<compile_context>
chip_gen: v5e
topology: v5e:2x2
jax: 0.10.0
libtpu: 0.0.40
codegen_flags: <defaults>
</compile_context>

<pallas_src>
import functools
import math

import jax
import jax.numpy as jnp
from jax.experimental import pallas as pl
from jax.experimental.pallas import tpu as pltpu

# ---------- small config (scaled down from Generator(16000, token_hz=50)) ----------
FRAME_LEN = 32       # torch: 320
E1_DIM = 16          # torch: 768
E2_DIM = 32          # torch: 1024 (encoder transformer dim)
D1_DIM = 32          # torch: 1024 (decoder transformer dim)
D2_DIM = 16          # torch: 768
CODEBOOK_DIM = 8     # torch: 16
CODEBOOK_SIZE = 64   # torch: 131072
N_HEADS = 2          # torch: 16
N_LAYERS = 2         # torch: 8
FFN_HIDDEN = 64
ENC_WINDOW = (4, 0)  # torch: [32, 0]
DEC_WINDOW = (4, 1)  # torch: [32, 2]

NEG_INF = -1e30

# Fixed operand order for the single fused kernel.
_PARAM_ORDER = (
    "enc_l1_w", "enc_l2_w", "enc_l2_b",
    "enc_attn_norm", "enc_wq", "enc_wk", "enc_wv", "enc_wo",
    "enc_ffn_norm", "enc_w1", "enc_w3", "enc_w2",
    "enc_final_norm", "enc_out_w", "enc_out_b",
    "codebook", "cb_proj_w", "cb_proj_b",
    "dec_in_w", "dec_in_b",
    "dec_attn_norm", "dec_wq", "dec_wk", "dec_wv", "dec_wo",
    "dec_ffn_norm", "dec_w1", "dec_w3", "dec_w2",
    "dec_final_norm", "dec_l1_w", "dec_l1_b", "dec_l2_w",
)
_WEIGHT_ORDER = _PARAM_ORDER + ("rope_cos", "rope_sin")


# ============================ fused Pallas kernel ============================

def _generator_kernel(x_ref, *refs, n_heads, n_layers, enc_window, dec_window):
    """Full pad->encode->quantize->decode forward for one batch element."""
    nw = len(_WEIGHT_ORDER)
    w = dict(zip(_WEIGHT_ORDER, refs[:nw]))
    xhat_ref, idx_ref, lvq_ref, lze_ref = refs[nw:]

    cos = w["rope_cos"][...]                                   # (T, Dh) f32
    sin = w["rope_sin"][...]
    T, Dh = cos.shape
    half = Dh // 2
    scale = 1.0 / math.sqrt(Dh)

    def rmsnorm(x, g):
        var = jnp.mean(x * x, axis=-1, keepdims=True)
        return x * jax.lax.rsqrt(var + 1e-6) * g

    def rope(t):
        rot = jnp.concatenate([-t[:, half:], t[:, :half]], axis=-1)
        return t * cos + rot * sin

    def window_allowed(window):
        left, right = window
        ri = jax.lax.broadcasted_iota(jnp.int32, (T, T), 0)
        ci = jax.lax.broadcasted_iota(jnp.int32, (T, T), 1)
        return ((ri - ci) <= left) & ((ci - ri) <= right)

    def tf_stack(x, pre, allowed):
        """n_layers pre-norm layers; residual stays f32 in registers/VMEM."""
        an = w[pre + "attn_norm"]
        wq, wk, wv, wo = w[pre + "wq"], w[pre + "wk"], w[pre + "wv"], w[pre + "wo"]
        fn = w[pre + "ffn_norm"]
        w1, w3, w2 = w[pre + "w1"], w[pre + "w3"], w[pre + "w2"]
        for l in range(n_layers):                              # static unroll
            # ---- attention block (per-head weight slices, no lane slicing) ----
            hb = rmsnorm(x, an[l]).astype(jnp.bfloat16)
            attn = jnp.zeros_like(x)
            for hh in range(n_heads):
                q = jnp.dot(hb, wq[l, hh], preferred_element_type=jnp.float32)
                k = jnp.dot(hb, wk[l, hh], preferred_element_type=jnp.float32)
                v = jnp.dot(hb, wv[l, hh], preferred_element_type=jnp.float32)
                # per-head qk L2-norm (use_qk_norm='head')
                q = q * jax.lax.rsqrt(jnp.sum(q * q, axis=-1, keepdims=True) + 1e-6)
                k = k * jax.lax.rsqrt(jnp.sum(k * k, axis=-1, keepdims=True) + 1e-6)
                q = rope(q)
                k = rope(k)
                s = jax.lax.dot_general(
                    q.astype(jnp.bfloat16), k.astype(jnp.bfloat16),
                    (((1,), (1,)), ((), ())),
                    preferred_element_type=jnp.float32) * scale
                s = jnp.where(allowed, s, NEG_INF)             # window mask (select)
                m = jnp.max(s, axis=-1, keepdims=True)
                p = jnp.exp(s - m)
                p = p * pl.reciprocal(jnp.sum(p, axis=-1, keepdims=True), approx=True)
                o = jnp.dot(p.astype(jnp.bfloat16), v.astype(jnp.bfloat16),
                            preferred_element_type=jnp.float32)
                attn = attn + jnp.dot(o.astype(jnp.bfloat16), wo[l, hh],
                                      preferred_element_type=jnp.float32)
            x = x + attn
            # ---- SwiGLU FFN block (separate gate/up, silu on EUP) ----
            hb = rmsnorm(x, fn[l]).astype(jnp.bfloat16)
            g = jnp.dot(hb, w1[l], preferred_element_type=jnp.float32)
            u = jnp.dot(hb, w3[l], preferred_element_type=jnp.float32)
            gate = g * pl.reciprocal(1.0 + jnp.exp(-g), approx=True) * u
            x = x + jnp.dot(gate.astype(jnp.bfloat16), w2[l],
                            preferred_element_type=jnp.float32)
        return x

    # ---------------- Encoder ----------------
    frames = x_ref[0].astype(jnp.bfloat16)                     # (T, FRAME_LEN)
    h = jnp.dot(frames, w["enc_l1_w"][...], preferred_element_type=jnp.float32)
    h = (jnp.dot(h.astype(jnp.bfloat16), w["enc_l2_w"][...],
                 preferred_element_type=jnp.float32)
         + w["enc_l2_b"][...].astype(jnp.float32))              # (T, E2) f32
    x = tf_stack(h, "enc_", window_allowed(enc_window))
    ze = rmsnorm(x, w["enc_final_norm"][...])
    ze = (jnp.dot(ze.astype(jnp.bfloat16), w["enc_out_w"][...],
                  preferred_element_type=jnp.float32)
          + w["enc_out_b"][...].astype(jnp.float32))            # (T, CD) f32

    # ---------------- Vector quantize (whole codebook, fused losses) --------
    cbp = jnp.dot(w["codebook"][...], w["cb_proj_w"][...],
                  preferred_element_type=jnp.float32)
    cbp = cbp + w["cb_proj_b"][...].astype(jnp.float32)         # (C, CD) f32
    C = cbp.shape[0]
    c2 = jnp.sum(cbp * cbp, axis=1)[None, :]                    # (1, C)
    cross = jax.lax.dot_general(ze, cbp, (((1,), (1,)), ((), ())),
                                preferred_element_type=jnp.float32)   # (T, C)
    dist = c2 - 2.0 * cross           # ||z_e||^2 dropped: constant per row
    minv = jnp.min(dist, axis=1, keepdims=True)
    col = jax.lax.broadcasted_iota(jnp.int32, dist.shape, 1)
    idx = jnp.min(jnp.where(dist == minv, col, jnp.int32(C)),
                  axis=1, keepdims=True)                        # (T, 1) first-min
    sel = (col == idx).astype(jnp.float32)                      # one-hot, no gather
    zq = jnp.dot(sel, cbp, preferred_element_type=jnp.float32)  # (T, CD) f32

    idx_ref[0] = idx
    # per-batch partial sums; reduced / scaled outside the kernel
    lvq_ref[0] = jnp.sum(jnp.sum(jnp.abs(zq - ze), axis=1, keepdims=True),
                         axis=0, keepdims=True)
    lze_ref[0] = jnp.sum(jnp.sum(ze * ze, axis=1, keepdims=True),
                         axis=0, keepdims=True)

    # ---------------- Decoder ----------------
    x = (jnp.dot(zq.astype(jnp.bfloat16), w["dec_in_w"][...],
                 preferred_element_type=jnp.float32)
         + w["dec_in_b"][...].astype(jnp.float32))              # (T, D1) f32
    x = tf_stack(x, "dec_", window_allowed(dec_window))
    h = rmsnorm(x, w["dec_final_norm"][...])
    y = (jnp.dot(h.astype(jnp.bfloat16), w["dec_l1_w"][...],
                 preferred_element_type=jnp.float32)
         + w["dec_l1_b"][...].astype(jnp.float32))
    y = jnp.dot(y.astype(jnp.bfloat16), w["dec_l2_w"][...],
                preferred_element_type=jnp.float32)             # (T, FRAME_LEN) f32
    xhat_ref[0] = y


# ============================ wrapper (single pallas_call) ============================

def make_rope(T, dh):
    half = dh // 2
    inv = 1.0 / (10000.0 ** (jnp.arange(half, dtype=jnp.float32) / half))
    ang = jnp.arange(T, dtype=jnp.float32)[:, None] * inv[None, :]
    cos = jnp.concatenate([jnp.cos(ang), jnp.cos(ang)], axis=-1)
    sin = jnp.concatenate([jnp.sin(ang), jnp.sin(ang)], axis=-1)
    return cos, sin


def generator_forward(params, x):
    """Mirrors Generator.forward: pad -> encode -> quantize -> decode."""
    B, L = x.shape
    T = math.ceil(L / FRAME_LEN)
    pad = T * FRAME_LEN - L
    x = jnp.pad(x, ((0, 0), (0, pad)))
    frames = x.reshape(B, T, FRAME_LEN)

    dh = E2_DIM // N_HEADS
    assert D1_DIM // N_HEADS == dh
    cos, sin = make_rope(T, dh)
    w_arrays = [params[name] for name in _PARAM_ORDER] + [cos, sin]

    def _const_spec(arr):
        nd = arr.ndim
        return pl.BlockSpec(arr.shape, lambda b, _n=nd: (0,) * _n)

    kern = functools.partial(_generator_kernel, n_heads=N_HEADS,
                             n_layers=N_LAYERS,
                             enc_window=ENC_WINDOW, dec_window=DEC_WINDOW)

    xhat, idx, lvq_p, lze_p = pl.pallas_call(
        kern,
        out_shape=(
            jax.ShapeDtypeStruct((B, T, FRAME_LEN), jnp.float32),
            jax.ShapeDtypeStruct((B, T, 1), jnp.int32),
            jax.ShapeDtypeStruct((B, 1, 1), jnp.float32),
            jax.ShapeDtypeStruct((B, 1, 1), jnp.float32),
        ),
        grid_spec=pltpu.PrefetchScalarGridSpec(
            num_scalar_prefetch=0,
            grid=(B,),                                          # one step per batch elem
            in_specs=[pl.BlockSpec((1, T, FRAME_LEN), lambda b: (b, 0, 0))]
                     + [_const_spec(a) for a in w_arrays],
            out_specs=(pl.BlockSpec((1, T, FRAME_LEN), lambda b: (b, 0, 0)),
                       pl.BlockSpec((1, T, 1), lambda b: (b, 0, 0)),
                       pl.BlockSpec((1, 1, 1), lambda b: (b, 0, 0)),
                       pl.BlockSpec((1, 1, 1), lambda b: (b, 0, 0)))),
        compiler_params=pltpu.CompilerParams(
            dimension_semantics=("parallel",),                  # both TCs on v7x
            vmem_limit_bytes=32 * 1024 * 1024),
    )(frames, *w_arrays)

    x_hat = xhat.reshape(B, 1, T * FRAME_LEN)                   # f32
    indices = idx[:, :, 0]                                      # (B, T) int32
    denom = float(B * T * CODEBOOK_DIM)
    # loss_vq = l1(z_q, z_e) + 0.25 * l1(z_e, z_q)  (same forward value)
    loss_vq = 1.25 * jnp.sum(lvq_p) / denom
    loss_ze = jnp.sum(lze_p) / denom
    return x_hat, loss_vq, loss_ze, indices


# ============================ deterministic init (weights pre-cast to bf16) ====

def _dense(key, shape, scale=0.02):
    return (scale * jax.random.normal(key, shape, jnp.float32)).astype(jnp.bfloat16)


def _stack_params(key, dim, hidden, prefix):
    dh = dim // N_HEADS
    ks = jax.random.split(key, 7)
    return {
        prefix + "attn_norm": jnp.ones((N_LAYERS, 1, dim), jnp.float32),
        prefix + "ffn_norm": jnp.ones((N_LAYERS, 1, dim), jnp.float32),
        prefix + "wq": _dense(ks[0], (N_LAYERS, N_HEADS, dim, dh)),
        prefix + "wk": _dense(ks[1], (N_LAYERS, N_HEADS, dim, dh)),
        prefix + "wv": _dense(ks[2], (N_LAYERS, N_HEADS, dim, dh)),
        prefix + "wo": _dense(ks[3], (N_LAYERS, N_HEADS, dh, dim)),
        prefix + "w1": _dense(ks[4], (N_LAYERS, dim, hidden)),   # gate proj
        prefix + "w3": _dense(ks[5], (N_LAYERS, dim, hidden)),   # up proj
        prefix + "w2": _dense(ks[6], (N_LAYERS, hidden, dim)),   # down proj
    }


def init_params(key):
    keys = jax.random.split(key, 12)
    params = {}
    params.update(_stack_params(keys[0], E2_DIM, FFN_HIDDEN, "enc_"))
    params.update(_stack_params(keys[1], D1_DIM, FFN_HIDDEN, "dec_"))
    params.update({
        # Encoder
        "enc_l1_w": _dense(keys[2], (FRAME_LEN, E1_DIM)),
        "enc_l2_w": _dense(keys[3], (E1_DIM, E2_DIM)),
        "enc_l2_b": jnp.zeros((1, E2_DIM), jnp.bfloat16),
        "enc_final_norm": jnp.ones((1, E2_DIM), jnp.float32),
        "enc_out_w": _dense(keys[4], (E2_DIM, CODEBOOK_DIM)),
        "enc_out_b": jnp.zeros((1, CODEBOOK_DIM), jnp.bfloat16),
        # VectorQuantize
        "codebook": _dense(keys[5], (CODEBOOK_SIZE, CODEBOOK_DIM), scale=1.0),
        "cb_proj_w": _dense(keys[6], (CODEBOOK_DIM, CODEBOOK_DIM)),
        "cb_proj_b": jnp.zeros((1, CODEBOOK_DIM), jnp.bfloat16),
        # Decoder
        "dec_in_w": _dense(keys[7], (CODEBOOK_DIM, D1_DIM)),
        "dec_in_b": jnp.zeros((1, D1_DIM), jnp.bfloat16),
        "dec_final_norm": jnp.ones((1, D1_DIM), jnp.float32),
        "dec_l1_w": _dense(keys[8], (D1_DIM, D2_DIM)),
        "dec_l1_b": jnp.zeros((1, D2_DIM), jnp.bfloat16),
        "dec_l2_w": _dense(keys[9], (D2_DIM, FRAME_LEN)),
    })
    return params


# ============================ main ============================

if __name__ == "__main__":
    root = jax.random.PRNGKey(0)
    pkey, xkey = jax.random.split(root)
    params = init_params(pkey)

    B, L = 2, 250                                    # pads to T=8 frames of 32 samples
    x = 0.1 * jax.random.normal(xkey, (B, L), jnp.float32)   # (B, L) mono audio

    fwd = jax.jit(generator_forward)
    x_hat, loss_vq, loss_ze, indices = fwd(params, x)
    jax.block_until_ready((x_hat, loss_vq, loss_ze, indices))

    T = math.ceil(L / FRAME_LEN)
    assert x_hat.shape == (B, 1, T * FRAME_LEN) and x_hat.dtype == jnp.float32
    assert indices.shape == (B, T) and indices.dtype == jnp.int32
    assert loss_vq.shape == () and loss_ze.shape == ()
    print("KERNEL_OK")
</pallas_src>

<mosaic_0001>
module attributes {stable_mosaic.version = 11 : i64} {
  func.func @_generator_kernel(%arg0: i32, %arg1: memref<1x8x32xf32, #tpu.memory_space<vmem>>, %arg2: memref<32x16xbf16, #tpu.memory_space<vmem>>, %arg3: memref<16x32xbf16, #tpu.memory_space<vmem>>, %arg4: memref<1x32xbf16, #tpu.memory_space<vmem>>, %arg5: memref<2x1x32xf32, #tpu.memory_space<vmem>>, %arg6: memref<2x2x32x16xbf16, #tpu.memory_space<vmem>>, %arg7: memref<2x2x32x16xbf16, #tpu.memory_space<vmem>>, %arg8: memref<2x2x32x16xbf16, #tpu.memory_space<vmem>>, %arg9: memref<2x2x16x32xbf16, #tpu.memory_space<vmem>>, %arg10: memref<2x1x32xf32, #tpu.memory_space<vmem>>, %arg11: memref<2x32x64xbf16, #tpu.memory_space<vmem>>, %arg12: memref<2x32x64xbf16, #tpu.memory_space<vmem>>, %arg13: memref<2x64x32xbf16, #tpu.memory_space<vmem>>, %arg14: memref<1x32xf32, #tpu.memory_space<vmem>>, %arg15: memref<32x8xbf16, #tpu.memory_space<vmem>>, %arg16: memref<1x8xbf16, #tpu.memory_space<vmem>>, %arg17: memref<64x8xbf16, #tpu.memory_space<vmem>>, %arg18: memref<8x8xbf16, #tpu.memory_space<vmem>>, %arg19: memref<1x8xbf16, #tpu.memory_space<vmem>>, %arg20: memref<8x32xbf16, #tpu.memory_space<vmem>>, %arg21: memref<1x32xbf16, #tpu.memory_space<vmem>>, %arg22: memref<2x1x32xf32, #tpu.memory_space<vmem>>, %arg23: memref<2x2x32x16xbf16, #tpu.memory_space<vmem>>, %arg24: memref<2x2x32x16xbf16, #tpu.memory_space<vmem>>, %arg25: memref<2x2x32x16xbf16, #tpu.memory_space<vmem>>, %arg26: memref<2x2x16x32xbf16, #tpu.memory_space<vmem>>, %arg27: memref<2x1x32xf32, #tpu.memory_space<vmem>>, %arg28: memref<2x32x64xbf16, #tpu.memory_space<vmem>>, %arg29: memref<2x32x64xbf16, #tpu.memory_space<vmem>>, %arg30: memref<2x64x32xbf16, #tpu.memory_space<vmem>>, %arg31: memref<1x32xf32, #tpu.memory_space<vmem>>, %arg32: memref<32x16xbf16, #tpu.memory_space<vmem>>, %arg33: memref<1x16xbf16, #tpu.memory_space<vmem>>, %arg34: memref<16x32xbf16, #tpu.memory_space<vmem>>, %arg35: memref<8x16xf32, #tpu.memory_space<vmem>>, %arg36: memref<8x16xf32, #tpu.memory_space<vmem>>, %arg37: memref<1x8x32xf32, #tpu.memory_space<vmem>>, %arg38: memref<1x8x1xi32, #tpu.memory_space<vmem>>, %arg39: memref<1x1x1xf32, #tpu.memory_space<vmem>>, %arg40: memref<1x1x1xf32, #tpu.memory_space<vmem>>) attributes {dimension_semantics = [#tpu.dimension_semantics<parallel>], iteration_bounds = array<i64: 2>, scalar_prefetch = 0 : i64, scratch_operands = 0 : i64, tpu.core_type = #tpu.core_type<tc>, window_params = [{transform_indices = @transform_0, window_bounds = array<i64: 1, 8, 32>}, {pipeline_mode = #tpu.pipeline_mode<synchronous>, transform_indices = @transform_1, window_bounds = array<i64: 32, 16>}, {pipeline_mode = #tpu.pipeline_mode<synchronous>, transform_indices = @transform_2, window_bounds = array<i64: 16, 32>}, {pipeline_mode = #tpu.pipeline_mode<synchronous>, transform_indices = @transform_3, window_bounds = array<i64: 1, 32>}, {pipeline_mode = #tpu.pipeline_mode<synchronous>, transform_indices = @transform_4, window_bounds = array<i64: 2, 1, 32>}, {pipeline_mode = #tpu.pipeline_mode<synchronous>, transform_indices = @transform_5, window_bounds = array<i64: 2, 2, 32, 16>}, {pipeline_mode = #tpu.pipeline_mode<synchronous>, transform_indices = @transform_6, window_bounds = array<i64: 2, 2, 32, 16>}, {pipeline_mode = #tpu.pipeline_mode<synchronous>, transform_indices = @transform_7, window_bounds = array<i64: 2, 2, 32, 16>}, {pipeline_mode = #tpu.pipeline_mode<synchronous>, transform_indices = @transform_8, window_bounds = array<i64: 2, 2, 16, 32>}, {pipeline_mode = #tpu.pipeline_mode<synchronous>, transform_indices = @transform_9, window_bounds = array<i64: 2, 1, 32>}, {pipeline_mode = #tpu.pipeline_mode<synchronous>, transform_indices = @transform_10, window_bounds = array<i64: 2, 32, 64>}, {pipeline_mode = #tpu.pipeline_mode<synchronous>, transform_indices = @transform_11, window_bounds = array<i64: 2, 32, 64>}, {pipeline_mode = #tpu.pipeline_mode<synchronous>, transform_indices = @transform_12, window_bounds = array<i64: 2, 64, 32>}, {pipeline_mode = #tpu.pipeline_mode<synchronous>, transform_indices = @transform_13, window_bounds = array<i64: 1, 32>}, {pipeline_mode = #tpu.pipeline_mode<synchronous>, transform_indices = @transform_14, window_bounds = array<i64: 32, 8>}, {pipeline_mode = #tpu.pipeline_mode<synchronous>, transform_indices = @transform_15, window_bounds = array<i64: 1, 8>}, {pipeline_mode = #tpu.pipeline_mode<synchronous>, transform_indices = @transform_16, window_bounds = array<i64: 64, 8>}, {pipeline_mode = #tpu.pipeline_mode<synchronous>, transform_indices = @transform_17, window_bounds = array<i64: 8, 8>}, {pipeline_mode = #tpu.pipeline_mode<synchronous>, transform_indices = @transform_18, window_bounds = array<i64: 1, 8>}, {pipeline_mode = #tpu.pipeline_mode<synchronous>, transform_indices = @transform_19, window_bounds = array<i64: 8, 32>}, {pipeline_mode = #tpu.pipeline_mode<synchronous>, transform_indices = @transform_20, window_bounds = array<i64: 1, 32>}, {pipeline_mode = #tpu.pipeline_mode<synchronous>, transform_indices = @transform_21, window_bounds = array<i64: 2, 1, 32>}, {pipeline_mode = #tpu.pipeline_mode<synchronous>, transform_indices = @transform_22, window_bounds = array<i64: 2, 2, 32, 16>}, {pipeline_mode = #tpu.pipeline_mode<synchronous>, transform_indices = @transform_23, window_bounds = array<i64: 2, 2, 32, 16>}, {pipeline_mode = #tpu.pipeline_mode<synchronous>, transform_indices = @transform_24, window_bounds = array<i64: 2, 2, 32, 16>}, {pipeline_mode = #tpu.pipeline_mode<synchronous>, transform_indices = @transform_25, window_bounds = array<i64: 2, 2, 16, 32>}, {pipeline_mode = #tpu.pipeline_mode<synchronous>, transform_indices = @transform_26, window_bounds = array<i64: 2, 1, 32>}, {pipeline_mode = #tpu.pipeline_mode<synchronous>, transform_indices = @transform_27, window_bounds = array<i64: 2, 32, 64>}, {pipeline_mode = #tpu.pipeline_mode<synchronous>, transform_indices = @transform_28, window_bounds = array<i64: 2, 32, 64>}, {pipeline_mode = #tpu.pipeline_mode<synchronous>, transform_indices = @transform_29, window_bounds = array<i64: 2, 64, 32>}, {pipeline_mode = #tpu.pipeline_mode<synchronous>, transform_indices = @transform_30, window_bounds = array<i64: 1, 32>}, {pipeline_mode = #tpu.pipeline_mode<synchronous>, transform_indices = @transform_31, window_bounds = array<i64: 32, 16>}, {pipeline_mode = #tpu.pipeline_mode<synchronous>, transform_indices = @transform_32, window_bounds = array<i64: 1, 16>}, {pipeline_mode = #tpu.pipeline_mode<synchronous>, transform_indices = @transform_33, window_bounds = array<i64: 16, 32>}, {pipeline_mode = #tpu.pipeline_mode<synchronous>, transform_indices = @transform_34, window_bounds = array<i64: 8, 16>}, {pipeline_mode = #tpu.pipeline_mode<synchronous>, transform_indices = @transform_35, window_bounds = array<i64: 8, 16>}, {transform_indices = @transform_36, window_bounds = array<i64: 1, 8, 32>}, {transform_indices = @transform_37, window_bounds = array<i64: 1, 8, 1>}, {transform_indices = @transform_38, window_bounds = array<i64: 1, 1, 1>}, {transform_indices = @transform_39, window_bounds = array<i64: 1, 1, 1>}]} {
    %c0 = arith.constant 0 : index
    %c0_0 = arith.constant 0 : index
    %0 = vector.load %arg35[%c0, %c0_0] : memref<8x16xf32, #tpu.memory_space<vmem>>, vector<8x16xf32>
    %c0_1 = arith.constant 0 : index
    %c0_2 = arith.constant 0 : index
    %1 = vector.load %arg36[%c0_1, %c0_2] : memref<8x16xf32, #tpu.memory_space<vmem>>, vector<8x16xf32>
    %c0_3 = arith.constant 0 : index
    %c0_4 = arith.constant 0 : index
    %c0_5 = arith.constant 0 : index
    %2 = vector.load %arg1[%c0_3, %c0_4, %c0_5] : memref<1x8x32xf32, #tpu.memory_space<vmem>>, vector<1x8x32xf32>
    %3 = vector.shape_cast %2 : vector<1x8x32xf32> to vector<8x32xf32>
    %4 = arith.truncf %3 : vector<8x32xf32> to vector<8x32xbf16>
    %c0_6 = arith.constant 0 : index
    %c0_7 = arith.constant 0 : index
    %5 = vector.load %arg2[%c0_6, %c0_7] : memref<32x16xbf16, #tpu.memory_space<vmem>>, vector<32x16xbf16>
    %cst = arith.constant dense<0.000000e+00> : vector<8x16xf32>
    %6 = tpu.matmul %4, %5, %cst {dimension_numbers = #tpu.dot_dimension_numbers<[1], [0], [0], [1], [0, 0, 1, 1], [], []>} : vector<8x32xbf16>, vector<32x16xbf16>, vector<8x16xf32> -> vector<8x16xf32>
    %7 = arith.truncf %6 : vector<8x16xf32> to vector<8x16xbf16>
    %c0_8 = arith.constant 0 : index
    %c0_9 = arith.constant 0 : index
    %8 = vector.load %arg3[%c0_8, %c0_9] : memref<16x32xbf16, #tpu.memory_space<vmem>>, vector<16x32xbf16>
    %cst_10 = arith.constant dense<0.000000e+00> : vector<8x32xf32>
    %9 = tpu.matmul %7, %8, %cst_10 {dimension_numbers = #tpu.dot_dimension_numbers<[1], [0], [0], [1], [0, 0, 1, 1], [], []>} : vector<8x16xbf16>, vector<16x32xbf16>, vector<8x32xf32> -> vector<8x32xf32>
    %c0_11 = arith.constant 0 : index
    %c0_12 = arith.constant 0 : index
    %10 = vector.load %arg4[%c0_11, %c0_12] : memref<1x32xbf16, #tpu.memory_space<vmem>>, vector<1x32xbf16>
    %11 = arith.extf %10 : vector<1x32xbf16> to vector<1x32xf32>
    %12 = vector.broadcast %11 : vector<1x32xf32> to vector<8x32xf32>
    %13 = arith.addf %9, %12 : vector<8x32xf32>
    %14 = tpu.iota {dimensions = array<i32: 0>} : vector<8x8xi32>
    %15 = tpu.iota {dimensions = array<i32: 1>} : vector<8x8xi32>
    %16 = arith.subi %14, %15 : vector<8x8xi32>
    %c4_i32 = arith.constant 4 : i32
    %17 = vector.broadcast %c4_i32 : i32 to vector<8x8xi32>
    %18 = arith.cmpi sle, %16, %17 : vector<8x8xi32>
    %19 = arith.subi %15, %14 : vector<8x8xi32>
    %c0_i32 = arith.constant 0 : i32
    %20 = vector.broadcast %c0_i32 : i32 to vector<8x8xi32>
    %21 = arith.cmpi sle, %19, %20 : vector<8x8xi32>
    %22 = arith.andi %18, %21 : vector<8x8xi1>
    %c0_13 = arith.constant 0 : index
    %c0_14 = arith.constant 0 : index
    %c0_15 = arith.constant 0 : index
    %23 = vector.load %arg5[%c0_13, %c0_14, %c0_15] : memref<2x1x32xf32, #tpu.memory_space<vmem>>, vector<1x1x32xf32>
    %24 = vector.shape_cast %23 : vector<1x1x32xf32> to vector<1x32xf32>
    %25 = arith.mulf %13, %13 : vector<8x32xf32>
    %cst_16 = arith.constant dense<0.000000e+00> : vector<8xf32>
    %26 = vector.multi_reduction <add>, %25, %cst_16 [1] : vector<8x32xf32> to vector<8xf32>
    %27 = vector.shape_cast %26 : vector<8xf32> to vector<8x1xf32>
    %cst_17 = arith.constant 3.200000e+01 : f32
    %28 = vector.broadcast %cst_17 : f32 to vector<8x1xf32>
    %29 = arith.divf %27, %28 : vector<8x1xf32>
    %cst_18 = arith.constant 9.99999997E-7 : f32
    %30 = vector.broadcast %cst_18 : f32 to vector<8x1xf32>
    %31 = arith.addf %29, %30 : vector<8x1xf32>
    %32 = math.rsqrt %31 : vector<8x1xf32>
    %33 = vector.broadcast %32 : vector<8x1xf32> to vector<8x32xf32>
    %34 = arith.mulf %13, %33 : vector<8x32xf32>
    %35 = vector.broadcast %24 : vector<1x32xf32> to vector<8x32xf32>
    %36 = arith.mulf %34, %35 : vector<8x32xf32>
    %37 = arith.truncf %36 : vector<8x32xf32> to vector<8x32xbf16>
    %cst_19 = arith.constant 0.000000e+00 : f32
    %38 = vector.broadcast %cst_19 : f32 to vector<8x32xf32>
    %c0_20 = arith.constant 0 : index
    %c0_21 = arith.constant 0 : index
    %c0_22 = arith.constant 0 : index
    %c0_23 = arith.constant 0 : index
    %39 = vector.load %arg6[%c0_20, %c0_21, %c0_22, %c0_23] : memref<2x2x32x16xbf16, #tpu.memory_space<vmem>>, vector<1x1x32x16xbf16>
    %40 = vector.shape_cast %39 : vector<1x1x32x16xbf16> to vector<32x16xbf16>
    %cst_24 = arith.constant dense<0.000000e+00> : vector<8x16xf32>
    %41 = tpu.matmul %37, %40, %cst_24 {dimension_numbers = #tpu.dot_dimension_numbers<[1], [0], [0], [1], [0, 0, 1, 1], [], []>} : vector<8x32xbf16>, vector<32x16xbf16>, vector<8x16xf32> -> vector<8x16xf32>
    %c0_25 = arith.constant 0 : index
    %c0_26 = arith.constant 0 : index
    %c0_27 = arith.constant 0 : index
    %c0_28 = arith.constant 0 : index
    %42 = vector.load %arg7[%c0_25, %c0_26, %c0_27, %c0_28] : memref<2x2x32x16xbf16, #tpu.memory_space<vmem>>, vector<1x1x32x16xbf16>
    %43 = vector.shape_cast %42 : vector<1x1x32x16xbf16> to vector<32x16xbf16>
    %cst_29 = arith.constant dense<0.000000e+00> : vector<8x16xf32>
    %44 = tpu.matmul %37, %43, %cst_29 {dimension_numbers = #tpu.dot_dimension_numbers<[1], [0], [0], [1], [0, 0, 1, 1], [], []>} : vector<8x32xbf16>, vector<32x16xbf16>, vector<8x16xf32> -> vector<8x16xf32>
    %c0_30 = arith.constant 0 : index
    %c0_31 = arith.constant 0 : index
    %c0_32 = arith.constant 0 : index
    %c0_33 = arith.constant 0 : index
    %45 = vector.load %arg8[%c0_30, %c0_31, %c0_32, %c0_33] : memref<2x2x32x16xbf16, #tpu.memory_space<vmem>>, vector<1x1x32x16xbf16>
    %46 = vector.shape_cast %45 : vector<1x1x32x16xbf16> to vector<32x16xbf16>
    %cst_34 = arith.constant dense<0.000000e+00> : vector<8x16xf32>
    %47 = tpu.matmul %37, %46, %cst_34 {dimension_numbers = #tpu.dot_dimension_numbers<[1], [0], [0], [1], [0, 0, 1, 1], [], []>} : vector<8x32xbf16>, vector<32x16xbf16>, vector<8x16xf32> -> vector<8x16xf32>
    %48 = arith.mulf %41, %41 : vector<8x16xf32>
    %cst_35 = arith.constant dense<0.000000e+00> : vector<8xf32>
    %49 = vector.multi_reduction <add>, %48, %cst_35 [1] : vector<8x16xf32> to vector<8xf32>
    %50 = vector.shape_cast %49 : vector<8xf32> to vector<8x1xf32>
    %cst_36 = arith.constant 9.99999997E-7 : f32
    %51 = vector.broadcast %cst_36 : f32 to vector<8x1xf32>
    %52 = arith.addf %50, %51 : vector<8x1xf32>
    %53 = math.rsqrt %52 : vector<8x1xf32>
    %54 = vector.broadcast %53 : vector<8x1xf32> to vector<8x16xf32>
    %55 = arith.mulf %41, %54 : vector<8x16xf32>
    %56 = arith.mulf %44, %44 : vector<8x16xf32>
    %cst_37 = arith.constant dense<0.000000e+00> : vector<8xf32>
    %57 = vector.multi_reduction <add>, %56, %cst_37 [1] : vector<8x16xf32> to vector<8xf32>
    %58 = vector.shape_cast %57 : vector<8xf32> to vector<8x1xf32>
    %cst_38 = arith.constant 9.99999997E-7 : f32
    %59 = vector.broadcast %cst_38 : f32 to vector<8x1xf32>
    %60 = arith.addf %58, %59 : vector<8x1xf32>
    %61 = math.rsqrt %60 : vector<8x1xf32>
    %62 = vector.broadcast %61 : vector<8x1xf32> to vector<8x16xf32>
    %63 = arith.mulf %44, %62 : vector<8x16xf32>
    %64 = vector.extract_strided_slice %55 {offsets = [0, 8], sizes = [8, 8], strides = [1, 1]} : vector<8x16xf32> to vector<8x8xf32>
    %cst_39 = arith.constant 0.000000e+00 : f32
    %65 = vector.broadcast %cst_39 : f32 to vector<8x8xf32>
    %66 = arith.subf %65, %64 : vector<8x8xf32>
    %67 = vector.extract_strided_slice %55 {offsets = [0, 0], sizes = [8, 8], strides = [1, 1]} : vector<8x16xf32> to vector<8x8xf32>
    %68 = tpu.concatenate %66, %67 in 1 : vector<8x8xf32>, vector<8x8xf32> -> vector<8x16xf32>
    %69 = arith.mulf %55, %0 : vector<8x16xf32>
    %70 = arith.mulf %68, %1 : vector<8x16xf32>
    %71 = arith.addf %69, %70 : vector<8x16xf32>
    %72 = vector.extract_strided_slice %63 {offsets = [0, 8], sizes = [8, 8], strides = [1, 1]} : vector<8x16xf32> to vector<8x8xf32>
    %cst_40 = arith.constant 0.000000e+00 : f32
    %73 = vector.broadcast %cst_40 : f32 to vector<8x8xf32>
    %74 = arith.subf %73, %72 : vector<8x8xf32>
    %75 = vector.extract_strided_slice %63 {offsets = [0, 0], sizes = [8, 8], strides = [1, 1]} : vector<8x16xf32> to vector<8x8xf32>
    %76 = tpu.concatenate %74, %75 in 1 : vector<8x8xf32>, vector<8x8xf32> -> vector<8x16xf32>
    %77 = arith.mulf %63, %0 : vector<8x16xf32>
    %78 = arith.mulf %76, %1 : vector<8x16xf32>
    %79 = arith.addf %77, %78 : vector<8x16xf32>
    %80 = arith.truncf %71 : vector<8x16xf32> to vector<8x16xbf16>
    %81 = arith.truncf %79 : vector<8x16xf32> to vector<8x16xbf16>
    %cst_41 = arith.constant dense<0.000000e+00> : vector<8x8xf32>
    %82 = tpu.matmul %80, %81, %cst_41 {dimension_numbers = #tpu.dot_dimension_numbers<[1], [1], [0], [0], [0, 0, 1, 0], [], []>} : vector<8x16xbf16>, vector<8x16xbf16>, vector<8x8xf32> -> vector<8x8xf32>
    %cst_42 = arith.constant 2.500000e-01 : f32
    %83 = vector.broadcast %cst_42 : f32 to vector<8x8xf32>
    %84 = arith.mulf %82, %83 : vector<8x8xf32>
    %cst_43 = arith.constant -1.000000e+30 : f32
    %85 = vector.broadcast %cst_43 : f32 to vector<8x8xf32>
    %86 = arith.select %22, %84, %85 : vector<8x8xi1>, vector<8x8xf32>
    %cst_44 = arith.constant dense<0xFF800000> : vector<8xf32>
    %87 = vector.multi_reduction <maximumf>, %86, %cst_44 [1] : vector<8x8xf32> to vector<8xf32>
    %88 = vector.shape_cast %87 : vector<8xf32> to vector<8x1xf32>
    %89 = vector.broadcast %88 : vector<8x1xf32> to vector<8x8xf32>
    %90 = arith.subf %86, %89 : vector<8x8xf32>
    %91 = math.exp %90 : vector<8x8xf32>
    %cst_45 = arith.constant dense<0.000000e+00> : vector<8xf32>
    %92 = vector.multi_reduction <add>, %91, %cst_45 [1] : vector<8x8xf32> to vector<8xf32>
    %93 = vector.shape_cast %92 : vector<8xf32> to vector<8x1xf32>
    %94 = tpu.reciprocal %93 {approx = true} : vector<8x1xf32> -> vector<8x1xf32>
    %95 = vector.broadcast %94 : vector<8x1xf32> to vector<8x8xf32>
    %96 = arith.mulf %91, %95 : vector<8x8xf32>
    %97 = arith.truncf %96 : vector<8x8xf32> to vector<8x8xbf16>
    %98 = arith.truncf %47 : vector<8x16xf32> to vector<8x16xbf16>
    %cst_46 = arith.constant dense<0.000000e+00> : vector<8x16xf32>
    %99 = tpu.matmul %97, %98, %cst_46 {dimension_numbers = #tpu.dot_dimension_numbers<[1], [0], [0], [1], [0, 0, 1, 1], [], []>} : vector<8x8xbf16>, vector<8x16xbf16>, vector<8x16xf32> -> vector<8x16xf32>
    %100 = arith.truncf %99 : vector<8x16xf32> to vector<8x16xbf16>
    %c0_47 = arith.constant 0 : index
    %c0_48 = arith.constant 0 : index
    %c0_49 = arith.constant 0 : index
    %c0_50 = arith.constant 0 : index
    %101 = vector.load %arg9[%c0_47, %c0_48, %c0_49, %c0_50] : memref<2x2x16x32xbf16, #tpu.memory_space<vmem>>, vector<1x1x16x32xbf16>
    %102 = vector.shape_cast %101 : vector<1x1x16x32xbf16> to vector<16x32xbf16>
    %cst_51 = arith.constant dense<0.000000e+00> : vector<8x32xf32>
    %103 = tpu.matmul %100, %102, %cst_51 {dimension_numbers = #tpu.dot_dimension_numbers<[1], [0], [0], [1], [0, 0, 1, 1], [], []>} : vector<8x16xbf16>, vector<16x32xbf16>, vector<8x32xf32> -> vector<8x32xf32>
    %104 = arith.addf %38, %103 : vector<8x32xf32>
    %c0_52 = arith.constant 0 : index
    %c1 = arith.constant 1 : index
    %c0_53 = arith.constant 0 : index
    %c0_54 = arith.constant 0 : index
    %105 = vector.load %arg6[%c0_52, %c1, %c0_53, %c0_54] : memref<2x2x32x16xbf16, #tpu.memory_space<vmem>>, vector<1x1x32x16xbf16>
    %106 = vector.shape_cast %105 : vector<1x1x32x16xbf16> to vector<32x16xbf16>
    %cst_55 = arith.constant dense<0.000000e+00> : vector<8x16xf32>
    %107 = tpu.matmul %37, %106, %cst_55 {dimension_numbers = #tpu.dot_dimension_numbers<[1], [0], [0], [1], [0, 0, 1, 1], [], []>} : vector<8x32xbf16>, vector<32x16xbf16>, vector<8x16xf32> -> vector<8x16xf32>
    %c0_56 = arith.constant 0 : index
    %c1_57 = arith.constant 1 : index
    %c0_58 = arith.constant 0 : index
    %c0_59 = arith.constant 0 : index
    %108 = vector.load %arg7[%c0_56, %c1_57, %c0_58, %c0_59] : memref<2x2x32x16xbf16, #tpu.memory_space<vmem>>, vector<1x1x32x16xbf16>
    %109 = vector.shape_cast %108 : vector<1x1x32x16xbf16> to vector<32x16xbf16>
    %cst_60 = arith.constant dense<0.000000e+00> : vector<8x16xf32>
    %110 = tpu.matmul %37, %109, %cst_60 {dimension_numbers = #tpu.dot_dimension_numbers<[1], [0], [0], [1], [0, 0, 1, 1], [], []>} : vector<8x32xbf16>, vector<32x16xbf16>, vector<8x16xf32> -> vector<8x16xf32>
    %c0_61 = arith.constant 0 : index
    %c1_62 = arith.constant 1 : index
    %c0_63 = arith.constant 0 : index
    %c0_64 = arith.constant 0 : index
    %111 = vector.load %arg8[%c0_61, %c1_62, %c0_63, %c0_64] : memref<2x2x32x16xbf16, #tpu.memory_space<vmem>>, vector<1x1x32x16xbf16>
    %112 = vector.shape_cast %111 : vector<1x1x32x16xbf16> to vector<32x16xbf16>
    %cst_65 = arith.constant dense<0.000000e+00> : vector<8x16xf32>
    %113 = tpu.matmul %37, %112, %cst_65 {dimension_numbers = #tpu.dot_dimension_numbers<[1], [0], [0], [1], [0, 0, 1, 1], [], []>} : vector<8x32xbf16>, vector<32x16xbf16>, vector<8x16xf32> -> vector<8x16xf32>
    %114 = arith.mulf %107, %107 : vector<8x16xf32>
    %cst_66 = arith.constant dense<0.000000e+00> : vector<8xf32>
    %115 = vector.multi_reduction <add>, %114, %cst_66 [1] : vector<8x16xf32> to vector<8xf32>
    %116 = vector.shape_cast %115 : vector<8xf32> to vector<8x1xf32>
    %cst_67 = arith.constant 9.99999997E-7 : f32
    %117 = vector.broadcast %cst_67 : f32 to vector<8x1xf32>
    %118 = arith.addf %116, %117 : vector<8x1xf32>
    %119 = math.rsqrt %118 : vector<8x1xf32>
    %120 = vector.broadcast %119 : vector<8x1xf32> to vector<8x16xf32>
    %121 = arith.mulf %107, %120 : vector<8x16xf32>
    %122 = arith.mulf %110, %110 : vector<8x16xf32>
    %cst_68 = arith.constant dense<0.000000e+00> : vector<8xf32>
    %123 = vector.multi_reduction <add>, %122, %cst_68 [1] : vector<8x16xf32> to vector<8xf32>
    %124 = vector.shape_cast %123 : vector<8xf32> to vector<8x1xf32>
    %cst_69 = arith.constant 9.99999997E-7 : f32
    %125 = vector.broadcast %cst_69 : f32 to vector<8x1xf32>
    %126 = arith.addf %124, %125 : vector<8x1xf32>
    %127 = math.rsqrt %126 : vector<8x1xf32>
    %128 = vector.broadcast %127 : vector<8x1xf32> to vector<8x16xf32>
    %129 = arith.mulf %110, %128 : vector<8x16xf32>
    %130 = vector.extract_strided_slice %121 {offsets = [0, 8], sizes = [8, 8], strides = [1, 1]} : vector<8x16xf32> to vector<8x8xf32>
    %cst_70 = arith.constant 0.000000e+00 : f32
    %131 = vector.broadcast %cst_70 : f32 to vector<8x8xf32>
    %132 = arith.subf %131, %130 : vector<8x8xf32>
    %133 = vector.extract_strided_slice %121 {offsets = [0, 0], sizes = [8, 8], strides = [1, 1]} : vector<8x16xf32> to vector<8x8xf32>
    %134 = tpu.concatenate %132, %133 in 1 : vector<8x8xf32>, vector<8x8xf32> -> vector<8x16xf32>
    %135 = arith.mulf %121, %0 : vector<8x16xf32>
    %136 = arith.mulf %134, %1 : vector<8x16xf32>
    %137 = arith.addf %135, %136 : vector<8x16xf32>
    %138 = vector.extract_strided_slice %129 {offsets = [0, 8], sizes = [8, 8], strides = [1, 1]} : vector<8x16xf32> to vector<8x8xf32>
    %cst_71 = arith.constant 0.000000e+00 : f32
    %139 = vector.broadcast %cst_71 : f32 to vector<8x8xf32>
    %140 = arith.subf %139, %138 : vector<8x8xf32>
    %141 = vector.extract_strided_slice %129 {offsets = [0, 0], sizes = [8, 8], strides = [1, 1]} : vector<8x16xf32> to vector<8x8xf32>
    %142 = tpu.concatenate %140, %141 in 1 : vector<8x8xf32>, vector<8x8xf32> -> vector<8x16xf32>
    %143 = arith.mulf %129, %0 : vector<8x16xf32>
    %144 = arith.mulf %142, %1 : vector<8x16xf32>
    %145 = arith.addf %143, %144 : vector<8x16xf32>
    %146 = arith.truncf %137 : vector<8x16xf32> to vector<8x16xbf16>
    %147 = arith.truncf %145 : vector<8x16xf32> to vector<8x16xbf16>
    %cst_72 = arith.constant dense<0.000000e+00> : vector<8x8xf32>
    %148 = tpu.matmul %146, %147, %cst_72 {dimension_numbers = #tpu.dot_dimension_numbers<[1], [1], [0], [0], [0, 0, 1, 0], [], []>} : vector<8x16xbf16>, vector<8x16xbf16>, vector<8x8xf32> -> vector<8x8xf32>
    %cst_73 = arith.constant 2.500000e-01 : f32
    %149 = vector.broadcast %cst_73 : f32 to vector<8x8xf32>
    %150 = arith.mulf %148, %149 : vector<8x8xf32>
    %cst_74 = arith.constant -1.000000e+30 : f32
    %151 = vector.broadcast %cst_74 : f32 to vector<8x8xf32>
    %152 = arith.select %22, %150, %151 : vector<8x8xi1>, vector<8x8xf32>
    %cst_75 = arith.constant dense<0xFF800000> : vector<8xf32>
    %153 = vector.multi_reduction <maximumf>, %152, %cst_75 [1] : vector<8x8xf32> to vector<8xf32>
    %154 = vector.shape_cast %153 : vector<8xf32> to vector<8x1xf32>
    %155 = vector.broadcast %154 : vector<8x1xf32> to vector<8x8xf32>
    %156 = arith.subf %152, %155 : vector<8x8xf32>
    %157 = math.exp %156 : vector<8x8xf32>
    %cst_76 = arith.constant dense<0.000000e+00> : vector<8xf32>
    %158 = vector.multi_reduction <add>, %157, %cst_76 [1] : vector<8x8xf32> to vector<8xf32>
    %159 = vector.shape_cast %158 : vector<8xf32> to vector<8x1xf32>
    %160 = tpu.reciprocal %159 {approx = true} : vector<8x1xf32> -> vector<8x1xf32>
    %161 = vector.broadcast %160 : vector<8x1xf32> to vector<8x8xf32>
    %162 = arith.mulf %157, %161 : vector<8x8xf32>
    %163 = arith.truncf %162 : vector<8x8xf32> to vector<8x8xbf16>
    %164 = arith.truncf %113 : vector<8x16xf32> to vector<8x16xbf16>
    %cst_77 = arith.constant dense<0.000000e+00> : vector<8x16xf32>
    %165 = tpu.matmul %163, %164, %cst_77 {dimension_numbers = #tpu.dot_dimension_numbers<[1], [0], [0], [1], [0, 0, 1, 1], [], []>} : vector<8x8xbf16>, vector<8x16xbf16>, vector<8x16xf32> -> vector<8x16xf32>
    %166 = arith.truncf %165 : vector<8x16xf32> to vector<8x16xbf16>
    %c0_78 = arith.constant 0 : index
    %c1_79 = arith.constant 1 : index
    %c0_80 = arith.constant 0 : index
    %c0_81 = arith.constant 0 : index
    %167 = vector.load %arg9[%c0_78, %c1_79, %c0_80, %c0_81] : memref<2x2x16x32xbf16, #tpu.memory_space<vmem>>, vector<1x1x16x32xbf16>
    %168 = vector.shape_cast %167 : vector<1x1x16x32xbf16> to vector<16x32xbf16>
    %cst_82 = arith.constant dense<0.000000e+00> : vector<8x32xf32>
    %169 = tpu.matmul %166, %168, %cst_82 {dimension_numbers = #tpu.dot_dimension_numbers<[1], [0], [0], [1], [0, 0, 1, 1], [], []>} : vector<8x16xbf16>, vector<16x32xbf16>, vector<8x32xf32> -> vector<8x32xf32>
    %170 = arith.addf %104, %169 : vector<8x32xf32>
    %171 = arith.addf %13, %170 : vector<8x32xf32>
    %c0_83 = arith.constant 0 : index
    %c0_84 = arith.constant 0 : index
    %c0_85 = arith.constant 0 : index
    %172 = vector.load %arg10[%c0_83, %c0_84, %c0_85] : memref<2x1x32xf32, #tpu.memory_space<vmem>>, vector<1x1x32xf32>
    %173 = vector.shape_cast %172 : vector<1x1x32xf32> to vector<1x32xf32>
    %174 = arith.mulf %171, %171 : vector<8x32xf32>
    %cst_86 = arith.constant dense<0.000000e+00> : vector<8xf32>
    %175 = vector.multi_reduction <add>, %174, %cst_86 [1] : vector<8x32xf32> to vector<8xf32>
    %176 = vector.shape_cast %175 : vector<8xf32> to vector<8x1xf32>
    %cst_87 = arith.constant 3.200000e+01 : f32
    %177 = vector.broadcast %cst_87 : f32 to vector<8x1xf32>
    %178 = arith.divf %176, %177 : vector<8x1xf32>
    %cst_88 = arith.constant 9.99999997E-7 : f32
    %179 = vector.broadcast %cst_88 : f32 to vector<8x1xf32>
    %180 = arith.addf %178, %179 : vector<8x1xf32>
    %181 = math.rsqrt %180 : vector<8x1xf32>
    %182 = vector.broadcast %181 : vector<8x1xf32> to vector<8x32xf32>
    %183 = arith.mulf %171, %182 : vector<8x32xf32>
    %184 = vector.broadcast %173 : vector<1x32xf32> to vector<8x32xf32>
    %185 = arith.mulf %183, %184 : vector<8x32xf32>
    %186 = arith.truncf %185 : vector<8x32xf32> to vector<8x32xbf16>
    %c0_89 = arith.constant 0 : index
    %c0_90 = arith.constant 0 : index
    %c0_91 = arith.constant 0 : index
    %187 = vector.load %arg11[%c0_89, %c0_90, %c0_91] : memref<2x32x64xbf16, #tpu.memory_space<vmem>>, vector<1x32x64xbf16>
    %188 = vector.shape_cast %187 : vector<1x32x64xbf16> to vector<32x64xbf16>
    %cst_92 = arith.constant dense<0.000000e+00> : vector<8x64xf32>
    %189 = tpu.matmul %186, %188, %cst_92 {dimension_numbers = #tpu.dot_dimension_numbers<[1], [0], [0], [1], [0, 0, 1, 1], [], []>} : vector<8x32xbf16>, vector<32x64xbf16>, vector<8x64xf32> -> vector<8x64xf32>
    %c0_93 = arith.constant 0 : index
    %c0_94 = arith.constant 0 : index
    %c0_95 = arith.constant 0 : index
    %190 = vector.load %arg12[%c0_93, %c0_94, %c0_95] : memref<2x32x64xbf16, #tpu.memory_space<vmem>>, vector<1x32x64xbf16>
    %191 = vector.shape_cast %190 : vector<1x32x64xbf16> to vector<32x64xbf16>
    %cst_96 = arith.constant dense<0.000000e+00> : vector<8x64xf32>
    %192 = tpu.matmul %186, %191, %cst_96 {dimension_numbers = #tpu.dot_dimension_numbers<[1], [0], [0], [1], [0, 0, 1, 1], [], []>} : vector<8x32xbf16>, vector<32x64xbf16>, vector<8x64xf32> -> vector<8x64xf32>
    %cst_97 = arith.constant 0.000000e+00 : f32
    %193 = vector.broadcast %cst_97 : f32 to vector<8x64xf32>
    %194 = arith.subf %193, %189 : vector<8x64xf32>
    %195 = math.exp %194 : vector<8x64xf32>
    %cst_98 = arith.constant 1.000000e+00 : f32
    %196 = vector.broadcast %cst_98 : f32 to vector<8x64xf32>
    %197 = arith.addf %196, %195 : vector<8x64xf32>
    %198 = tpu.reciprocal %197 {approx = true} : vector<8x64xf32> -> vector<8x64xf32>
    %199 = arith.mulf %189, %198 : vector<8x64xf32>
    %200 = arith.mulf %199, %192 : vector<8x64xf32>
    %201 = arith.truncf %200 : vector<8x64xf32> to vector<8x64xbf16>
    %c0_99 = arith.constant 0 : index
    %c0_100 = arith.constant 0 : index
    %c0_101 = arith.constant 0 : index
    %202 = vector.load %arg13[%c0_99, %c0_100, %c0_101] : memref<2x64x32xbf16, #tpu.memory_space<vmem>>, vector<1x64x32xbf16>
    %203 = vector.shape_cast %202 : vector<1x64x32xbf16> to vector<64x32xbf16>
    %cst_102 = arith.constant dense<0.000000e+00> : vector<8x32xf32>
    %204 = tpu.matmul %201, %203, %cst_102 {dimension_numbers = #tpu.dot_dimension_numbers<[1], [0], [0], [1], [0, 0, 1, 1], [], []>} : vector<8x64xbf16>, vector<64x32xbf16>, vector<8x32xf32> -> vector<8x32xf32>
    %205 = arith.addf %171, %204 : vector<8x32xf32>
    %c1_103 = arith.constant 1 : index
    %c0_104 = arith.constant 0 : index
    %c0_105 = arith.constant 0 : index
    %206 = vector.load %arg5[%c1_103, %c0_104, %c0_105] : memref<2x1x32xf32, #tpu.memory_space<vmem>>, vector<1x1x32xf32>
    %207 = vector.shape_cast %206 : vector<1x1x32xf32> to vector<1x32xf32>
    %208 = arith.mulf %205, %205 : vector<8x32xf32>
    %cst_106 = arith.constant dense<0.000000e+00> : vector<8xf32>
    %209 = vector.multi_reduction <add>, %208, %cst_106 [1] : vector<8x32xf32> to vector<8xf32>
    %210 = vector.shape_cast %209 : vector<8xf32> to vector<8x1xf32>
    %cst_107 = arith.constant 3.200000e+01 : f32
    %211 = vector.broadcast %cst_107 : f32 to vector<8x1xf32>
    %212 = arith.divf %210, %211 : vector<8x1xf32>
    %cst_108 = arith.constant 9.99999997E-7 : f32
    %213 = vector.broadcast %cst_108 : f32 to vector<8x1xf32>
    %214 = arith.addf %212, %213 : vector<8x1xf32>
    %215 = math.rsqrt %214 : vector<8x1xf32>
    %216 = vector.broadcast %215 : vector<8x1xf32> to vector<8x32xf32>
    %217 = arith.mulf %205, %216 : vector<8x32xf32>
    %218 = vector.broadcast %207 : vector<1x32xf32> to vector<8x32xf32>
    %219 = arith.mulf %217, %218 : vector<8x32xf32>
    %220 = arith.truncf %219 : vector<8x32xf32> to vector<8x32xbf16>
    %cst_109 = arith.constant 0.000000e+00 : f32
    %221 = vector.broadcast %cst_109 : f32 to vector<8x32xf32>
    %c1_110 = arith.constant 1 : index
    %c0_111 = arith.constant 0 : index
    %c0_112 = arith.constant 0 : index
    %c0_113 = arith.constant 0 : index
    %222 = vector.load %arg6[%c1_110, %c0_111, %c0_112, %c0_113] : memref<2x2x32x16xbf16, #tpu.memory_space<vmem>>, vector<1x1x32x16xbf16>
    %223 = vector.shape_cast %222 : vector<1x1x32x16xbf16> to vector<32x16xbf16>
    %cst_114 = arith.constant dense<0.000000e+00> : vector<8x16xf32>
    %224 = tpu.matmul %220, %223, %cst_114 {dimension_numbers = #tpu.dot_dimension_numbers<[1], [0], [0], [1], [0, 0, 1, 1], [], []>} : vector<8x32xbf16>, vector<32x16xbf16>, vector<8x16xf32> -> vector<8x16xf32>
    %c1_115 = arith.constant 1 : index
    %c0_116 = arith.constant 0 : index
    %c0_117 = arith.constant 0 : index
    %c0_118 = arith.constant 0 : index
    %225 = vector.load %arg7[%c1_115, %c0_116, %c0_117, %c0_118] : memref<2x2x32x16xbf16, #tpu.memory_space<vmem>>, vector<1x1x32x16xbf16>
    %226 = vector.shape_cast %225 : vector<1x1x32x16xbf16> to vector<32x16xbf16>
    %cst_119 = arith.constant dense<0.000000e+00> : vector<8x16xf32>
    %227 = tpu.matmul %220, %226, %cst_119 {dimension_numbers = #tpu.dot_dimension_numbers<[1], [0], [0], [1], [0, 0, 1, 1], [], []>} : vector<8x32xbf16>, vector<32x16xbf16>, vector<8x16xf32> -> vector<8x16xf32>
    %c1_120 = arith.constant 1 : index
    %c0_121 = arith.constant 0 : index
    %c0_122 = arith.constant 0 : index
    %c0_123 = arith.constant 0 : index
    %228 = vector.load %arg8[%c1_120, %c0_121, %c0_122, %c0_123] : memref<2x2x32x16xbf16, #tpu.memory_space<vmem>>, vector<1x1x32x16xbf16>
    %229 = vector.shape_cast %228 : vector<1x1x32x16xbf16> to vector<32x16xbf16>
    %cst_124 = arith.constant dense<0.000000e+00> : vector<8x16xf32>
    %230 = tpu.matmul %220, %229, %cst_124 {dimension_numbers = #tpu.dot_dimension_numbers<[1], [0], [0], [1], [0, 0, 1, 1], [], []>} : vector<8x32xbf16>, vector<32x16xbf16>, vector<8x16xf32> -> vector<8x16xf32>
    %231 = arith.mulf %224, %224 : vector<8x16xf32>
    %cst_125 = arith.constant dense<0.000000e+00> : vector<8xf32>
    %232 = vector.multi_reduction <add>, %231, %cst_125 [1] : vector<8x16xf32> to vector<8xf32>
    %233 = vector.shape_cast %232 : vector<8xf32> to vector<8x1xf32>
    %cst_126 = arith.constant 9.99999997E-7 : f32
    %234 = vector.broadcast %cst_126 : f32 to vector<8x1xf32>
    %235 = arith.addf %233, %234 : vector<8x1xf32>
    %236 = math.rsqrt %235 : vector<8x1xf32>
    %237 = vector.broadcast %236 : vector<8x1xf32> to vector<8x16xf32>
    %238 = arith.mulf %224, %237 : vector<8x16xf32>
    %239 = arith.mulf %227, %227 : vector<8x16xf32>
    %cst_127 = arith.constant dense<0.000000e+00> : vector<8xf32>
    %240 = vector.multi_reduction <add>, %239, %cst_127 [1] : vector<8x16xf32> to vector<8xf32>
    %241 = vector.shape_cast %240 : vector<8xf32> to vector<8x1xf32>
    %cst_128 = arith.constant 9.99999997E-7 : f32
    %242 = vector.broadcast %cst_128 : f32 to vector<8x1xf32>
    %243 = arith.addf %241, %242 : vector<8x1xf32>
    %244 = math.rsqrt %243 : vector<8x1xf32>
    %245 = vector.broadcast %244 : vector<8x1xf32> to vector<8x16xf32>
    %246 = arith.mulf %227, %245 : vector<8x16xf32>
    %247 = vector.extract_strided_slice %238 {offsets = [0, 8], sizes = [8, 8], strides = [1, 1]} : vector<8x16xf32> to vector<8x8xf32>
    %cst_129 = arith.constant 0.000000e+00 : f32
    %248 = vector.broadcast %cst_129 : f32 to vector<8x8xf32>
    %249 = arith.subf %248, %247 : vector<8x8xf32>
    %250 = vector.extract_strided_slice %238 {offsets = [0, 0], sizes = [8, 8], strides = [1, 1]} : vector<8x16xf32> to vector<8x8xf32>
    %251 = tpu.concatenate %249, %250 in 1 : vector<8x8xf32>, vector<8x8xf32> -> vector<8x16xf32>
    %252 = arith.mulf %238, %0 : vector<8x16xf32>
    %253 = arith.mulf %251, %1 : vector<8x16xf32>
    %254 = arith.addf %252, %253 : vector<8x16xf32>
    %255 = vector.extract_strided_slice %246 {offsets = [0, 8], sizes = [8, 8], strides = [1, 1]} : vector<8x16xf32> to vector<8x8xf32>
    %cst_130 = arith.constant 0.000000e+00 : f32
    %256 = vector.broadcast %cst_130 : f32 to vector<8x8xf32>
    %257 = arith.subf %256, %255 : vector<8x8xf32>
    %258 = vector.extract_strided_slice %246 {offsets = [0, 0], sizes = [8, 8], strides = [1, 1]} : vector<8x16xf32> to vector<8x8xf32>
    %259 = tpu.concatenate %257, %258 in 1 : vector<8x8xf32>, vector<8x8xf32> -> vector<8x16xf32>
    %260 = arith.mulf %246, %0 : vector<8x16xf32>
    %261 = arith.mulf %259, %1 : vector<8x16xf32>
    %262 = arith.addf %260, %261 : vector<8x16xf32>
    %263 = arith.truncf %254 : vector<8x16xf32> to vector<8x16xbf16>
    %264 = arith.truncf %262 : vector<8x16xf32> to vector<8x16xbf16>
    %cst_131 = arith.constant dense<0.000000e+00> : vector<8x8xf32>
    %265 = tpu.matmul %263, %264, %cst_131 {dimension_numbers = #tpu.dot_dimension_numbers<[1], [1], [0], [0], [0, 0, 1, 0], [], []>} : vector<8x16xbf16>, vector<8x16xbf16>, vector<8x8xf32> -> vector<8x8xf32>
    %cst_132 = arith.constant 2.500000e-01 : f32
    %266 = vector.broadcast %cst_132 : f32 to vector<8x8xf32>
    %267 = arith.mulf %265, %266 : vector<8x8xf32>
    %cst_133 = arith.constant -1.000000e+30 : f32
    %268 = vector.broadcast %cst_133 : f32 to vector<8x8xf32>
    %269 = arith.select %22, %267, %268 : vector<8x8xi1>, vector<8x8xf32>
    %cst_134 = arith.constant dense<0xFF800000> : vector<8xf32>
    %270 = vector.multi_reduction <maximumf>, %269, %cst_134 [1] : vector<8x8xf32> to vector<8xf32>
    %271 = vector.shape_cast %270 : vector<8xf32> to vector<8x1xf32>
    %272 = vector.broadcast %271 : vector<8x1xf32> to vector<8x8xf32>
    %273 = arith.subf %269, %272 : vector<8x8xf32>
    %274 = math.exp %273 : vector<8x8xf32>
    %cst_135 = arith.constant dense<0.000000e+00> : vector<8xf32>
    %275 = vector.multi_reduction <add>, %274, %cst_135 [1] : vector<8x8xf32> to vector<8xf32>
    %276 = vector.shape_cast %275 : vector<8xf32> to vector<8x1xf32>
    %277 = tpu.reciprocal %276 {approx = true} : vector<8x1xf32> -> vector<8x1xf32>
    %278 = vector.broadcast %277 : vector<8x1xf32> to vector<8x8xf32>
    %279 = arith.mulf %274, %278 : vector<8x8xf32>
    %280 = arith.truncf %279 : vector<8x8xf32> to vector<8x8xbf16>
    %281 = arith.truncf %230 : vector<8x16xf32> to vector<8x16xbf16>
    %cst_136 = arith.constant dense<0.000000e+00> : vector<8x16xf32>
    %282 = tpu.matmul %280, %281, %cst_136 {dimension_numbers = #tpu.dot_dimension_numbers<[1], [0], [0], [1], [0, 0, 1, 1], [], []>} : vector<8x8xbf16>, vector<8x16xbf16>, vector<8x16xf32> -> vector<8x16xf32>
    %283 = arith.truncf %282 : vector<8x16xf32> to vector<8x16xbf16>
    %c1_137 = arith.constant 1 : index
    %c0_138 = arith.constant 0 : index
    %c0_139 = arith.constant 0 : index
    %c0_140 = arith.constant 0 : index
    %284 = vector.load %arg9[%c1_137, %c0_138, %c0_139, %c0_140] : memref<2x2x16x32xbf16, #tpu.memory_space<vmem>>, vector<1x1x16x32xbf16>
    %285 = vector.shape_cast %284 : vector<1x1x16x32xbf16> to vector<16x32xbf16>
    %cst_141 = arith.constant dense<0.000000e+00> : vector<8x32xf32>
    %286 = tpu.matmul %283, %285, %cst_141 {dimension_numbers = #tpu.dot_dimension_numbers<[1], [0], [0], [1], [0, 0, 1, 1], [], []>} : vector<8x16xbf16>, vector<16x32xbf16>, vector<8x32xf32> -> vector<8x32xf32>
    %287 = arith.addf %221, %286 : vector<8x32xf32>
    %c1_142 = arith.constant 1 : index
    %c1_143 = arith.constant 1 : index
    %c0_144 = arith.constant 0 : index
    %c0_145 = arith.constant 0 : index
    %288 = vector.load %arg6[%c1_142, %c1_143, %c0_144, %c0_145] : memref<2x2x32x16xbf16, #tpu.memory_space<vmem>>, vector<1x1x32x16xbf16>
    %289 = vector.shape_cast %288 : vector<1x1x32x16xbf16> to vector<32x16xbf16>
    %cst_146 = arith.constant dense<0.000000e+00> : vector<8x16xf32>
    %290 = tpu.matmul %220, %289, %cst_146 {dimension_numbers = #tpu.dot_dimension_numbers<[1], [0], [0], [1], [0, 0, 1, 1], [], []>} : vector<8x32xbf16>, vector<32x16xbf16>, vector<8x16xf32> -> vector<8x16xf32>
    %c1_147 = arith.constant 1 : index
    %c1_148 = arith.constant 1 : index
    %c0_149 = arith.constant 0 : index
    %c0_150 = arith.constant 0 : index
    %291 = vector.load %arg7[%c1_147, %c1_148, %c0_149, %c0_150] : memref<2x2x32x16xbf16, #tpu.memory_space<vmem>>, vector<1x1x32x16xbf16>
    %292 = vector.shape_cast %291 : vector<1x1x32x16xbf16> to vector<32x16xbf16>
    %cst_151 = arith.constant dense<0.000000e+00> : vector<8x16xf32>
    %293 = tpu.matmul %220, %292, %cst_151 {dimension_numbers = #tpu.dot_dimension_numbers<[1], [0], [0], [1], [0, 0, 1, 1], [], []>} : vector<8x32xbf16>, vector<32x16xbf16>, vector<8x16xf32> -> vector<8x16xf32>
    %c1_152 = arith.constant 1 : index
    %c1_153 = arith.constant 1 : index
    %c0_154 = arith.constant 0 : index
    %c0_155 = arith.constant 0 : index
    %294 = vector.load %arg8[%c1_152, %c1_153, %c0_154, %c0_155] : memref<2x2x32x16xbf16, #tpu.memory_space<vmem>>, vector<1x1x32x16xbf16>
    %295 = vector.shape_cast %294 : vector<1x1x32x16xbf16> to vector<32x16xbf16>
    %cst_156 = arith.constant dense<0.000000e+00> : vector<8x16xf32>
    %296 = tpu.matmul %220, %295, %cst_156 {dimension_numbers = #tpu.dot_dimension_numbers<[1], [0], [0], [1], [0, 0, 1, 1], [], []>} : vector<8x32xbf16>, vector<32x16xbf16>, vector<8x16xf32> -> vector<8x16xf32>
    %297 = arith.mulf %290, %290 : vector<8x16xf32>
    %cst_157 = arith.constant dense<0.000000e+00> : vector<8xf32>
    %298 = vector.multi_reduction <add>, %297, %cst_157 [1] : vector<8x16xf32> to vector<8xf32>
    %299 = vector.shape_cast %298 : vector<8xf32> to vector<8x1xf32>
    %cst_158 = arith.constant 9.99999997E-7 : f32
    %300 = vector.broadcast %cst_158 : f32 to vector<8x1xf32>
    %301 = arith.addf %299, %300 : vector<8x1xf32>
    %302 = math.rsqrt %301 : vector<8x1xf32>
    %303 = vector.broadcast %302 : vector<8x1xf32> to vector<8x16xf32>
    %304 = arith.mulf %290, %303 : vector<8x16xf32>
    %305 = arith.mulf %293, %293 : vector<8x16xf32>
    %cst_159 = arith.constant dense<0.000000e+00> : vector<8xf32>
    %306 = vector.multi_reduction <add>, %305, %cst_159 [1] : vector<8x16xf32> to vector<8xf32>
    %307 = vector.shape_cast %306 : vector<8xf32> to vector<8x1xf32>
    %cst_160 = arith.constant 9.99999997E-7 : f32
    %308 = vector.broadcast %cst_160 : f32 to vector<8x1xf32>
    %309 = arith.addf %307, %308 : vector<8x1xf32>
    %310 = math.rsqrt %309 : vector<8x1xf32>
    %311 = vector.broadcast %310 : vector<8x1xf32> to vector<8x16xf32>
    %312 = arith.mulf %293, %311 : vector<8x16xf32>
    %313 = vector.extract_strided_slice %304 {offsets = [0, 8], sizes = [8, 8], strides = [1, 1]} : vector<8x16xf32> to vector<8x8xf32>
    %cst_161 = arith.constant 0.000000e+00 : f32
    %314 = vector.broadcast %cst_161 : f32 to vector<8x8xf32>
    %315 = arith.subf %314, %313 : vector<8x8xf32>
    %316 = vector.extract_strided_slice %304 {offsets = [0, 0], sizes = [8, 8], strides = [1, 1]} : vector<8x16xf32> to vector<8x8xf32>
    %317 = tpu.concatenate %315, %316 in 1 : vector<8x8xf32>, vector<8x8xf32> -> vector<8x16xf32>
    %318 = arith.mulf %304, %0 : vector<8x16xf32>
    %319 = arith.mulf %317, %1 : vector<8x16xf32>
    %320 = arith.addf %318, %319 : vector<8x16xf32>
    %321 = vector.extract_strided_slice %312 {offsets = [0, 8], sizes = [8, 8], strides = [1, 1]} : vector<8x16xf32> to vector<8x8xf32>
    %cst_162 = arith.constant 0.000000e+00 : f32
    %322 = vector.broadcast %cst_162 : f32 to vector<8x8xf32>
    %323 = arith.subf %322, %321 : vector<8x8xf32>
    %324 = vector.extract_strided_slice %312 {offsets = [0, 0], sizes = [8, 8], strides = [1, 1]} : vector<8x16xf32> to vector<8x8xf32>
    %325 = tpu.concatenate %323, %324 in 1 : vector<8x8xf32>, vector<8x8xf32> -> vector<8x16xf32>
    %326 = arith.mulf %312, %0 : vector<8x16xf32>
    %327 = arith.mulf %325, %1 : vector<8x16xf32>
    %328 = arith.addf %326, %327 : vector<8x16xf32>
    %329 = arith.truncf %320 : vector<8x16xf32> to vector<8x16xbf16>
    %330 = arith.truncf %328 : vector<8x16xf32> to vector<8x16xbf16>
    %cst_163 = arith.constant dense<0.000000e+00> : vector<8x8xf32>
    %331 = tpu.matmul %329, %330, %cst_163 {dimension_numbers = #tpu.dot_dimension_numbers<[1], [1], [0], [0], [0, 0, 1, 0], [], []>} : vector<8x16xbf16>, vector<8x16xbf16>, vector<8x8xf32> -> vector<8x8xf32>
    %cst_164 = arith.constant 2.500000e-01 : f32
    %332 = vector.broadcast %cst_164 : f32 to vector<8x8xf32>
    %333 = arith.mulf %331, %332 : vector<8x8xf32>
    %cst_165 = arith.constant -1.000000e+30 : f32
    %334 = vector.broadcast %cst_165 : f32 to vector<8x8xf32>
    %335 = arith.select %22, %333, %334 : vector<8x8xi1>, vector<8x8xf32>
    %cst_166 = arith.constant dense<0xFF800000> : vector<8xf32>
    %336 = vector.multi_reduction <maximumf>, %335, %cst_166 [1] : vector<8x8xf32> to vector<8xf32>
    %337 = vector.shape_cast %336 : vector<8xf32> to vector<8x1xf32>
    %338 = vector.broadcast %337 : vector<8x1xf32> to vector<8x8xf32>
    %339 = arith.subf %335, %338 : vector<8x8xf32>
    %340 = math.exp %339 : vector<8x8xf32>
    %cst_167 = arith.constant dense<0.000000e+00> : vector<8xf32>
    %341 = vector.multi_reduction <add>, %340, %cst_167 [1] : vector<8x8xf32> to vector<8xf32>
    %342 = vector.shape_cast %341 : vector<8xf32> to vector<8x1xf32>
    %343 = tpu.reciprocal %342 {approx = true} : vector<8x1xf32> -> vector<8x1xf32>
    %344 = vector.broadcast %343 : vector<8x1xf32> to vector<8x8xf32>
    %345 = arith.mulf %340, %344 : vector<8x8xf32>
    %346 = arith.truncf %345 : vector<8x8xf32> to vector<8x8xbf16>
    %347 = arith.truncf %296 : vector<8x16xf32> to vector<8x16xbf16>
    %cst_168 = arith.constant dense<0.000000e+00> : vector<8x16xf32>
    %348 = tpu.matmul %346, %347, %cst_168 {dimension_numbers = #tpu.dot_dimension_numbers<[1], [0], [0], [1], [0, 0, 1, 1], [], []>} : vector<8x8xbf16>, vector<8x16xbf16>, vector<8x16xf32> -> vector<8x16xf32>
    %349 = arith.truncf %348 : vector<8x16xf32> to vector<8x16xbf16>
    %c1_169 = arith.constant 1 : index
    %c1_170 = arith.constant 1 : index
    %c0_171 = arith.constant 0 : index
    %c0_172 = arith.constant 0 : index
    %350 = vector.load %arg9[%c1_169, %c1_170, %c0_171, %c0_172] : memref<2x2x16x32xbf16, #tpu.memory_space<vmem>>, vector<1x1x16x32xbf16>
    %351 = vector.shape_cast %350 : vector<1x1x16x32xbf16> to vector<16x32xbf16>
    %cst_173 = arith.constant dense<0.000000e+00> : vector<8x32xf32>
    %352 = tpu.matmul %349, %351, %cst_173 {dimension_numbers = #tpu.dot_dimension_numbers<[1], [0], [0], [1], [0, 0, 1, 1], [], []>} : vector<8x16xbf16>, vector<16x32xbf16>, vector<8x32xf32> -> vector<8x32xf32>
    %353 = arith.addf %287, %352 : vector<8x32xf32>
    %354 = arith.addf %205, %353 : vector<8x32xf32>
    %c1_174 = arith.constant 1 : index
    %c0_175 = arith.constant 0 : index
    %c0_176 = arith.constant 0 : index
    %355 = vector.load %arg10[%c1_174, %c0_175, %c0_176] : memref<2x1x32xf32, #tpu.memory_space<vmem>>, vector<1x1x32xf32>
    %356 = vector.shape_cast %355 : vector<1x1x32xf32> to vector<1x32xf32>
    %357 = arith.mulf %354, %354 : vector<8x32xf32>
    %cst_177 = arith.constant dense<0.000000e+00> : vector<8xf32>
    %358 = vector.multi_reduction <add>, %357, %cst_177 [1] : vector<8x32xf32> to vector<8xf32>
    %359 = vector.shape_cast %358 : vector<8xf32> to vector<8x1xf32>
    %cst_178 = arith.constant 3.200000e+01 : f32
    %360 = vector.broadcast %cst_178 : f32 to vector<8x1xf32>
    %361 = arith.divf %359, %360 : vector<8x1xf32>
    %cst_179 = arith.constant 9.99999997E-7 : f32
    %362 = vector.broadcast %cst_179 : f32 to vector<8x1xf32>
    %363 = arith.addf %361, %362 : vector<8x1xf32>
    %364 = math.rsqrt %363 : vector<8x1xf32>
    %365 = vector.broadcast %364 : vector<8x1xf32> to vector<8x32xf32>
    %366 = arith.mulf %354, %365 : vector<8x32xf32>
    %367 = vector.broadcast %356 : vector<1x32xf32> to vector<8x32xf32>
    %368 = arith.mulf %366, %367 : vector<8x32xf32>
    %369 = arith.truncf %368 : vector<8x32xf32> to vector<8x32xbf16>
    %c1_180 = arith.constant 1 : index
    %c0_181 = arith.constant 0 : index
    %c0_182 = arith.constant 0 : index
    %370 = vector.load %arg11[%c1_180, %c0_181, %c0_182] : memref<2x32x64xbf16, #tpu.memory_space<vmem>>, vector<1x32x64xbf16>
    %371 = vector.shape_cast %370 : vector<1x32x64xbf16> to vector<32x64xbf16>
    %cst_183 = arith.constant dense<0.000000e+00> : vector<8x64xf32>
    %372 = tpu.matmul %369, %371, %cst_183 {dimension_numbers = #tpu.dot_dimension_numbers<[1], [0], [0], [1], [0, 0, 1, 1], [], []>} : vector<8x32xbf16>, vector<32x64xbf16>, vector<8x64xf32> -> vector<8x64xf32>
    %c1_184 = arith.constant 1 : index
    %c0_185 = arith.constant 0 : index
    %c0_186 = arith.constant 0 : index
    %373 = vector.load %arg12[%c1_184, %c0_185, %c0_186] : memref<2x32x64xbf16, #tpu.memory_space<vmem>>, vector<1x32x64xbf16>
    %374 = vector.shape_cast %373 : vector<1x32x64xbf16> to vector<32x64xbf16>
    %cst_187 = arith.constant dense<0.000000e+00> : vector<8x64xf32>
    %375 = tpu.matmul %369, %374, %cst_187 {dimension_numbers = #tpu.dot_dimension_numbers<[1], [0], [0], [1], [0, 0, 1, 1], [], []>} : vector<8x32xbf16>, vector<32x64xbf16>, vector<8x64xf32> -> vector<8x64xf32>
    %cst_188 = arith.constant 0.000000e+00 : f32
    %376 = vector.broadcast %cst_188 : f32 to vector<8x64xf32>
    %377 = arith.subf %376, %372 : vector<8x64xf32>
    %378 = math.exp %377 : vector<8x64xf32>
    %cst_189 = arith.constant 1.000000e+00 : f32
    %379 = vector.broadcast %cst_189 : f32 to vector<8x64xf32>
    %380 = arith.addf %379, %378 : vector<8x64xf32>
    %381 = tpu.reciprocal %380 {approx = true} : vector<8x64xf32> -> vector<8x64xf32>
    %382 = arith.mulf %372, %381 : vector<8x64xf32>
    %383 = arith.mulf %382, %375 : vector<8x64xf32>
    %384 = arith.truncf %383 : vector<8x64xf32> to vector<8x64xbf16>
    %c1_190 = arith.constant 1 : index
    %c0_191 = arith.constant 0 : index
    %c0_192 = arith.constant 0 : index
    %385 = vector.load %arg13[%c1_190, %c0_191, %c0_192] : memref<2x64x32xbf16, #tpu.memory_space<vmem>>, vector<1x64x32xbf16>
    %386 = vector.shape_cast %385 : vector<1x64x32xbf16> to vector<64x32xbf16>
    %cst_193 = arith.constant dense<0.000000e+00> : vector<8x32xf32>
    %387 = tpu.matmul %384, %386, %cst_193 {dimension_numbers = #tpu.dot_dimension_numbers<[1], [0], [0], [1], [0, 0, 1, 1], [], []>} : vector<8x64xbf16>, vector<64x32xbf16>, vector<8x32xf32> -> vector<8x32xf32>
    %388 = arith.addf %354, %387 : vector<8x32xf32>
    %c0_194 = arith.constant 0 : index
    %c0_195 = arith.constant 0 : index
    %389 = vector.load %arg14[%c0_194, %c0_195] : memref<1x32xf32, #tpu.memory_space<vmem>>, vector<1x32xf32>
    %390 = arith.mulf %388, %388 : vector<8x32xf32>
    %cst_196 = arith.constant dense<0.000000e+00> : vector<8xf32>
    %391 = vector.multi_reduction <add>, %390, %cst_196 [1] : vector<8x32xf32> to vector<8xf32>
    %392 = vector.shape_cast %391 : vector<8xf32> to vector<8x1xf32>
    %cst_197 = arith.constant 3.200000e+01 : f32
    %393 = vector.broadcast %cst_197 : f32 to vector<8x1xf32>
    %394 = arith.divf %392, %393 : vector<8x1xf32>
    %cst_198 = arith.constant 9.99999997E-7 : f32
    %395 = vector.broadcast %cst_198 : f32 to vector<8x1xf32>
    %396 = arith.addf %394, %395 : vector<8x1xf32>
    %397 = math.rsqrt %396 : vector<8x1xf32>
    %398 = vector.broadcast %397 : vector<8x1xf32> to vector<8x32xf32>
    %399 = arith.mulf %388, %398 : vector<8x32xf32>
    %400 = vector.broadcast %389 : vector<1x32xf32> to vector<8x32xf32>
    %401 = arith.mulf %399, %400 : vector<8x32xf32>
    %402 = arith.truncf %401 : vector<8x32xf32> to vector<8x32xbf16>
    %c0_199 = arith.constant 0 : index
    %c0_200 = arith.constant 0 : index
    %403 = vector.load %arg15[%c0_199, %c0_200] : memref<32x8xbf16, #tpu.memory_space<vmem>>, vector<32x8xbf16>
    %cst_201 = arith.constant dense<0.000000e+00> : vector<8x8xf32>
    %404 = tpu.matmul %402, %403, %cst_201 {dimension_numbers = #tpu.dot_dimension_numbers<[1], [0], [0], [1], [0, 0, 1, 1], [], []>} : vector<8x32xbf16>, vector<32x8xbf16>, vector<8x8xf32> -> vector<8x8xf32>
    %c0_202 = arith.constant 0 : index
    %c0_203 = arith.constant 0 : index
    %405 = vector.load %arg16[%c0_202, %c0_203] : memref<1x8xbf16, #tpu.memory_space<vmem>>, vector<1x8xbf16>
    %406 = arith.extf %405 : vector<1x8xbf16> to vector<1x8xf32>
    %407 = vector.broadcast %406 : vector<1x8xf32> to vector<8x8xf32>
    %408 = arith.addf %404, %407 : vector<8x8xf32>
    %c0_204 = arith.constant 0 : index
    %c0_205 = arith.constant 0 : index
    %409 = vector.load %arg17[%c0_204, %c0_205] : memref<64x8xbf16, #tpu.memory_space<vmem>>, vector<64x8xbf16>
    %c0_206 = arith.constant 0 : index
    %c0_207 = arith.constant 0 : index
    %410 = vector.load %arg18[%c0_206, %c0_207] : memref<8x8xbf16, #tpu.memory_space<vmem>>, vector<8x8xbf16>
    %cst_208 = arith.constant dense<0.000000e+00> : vector<64x8xf32>
    %411 = tpu.matmul %409, %410, %cst_208 {dimension_numbers = #tpu.dot_dimension_numbers<[1], [0], [0], [1], [0, 0, 1, 1], [], []>} : vector<64x8xbf16>, vector<8x8xbf16>, vector<64x8xf32> -> vector<64x8xf32>
    %c0_209 = arith.constant 0 : index
    %c0_210 = arith.constant 0 : index
    %412 = vector.load %arg19[%c0_209, %c0_210] : memref<1x8xbf16, #tpu.memory_space<vmem>>, vector<1x8xbf16>
    %413 = arith.extf %412 : vector<1x8xbf16> to vector<1x8xf32>
    %414 = vector.broadcast %413 : vector<1x8xf32> to vector<64x8xf32>
    %415 = arith.addf %411, %414 : vector<64x8xf32>
    %416 = arith.mulf %415, %415 : vector<64x8xf32>
    %cst_211 = arith.constant dense<0.000000e+00> : vector<64xf32>
    %417 = vector.multi_reduction <add>, %416, %cst_211 [1] : vector<64x8xf32> to vector<64xf32>
    %418 = vector.shape_cast %417 : vector<64xf32> to vector<1x64xf32>
    %cst_212 = arith.constant dense<0.000000e+00> : vector<8x64xf32>
    %419 = tpu.matmul %408, %415, %cst_212 {dimension_numbers = #tpu.dot_dimension_numbers<[1], [1], [0], [0], [0, 0, 1, 0], [], []>} : vector<8x8xf32>, vector<64x8xf32>, vector<8x64xf32> -> vector<8x64xf32>
    %cst_213 = arith.constant 2.000000e+00 : f32
    %420 = vector.broadcast %cst_213 : f32 to vector<8x64xf32>
    %421 = arith.mulf %420, %419 : vector<8x64xf32>
    %422 = vector.broadcast %418 : vector<1x64xf32> to vector<8x64xf32>
    %423 = arith.subf %422, %421 : vector<8x64xf32>
    %cst_214 = arith.constant dense<0x7F800000> : vector<8xf32>
    %424 = vector.multi_reduction <minimumf>, %423, %cst_214 [1] : vector<8x64xf32> to vector<8xf32>
    %425 = vector.shape_cast %424 : vector<8xf32> to vector<8x1xf32>
    %426 = tpu.iota {dimensions = array<i32: 1>} : vector<8x64xi32>
    %427 = vector.broadcast %425 : vector<8x1xf32> to vector<8x64xf32>
    %428 = arith.cmpf oeq, %423, %427 : vector<8x64xf32>
    %c64_i32 = arith.constant 64 : i32
    %429 = vector.broadcast %c64_i32 : i32 to vector<8x64xi32>
    %430 = arith.select %428, %426, %429 : vector<8x64xi1>, vector<8x64xi32>
    %cst_215 = arith.constant dense<2147483647> : vector<8xi32>
    %431 = vector.multi_reduction <minsi>, %430, %cst_215 [1] : vector<8x64xi32> to vector<8xi32>
    %432 = vector.shape_cast %431 : vector<8xi32> to vector<8x1xi32>
    %433 = vector.broadcast %432 : vector<8x1xi32> to vector<8x64xi32>
    %434 = arith.cmpi eq, %426, %433 : vector<8x64xi32>
    %435 = arith.extui %434 : vector<8x64xi1> to vector<8x64xi32>
    %436 = arith.sitofp %435 : vector<8x64xi32> to vector<8x64xf32>
    %cst_216 = arith.constant dense<0.000000e+00> : vector<8x8xf32>
    %437 = tpu.matmul %436, %415, %cst_216 {dimension_numbers = #tpu.dot_dimension_numbers<[1], [0], [0], [1], [0, 0, 1, 1], [], []>} : vector<8x64xf32>, vector<64x8xf32>, vector<8x8xf32> -> vector<8x8xf32>
    %c0_217 = arith.constant 0 : index
    %c0_218 = arith.constant 0 : index
    %c0_219 = arith.constant 0 : index
    %438 = vector.load %arg38[%c0_217, %c0_218, %c0_219] : memref<1x8x1xi32, #tpu.memory_space<vmem>>, vector<1x8x1xi32>
    %439 = vector.shape_cast %438 : vector<1x8x1xi32> to vector<8x1xi32>
    %440 = vector.shape_cast %432 : vector<8x1xi32> to vector<1x8x1xi32>
    tpu.vector_store %arg38[%c0_217, %c0_218, %c0_219], %440 {strides = array<i32>} : memref<1x8x1xi32, #tpu.memory_space<vmem>>, vector<1x8x1xi32>,
    %441 = arith.subf %437, %408 : vector<8x8xf32>
    %442 = math.absf %441 : vector<8x8xf32>
    %cst_220 = arith.constant dense<0.000000e+00> : vector<8xf32>
    %443 = vector.multi_reduction <add>, %442, %cst_220 [1] : vector<8x8xf32> to vector<8xf32>
    %444 = vector.shape_cast %443 : vector<8xf32> to vector<8x1xf32>
    %cst_221 = arith.constant dense<0.000000e+00> : vector<1xf32>
    %445 = vector.multi_reduction <add>, %444, %cst_221 [0] : vector<8x1xf32> to vector<1xf32>
    %446 = vector.shape_cast %445 : vector<1xf32> to vector<1x1xf32>
    %c0_222 = arith.constant 0 : index
    %c0_223 = arith.constant 0 : index
    %c0_224 = arith.constant 0 : index
    %447 = vector.load %arg39[%c0_222, %c0_223, %c0_224] : memref<1x1x1xf32, #tpu.memory_space<vmem>>, vector<1x1x1xf32>
    %448 = vector.shape_cast %447 : vector<1x1x1xf32> to vector<1x1xf32>
    %449 = vector.shape_cast %446 : vector<1x1xf32> to vector<1x1x1xf32>
    tpu.vector_store %arg39[%c0_222, %c0_223, %c0_224], %449 {strides = array<i32>} : memref<1x1x1xf32, #tpu.memory_space<vmem>>, vector<1x1x1xf32>,
    %450 = arith.mulf %408, %408 : vector<8x8xf32>
    %cst_225 = arith.constant dense<0.000000e+00> : vector<8xf32>
    %451 = vector.multi_reduction <add>, %450, %cst_225 [1] : vector<8x8xf32> to vector<8xf32>
    %452 = vector.shape_cast %451 : vector<8xf32> to vector<8x1xf32>
    %cst_226 = arith.constant dense<0.000000e+00> : vector<1xf32>
    %453 = vector.multi_reduction <add>, %452, %cst_226 [0] : vector<8x1xf32> to vector<1xf32>
    %454 = vector.shape_cast %453 : vector<1xf32> to vector<1x1xf32>
    %c0_227 = arith.constant 0 : index
    %c0_228 = arith.constant 0 : index
    %c0_229 = arith.constant 0 : index
    %455 = vector.load %arg40[%c0_227, %c0_228, %c0_229] : memref<1x1x1xf32, #tpu.memory_space<vmem>>, vector<1x1x1xf32>
    %456 = vector.shape_cast %455 : vector<1x1x1xf32> to vector<1x1xf32>
    %457 = vector.shape_cast %454 : vector<1x1xf32> to vector<1x1x1xf32>
    tpu.vector_store %arg40[%c0_227, %c0_228, %c0_229], %457 {strides = array<i32>} : memref<1x1x1xf32, #tpu.memory_space<vmem>>, vector<1x1x1xf32>,
    %458 = arith.truncf %437 : vector<8x8xf32> to vector<8x8xbf16>
    %c0_230 = arith.constant 0 : index
    %c0_231 = arith.constant 0 : index
    %459 = vector.load %arg20[%c0_230, %c0_231] : memref<8x32xbf16, #tpu.memory_space<vmem>>, vector<8x32xbf16>
    %cst_232 = arith.constant dense<0.000000e+00> : vector<8x32xf32>
    %460 = tpu.matmul %458, %459, %cst_232 {dimension_numbers = #tpu.dot_dimension_numbers<[1], [0], [0], [1], [0, 0, 1, 1], [], []>} : vector<8x8xbf16>, vector<8x32xbf16>, vector<8x32xf32> -> vector<8x32xf32>
    %c0_233 = arith.constant 0 : index
    %c0_234 = arith.constant 0 : index
    %461 = vector.load %arg21[%c0_233, %c0_234] : memref<1x32xbf16, #tpu.memory_space<vmem>>, vector<1x32xbf16>
    %462 = arith.extf %461 : vector<1x32xbf16> to vector<1x32xf32>
    %463 = vector.broadcast %462 : vector<1x32xf32> to vector<8x32xf32>
    %464 = arith.addf %460, %463 : vector<8x32xf32>
    %465 = tpu.iota {dimensions = array<i32: 0>} : vector<8x8xi32>
    %466 = tpu.iota {dimensions = array<i32: 1>} : vector<8x8xi32>
    %467 = arith.subi %465, %466 : vector<8x8xi32>
    %c4_i32_235 = arith.constant 4 : i32
    %468 = vector.broadcast %c4_i32_235 : i32 to vector<8x8xi32>
    %469 = arith.cmpi sle, %467, %468 : vector<8x8xi32>
    %470 = arith.subi %466, %465 : vector<8x8xi32>
    %c1_i32 = arith.constant 1 : i32
    %471 = vector.broadcast %c1_i32 : i32 to vector<8x8xi32>
    %472 = arith.cmpi sle, %470, %471 : vector<8x8xi32>
    %473 = arith.andi %469, %472 : vector<8x8xi1>
    %c0_236 = arith.constant 0 : index
    %c0_237 = arith.constant 0 : index
    %c0_238 = arith.constant 0 : index
    %474 = vector.load %arg22[%c0_236, %c0_237, %c0_238] : memref<2x1x32xf32, #tpu.memory_space<vmem>>, vector<1x1x32xf32>
    %475 = vector.shape_cast %474 : vector<1x1x32xf32> to vector<1x32xf32>
    %476 = arith.mulf %464, %464 : vector<8x32xf32>
    %cst_239 = arith.constant dense<0.000000e+00> : vector<8xf32>
    %477 = vector.multi_reduction <add>, %476, %cst_239 [1] : vector<8x32xf32> to vector<8xf32>
    %478 = vector.shape_cast %477 : vector<8xf32> to vector<8x1xf32>
    %cst_240 = arith.constant 3.200000e+01 : f32
    %479 = vector.broadcast %cst_240 : f32 to vector<8x1xf32>
    %480 = arith.divf %478, %479 : vector<8x1xf32>
    %cst_241 = arith.constant 9.99999997E-7 : f32
    %481 = vector.broadcast %cst_241 : f32 to vector<8x1xf32>
    %482 = arith.addf %480, %481 : vector<8x1xf32>
    %483 = math.rsqrt %482 : vector<8x1xf32>
    %484 = vector.broadcast %483 : vector<8x1xf32> to vector<8x32xf32>
    %485 = arith.mulf %464, %484 : vector<8x32xf32>
    %486 = vector.broadcast %475 : vector<1x32xf32> to vector<8x32xf32>
    %487 = arith.mulf %485, %486 : vector<8x32xf32>
    %488 = arith.truncf %487 : vector<8x32xf32> to vector<8x32xbf16>
    %cst_242 = arith.constant 0.000000e+00 : f32
    %489 = vector.broadcast %cst_242 : f32 to vector<8x32xf32>
    %c0_243 = arith.constant 0 : index
    %c0_244 = arith.constant 0 : index
    %c0_245 = arith.constant 0 : index
    %c0_246 = arith.constant 0 : index
    %490 = vector.load %arg23[%c0_243, %c0_244, %c0_245, %c0_246] : memref<2x2x32x16xbf16, #tpu.memory_space<vmem>>, vector<1x1x32x16xbf16>
    %491 = vector.shape_cast %490 : vector<1x1x32x16xbf16> to vector<32x16xbf16>
    %cst_247 = arith.constant dense<0.000000e+00> : vector<8x16xf32>
    %492 = tpu.matmul %488, %491, %cst_247 {dimension_numbers = #tpu.dot_dimension_numbers<[1], [0], [0], [1], [0, 0, 1, 1], [], []>} : vector<8x32xbf16>, vector<32x16xbf16>, vector<8x16xf32> -> vector<8x16xf32>
    %c0_248 = arith.constant 0 : index
    %c0_249 = arith.constant 0 : index
    %c0_250 = arith.constant 0 : index
    %c0_251 = arith.constant 0 : index
    %493 = vector.load %arg24[%c0_248, %c0_249, %c0_250, %c0_251] : memref<2x2x32x16xbf16, #tpu.memory_space<vmem>>, vector<1x1x32x16xbf16>
    %494 = vector.shape_cast %493 : vector<1x1x32x16xbf16> to vector<32x16xbf16>
    %cst_252 = arith.constant dense<0.000000e+00> : vector<8x16xf32>
    %495 = tpu.matmul %488, %494, %cst_252 {dimension_numbers = #tpu.dot_dimension_numbers<[1], [0], [0], [1], [0, 0, 1, 1], [], []>} : vector<8x32xbf16>, vector<32x16xbf16>, vector<8x16xf32> -> vector<8x16xf32>
    %c0_253 = arith.constant 0 : index
    %c0_254 = arith.constant 0 : index
    %c0_255 = arith.constant 0 : index
    %c0_256 = arith.constant 0 : index
    %496 = vector.load %arg25[%c0_253, %c0_254, %c0_255, %c0_256] : memref<2x2x32x16xbf16, #tpu.memory_space<vmem>>, vector<1x1x32x16xbf16>
    %497 = vector.shape_cast %496 : vector<1x1x32x16xbf16> to vector<32x16xbf16>
    %cst_257 = arith.constant dense<0.000000e+00> : vector<8x16xf32>
    %498 = tpu.matmul %488, %497, %cst_257 {dimension_numbers = #tpu.dot_dimension_numbers<[1], [0], [0], [1], [0, 0, 1, 1], [], []>} : vector<8x32xbf16>, vector<32x16xbf16>, vector<8x16xf32> -> vector<8x16xf32>
    %499 = arith.mulf %492, %492 : vector<8x16xf32>
    %cst_258 = arith.constant dense<0.000000e+00> : vector<8xf32>
    %500 = vector.multi_reduction <add>, %499, %cst_258 [1] : vector<8x16xf32> to vector<8xf32>
    %501 = vector.shape_cast %500 : vector<8xf32> to vector<8x1xf32>
    %cst_259 = arith.constant 9.99999997E-7 : f32
    %502 = vector.broadcast %cst_259 : f32 to vector<8x1xf32>
    %503 = arith.addf %501, %502 : vector<8x1xf32>
    %504 = math.rsqrt %503 : vector<8x1xf32>
    %505 = vector.broadcast %504 : vector<8x1xf32> to vector<8x16xf32>
    %506 = arith.mulf %492, %505 : vector<8x16xf32>
    %507 = arith.mulf %495, %495 : vector<8x16xf32>
    %cst_260 = arith.constant dense<0.000000e+00> : vector<8xf32>
    %508 = vector.multi_reduction <add>, %507, %cst_260 [1] : vector<8x16xf32> to vector<8xf32>
    %509 = vector.shape_cast %508 : vector<8xf32> to vector<8x1xf32>
    %cst_261 = arith.constant 9.99999997E-7 : f32
    %510 = vector.broadcast %cst_261 : f32 to vector<8x1xf32>
    %511 = arith.addf %509, %510 : vector<8x1xf32>
    %512 = math.rsqrt %511 : vector<8x1xf32>
    %513 = vector.broadcast %512 : vector<8x1xf32> to vector<8x16xf32>
    %514 = arith.mulf %495, %513 : vector<8x16xf32>
    %515 = vector.extract_strided_slice %506 {offsets = [0, 8], sizes = [8, 8], strides = [1, 1]} : vector<8x16xf32> to vector<8x8xf32>
    %cst_262 = arith.constant 0.000000e+00 : f32
    %516 = vector.broadcast %cst_262 : f32 to vector<8x8xf32>
    %517 = arith.subf %516, %515 : vector<8x8xf32>
    %518 = vector.extract_strided_slice %506 {offsets = [0, 0], sizes = [8, 8], strides = [1, 1]} : vector<8x16xf32> to vector<8x8xf32>
    %519 = tpu.concatenate %517, %518 in 1 : vector<8x8xf32>, vector<8x8xf32> -> vector<8x16xf32>
    %520 = arith.mulf %506, %0 : vector<8x16xf32>
    %521 = arith.mulf %519, %1 : vector<8x16xf32>
    %522 = arith.addf %520, %521 : vector<8x16xf32>
    %523 = vector.extract_strided_slice %514 {offsets = [0, 8], sizes = [8, 8], strides = [1, 1]} : vector<8x16xf32> to vector<8x8xf32>
    %cst_263 = arith.constant 0.000000e+00 : f32
    %524 = vector.broadcast %cst_263 : f32 to vector<8x8xf32>
    %525 = arith.subf %524, %523 : vector<8x8xf32>
    %526 = vector.extract_strided_slice %514 {offsets = [0, 0], sizes = [8, 8], strides = [1, 1]} : vector<8x16xf32> to vector<8x8xf32>
    %527 = tpu.concatenate %525, %526 in 1 : vector<8x8xf32>, vector<8x8xf32> -> vector<8x16xf32>
    %528 = arith.mulf %514, %0 : vector<8x16xf32>
    %529 = arith.mulf %527, %1 : vector<8x16xf32>
    %530 = arith.addf %528, %529 : vector<8x16xf32>
    %531 = arith.truncf %522 : vector<8x16xf32> to vector<8x16xbf16>
    %532 = arith.truncf %530 : vector<8x16xf32> to vector<8x16xbf16>
    %cst_264 = arith.constant dense<0.000000e+00> : vector<8x8xf32>
    %533 = tpu.matmul %531, %532, %cst_264 {dimension_numbers = #tpu.dot_dimension_numbers<[1], [1], [0], [0], [0, 0, 1, 0], [], []>} : vector<8x16xbf16>, vector<8x16xbf16>, vector<8x8xf32> -> vector<8x8xf32>
    %cst_265 = arith.constant 2.500000e-01 : f32
    %534 = vector.broadcast %cst_265 : f32 to vector<8x8xf32>
    %535 = arith.mulf %533, %534 : vector<8x8xf32>
    %cst_266 = arith.constant -1.000000e+30 : f32
    %536 = vector.broadcast %cst_266 : f32 to vector<8x8xf32>
    %537 = arith.select %473, %535, %536 : vector<8x8xi1>, vector<8x8xf32>
    %cst_267 = arith.constant dense<0xFF800000> : vector<8xf32>
    %538 = vector.multi_reduction <maximumf>, %537, %cst_267 [1] : vector<8x8xf32> to vector<8xf32>
    %539 = vector.shape_cast %538 : vector<8xf32> to vector<8x1xf32>
    %540 = vector.broadcast %539 : vector<8x1xf32> to vector<8x8xf32>
    %541 = arith.subf %537, %540 : vector<8x8xf32>
    %542 = math.exp %541 : vector<8x8xf32>
    %cst_268 = arith.constant dense<0.000000e+00> : vector<8xf32>
    %543 = vector.multi_reduction <add>, %542, %cst_268 [1] : vector<8x8xf32> to vector<8xf32>
    %544 = vector.shape_cast %543 : vector<8xf32> to vector<8x1xf32>
    %545 = tpu.reciprocal %544 {approx = true} : vector<8x1xf32> -> vector<8x1xf32>
    %546 = vector.broadcast %545 : vector<8x1xf32> to vector<8x8xf32>
    %547 = arith.mulf %542, %546 : vector<8x8xf32>
    %548 = arith.truncf %547 : vector<8x8xf32> to vector<8x8xbf16>
    %549 = arith.truncf %498 : vector<8x16xf32> to vector<8x16xbf16>
    %cst_269 = arith.constant dense<0.000000e+00> : vector<8x16xf32>
    %550 = tpu.matmul %548, %549, %cst_269 {dimension_numbers = #tpu.dot_dimension_numbers<[1], [0], [0], [1], [0, 0, 1, 1], [], []>} : vector<8x8xbf16>, vector<8x16xbf16>, vector<8x16xf32> -> vector<8x16xf32>
    %551 = arith.truncf %550 : vector<8x16xf32> to vector<8x16xbf16>
    %c0_270 = arith.constant 0 : index
    %c0_271 = arith.constant 0 : index
    %c0_272 = arith.constant 0 : index
    %c0_273 = arith.constant 0 : index
    %552 = vector.load %arg26[%c0_270, %c0_271, %c0_272, %c0_273] : memref<2x2x16x32xbf16, #tpu.memory_space<vmem>>, vector<1x1x16x32xbf16>
    %553 = vector.shape_cast %552 : vector<1x1x16x32xbf16> to vector<16x32xbf16>
    %cst_274 = arith.constant dense<0.000000e+00> : vector<8x32xf32>
    %554 = tpu.matmul %551, %553, %cst_274 {dimension_numbers = #tpu.dot_dimension_numbers<[1], [0], [0], [1], [0, 0, 1, 1], [], []>} : vector<8x16xbf16>, vector<16x32xbf16>, vector<8x32xf32> -> vector<8x32xf32>
    %555 = arith.addf %489, %554 : vector<8x32xf32>
    %c0_275 = arith.constant 0 : index
    %c1_276 = arith.constant 1 : index
    %c0_277 = arith.constant 0 : index
    %c0_278 = arith.constant 0 : index
    %556 = vector.load %arg23[%c0_275, %c1_276, %c0_277, %c0_278] : memref<2x2x32x16xbf16, #tpu.memory_space<vmem>>, vector<1x1x32x16xbf16>
    %557 = vector.shape_cast %556 : vector<1x1x32x16xbf16> to vector<32x16xbf16>
    %cst_279 = arith.constant dense<0.000000e+00> : vector<8x16xf32>
    %558 = tpu.matmul %488, %557, %cst_279 {dimension_numbers = #tpu.dot_dimension_numbers<[1], [0], [0], [1], [0, 0, 1, 1], [], []>} : vector<8x32xbf16>, vector<32x16xbf16>, vector<8x16xf32> -> vector<8x16xf32>
    %c0_280 = arith.constant 0 : index
    %c1_281 = arith.constant 1 : index
    %c0_282 = arith.constant 0 : index
    %c0_283 = arith.constant 0 : index
    %559 = vector.load %arg24[%c0_280, %c1_281, %c0_282, %c0_283] : memref<2x2x32x16xbf16, #tpu.memory_space<vmem>>, vector<1x1x32x16xbf16>
    %560 = vector.shape_cast %559 : vector<1x1x32x16xbf16> to vector<32x16xbf16>
    %cst_284 = arith.constant dense<0.000000e+00> : vector<8x16xf32>
    %561 = tpu.matmul %488, %560, %cst_284 {dimension_numbers = #tpu.dot_dimension_numbers<[1], [0], [0], [1], [0, 0, 1, 1], [], []>} : vector<8x32xbf16>, vector<32x16xbf16>, vector<8x16xf32> -> vector<8x16xf32>
    %c0_285 = arith.constant 0 : index
    %c1_286 = arith.constant 1 : index
    %c0_287 = arith.constant 0 : index
    %c0_288 = arith.constant 0 : index
    %562 = vector.load %arg25[%c0_285, %c1_286, %c0_287, %c0_288] : memref<2x2x32x16xbf16, #tpu.memory_space<vmem>>, vector<1x1x32x16xbf16>
    %563 = vector.shape_cast %562 : vector<1x1x32x16xbf16> to vector<32x16xbf16>
    %cst_289 = arith.constant dense<0.000000e+00> : vector<8x16xf32>
    %564 = tpu.matmul %488, %563, %cst_289 {dimension_numbers = #tpu.dot_dimension_numbers<[1], [0], [0], [1], [0, 0, 1, 1], [], []>} : vector<8x32xbf16>, vector<32x16xbf16>, vector<8x16xf32> -> vector<8x16xf32>
    %565 = arith.mulf %558, %558 : vector<8x16xf32>
    %cst_290 = arith.constant dense<0.000000e+00> : vector<8xf32>
    %566 = vector.multi_reduction <add>, %565, %cst_290 [1] : vector<8x16xf32> to vector<8xf32>
    %567 = vector.shape_cast %566 : vector<8xf32> to vector<8x1xf32>
    %cst_291 = arith.constant 9.99999997E-7 : f32
    %568 = vector.broadcast %cst_291 : f32 to vector<8x1xf32>
    %569 = arith.addf %567, %568 : vector<8x1xf32>
    %570 = math.rsqrt %569 : vector<8x1xf32>
    %571 = vector.broadcast %570 : vector<8x1xf32> to vector<8x16xf32>
    %572 = arith.mulf %558, %571 : vector<8x16xf32>
    %573 = arith.mulf %561, %561 : vector<8x16xf32>
    %cst_292 = arith.constant dense<0.000000e+00> : vector<8xf32>
    %574 = vector.multi_reduction <add>, %573, %cst_292 [1] : vector<8x16xf32> to vector<8xf32>
    %575 = vector.shape_cast %574 : vector<8xf32> to vector<8x1xf32>
    %cst_293 = arith.constant 9.99999997E-7 : f32
    %576 = vector.broadcast %cst_293 : f32 to vector<8x1xf32>
    %577 = arith.addf %575, %576 : vector<8x1xf32>
    %578 = math.rsqrt %577 : vector<8x1xf32>
    %579 = vector.broadcast %578 : vector<8x1xf32> to vector<8x16xf32>
    %580 = arith.mulf %561, %579 : vector<8x16xf32>
    %581 = vector.extract_strided_slice %572 {offsets = [0, 8], sizes = [8, 8], strides = [1, 1]} : vector<8x16xf32> to vector<8x8xf32>
    %cst_294 = arith.constant 0.000000e+00 : f32
    %582 = vector.broadcast %cst_294 : f32 to vector<8x8xf32>
    %583 = arith.subf %582, %581 : vector<8x8xf32>
    %584 = vector.extract_strided_slice %572 {offsets = [0, 0], sizes = [8, 8], strides = [1, 1]} : vector<8x16xf32> to vector<8x8xf32>
    %585 = tpu.concatenate %583, %584 in 1 : vector<8x8xf32>, vector<8x8xf32> -> vector<8x16xf32>
    %586 = arith.mulf %572, %0 : vector<8x16xf32>
    %587 = arith.mulf %585, %1 : vector<8x16xf32>
    %588 = arith.addf %586, %587 : vector<8x16xf32>
    %589 = vector.extract_strided_slice %580 {offsets = [0, 8], sizes = [8, 8], strides = [1, 1]} : vector<8x16xf32> to vector<8x8xf32>
    %cst_295 = arith.constant 0.000000e+00 : f32
    %590 = vector.broadcast %cst_295 : f32 to vector<8x8xf32>
    %591 = arith.subf %590, %589 : vector<8x8xf32>
    %592 = vector.extract_strided_slice %580 {offsets = [0, 0], sizes = [8, 8], strides = [1, 1]} : vector<8x16xf32> to vector<8x8xf32>
    %593 = tpu.concatenate %591, %592 in 1 : vector<8x8xf32>, vector<8x8xf32> -> vector<8x16xf32>
    %594 = arith.mulf %580, %0 : vector<8x16xf32>
    %595 = arith.mulf %593, %1 : vector<8x16xf32>
    %596 = arith.addf %594, %595 : vector<8x16xf32>
    %597 = arith.truncf %588 : vector<8x16xf32> to vector<8x16xbf16>
    %598 = arith.truncf %596 : vector<8x16xf32> to vector<8x16xbf16>
    %cst_296 = arith.constant dense<0.000000e+00> : vector<8x8xf32>
    %599 = tpu.matmul %597, %598, %cst_296 {dimension_numbers = #tpu.dot_dimension_numbers<[1], [1], [0], [0], [0, 0, 1, 0], [], []>} : vector<8x16xbf16>, vector<8x16xbf16>, vector<8x8xf32> -> vector<8x8xf32>
    %cst_297 = arith.constant 2.500000e-01 : f32
    %600 = vector.broadcast %cst_297 : f32 to vector<8x8xf32>
    %601 = arith.mulf %599, %600 : vector<8x8xf32>
    %cst_298 = arith.constant -1.000000e+30 : f32
    %602 = vector.broadcast %cst_298 : f32 to vector<8x8xf32>
    %603 = arith.select %473, %601, %602 : vector<8x8xi1>, vector<8x8xf32>
    %cst_299 = arith.constant dense<0xFF800000> : vector<8xf32>
    %604 = vector.multi_reduction <maximumf>, %603, %cst_299 [1] : vector<8x8xf32> to vector<8xf32>
    %605 = vector.shape_cast %604 : vector<8xf32> to vector<8x1xf32>
    %606 = vector.broadcast %605 : vector<8x1xf32> to vector<8x8xf32>
    %607 = arith.subf %603, %606 : vector<8x8xf32>
    %608 = math.exp %607 : vector<8x8xf32>
    %cst_300 = arith.constant dense<0.000000e+00> : vector<8xf32>
    %609 = vector.multi_reduction <add>, %608, %cst_300 [1] : vector<8x8xf32> to vector<8xf32>
    %610 = vector.shape_cast %609 : vector<8xf32> to vector<8x1xf32>
    %611 = tpu.reciprocal %610 {approx = true} : vector<8x1xf32> -> vector<8x1xf32>
    %612 = vector.broadcast %611 : vector<8x1xf32> to vector<8x8xf32>
    %613 = arith.mulf %608, %612 : vector<8x8xf32>
    %614 = arith.truncf %613 : vector<8x8xf32> to vector<8x8xbf16>
    %615 = arith.truncf %564 : vector<8x16xf32> to vector<8x16xbf16>
    %cst_301 = arith.constant dense<0.000000e+00> : vector<8x16xf32>
    %616 = tpu.matmul %614, %615, %cst_301 {dimension_numbers = #tpu.dot_dimension_numbers<[1], [0], [0], [1], [0, 0, 1, 1], [], []>} : vector<8x8xbf16>, vector<8x16xbf16>, vector<8x16xf32> -> vector<8x16xf32>
    %617 = arith.truncf %616 : vector<8x16xf32> to vector<8x16xbf16>
    %c0_302 = arith.constant 0 : index
    %c1_303 = arith.constant 1 : index
    %c0_304 = arith.constant 0 : index
    %c0_305 = arith.constant 0 : index
    %618 = vector.load %arg26[%c0_302, %c1_303, %c0_304, %c0_305] : memref<2x2x16x32xbf16, #tpu.memory_space<vmem>>, vector<1x1x16x32xbf16>
    %619 = vector.shape_cast %618 : vector<1x1x16x32xbf16> to vector<16x32xbf16>
    %cst_306 = arith.constant dense<0.000000e+00> : vector<8x32xf32>
    %620 = tpu.matmul %617, %619, %cst_306 {dimension_numbers = #tpu.dot_dimension_numbers<[1], [0], [0], [1], [0, 0, 1, 1], [], []>} : vector<8x16xbf16>, vector<16x32xbf16>, vector<8x32xf32> -> vector<8x32xf32>
    %621 = arith.addf %555, %620 : vector<8x32xf32>
    %622 = arith.addf %464, %621 : vector<8x32xf32>
    %c0_307 = arith.constant 0 : index
    %c0_308 = arith.constant 0 : index
    %c0_309 = arith.constant 0 : index
    %623 = vector.load %arg27[%c0_307, %c0_308, %c0_309] : memref<2x1x32xf32, #tpu.memory_space<vmem>>, vector<1x1x32xf32>
    %624 = vector.shape_cast %623 : vector<1x1x32xf32> to vector<1x32xf32>
    %625 = arith.mulf %622, %622 : vector<8x32xf32>
    %cst_310 = arith.constant dense<0.000000e+00> : vector<8xf32>
    %626 = vector.multi_reduction <add>, %625, %cst_310 [1] : vector<8x32xf32> to vector<8xf32>
    %627 = vector.shape_cast %626 : vector<8xf32> to vector<8x1xf32>
    %cst_311 = arith.constant 3.200000e+01 : f32
    %628 = vector.broadcast %cst_311 : f32 to vector<8x1xf32>
    %629 = arith.divf %627, %628 : vector<8x1xf32>
    %cst_312 = arith.constant 9.99999997E-7 : f32
    %630 = vector.broadcast %cst_312 : f32 to vector<8x1xf32>
    %631 = arith.addf %629, %630 : vector<8x1xf32>
    %632 = math.rsqrt %631 : vector<8x1xf32>
    %633 = vector.broadcast %632 : vector<8x1xf32> to vector<8x32xf32>
    %634 = arith.mulf %622, %633 : vector<8x32xf32>
    %635 = vector.broadcast %624 : vector<1x32xf32> to vector<8x32xf32>
    %636 = arith.mulf %634, %635 : vector<8x32xf32>
    %637 = arith.truncf %636 : vector<8x32xf32> to vector<8x32xbf16>
    %c0_313 = arith.constant 0 : index
    %c0_314 = arith.constant 0 : index
    %c0_315 = arith.constant 0 : index
    %638 = vector.load %arg28[%c0_313, %c0_314, %c0_315] : memref<2x32x64xbf16, #tpu.memory_space<vmem>>, vector<1x32x64xbf16>
    %639 = vector.shape_cast %638 : vector<1x32x64xbf16> to vector<32x64xbf16>
    %cst_316 = arith.constant dense<0.000000e+00> : vector<8x64xf32>
    %640 = tpu.matmul %637, %639, %cst_316 {dimension_numbers = #tpu.dot_dimension_numbers<[1], [0], [0], [1], [0, 0, 1, 1], [], []>} : vector<8x32xbf16>, vector<32x64xbf16>, vector<8x64xf32> -> vector<8x64xf32>
    %c0_317 = arith.constant 0 : index
    %c0_318 = arith.constant 0 : index
    %c0_319 = arith.constant 0 : index
    %641 = vector.load %arg29[%c0_317, %c0_318, %c0_319] : memref<2x32x64xbf16, #tpu.memory_space<vmem>>, vector<1x32x64xbf16>
    %642 = vector.shape_cast %641 : vector<1x32x64xbf16> to vector<32x64xbf16>
    %cst_320 = arith.constant dense<0.000000e+00> : vector<8x64xf32>
    %643 = tpu.matmul %637, %642, %cst_320 {dimension_numbers = #tpu.dot_dimension_numbers<[1], [0], [0], [1], [0, 0, 1, 1], [], []>} : vector<8x32xbf16>, vector<32x64xbf16>, vector<8x64xf32> -> vector<8x64xf32>
    %cst_321 = arith.constant 0.000000e+00 : f32
    %644 = vector.broadcast %cst_321 : f32 to vector<8x64xf32>
    %645 = arith.subf %644, %640 : vector<8x64xf32>
    %646 = math.exp %645 : vector<8x64xf32>
    %cst_322 = arith.constant 1.000000e+00 : f32
    %647 = vector.broadcast %cst_322 : f32 to vector<8x64xf32>
    %648 = arith.addf %647, %646 : vector<8x64xf32>
    %649 = tpu.reciprocal %648 {approx = true} : vector<8x64xf32> -> vector<8x64xf32>
    %650 = arith.mulf %640, %649 : vector<8x64xf32>
    %651 = arith.mulf %650, %643 : vector<8x64xf32>
    %652 = arith.truncf %651 : vector<8x64xf32> to vector<8x64xbf16>
    %c0_323 = arith.constant 0 : index
    %c0_324 = arith.constant 0 : index
    %c0_325 = arith.constant 0 : index
    %653 = vector.load %arg30[%c0_323, %c0_324, %c0_325] : memref<2x64x32xbf16, #tpu.memory_space<vmem>>, vector<1x64x32xbf16>
    %654 = vector.shape_cast %653 : vector<1x64x32xbf16> to vector<64x32xbf16>
    %cst_326 = arith.constant dense<0.000000e+00> : vector<8x32xf32>
    %655 = tpu.matmul %652, %654, %cst_326 {dimension_numbers = #tpu.dot_dimension_numbers<[1], [0], [0], [1], [0, 0, 1, 1], [], []>} : vector<8x64xbf16>, vector<64x32xbf16>, vector<8x32xf32> -> vector<8x32xf32>
    %656 = arith.addf %622, %655 : vector<8x32xf32>
    %c1_327 = arith.constant 1 : index
    %c0_328 = arith.constant 0 : index
    %c0_329 = arith.constant 0 : index
    %657 = vector.load %arg22[%c1_327, %c0_328, %c0_329] : memref<2x1x32xf32, #tpu.memory_space<vmem>>, vector<1x1x32xf32>
    %658 = vector.shape_cast %657 : vector<1x1x32xf32> to vector<1x32xf32>
    %659 = arith.mulf %656, %656 : vector<8x32xf32>
    %cst_330 = arith.constant dense<0.000000e+00> : vector<8xf32>
    %660 = vector.multi_reduction <add>, %659, %cst_330 [1] : vector<8x32xf32> to vector<8xf32>
    %661 = vector.shape_cast %660 : vector<8xf32> to vector<8x1xf32>
    %cst_331 = arith.constant 3.200000e+01 : f32
    %662 = vector.broadcast %cst_331 : f32 to vector<8x1xf32>
    %663 = arith.divf %661, %662 : vector<8x1xf32>
    %cst_332 = arith.constant 9.99999997E-7 : f32
    %664 = vector.broadcast %cst_332 : f32 to vector<8x1xf32>
    %665 = arith.addf %663, %664 : vector<8x1xf32>
    %666 = math.rsqrt %665 : vector<8x1xf32>
    %667 = vector.broadcast %666 : vector<8x1xf32> to vector<8x32xf32>
    %668 = arith.mulf %656, %667 : vector<8x32xf32>
    %669 = vector.broadcast %658 : vector<1x32xf32> to vector<8x32xf32>
    %670 = arith.mulf %668, %669 : vector<8x32xf32>
    %671 = arith.truncf %670 : vector<8x32xf32> to vector<8x32xbf16>
    %cst_333 = arith.constant 0.000000e+00 : f32
    %672 = vector.broadcast %cst_333 : f32 to vector<8x32xf32>
    %c1_334 = arith.constant 1 : index
    %c0_335 = arith.constant 0 : index
    %c0_336 = arith.constant 0 : index
    %c0_337 = arith.constant 0 : index
    %673 = vector.load %arg23[%c1_334, %c0_335, %c0_336, %c0_337] : memref<2x2x32x16xbf16, #tpu.memory_space<vmem>>, vector<1x1x32x16xbf16>
    %674 = vector.shape_cast %673 : vector<1x1x32x16xbf16> to vector<32x16xbf16>
    %cst_338 = arith.constant dense<0.000000e+00> : vector<8x16xf32>
    %675 = tpu.matmul %671, %674, %cst_338 {dimension_numbers = #tpu.dot_dimension_numbers<[1], [0], [0], [1], [0, 0, 1, 1], [], []>} : vector<8x32xbf16>, vector<32x16xbf16>, vector<8x16xf32> -> vector<8x16xf32>
    %c1_339 = arith.constant 1 : index
    %c0_340 = arith.constant 0 : index
    %c0_341 = arith.constant 0 : index
    %c0_342 = arith.constant 0 : index
    %676 = vector.load %arg24[%c1_339, %c0_340, %c0_341, %c0_342] : memref<2x2x32x16xbf16, #tpu.memory_space<vmem>>, vector<1x1x32x16xbf16>
    %677 = vector.shape_cast %676 : vector<1x1x32x16xbf16> to vector<32x16xbf16>
    %cst_343 = arith.constant dense<0.000000e+00> : vector<8x16xf32>
    %678 = tpu.matmul %671, %677, %cst_343 {dimension_numbers = #tpu.dot_dimension_numbers<[1], [0], [0], [1], [0, 0, 1, 1], [], []>} : vector<8x32xbf16>, vector<32x16xbf16>, vector<8x16xf32> -> vector<8x16xf32>
    %c1_344 = arith.constant 1 : index
    %c0_345 = arith.constant 0 : index
    %c0_346 = arith.constant 0 : index
    %c0_347 = arith.constant 0 : index
    %679 = vector.load %arg25[%c1_344, %c0_345, %c0_346, %c0_347] : memref<2x2x32x16xbf16, #tpu.memory_space<vmem>>, vector<1x1x32x16xbf16>
    %680 = vector.shape_cast %679 : vector<1x1x32x16xbf16> to vector<32x16xbf16>
    %cst_348 = arith.constant dense<0.000000e+00> : vector<8x16xf32>
    %681 = tpu.matmul %671, %680, %cst_348 {dimension_numbers = #tpu.dot_dimension_numbers<[1], [0], [0], [1], [0, 0, 1, 1], [], []>} : vector<8x32xbf16>, vector<32x16xbf16>, vector<8x16xf32> -> vector<8x16xf32>
    %682 = arith.mulf %675, %675 : vector<8x16xf32>
    %cst_349 = arith.constant dense<0.000000e+00> : vector<8xf32>
    %683 = vector.multi_reduction <add>, %682, %cst_349 [1] : vector<8x16xf32> to vector<8xf32>
    %684 = vector.shape_cast %683 : vector<8xf32> to vector<8x1xf32>
    %cst_350 = arith.constant 9.99999997E-7 : f32
    %685 = vector.broadcast %cst_350 : f32 to vector<8x1xf32>
    %686 = arith.addf %684, %685 : vector<8x1xf32>
    %687 = math.rsqrt %686 : vector<8x1xf32>
    %688 = vector.broadcast %687 : vector<8x1xf32> to vector<8x16xf32>
    %689 = arith.mulf %675, %688 : vector<8x16xf32>
    %690 = arith.mulf %678, %678 : vector<8x16xf32>
    %cst_351 = arith.constant dense<0.000000e+00> : vector<8xf32>
    %691 = vector.multi_reduction <add>, %690, %cst_351 [1] : vector<8x16xf32> to vector<8xf32>
    %692 = vector.shape_cast %691 : vector<8xf32> to vector<8x1xf32>
    %cst_352 = arith.constant 9.99999997E-7 : f32
    %693 = vector.broadcast %cst_352 : f32 to vector<8x1xf32>
    %694 = arith.addf %692, %693 : vector<8x1xf32>
    %695 = math.rsqrt %694 : vector<8x1xf32>
    %696 = vector.broadcast %695 : vector<8x1xf32> to vector<8x16xf32>
    %697 = arith.mulf %678, %696 : vector<8x16xf32>
    %698 = vector.extract_strided_slice %689 {offsets = [0, 8], sizes = [8, 8], strides = [1, 1]} : vector<8x16xf32> to vector<8x8xf32>
    %cst_353 = arith.constant 0.000000e+00 : f32
    %699 = vector.broadcast %cst_353 : f32 to vector<8x8xf32>
    %700 = arith.subf %699, %698 : vector<8x8xf32>
    %701 = vector.extract_strided_slice %689 {offsets = [0, 0], sizes = [8, 8], strides = [1, 1]} : vector<8x16xf32> to vector<8x8xf32>
    %702 = tpu.concatenate %700, %701 in 1 : vector<8x8xf32>, vector<8x8xf32> -> vector<8x16xf32>
    %703 = arith.mulf %689, %0 : vector<8x16xf32>
    %704 = arith.mulf %702, %1 : vector<8x16xf32>
    %705 = arith.addf %703, %704 : vector<8x16xf32>
    %706 = vector.extract_strided_slice %697 {offsets = [0, 8], sizes = [8, 8], strides = [1, 1]} : vector<8x16xf32> to vector<8x8xf32>
    %cst_354 = arith.constant 0.000000e+00 : f32
    %707 = vector.broadcast %cst_354 : f32 to vector<8x8xf32>
    %708 = arith.subf %707, %706 : vector<8x8xf32>
    %709 = vector.extract_strided_slice %697 {offsets = [0, 0], sizes = [8, 8], strides = [1, 1]} : vector<8x16xf32> to vector<8x8xf32>
    %710 = tpu.concatenate %708, %709 in 1 : vector<8x8xf32>, vector<8x8xf32> -> vector<8x16xf32>
    %711 = arith.mulf %697, %0 : vector<8x16xf32>
    %712 = arith.mulf %710, %1 : vector<8x16xf32>
    %713 = arith.addf %711, %712 : vector<8x16xf32>
    %714 = arith.truncf %705 : vector<8x16xf32> to vector<8x16xbf16>
    %715 = arith.truncf %713 : vector<8x16xf32> to vector<8x16xbf16>
    %cst_355 = arith.constant dense<0.000000e+00> : vector<8x8xf32>
    %716 = tpu.matmul %714, %715, %cst_355 {dimension_numbers = #tpu.dot_dimension_numbers<[1], [1], [0], [0], [0, 0, 1, 0], [], []>} : vector<8x16xbf16>, vector<8x16xbf16>, vector<8x8xf32> -> vector<8x8xf32>
    %cst_356 = arith.constant 2.500000e-01 : f32
    %717 = vector.broadcast %cst_356 : f32 to vector<8x8xf32>
    %718 = arith.mulf %716, %717 : vector<8x8xf32>
    %cst_357 = arith.constant -1.000000e+30 : f32
    %719 = vector.broadcast %cst_357 : f32 to vector<8x8xf32>
    %720 = arith.select %473, %718, %719 : vector<8x8xi1>, vector<8x8xf32>
    %cst_358 = arith.constant dense<0xFF800000> : vector<8xf32>
    %721 = vector.multi_reduction <maximumf>, %720, %cst_358 [1] : vector<8x8xf32> to vector<8xf32>
    %722 = vector.shape_cast %721 : vector<8xf32> to vector<8x1xf32>
    %723 = vector.broadcast %722 : vector<8x1xf32> to vector<8x8xf32>
    %724 = arith.subf %720, %723 : vector<8x8xf32>
    %725 = math.exp %724 : vector<8x8xf32>
    %cst_359 = arith.constant dense<0.000000e+00> : vector<8xf32>
    %726 = vector.multi_reduction <add>, %725, %cst_359 [1] : vector<8x8xf32> to vector<8xf32>
    %727 = vector.shape_cast %726 : vector<8xf32> to vector<8x1xf32>
    %728 = tpu.reciprocal %727 {approx = true} : vector<8x1xf32> -> vector<8x1xf32>
    %729 = vector.broadcast %728 : vector<8x1xf32> to vector<8x8xf32>
    %730 = arith.mulf %725, %729 : vector<8x8xf32>
    %731 = arith.truncf %730 : vector<8x8xf32> to vector<8x8xbf16>
    %732 = arith.truncf %681 : vector<8x16xf32> to vector<8x16xbf16>
    %cst_360 = arith.constant dense<0.000000e+00> : vector<8x16xf32>
    %733 = tpu.matmul %731, %732, %cst_360 {dimension_numbers = #tpu.dot_dimension_numbers<[1], [0], [0], [1], [0, 0, 1, 1], [], []>} : vector<8x8xbf16>, vector<8x16xbf16>, vector<8x16xf32> -> vector<8x16xf32>
    %734 = arith.truncf %733 : vector<8x16xf32> to vector<8x16xbf16>
    %c1_361 = arith.constant 1 : index
    %c0_362 = arith.constant 0 : index
    %c0_363 = arith.constant 0 : index
    %c0_364 = arith.constant 0 : index
    %735 = vector.load %arg26[%c1_361, %c0_362, %c0_363, %c0_364] : memref<2x2x16x32xbf16, #tpu.memory_space<vmem>>, vector<1x1x16x32xbf16>
    %736 = vector.shape_cast %735 : vector<1x1x16x32xbf16> to vector<16x32xbf16>
    %cst_365 = arith.constant dense<0.000000e+00> : vector<8x32xf32>
    %737 = tpu.matmul %734, %736, %cst_365 {dimension_numbers = #tpu.dot_dimension_numbers<[1], [0], [0], [1], [0, 0, 1, 1], [], []>} : vector<8x16xbf16>, vector<16x32xbf16>, vector<8x32xf32> -> vector<8x32xf32>
    %738 = arith.addf %672, %737 : vector<8x32xf32>
    %c1_366 = arith.constant 1 : index
    %c1_367 = arith.constant 1 : index
    %c0_368 = arith.constant 0 : index
    %c0_369 = arith.constant 0 : index
    %739 = vector.load %arg23[%c1_366, %c1_367, %c0_368, %c0_369] : memref<2x2x32x16xbf16, #tpu.memory_space<vmem>>, vector<1x1x32x16xbf16>
    %740 = vector.shape_cast %739 : vector<1x1x32x16xbf16> to vector<32x16xbf16>
    %cst_370 = arith.constant dense<0.000000e+00> : vector<8x16xf32>
    %741 = tpu.matmul %671, %740, %cst_370 {dimension_numbers = #tpu.dot_dimension_numbers<[1], [0], [0], [1], [0, 0, 1, 1], [], []>} : vector<8x32xbf16>, vector<32x16xbf16>, vector<8x16xf32> -> vector<8x16xf32>
    %c1_371 = arith.constant 1 : index
    %c1_372 = arith.constant 1 : index
    %c0_373 = arith.constant 0 : index
    %c0_374 = arith.constant 0 : index
    %742 = vector.load %arg24[%c1_371, %c1_372, %c0_373, %c0_374] : memref<2x2x32x16xbf16, #tpu.memory_space<vmem>>, vector<1x1x32x16xbf16>
    %743 = vector.shape_cast %742 : vector<1x1x32x16xbf16> to vector<32x16xbf16>
    %cst_375 = arith.constant dense<0.000000e+00> : vector<8x16xf32>
    %744 = tpu.matmul %671, %743, %cst_375 {dimension_numbers = #tpu.dot_dimension_numbers<[1], [0], [0], [1], [0, 0, 1, 1], [], []>} : vector<8x32xbf16>, vector<32x16xbf16>, vector<8x16xf32> -> vector<8x16xf32>
    %c1_376 = arith.constant 1 : index
    %c1_377 = arith.constant 1 : index
    %c0_378 = arith.constant 0 : index
    %c0_379 = arith.constant 0 : index
    %745 = vector.load %arg25[%c1_376, %c1_377, %c0_378, %c0_379] : memref<2x2x32x16xbf16, #tpu.memory_space<vmem>>, vector<1x1x32x16xbf16>
    %746 = vector.shape_cast %745 : vector<1x1x32x16xbf16> to vector<32x16xbf16>
    %cst_380 = arith.constant dense<0.000000e+00> : vector<8x16xf32>
    %747 = tpu.matmul %671, %746, %cst_380 {dimension_numbers = #tpu.dot_dimension_numbers<[1], [0], [0], [1], [0, 0, 1, 1], [], []>} : vector<8x32xbf16>, vector<32x16xbf16>, vector<8x16xf32> -> vector<8x16xf32>
    %748 = arith.mulf %741, %741 : vector<8x16xf32>
    %cst_381 = arith.constant dense<0.000000e+00> : vector<8xf32>
    %749 = vector.multi_reduction <add>, %748, %cst_381 [1] : vector<8x16xf32> to vector<8xf32>
    %750 = vector.shape_cast %749 : vector<8xf32> to vector<8x1xf32>
    %cst_382 = arith.constant 9.99999997E-7 : f32
    %751 = vector.broadcast %cst_382 : f32 to vector<8x1xf32>
    %752 = arith.addf %750, %751 : vector<8x1xf32>
    %753 = math.rsqrt %752 : vector<8x1xf32>
    %754 = vector.broadcast %753 : vector<8x1xf32> to vector<8x16xf32>
    %755 = arith.mulf %741, %754 : vector<8x16xf32>
    %756 = arith.mulf %744, %744 : vector<8x16xf32>
    %cst_383 = arith.constant dense<0.000000e+00> : vector<8xf32>
    %757 = vector.multi_reduction <add>, %756, %cst_383 [1] : vector<8x16xf32> to vector<8xf32>
    %758 = vector.shape_cast %757 : vector<8xf32> to vector<8x1xf32>
    %cst_384 = arith.constant 9.99999997E-7 : f32
    %759 = vector.broadcast %cst_384 : f32 to vector<8x1xf32>
    %760 = arith.addf %758, %759 : vector<8x1xf32>
    %761 = math.rsqrt %760 : vector<8x1xf32>
    %762 = vector.broadcast %761 : vector<8x1xf32> to vector<8x16xf32>
    %763 = arith.mulf %744, %762 : vector<8x16xf32>
    %764 = vector.extract_strided_slice %755 {offsets = [0, 8], sizes = [8, 8], strides = [1, 1]} : vector<8x16xf32> to vector<8x8xf32>
    %cst_385 = arith.constant 0.000000e+00 : f32
    %765 = vector.broadcast %cst_385 : f32 to vector<8x8xf32>
    %766 = arith.subf %765, %764 : vector<8x8xf32>
    %767 = vector.extract_strided_slice %755 {offsets = [0, 0], sizes = [8, 8], strides = [1, 1]} : vector<8x16xf32> to vector<8x8xf32>
    %768 = tpu.concatenate %766, %767 in 1 : vector<8x8xf32>, vector<8x8xf32> -> vector<8x16xf32>
    %769 = arith.mulf %755, %0 : vector<8x16xf32>
    %770 = arith.mulf %768, %1 : vector<8x16xf32>
    %771 = arith.addf %769, %770 : vector<8x16xf32>
    %772 = vector.extract_strided_slice %763 {offsets = [0, 8], sizes = [8, 8], strides = [1, 1]} : vector<8x16xf32> to vector<8x8xf32>
    %cst_386 = arith.constant 0.000000e+00 : f32
    %773 = vector.broadcast %cst_386 : f32 to vector<8x8xf32>
    %774 = arith.subf %773, %772 : vector<8x8xf32>
    %775 = vector.extract_strided_slice %763 {offsets = [0, 0], sizes = [8, 8], strides = [1, 1]} : vector<8x16xf32> to vector<8x8xf32>
    %776 = tpu.concatenate %774, %775 in 1 : vector<8x8xf32>, vector<8x8xf32> -> vector<8x16xf32>
    %777 = arith.mulf %763, %0 : vector<8x16xf32>
    %778 = arith.mulf %776, %1 : vector<8x16xf32>
    %779 = arith.addf %777, %778 : vector<8x16xf32>
    %780 = arith.truncf %771 : vector<8x16xf32> to vector<8x16xbf16>
    %781 = arith.truncf %779 : vector<8x16xf32> to vector<8x16xbf16>
    %cst_387 = arith.constant dense<0.000000e+00> : vector<8x8xf32>
    %782 = tpu.matmul %780, %781, %cst_387 {dimension_numbers = #tpu.dot_dimension_numbers<[1], [1], [0], [0], [0, 0, 1, 0], [], []>} : vector<8x16xbf16>, vector<8x16xbf16>, vector<8x8xf32> -> vector<8x8xf32>
    %cst_388 = arith.constant 2.500000e-01 : f32
    %783 = vector.broadcast %cst_388 : f32 to vector<8x8xf32>
    %784 = arith.mulf %782, %783 : vector<8x8xf32>
    %cst_389 = arith.constant -1.000000e+30 : f32
    %785 = vector.broadcast %cst_389 : f32 to vector<8x8xf32>
    %786 = arith.select %473, %784, %785 : vector<8x8xi1>, vector<8x8xf32>
    %cst_390 = arith.constant dense<0xFF800000> : vector<8xf32>
    %787 = vector.multi_reduction <maximumf>, %786, %cst_390 [1] : vector<8x8xf32> to vector<8xf32>
    %788 = vector.shape_cast %787 : vector<8xf32> to vector<8x1xf32>
    %789 = vector.broadcast %788 : vector<8x1xf32> to vector<8x8xf32>
    %790 = arith.subf %786, %789 : vector<8x8xf32>
    %791 = math.exp %790 : vector<8x8xf32>
    %cst_391 = arith.constant dense<0.000000e+00> : vector<8xf32>
    %792 = vector.multi_reduction <add>, %791, %cst_391 [1] : vector<8x8xf32> to vector<8xf32>
    %793 = vector.shape_cast %792 : vector<8xf32> to vector<8x1xf32>
    %794 = tpu.reciprocal %793 {approx = true} : vector<8x1xf32> -> vector<8x1xf32>
    %795 = vector.broadcast %794 : vector<8x1xf32> to vector<8x8xf32>
    %796 = arith.mulf %791, %795 : vector<8x8xf32>
    %797 = arith.truncf %796 : vector<8x8xf32> to vector<8x8xbf16>
    %798 = arith.truncf %747 : vector<8x16xf32> to vector<8x16xbf16>
    %cst_392 = arith.constant dense<0.000000e+00> : vector<8x16xf32>
    %799 = tpu.matmul %797, %798, %cst_392 {dimension_numbers = #tpu.dot_dimension_numbers<[1], [0], [0], [1], [0, 0, 1, 1], [], []>} : vector<8x8xbf16>, vector<8x16xbf16>, vector<8x16xf32> -> vector<8x16xf32>
    %800 = arith.truncf %799 : vector<8x16xf32> to vector<8x16xbf16>
    %c1_393 = arith.constant 1 : index
    %c1_394 = arith.constant 1 : index
    %c0_395 = arith.constant 0 : index
    %c0_396 = arith.constant 0 : index
    %801 = vector.load %arg26[%c1_393, %c1_394, %c0_395, %c0_396] : memref<2x2x16x32xbf16, #tpu.memory_space<vmem>>, vector<1x1x16x32xbf16>
    %802 = vector.shape_cast %801 : vector<1x1x16x32xbf16> to vector<16x32xbf16>
    %cst_397 = arith.constant dense<0.000000e+00> : vector<8x32xf32>
    %803 = tpu.matmul %800, %802, %cst_397 {dimension_numbers = #tpu.dot_dimension_numbers<[1], [0], [0], [1], [0, 0, 1, 1], [], []>} : vector<8x16xbf16>, vector<16x32xbf16>, vector<8x32xf32> -> vector<8x32xf32>
    %804 = arith.addf %738, %803 : vector<8x32xf32>
    %805 = arith.addf %656, %804 : vector<8x32xf32>
    %c1_398 = arith.constant 1 : index
    %c0_399 = arith.constant 0 : index
    %c0_400 = arith.constant 0 : index
    %806 = vector.load %arg27[%c1_398, %c0_399, %c0_400] : memref<2x1x32xf32, #tpu.memory_space<vmem>>, vector<1x1x32xf32>
    %807 = vector.shape_cast %806 : vector<1x1x32xf32> to vector<1x32xf32>
    %808 = arith.mulf %805, %805 : vector<8x32xf32>
    %cst_401 = arith.constant dense<0.000000e+00> : vector<8xf32>
    %809 = vector.multi_reduction <add>, %808, %cst_401 [1] : vector<8x32xf32> to vector<8xf32>
    %810 = vector.shape_cast %809 : vector<8xf32> to vector<8x1xf32>
    %cst_402 = arith.constant 3.200000e+01 : f32
    %811 = vector.broadcast %cst_402 : f32 to vector<8x1xf32>
    %812 = arith.divf %810, %811 : vector<8x1xf32>
    %cst_403 = arith.constant 9.99999997E-7 : f32
    %813 = vector.broadcast %cst_403 : f32 to vector<8x1xf32>
    %814 = arith.addf %812, %813 : vector<8x1xf32>
    %815 = math.rsqrt %814 : vector<8x1xf32>
    %816 = vector.broadcast %815 : vector<8x1xf32> to vector<8x32xf32>
    %817 = arith.mulf %805, %816 : vector<8x32xf32>
    %818 = vector.broadcast %807 : vector<1x32xf32> to vector<8x32xf32>
    %819 = arith.mulf %817, %818 : vector<8x32xf32>
    %820 = arith.truncf %819 : vector<8x32xf32> to vector<8x32xbf16>
    %c1_404 = arith.constant 1 : index
    %c0_405 = arith.constant 0 : index
    %c0_406 = arith.constant 0 : index
    %821 = vector.load %arg28[%c1_404, %c0_405, %c0_406] : memref<2x32x64xbf16, #tpu.memory_space<vmem>>, vector<1x32x64xbf16>
    %822 = vector.shape_cast %821 : vector<1x32x64xbf16> to vector<32x64xbf16>
    %cst_407 = arith.constant dense<0.000000e+00> : vector<8x64xf32>
    %823 = tpu.matmul %820, %822, %cst_407 {dimension_numbers = #tpu.dot_dimension_numbers<[1], [0], [0], [1], [0, 0, 1, 1], [], []>} : vector<8x32xbf16>, vector<32x64xbf16>, vector<8x64xf32> -> vector<8x64xf32>
    %c1_408 = arith.constant 1 : index
    %c0_409 = arith.constant 0 : index
    %c0_410 = arith.constant 0 : index
    %824 = vector.load %arg29[%c1_408, %c0_409, %c0_410] : memref<2x32x64xbf16, #tpu.memory_space<vmem>>, vector<1x32x64xbf16>
    %825 = vector.shape_cast %824 : vector<1x32x64xbf16> to vector<32x64xbf16>
    %cst_411 = arith.constant dense<0.000000e+00> : vector<8x64xf32>
    %826 = tpu.matmul %820, %825, %cst_411 {dimension_numbers = #tpu.dot_dimension_numbers<[1], [0], [0], [1], [0, 0, 1, 1], [], []>} : vector<8x32xbf16>, vector<32x64xbf16>, vector<8x64xf32> -> vector<8x64xf32>
    %cst_412 = arith.constant 0.000000e+00 : f32
    %827 = vector.broadcast %cst_412 : f32 to vector<8x64xf32>
    %828 = arith.subf %827, %823 : vector<8x64xf32>
    %829 = math.exp %828 : vector<8x64xf32>
    %cst_413 = arith.constant 1.000000e+00 : f32
    %830 = vector.broadcast %cst_413 : f32 to vector<8x64xf32>
    %831 = arith.addf %830, %829 : vector<8x64xf32>
    %832 = tpu.reciprocal %831 {approx = true} : vector<8x64xf32> -> vector<8x64xf32>
    %833 = arith.mulf %823, %832 : vector<8x64xf32>
    %834 = arith.mulf %833, %826 : vector<8x64xf32>
    %835 = arith.truncf %834 : vector<8x64xf32> to vector<8x64xbf16>
    %c1_414 = arith.constant 1 : index
    %c0_415 = arith.constant 0 : index
    %c0_416 = arith.constant 0 : index
    %836 = vector.load %arg30[%c1_414, %c0_415, %c0_416] : memref<2x64x32xbf16, #tpu.memory_space<vmem>>, vector<1x64x32xbf16>
    %837 = vector.shape_cast %836 : vector<1x64x32xbf16> to vector<64x32xbf16>
    %cst_417 = arith.constant dense<0.000000e+00> : vector<8x32xf32>
    %838 = tpu.matmul %835, %837, %cst_417 {dimension_numbers = #tpu.dot_dimension_numbers<[1], [0], [0], [1], [0, 0, 1, 1], [], []>} : vector<8x64xbf16>, vector<64x32xbf16>, vector<8x32xf32> -> vector<8x32xf32>
    %839 = arith.addf %805, %838 : vector<8x32xf32>
    %c0_418 = arith.constant 0 : index
    %c0_419 = arith.constant 0 : index
    %840 = vector.load %arg31[%c0_418, %c0_419] : memref<1x32xf32, #tpu.memory_space<vmem>>, vector<1x32xf32>
    %841 = arith.mulf %839, %839 : vector<8x32xf32>
    %cst_420 = arith.constant dense<0.000000e+00> : vector<8xf32>
    %842 = vector.multi_reduction <add>, %841, %cst_420 [1] : vector<8x32xf32> to vector<8xf32>
    %843 = vector.shape_cast %842 : vector<8xf32> to vector<8x1xf32>
    %cst_421 = arith.constant 3.200000e+01 : f32
    %844 = vector.broadcast %cst_421 : f32 to vector<8x1xf32>
    %845 = arith.divf %843, %844 : vector<8x1xf32>
    %cst_422 = arith.constant 9.99999997E-7 : f32
    %846 = vector.broadcast %cst_422 : f32 to vector<8x1xf32>
    %847 = arith.addf %845, %846 : vector<8x1xf32>
    %848 = math.rsqrt %847 : vector<8x1xf32>
    %849 = vector.broadcast %848 : vector<8x1xf32> to vector<8x32xf32>
    %850 = arith.mulf %839, %849 : vector<8x32xf32>
    %851 = vector.broadcast %840 : vector<1x32xf32> to vector<8x32xf32>
    %852 = arith.mulf %850, %851 : vector<8x32xf32>
    %853 = arith.truncf %852 : vector<8x32xf32> to vector<8x32xbf16>
    %c0_423 = arith.constant 0 : index
    %c0_424 = arith.constant 0 : index
    %854 = vector.load %arg32[%c0_423, %c0_424] : memref<32x16xbf16, #tpu.memory_space<vmem>>, vector<32x16xbf16>
    %cst_425 = arith.constant dense<0.000000e+00> : vector<8x16xf32>
    %855 = tpu.matmul %853, %854, %cst_425 {dimension_numbers = #tpu.dot_dimension_numbers<[1], [0], [0], [1], [0, 0, 1, 1], [], []>} : vector<8x32xbf16>, vector<32x16xbf16>, vector<8x16xf32> -> vector<8x16xf32>
    %c0_426 = arith.constant 0 : index
    %c0_427 = arith.constant 0 : index
    %856 = vector.load %arg33[%c0_426, %c0_427] : memref<1x16xbf16, #tpu.memory_space<vmem>>, vector<1x16xbf16>
    %857 = arith.extf %856 : vector<1x16xbf16> to vector<1x16xf32>
    %858 = vector.broadcast %857 : vector<1x16xf32> to vector<8x16xf32>
    %859 = arith.addf %855, %858 : vector<8x16xf32>
    %860 = arith.truncf %859 : vector<8x16xf32> to vector<8x16xbf16>
    %c0_428 = arith.constant 0 : index
    %c0_429 = arith.constant 0 : index
    %861 = vector.load %arg34[%c0_428, %c0_429] : memref<16x32xbf16, #tpu.memory_space<vmem>>, vector<16x32xbf16>
    %cst_430 = arith.constant dense<0.000000e+00> : vector<8x32xf32>
    %862 = tpu.matmul %860, %861, %cst_430 {dimension_numbers = #tpu.dot_dimension_numbers<[1], [0], [0], [1], [0, 0, 1, 1], [], []>} : vector<8x16xbf16>, vector<16x32xbf16>, vector<8x32xf32> -> vector<8x32xf32>
    %c0_431 = arith.constant 0 : index
    %c0_432 = arith.constant 0 : index
    %c0_433 = arith.constant 0 : index
    %863 = vector.load %arg37[%c0_431, %c0_432, %c0_433] : memref<1x8x32xf32, #tpu.memory_space<vmem>>, vector<1x8x32xf32>
    %864 = vector.shape_cast %863 : vector<1x8x32xf32> to vector<8x32xf32>
    %865 = vector.shape_cast %862 : vector<8x32xf32> to vector<1x8x32xf32>
    tpu.vector_store %arg37[%c0_431, %c0_432, %c0_433], %865 {strides = array<i32>} : memref<1x8x32xf32, #tpu.memory_space<vmem>>, vector<1x8x32xf32>,
    return
  }
  func.func @transform_0(%arg0: i32) -> (i32, i32, i32) {
    %c0_i32 = arith.constant 0 : i32
    %c0_i32_0 = arith.constant 0 : i32
    %c0_i32_1 = arith.constant 0 : i32
    return %arg0, %c0_i32, %c0_i32_0 : i32, i32, i32
  }
  func.func @transform_1(%arg0: i32) -> (i32, i32) {
    %c0_i32 = arith.constant 0 : i32
    %c0_i32_0 = arith.constant 0 : i32
    %c0_i32_1 = arith.constant 0 : i32
    return %c0_i32, %c0_i32_0 : i32, i32
  }
  func.func @transform_2(%arg0: i32) -> (i32, i32) {
    %c0_i32 = arith.constant 0 : i32
    %c0_i32_0 = arith.constant 0 : i32
    %c0_i32_1 = arith.constant 0 : i32
    return %c0_i32, %c0_i32_0 : i32, i32
  }
  func.func @transform_3(%arg0: i32) -> (i32, i32) {
    %c0_i32 = arith.constant 0 : i32
    %c0_i32_0 = arith.constant 0 : i32
    %c0_i32_1 = arith.constant 0 : i32
    return %c0_i32, %c0_i32_0 : i32, i32
  }
  func.func @transform_4(%arg0: i32) -> (i32, i32, i32) {
    %c0_i32 = arith.constant 0 : i32
    %c0_i32_0 = arith.constant 0 : i32
    %c0_i32_1 = arith.constant 0 : i32
    %c0_i32_2 = arith.constant 0 : i32
    return %c0_i32, %c0_i32_0, %c0_i32_1 : i32, i32, i32
  }
  func.func @transform_5(%arg0: i32) -> (i32, i32, i32, i32) {
    %c0_i32 = arith.constant 0 : i32
    %c0_i32_0 = arith.constant 0 : i32
    %c0_i32_1 = arith.constant 0 : i32
    %c0_i32_2 = arith.constant 0 : i32
    %c0_i32_3 = arith.constant 0 : i32
    return %c0_i32, %c0_i32_0, %c0_i32_1, %c0_i32_2 : i32, i32, i32, i32
  }
  func.func @transform_6(%arg0: i32) -> (i32, i32, i32, i32) {
    %c0_i32 = arith.constant 0 : i32
    %c0_i32_0 = arith.constant 0 : i32
    %c0_i32_1 = arith.constant 0 : i32
    %c0_i32_2 = arith.constant 0 : i32
    %c0_i32_3 = arith.constant 0 : i32
    return %c0_i32, %c0_i32_0, %c0_i32_1, %c0_i32_2 : i32, i32, i32, i32
  }
  func.func @transform_7(%arg0: i32) -> (i32, i32, i32, i32) {
    %c0_i32 = arith.constant 0 : i32
    %c0_i32_0 = arith.constant 0 : i32
    %c0_i32_1 = arith.constant 0 : i32
    %c0_i32_2 = arith.constant 0 : i32
    %c0_i32_3 = arith.constant 0 : i32
    return %c0_i32, %c0_i32_0, %c0_i32_1, %c0_i32_2 : i32, i32, i32, i32
  }
  func.func @transform_8(%arg0: i32) -> (i32, i32, i32, i32) {
    %c0_i32 = arith.constant 0 : i32
    %c0_i32_0 = arith.constant 0 : i32
    %c0_i32_1 = arith.constant 0 : i32
    %c0_i32_2 = arith.constant 0 : i32
    %c0_i32_3 = arith.constant 0 : i32
    return %c0_i32, %c0_i32_0, %c0_i32_1, %c0_i32_2 : i32, i32, i32, i32
  }
  func.func @transform_9(%arg0: i32) -> (i32, i32, i32) {
    %c0_i32 = arith.constant 0 : i32
    %c0_i32_0 = arith.constant 0 : i32
    %c0_i32_1 = arith.constant 0 : i32
    %c0_i32_2 = arith.constant 0 : i32
    return %c0_i32, %c0_i32_0, %c0_i32_1 : i32, i32, i32
  }
  func.func @transform_10(%arg0: i32) -> (i32, i32, i32) {
    %c0_i32 = arith.constant 0 : i32
    %c0_i32_0 = arith.constant 0 : i32
    %c0_i32_1 = arith.constant 0 : i32
    %c0_i32_2 = arith.constant 0 : i32
    return %c0_i32, %c0_i32_0, %c0_i32_1 : i32, i32, i32
  }
  func.func @transform_11(%arg0: i32) -> (i32, i32, i32) {
    %c0_i32 = arith.constant 0 : i32
    %c0_i32_0 = arith.constant 0 : i32
    %c0_i32_1 = arith.constant 0 : i32
    %c0_i32_2 = arith.constant 0 : i32
    return %c0_i32, %c0_i32_0, %c0_i32_1 : i32, i32, i32
  }
  func.func @transform_12(%arg0: i32) -> (i32, i32, i32) {
    %c0_i32 = arith.constant 0 : i32
    %c0_i32_0 = arith.constant 0 : i32
    %c0_i32_1 = arith.constant 0 : i32
    %c0_i32_2 = arith.constant 0 : i32
    return %c0_i32, %c0_i32_0, %c0_i32_1 : i32, i32, i32
  }
  func.func @transform_13(%arg0: i32) -> (i32, i32) {
    %c0_i32 = arith.constant 0 : i32
    %c0_i32_0 = arith.constant 0 : i32
    %c0_i32_1 = arith.constant 0 : i32
    return %c0_i32, %c0_i32_0 : i32, i32
  }
  func.func @transform_14(%arg0: i32) -> (i32, i32) {
    %c0_i32 = arith.constant 0 : i32
    %c0_i32_0 = arith.constant 0 : i32
    %c0_i32_1 = arith.constant 0 : i32
    return %c0_i32, %c0_i32_0 : i32, i32
  }
  func.func @transform_15(%arg0: i32) -> (i32, i32) {
    %c0_i32 = arith.constant 0 : i32
    %c0_i32_0 = arith.constant 0 : i32
    %c0_i32_1 = arith.constant 0 : i32
    return %c0_i32, %c0_i32_0 : i32, i32
  }
  func.func @transform_16(%arg0: i32) -> (i32, i32) {
    %c0_i32 = arith.constant 0 : i32
    %c0_i32_0 = arith.constant 0 : i32
    %c0_i32_1 = arith.constant 0 : i32
    return %c0_i32, %c0_i32_0 : i32, i32
  }
  func.func @transform_17(%arg0: i32) -> (i32, i32) {
    %c0_i32 = arith.constant 0 : i32
    %c0_i32_0 = arith.constant 0 : i32
    %c0_i32_1 = arith.constant 0 : i32
    return %c0_i32, %c0_i32_0 : i32, i32
  }
  func.func @transform_18(%arg0: i32) -> (i32, i32) {
    %c0_i32 = arith.constant 0 : i32
    %c0_i32_0 = arith.constant 0 : i32
    %c0_i32_1 = arith.constant 0 : i32
    return %c0_i32, %c0_i32_0 : i32, i32
  }
  func.func @transform_19(%arg0: i32) -> (i32, i32) {
    %c0_i32 = arith.constant 0 : i32
    %c0_i32_0 = arith.constant 0 : i32
    %c0_i32_1 = arith.constant 0 : i32
    return %c0_i32, %c0_i32_0 : i32, i32
  }
  func.func @transform_20(%arg0: i32) -> (i32, i32) {
    %c0_i32 = arith.constant 0 : i32
    %c0_i32_0 = arith.constant 0 : i32
    %c0_i32_1 = arith.constant 0 : i32
    return %c0_i32, %c0_i32_0 : i32, i32
  }
  func.func @transform_21(%arg0: i32) -> (i32, i32, i32) {
    %c0_i32 = arith.constant 0 : i32
    %c0_i32_0 = arith.constant 0 : i32
    %c0_i32_1 = arith.constant 0 : i32
    %c0_i32_2 = arith.constant 0 : i32
    return %c0_i32, %c0_i32_0, %c0_i32_1 : i32, i32, i32
  }
  func.func @transform_22(%arg0: i32) -> (i32, i32, i32, i32) {
    %c0_i32 = arith.constant 0 : i32
    %c0_i32_0 = arith.constant 0 : i32
    %c0_i32_1 = arith.constant 0 : i32
    %c0_i32_2 = arith.constant 0 : i32
    %c0_i32_3 = arith.constant 0 : i32
    return %c0_i32, %c0_i32_0, %c0_i32_1, %c0_i32_2 : i32, i32, i32, i32
  }
  func.func @transform_23(%arg0: i32) -> (i32, i32, i32, i32) {
    %c0_i32 = arith.constant 0 : i32
    %c0_i32_0 = arith.constant 0 : i32
    %c0_i32_1 = arith.constant 0 : i32
    %c0_i32_2 = arith.constant 0 : i32
    %c0_i32_3 = arith.constant 0 : i32
    return %c0_i32, %c0_i32_0, %c0_i32_1, %c0_i32_2 : i32, i32, i32, i32
  }
  func.func @transform_24(%arg0: i32) -> (i32, i32, i32, i32) {
    %c0_i32 = arith.constant 0 : i32
    %c0_i32_0 = arith.constant 0 : i32
    %c0_i32_1 = arith.constant 0 : i32
    %c0_i32_2 = arith.constant 0 : i32
    %c0_i32_3 = arith.constant 0 : i32
    return %c0_i32, %c0_i32_0, %c0_i32_1, %c0_i32_2 : i32, i32, i32, i32
  }
  func.func @transform_25(%arg0: i32) -> (i32, i32, i32, i32) {
    %c0_i32 = arith.constant 0 : i32
    %c0_i32_0 = arith.constant 0 : i32
    %c0_i32_1 = arith.constant 0 : i32
    %c0_i32_2 = arith.constant 0 : i32
    %c0_i32_3 = arith.constant 0 : i32
    return %c0_i32, %c0_i32_0, %c0_i32_1, %c0_i32_2 : i32, i32, i32, i32
  }
  func.func @transform_26(%arg0: i32) -> (i32, i32, i32) {
    %c0_i32 = arith.constant 0 : i32
    %c0_i32_0 = arith.constant 0 : i32
    %c0_i32_1 = arith.constant 0 : i32
    %c0_i32_2 = arith.constant 0 : i32
    return %c0_i32, %c0_i32_0, %c0_i32_1 : i32, i32, i32
  }
  func.func @transform_27(%arg0: i32) -> (i32, i32, i32) {
    %c0_i32 = arith.constant 0 : i32
    %c0_i32_0 = arith.constant 0 : i32
    %c0_i32_1 = arith.constant 0 : i32
    %c0_i32_2 = arith.constant 0 : i32
    return %c0_i32, %c0_i32_0, %c0_i32_1 : i32, i32, i32
  }
  func.func @transform_28(%arg0: i32) -> (i32, i32, i32) {
    %c0_i32 = arith.constant 0 : i32
    %c0_i32_0 = arith.constant 0 : i32
    %c0_i32_1 = arith.constant 0 : i32
    %c0_i32_2 = arith.constant 0 : i32
    return %c0_i32, %c0_i32_0, %c0_i32_1 : i32, i32, i32
  }
  func.func @transform_29(%arg0: i32) -> (i32, i32, i32) {
    %c0_i32 = arith.constant 0 : i32
    %c0_i32_0 = arith.constant 0 : i32
    %c0_i32_1 = arith.constant 0 : i32
    %c0_i32_2 = arith.constant 0 : i32
    return %c0_i32, %c0_i32_0, %c0_i32_1 : i32, i32, i32
  }
  func.func @transform_30(%arg0: i32) -> (i32, i32) {
    %c0_i32 = arith.constant 0 : i32
    %c0_i32_0 = arith.constant 0 : i32
    %c0_i32_1 = arith.constant 0 : i32
    return %c0_i32, %c0_i32_0 : i32, i32
  }
  func.func @transform_31(%arg0: i32) -> (i32, i32) {
    %c0_i32 = arith.constant 0 : i32
    %c0_i32_0 = arith.constant 0 : i32
    %c0_i32_1 = arith.constant 0 : i32
    return %c0_i32, %c0_i32_0 : i32, i32
  }
  func.func @transform_32(%arg0: i32) -> (i32, i32) {
    %c0_i32 = arith.constant 0 : i32
    %c0_i32_0 = arith.constant 0 : i32
    %c0_i32_1 = arith.constant 0 : i32
    return %c0_i32, %c0_i32_0 : i32, i32
  }
  func.func @transform_33(%arg0: i32) -> (i32, i32) {
    %c0_i32 = arith.constant 0 : i32
    %c0_i32_0 = arith.constant 0 : i32
    %c0_i32_1 = arith.constant 0 : i32
    return %c0_i32, %c0_i32_0 : i32, i32
  }
  func.func @transform_34(%arg0: i32) -> (i32, i32) {
    %c0_i32 = arith.constant 0 : i32
    %c0_i32_0 = arith.constant 0 : i32
    %c0_i32_1 = arith.constant 0 : i32
    return %c0_i32, %c0_i32_0 : i32, i32
  }
  func.func @transform_35(%arg0: i32) -> (i32, i32) {
    %c0_i32 = arith.constant 0 : i32
    %c0_i32_0 = arith.constant 0 : i32
    %c0_i32_1 = arith.constant 0 : i32
    return %c0_i32, %c0_i32_0 : i32, i32
  }
  func.func @transform_36(%arg0: i32) -> (i32, i32, i32) {
    %c0_i32 = arith.constant 0 : i32
    %c0_i32_0 = arith.constant 0 : i32
    %c0_i32_1 = arith.constant 0 : i32
    return %arg0, %c0_i32, %c0_i32_0 : i32, i32, i32
  }
  func.func @transform_37(%arg0: i32) -> (i32, i32, i32) {
    %c0_i32 = arith.constant 0 : i32
    %c0_i32_0 = arith.constant 0 : i32
    %c0_i32_1 = arith.constant 0 : i32
    return %arg0, %c0_i32, %c0_i32_0 : i32, i32, i32
  }
  func.func @transform_38(%arg0: i32) -> (i32, i32, i32) {
    %c0_i32 = arith.constant 0 : i32
    %c0_i32_0 = arith.constant 0 : i32
    %c0_i32_1 = arith.constant 0 : i32
    return %arg0, %c0_i32, %c0_i32_0 : i32, i32, i32
  }
  func.func @transform_39(%arg0: i32) -> (i32, i32, i32) {
    %c0_i32 = arith.constant 0 : i32
    %c0_i32_0 = arith.constant 0 : i32
    %c0_i32_1 = arith.constant 0 : i32
    return %arg0, %c0_i32, %c0_i32_0 : i32, i32, i32
  }
}

</mosaic_0001>

<bundles_post_ra>
// kernel: generator_forward.1
= control target key start
LH: loop header
LB: loop body
LE: loop exit
PB: predicated region body
PF: predicated region fallthrough
CT: control target
= control target key end

     0   :  { %s6760_s6 = smov 1   ;;  %s6761_s10 = smov 2   ;;  %s8726_s0 = inlined_call_operand.smem [shape: u32[40], index: -1, kind: input, shape index: {}] }
   0x1   :  { %s6812_s5 = sld [smem:[%s8726_s0]]   ;;  %s6762_s14 = smov 3  }
   0x2   :  { %s6817_s9 = sld [smem:[%s8726_s0 + %s6760_s6]]   ;;  %s6763_s18 = smov 4  }
   0x3   :  { %s6822_s13 = sld [smem:[%s8726_s0 + %s6761_s10]]   ;;  %s6764_s22 = smov 5  }
   0x4   :  { %s6827_s17 = sld [smem:[%s8726_s0 + %s6762_s14]]   ;;  %s6765_s26 = smov 6  }
   0x5   :  { %s6832_s21 = sld [smem:[%s8726_s0 + %s6763_s18]]   ;;  %s6766_s30 = smov 7  }
   0x6   :  { %s6837_s25 = sld [smem:[%s8726_s0 + %s6764_s22]]   ;;  %s6767_s4 = smov 8  }
   0x7   :  { %8814 = sst [smem:[#allocation2_spill]] %s6812_s5  ;;  %s6768_s10 = smov 9  }
   0x8   :  { %s6842_s29 = sld [smem:[%s8726_s0 + %s6765_s26]]   ;;  %s6769_s15 = smov 10  }
   0x9   :  { %s6847_s3 = sld [smem:[%s8726_s0 + %s6766_s30]]   ;;  %s6770_s20 = smov 11  }
   0xa   :  { %s6852_s8 = sld [smem:[%s8726_s0 + %s6767_s4]]   ;;  %s6771_s26 = smov 12  }
   0xb   :  { %s6857_s14 = sld [smem:[%s8726_s0 + %s6768_s10]]   ;;  %s6772_s1 = smov 13  }
   0xc   :  { %s6862_s19 = sld [smem:[%s8726_s0 + %s6769_s15]]   ;;  %s6773_s7 = smov 14  }
   0xd   :  { %s6867_s24 = sld [smem:[%s8726_s0 + %s6770_s20]]   ;;  %s6774_s15 = smov 15  }
   0xe   :  { %s6872_s30 = sld [smem:[%s8726_s0 + %s6771_s26]]   ;;  %s6775_s22 = smov 16  }
   0xf   :  { %8815 = sst [smem:[#allocation3_spill]] %s6847_s3  ;;  %s6776_s28 = smov 17  }
  0x10   :  { %s6877_s6 = sld [smem:[%s8726_s0 + %s6772_s1]]  }
  0x11   :  { %s6882_s12 = sld [smem:[%s8726_s0 + %s6773_s7]]   ;;  %s6777_s7 = smov 18  }
  0x12   :  { %s6887_s20 = sld [smem:[%s8726_s0 + %s6774_s15]]   ;;  %s6778_s15 = smov 19  }
  0x13   :  { %s6892_s27 = sld [smem:[%s8726_s0 + %s6775_s22]]   ;;  %s6779_s22 = smov 20  }
  0x14   :  { %8816 = sst [smem:[#allocation4_spill]] %s6872_s30 }
  0x15   :  { %s6897_s4 = sld [smem:[%s8726_s0 + %s6776_s28]]   ;;  %s6780_s28 = smov 21  }
  0x16   :  { %8817 = sst [smem:[#allocation5_spill]] %s6877_s6 }
  0x17   :  { %8818 = sst [smem:[#allocation6_spill]] %s6882_s12 }
  0x18   :  { %8819 = sst [smem:[#allocation7_spill]] %s6887_s20 }
  0x19   :  { %8820 = sst [smem:[#allocation8_spill]] %s6892_s27 }
  0x1a   :  { %s6902_s6 = sld [smem:[%s8726_s0 + %s6777_s7]]   ;;  %s6781_s7 = smov 22  }
  0x1b   :  { %8821 = sst [smem:[#allocation9_spill]] %s6897_s4 }
  0x1c   :  { %s6907_s20 = sld [smem:[%s8726_s0 + %s6778_s15]]   ;;  %s6782_s15 = smov 23  }
  0x1d   :  { %s6912_s12 = sld [smem:[%s8726_s0 + %s6779_s22]]   ;;  %s6783_s22 = smov 24  }
  0x1e   :  { %s6917_s27 = sld [smem:[%s8726_s0 + %s6780_s28]]   ;;  %s6784_s28 = smov 25  }
  0x20   :  { %8822 = sst [smem:[#allocation10_spill]] %s6902_s6 }
  0x21   :  { %s6922_s6 = sld [smem:[%s8726_s0 + %s6781_s7]]   ;;  %s6785_s7 = smov 26  }
  0x22   :  { %8823 = sst [smem:[#allocation11_spill]] %s6907_s20 }
  0x23   :  { %8824 = sst [smem:[#allocation12_spill]] %s6912_s12 }
  0x24   :  { %8825 = sst [smem:[#allocation13_spill]] %s6917_s27 }
  0x25   :  { %s6927_s20 = sld [smem:[%s8726_s0 + %s6782_s15]]   ;;  %s6786_s15 = smov 27  }
  0x26   :  { %s6932_s12 = sld [smem:[%s8726_s0 + %s6783_s22]]   ;;  %s6787_s22 = smov 28  }
  0x27   :  { %8826 = sst [smem:[#allocation14_spill]] %s6922_s6 }
  0x28   :  { %s6937_s27 = sld [smem:[%s8726_s0 + %s6784_s28]]   ;;  %s6788_s28 = smov 29  }
  0x29   :  { %s6942_s6 = sld [smem:[%s8726_s0 + %s6785_s7]]   ;;  %s6789_s7 = smov 30  }
  0x2b   :  { %8827 = sst [smem:[#allocation15_spill]] %s6927_s20 }
  0x2c   :  { %8828 = sst [smem:[#allocation16_spill]] %s6932_s12 }
  0x2d   :  { %s6947_s20 = sld [smem:[%s8726_s0 + %s6786_s15]]   ;;  %s6790_s15 = smov 31  }
  0x2e   :  { %8829 = sst [smem:[#allocation17_spill]] %s6937_s27 }
  0x2f   :  { %8830 = sst [smem:[#allocation18_spill]] %s6942_s6 }
  0x30   :  { %s6952_s12 = sld [smem:[%s8726_s0 + %s6787_s22]]   ;;  %s6791_s22 = smov 32  }
  0x31   :  { %s6957_s27 = sld [smem:[%s8726_s0 + %s6788_s28]]   ;;  %s6792_s28 = smov 33  }
  0x32   :  { %s6962_s6 = sld [smem:[%s8726_s0 + %s6789_s7]]   ;;  %s6793_s7 = smov 34  }
  0x33   :  { %8831 = sst [smem:[#allocation19_spill]] %s6947_s20 }
  0x34   :  { %s6967_s20 = sld [smem:[%s8726_s0 + %s6790_s15]]   ;;  %s6794_s15 = smov 35  }
  0x36   :  { %8832 = sst [smem:[#allocation20_spill]] %s6952_s12 }
  0x37   :  { %8833 = sst [smem:[#allocation21_spill]] %s6957_s27 }
  0x38   :  { %8834 = sst [smem:[#allocation22_spill]] %s6962_s6 }
  0x39   :  { %s6972_s12 = sld [smem:[%s8726_s0 + %s6791_s22]]   ;;  %s6795_s22 = smov 36  }
  0x3a   :  { %8835 = sst [smem:[#allocation23_spill]] %s6967_s20 }
  0x3b   :  { %s6977_s27 = sld [smem:[%s8726_s0 + %s6792_s28]]   ;;  %s6796_s28 = smov 37  }
  0x3c   :  { %s6982_s6 = sld [smem:[%s8726_s0 + %s6793_s7]]   ;;  %s6797_s7 = smov 38  }
  0x3d   :  { %s6987_s20 = sld [smem:[%s8726_s0 + %s6794_s15]]   ;;  %s6798_s15 = smov 39  }
  0x3e   :  { %s7002_s4 = sld [smem:[%s8726_s0 + %s6797_s7]]  }
  0x3f   :  { %8836 = sst [smem:[#allocation24_spill]] %s6972_s12 }
  0x40   :  { %s6992_s12 = sld [smem:[%s8726_s0 + %s6795_s22]]   ;;  %s7009_s22 = smov 0  }
  0x41   :  { %8837 = sst [smem:[#allocation25_spill]] %s6977_s27 }
  0x42   :  { %8838 = sst [smem:[#allocation26_spill]] %s6982_s6 }
  0x43   :  { %s6997_s27 = sld [smem:[%s8726_s0 + %s6796_s28]]  }
  0x44   :  { %s7007_s30 = sld [smem:[%s8726_s0 + %s6798_s15]]  }
  0x45 LB: > { %s8839_s6 = sld [smem:[#allocation26_spill]]  ;;  %s5802_s23 = sadd.s32 4294967295, %s6758_s22   ;;  %s6758_s22 = sphi %s7009_s22, %s90_s22  }
  0x46   : > { %s8840_s3 = sld [smem:[#allocation3_spill]]  ;;  %p5806_p0 = scmp.ge.s32.totalorder %s6758_s22, 1 }
  0x47   : > { %p1083_p1 = scmp.lt.s32.totalorder %s6758_s22, 3 }
  0x49   : > { %p1084_p2 = pnand %p5806_p0, %p1083_p1 }
  0x4b   : > { %1087 = sbr.rel (%p1084_p2) target bundleno = 10936 (0x2ab8), region = 164 }
  0x50   : > { %s8841_s5 = sld [smem:[#allocation2_spill]]  ;;  %v6414_v0 = vld [vmem:[%s6817_s9 + $0x8] sm:$0xff]  ;;  %p1187_p3 = scmp.lt.s32.totalorder %s5802_s23, 1  ;;  %v6413_v1 = vld [vmem:[%s6817_s9] sm:$0xff]  ;;  %vm8797_vm0 = vcmask 261120   ;;  %vm8796_vm1 = vcmask 130048  }
  0x51   : > { %1236 = vmatpush.bf16.msra.mxu0 %v6414_v0  ;;  %v6415_v4 = vld [vmem:[%s6822_s13] sm:$0xff]  ;;  %v6799_v16 = vmov 32.0   ;;  %v6417_v20 = vld [vmem:[%s6837_s25 + $0x8] sm:$0xff]  ;;  %v6424_v29 = vld [vmem:[%s6837_s25 + $0x18] sm:$0xff]  ;;  %vm8799_vm6 = vcmask 1043456   ;;  %s8806_s28 = smov 8  }
  0x52   : > { %s9058_s23 = smov (!%p1187_p3, %s5802_s23), 1  ;;  %1266 = vmatpush.bf16.msra.mxu1 %v6415_v4  ;;  %v1246_v8 = vld [vmem:[%s6827_s17] sm:$0x1]  ;;  %6648 = vrcp.f32 %v6799_v16  ;;  %v6419_v21 = vld [vmem:[%s6842_s29 + $0x8] sm:$0xff]  ;;  %1336 = vmatpush.bf16.msra.mxu2 %v6417_v20  ;;  %v6426_v30 = vld [vmem:[%s6842_s29 + $0x18] sm:$0xff]  ;;  %s8808_s1 = smov 120  }
  0x53   : > { %s7022_s0 = sshll.u32 %s9058_s23, 3  ;;  %v1247_v9 = vunpack.c.l.bf16 %v1246_v8  ;;  %v6421_v22 = vld [vmem:[%s8840_s3 + $0x8] sm:$0xff]  ;;  %1365 = vmatpush.bf16.msra.mxu3 %v6419_v21  ;;  %v6416_v24 = vld [vmem:[%s6837_s25] sm:$0xff]  ;;  %v6423_v32 = vld [vmem:[%s6837_s25 + $0x10] sm:$0xff]  ;;  %vm8798_vm13 = vcmask 64512   ;;  %s8849_s2 = sld [smem:[#allocation4_spill]] }
  0x54   : > { %v6418_v25 = vld [vmem:[%s6842_s29] sm:$0xff]  ;;  %v6425_v33 = vld [vmem:[%s6842_s29 + $0x10] sm:$0xff]  ;;  %s8850_s7 = sld [smem:[#allocation9_spill]] }
  0x55   : > { %1237 = vmatpush.bf16.msra.mxu0 %v6413_v1  ;;  %v1248_v10 = vperm.slane %v1247_v9, 0  ;;  %v6420_v26 = vld [vmem:[%s8840_s3] sm:$0xff]  ;;  %s8851_s10 = sld [smem:[#allocation8_spill]] }
  0x56   : > { %s1190_s26 = scalar_lea.vmem %s8841_s5, %s7022_s0  ;;  %1394 = vmatpush.bf16.msrb.mxu1 %v6421_v22  ;;  %1337 = vmatpush.bf16.msra.mxu2 %v6416_v24  ;;  %v6638_v42 = vld [vmem:[%s6832_s21] ss:$0 sm:$0xff]  ;;  %s8852_s11 = sld [smem:[#allocation10_spill]] }
  0x57   : > { %v1208_v2 = vld [vmem:[%s1190_s26] sm:$0xff]  ;;  %1366 = vmatpush.bf16.msra.mxu3 %v6418_v25  ;;  %s8853_s15 = sld [smem:[#allocation6_spill]] }
  0x58   : > { %v1209_v3 = vpack.c.bf16 %v1208_v2, %v1208_v2  ;;  %v6649_v17 = vpop.eup %6648  ;;  %s8857_s16 = sld [smem:[#allocation5_spill]] }
  0x59   : > { %v1287_v18 = vmul.f32 32.0, %v6649_v17  ;;  %vm1291_vm2 = vweird.f32 %v6649_v17  ;;  %s8858_s18 = sld [smem:[#allocation7_spill]] }
  0x5a   : > { %5818 = vmatmul.msk.bf16.vlgmr.msra.gmra.mxu0 %vm8797_vm0, %v1209_v3  ;;  %1395 = vmatpush.bf16.msrb.mxu1 %v6420_v26  ;;  %s8962_s26 = sld [smem:[#allocation11_spill]] }
  0x5b   : > { %v1288_v19 = vsub.f32 1.0, %v1287_v18  ;;  %1542 = vmatpush.bf16.msrb.mxu3 %v6424_v29  ;;  %s9010_s5 = sld [smem:[#allocation21_spill]] }
  0x5d   : > { %v1289_v23 = vmul.f32 %v6649_v17, %v1288_v19 }
  0x5f   : > { %v1290_v27 = vadd.f32 %v6649_v17, %v1289_v23  ;;  %1543 = vmatpush.bf16.msrb.mxu3 %v6423_v32 }
  0x61   : > { %v7041_v28 = vsel %vm1291_vm2, %v6649_v17, %v1290_v27  ;;  %v7080_v27 = vld [vmem:[%s8839_s6] sm:$0xff] }
  0x62   : > { %8842 = vst [vmem:[#allocation27_spill] sm:$0xff] %v7041_v28 }
  0xd7   : > { %v1239_v5 = vpop.f32.mrf.mxu0 }
  0xd8   : > { %v1243_v6 = vpack.c.bf16 %v1239_v5, %v1239_v5 }
  0xda   : > { %5823 = vmatmul.msk.bf16.vlgmr.msra.gmra.mxu1 %vm8796_vm1, %v1243_v6 }
  0xdb   : > { %1572 = vmatpush.bf16.msra.mxu1 %v6426_v30 }
  0xdf   : > { %v1241_v7 = vpop.f32.mrf.mxu0  ;;  %1573 = vmatpush.bf16.msra.mxu1 %v6425_v33 }
 0x157   : > { %v1268_v11 = vpop.f32.mrf.mxu1 }
 0x158   : > { %v7030_v12 = vadd.f32 %v1268_v11, %v1248_v10 }
 0x15a   : > { %v1282_v13 = vmul.f32 %v7030_v12, %v7030_v12 }
 0x15c   : > { %v1283_v14 = vsel %vm8797_vm0, %v1282_v13, 0.0 }
 0x15d   : > { %1284 = vadd.xlane.f32.xlu0 %v1283_v14 }
 0x15f   : > { %v1270_v15 = vpop.f32.mrf.mxu1 }
 0x1d0   : > { %v1285_v31 = vpop.xlane.xlu0 %1284 }
 0x1d1   : > { %v1293_v34 = vmul.f32 %v7041_v28, %v1285_v31  ;;  %v7083_v31 = vld [vmem:[%s6987_s20] sm:$0xff] }
 0x1d3   : > { %v1294_v35 = vadd.f32 1e-06, %v1293_v34 }
 0x1d5   : > { %6650 = vrsqrt.f32 %v1294_v35  ;;  %vm1301_vm4 = vweird.f32 %v1294_v35 }
 0x1db   : > { %v6651_v36 = vpop.eup %6650 }
 0x1dc   : > { %v1296_v37 = vmul.f32 %v6651_v36, %v1294_v35  ;;  %vm1302_vm3 = vweird.f32 %v6651_v36 }
 0x1dd   : > { %vm1303_vm5 = vmor %vm1301_vm4, %vm1302_vm3 }
 0x1de   : > { %v1297_v38 = vmul.f32 %v6651_v36, %v1296_v37 }
 0x1e0   : > { %v1298_v39 = vmul.f32 0.5, %v1297_v38 }
 0x1e2   : > { %v1299_v40 = vsub.f32 1.5, %v1298_v39 }
 0x1e4   : > { %v1300_v41 = vmul.f32 %v6651_v36, %v1299_v40  ;;  %v6428_v40 = vld [vmem:[%s8840_s3 + $0x18] sm:$0xff] }
 0x1e6   : > { %v1304_v43 = vsel %vm1303_vm5, %v6651_v36, %v1300_v41 }
 0x1e7   : > { %v1305_v44 = vmul.f32 %v1304_v43, %v7030_v12 }
 0x1e9   : > { %v1309_v45 = vmul.f32 %v6638_v42, %v1305_v44  ;;  %v6427_v44 = vld [vmem:[%s8840_s3 + $0x10] sm:$0xff] }
 0x1eb   : > { %v7050_v46 = vpack.c.bf16 %v1309_v45, %v1309_v45 }
 0x1ed   : > { %5832 = vmatmul.msk.bf16.vlgmr.msra.gmra.mxu2 %vm8797_vm0, %v7050_v46  ;;  %5841 = vmatmul.msk.bf16.vlgmr.msra.gmra.mxu3 %vm8797_vm0, %v7050_v46 }
 0x1ee   : > { %5850 = vmatmul.msk.bf16.vlgmr.msrb.gmra.mxu1 %vm8797_vm0, %v7050_v46 }
 0x1fd   : > { %5865 = vmatmul.msk.bf16.vlgmr.msrb.gmra.mxu3 %vm8797_vm0, %v7050_v46 }
 0x1fe   : > { %5878 = vmatmul.msk.bf16.vlgmr.msra.gmra.mxu1 %vm8797_vm0, %v7050_v46 }
 0x26b   : > { %v1397_v47 = vpop.f32.mrf.mxu1 }
 0x26c   : > { %v1495_v48 = vpack.c.bf16 %v1397_v47, %v1397_v47 }
 0x26e   : > { %v1501_v49 = vsel %vm8799_vm6, %v1495_v48, 0 }
 0x26f   : > { %1510 = vmatpush.bf16.msrb.mxu2 %v1501_v49 }
 0x270   : > { %v1339_v50 = vpop.f32.mrf.mxu2  ;;  %v1368_v51 = vpop.f32.mrf.mxu3 }
 0x271   : > { %v1417_v52 = vmul.f32 %v1368_v51, %v1368_v51  ;;  %v1401_v53 = vmul.f32 %v1339_v50, %v1339_v50 }
 0x273   : > { %v1399_v54 = vpop.f32.mrf.mxu1  ;;  %v1418_v55 = vsel %vm8796_vm1, %v1417_v52, 0.0  ;;  %v1402_v56 = vsel %vm8796_vm1, %v1401_v53, 0.0 }
 0x274   : > { %1419 = vadd.xlane.f32.xlu0 %v1418_v55  ;;  %1403 = vadd.xlane.f32.xlu1 %v1402_v56 }
 0x278   : > { %v1341_v57 = vpop.f32.mrf.mxu2  ;;  %v1370_v58 = vpop.f32.mrf.mxu3 }
 0x27b   : > { %v7065_v59 = vpop.f32.mrf.mxu1 }
 0x27c   : > { %v1625_v23 = vmul.f32 %v7065_v59, %v7065_v59 }
 0x27e   : > { %v1626_v25 = vsel %vm8796_vm1, %v1625_v23, 0.0 }
 0x280   : > { %v7067_v60 = vpop.f32.mrf.mxu3 }
 0x281   : > { %v1609_v22 = vmul.f32 %v7067_v60, %v7067_v60 }
 0x283   : > { %v1577_v61 = vpop.f32.mrf.mxu1  ;;  %v1610_v24 = vsel %vm8796_vm1, %v1609_v22, 0.0 }
 0x288   : > { %v1547_v62 = vpop.f32.mrf.mxu3 }
 0x2e7   : > { %v1420_v63 = vpop.xlane.xlu0 %1419  ;;  %v1404_v0 = vpop.xlane.xlu1 %1403 }
 0x2e8   : > { %v1421_v1 = vadd.f32 1e-06, %v1420_v63  ;;  %v1405_v2 = vadd.f32 1e-06, %v1404_v0 }
 0x2ea   : > { %6652 = vrsqrt.f32 %v1421_v1  ;;  %vm1428_vm9 = vweird.f32 %v1421_v1  ;;  %vm1412_vm10 = vweird.f32 %v1405_v2 }
 0x2eb   : > { %6654 = vrsqrt.f32 %v1405_v2 }
 0x2f0   : > { %v6653_v3 = vpop.eup %6652 }
 0x2f1   : > { %v6655_v4 = vpop.eup %6654  ;;  %v1423_v5 = vmul.f32 %v6653_v3, %v1421_v1  ;;  %vm1429_vm7 = vweird.f32 %v6653_v3 }
 0x2f2   : > { %v1407_v6 = vmul.f32 %v6655_v4, %v1405_v2  ;;  %vm1413_vm8 = vweird.f32 %v6655_v4  ;;  %vm1430_vm11 = vmor %vm1428_vm9, %vm1429_vm7 }
 0x2f3   : > { %v1424_v7 = vmul.f32 %v6653_v3, %v1423_v5  ;;  %vm1414_vm12 = vmor %vm1412_vm10, %vm1413_vm8  ;;  %v1272_v5 = vlaneseq }
 0x2f4   : > { %v1408_v8 = vmul.f32 %v6655_v4, %v1407_v6 }
 0x2f5   : > { %v1425_v9 = vmul.f32 0.5, %v1424_v7  ;;  %v7101_v6 = vshrl.u32 %v1272_v5, 7  ;;  %v7105_v7 = vand.u32 127, %v1272_v5 }
 0x2f6   : > { %v1409_v10 = vmul.f32 0.5, %v1408_v8  ;;  %v8844_v8 = vmov 0 }
 0x2f7   : > { %v1426_v11 = vsub.f32 1.5, %v1425_v9  ;;  %6565 = vset.pattern.permute.xlu0 %v7101_v6  ;;  %6573 = vset.pattern.permute.xlu2 %v7101_v6 }
 0x2f8   : > { %v1410_v13 = vsub.f32 1.5, %v1409_v10 }
 0x2f9   : > { %v1427_v14 = vmul.f32 %v6653_v3, %v1426_v11 }
 0x2fa   : > { %v1411_v15 = vmul.f32 %v6655_v4, %v1410_v13 }
 0x2fb   : > { %v1431_v16 = vsel %vm1430_vm11, %v6653_v3, %v1427_v14 }
 0x2fc   : > { %v1432_v17 = vmul.f32 %v1431_v16, %v1368_v51  ;;  %v1415_v18 = vsel %vm1414_vm12, %v6655_v4, %v1411_v15 }
 0x2fd   : > { %v1416_v19 = vmul.f32 %v1415_v18, %v1339_v50 }
 0x2fe   : > { %1453 = vrot.lane.b32.xlu2 %v1432_v17, %s8806_s28  ;;  %v1447_v20 = vsub.f32 0.0, %v1432_v17  ;;  %v1457_v35 = vmul.f32 %v1432_v17, %v7080_v27 }
 0x2ff   : > { %1439 = vrot.lane.b32.xlu0 %v1416_v19, %s8806_s28  ;;  %v1433_v21 = vsub.f32 0.0, %v1416_v19  ;;  %v1444_v41 = vmul.f32 %v1416_v19, %v7080_v27 }
 0x300   : > { %1449 = vrot.lane.b32.xlu1 %v1447_v20, %s8808_s1 }
 0x306   : > { %1435 = vrot.lane.b32.xlu2 %v1433_v21, %s8808_s1 }
 0x329   : > { %1611 = vadd.xlane.f32.xlu0 %v1610_v24 }
 0x32a   : > { %1627 = vadd.xlane.f32.xlu1 %v1626_v25 }
 0x358   : > { %v1454_v26 = vpop.permute.xlu2 %1453 }
 0x360   : > { %v1436_v33 = vpop.permute.xlu2 %1435 }
 0x371   : > { %v1440_v29 = vpop.permute.xlu0 %1439 }
 0x372   : > { %v1450_v30 = vpop.permute.xlu1 %1449  ;;  %v1443_v36 = vsel %vm8798_vm13, %v1436_v33, %v1440_v29 }
 0x373   : > { %v1456_v32 = vsel %vm8798_vm13, %v1450_v30, %v1454_v26  ;;  %v1445_v38 = vmul.f32 %v1443_v36, %v7083_v31 }
 0x374   : > { %v1458_v34 = vmul.f32 %v1456_v32, %v7083_v31 }
 0x375   : > { %v1446_v43 = vadd.f32 %v1445_v38, %v1444_v41 }
 0x376   : > { %v1459_v37 = vadd.f32 %v1458_v34, %v1457_v35 }
 0x377   : > { %v1460_v45 = vpack.c.bf16 %v1446_v43, %v1446_v43 }
 0x378   : > { %v1461_v39 = vpack.c.bf16 %v1459_v37, %v1459_v37 }
 0x37a   : > { %v1466_v42 = vsel %vm8796_vm1, %v1461_v39, 0 }
 0x37b   : > { %1475 = vmatpush.bf16.xpose.msrb.mxu0 %v1466_v42 }
 0x382   : > { %5851 = vmatmul.msk.bf16.vlgmr.msrb.gmra.mxu0 %vm8796_vm1, %v1460_v45 }
 0x383   : > { %1602 = vmatpush.bf16.msra.mxu0 %v6428_v40 }
 0x387   : > { %1603 = vmatpush.bf16.msra.mxu0 %v6427_v44 }
 0x392   : > { %5891 = vmatmul.msk.bf16.vlgmr.msra.gmra.mxu0 %vm8797_vm0, %v7050_v46 }
 0x39c   : > { %v1612_v47 = vpop.xlane.xlu0 %1611 }
 0x39d   : > { %v1613_v48 = vadd.f32 1e-06, %v1612_v47  ;;  %v1628_v49 = vpop.xlane.xlu1 %1627 }
 0x39e   : > { %v1629_v50 = vadd.f32 1e-06, %v1628_v49  ;;  %v6422_v49 = vld [vmem:[%s6852_s8] sm:$0xff] }
 0x39f   : > { %6656 = vrsqrt.f32 %v1613_v48  ;;  %vm1620_vm2 = vweird.f32 %v1613_v48  ;;  %1764 = vmatpush.bf16.msrb.mxu0 %v6422_v49 }
 0x3a0   : > { %6658 = vrsqrt.f32 %v1629_v50  ;;  %vm1636_vm4 = vweird.f32 %v1629_v50 }
 0x3a5   : > { %v6657_v51 = vpop.eup %6656 }
 0x3a6   : > { %v6659_v52 = vpop.eup %6658  ;;  %v1615_v53 = vmul.f32 %v6657_v51, %v1613_v48  ;;  %vm1621_vm14 = vweird.f32 %v6657_v51 }
 0x3a7   : > { %v1631_v54 = vmul.f32 %v6659_v52, %v1629_v50  ;;  %vm1637_vm15 = vweird.f32 %v6659_v52  ;;  %vm1622_vm3 = vmor %vm1620_vm2, %vm1621_vm14  ;;  %vm8803_vm14 = vcmask 523264  }
 0x3a8   : > { %v1616_v55 = vmul.f32 %v6657_v51, %v1615_v53  ;;  %vm1638_vm5 = vmor %vm1636_vm4, %vm1637_vm15 }
 0x3a9   : > { %v1632_v56 = vmul.f32 %v6659_v52, %v1631_v54 }
 0x3aa   : > { %v1617_v57 = vmul.f32 0.5, %v1616_v55 }
 0x3ab   : > { %v1633_v58 = vmul.f32 0.5, %v1632_v56 }
 0x3ac   : > { %v1618_v61 = vsub.f32 1.5, %v1617_v57 }
 0x3ad   : > { %v1634_v62 = vsub.f32 1.5, %v1633_v58 }
 0x3ae   : > { %v1619_v63 = vmul.f32 %v6657_v51, %v1618_v61 }
 0x3af   : > { %v1635_v46 = vmul.f32 %v6659_v52, %v1634_v62 }
 0x3b0   : > { %v1623_v0 = vsel %vm1622_vm3, %v6657_v51, %v1619_v63 }
 0x3b1   : > { %v1624_v1 = vmul.f32 %v1623_v0, %v7067_v60  ;;  %v1639_v2 = vsel %vm1638_vm5, %v6659_v52, %v1635_v46  ;;  %v1276_v60 = vsub.s32 %v7101_v6, %v7105_v7 }
 0x3b2   : > { %v1640_v3 = vmul.f32 %v1639_v2, %v7065_v59  ;;  %v7111_v59 = vsub.s32 %v7105_v7, %v7101_v6  ;;  %v6429_v2 = vld [vmem:[%s6852_s8 + $0x8] sm:$0xff] }
 0x3b3   : > { %v1641_v4 = vsub.f32 0.0, %v1624_v1  ;;  %vm7113_vm7 = vcmp.le.s32.totalorder %v1276_v60, 4  ;;  %v1651_v45 = vmul.f32 %v1624_v1, %v7080_v27  ;;  %1742 = vmatpush.bf16.msrb.mxu1 %v6429_v2  ;;  %v6438_v2 = vld [vmem:[%s6837_s25 + $0x20] sm:$0xff] }
 0x3b4   : > { %1660 = vrot.lane.b32.xlu1 %v1640_v3, %s8806_s28  ;;  %8843 = vst [vmem:[#allocation28_spill] sm:$0xff] %v7111_v59  ;;  %v8845_v8 = vsel %vm7113_vm7, 4294967295, %v8844_v8  ;;  %vm1279_vm8 = vcmp.le.s32.totalorder %v7111_v59, 0  ;;  %v1654_v20 = vsub.f32 0.0, %v1640_v3  ;;  %v1664_v29 = vmul.f32 %v1640_v3, %v7080_v27 }
 0x3b5   : > { %1643 = vrot.lane.b32.xlu0 %v1641_v4, %s8808_s1  ;;  %8846 = vst [vmem:[#allocation29_spill] sm:$0xff] %v8845_v8  ;;  %vm7120_vm9 = vmand %vm7113_vm7, %vm1279_vm8 }
 0x3ff   : > { %v1477_v9 = vpop.f32.mrf.mxu0 }
 0x400   : > { %v1481_v11 = vmul.f32 0.25, %v1477_v9 }
 0x402   : > { %v1482_v13 = vsel %vm7120_vm9, %v1481_v11, -1e+30 }
 0x403   : > { %v1483_v14 = vsel %vm8798_vm13, %v1482_v13, -inf }
 0x404   : > { %1484 = vmax.xlane.f32.xlu2 %v1483_v14 }
 0x407   : > { %v1479_v15 = vpop.f32.mrf.mxu0 }
 0x40f   : > { %v1605_v16 = vpop.f32.mrf.mxu0 }
 0x410   : > { %v1702_v17 = vpack.c.bf16 %v1605_v16, %v1605_v16 }
 0x412   : > { %v1707_v18 = vsel %vm8799_vm6, %v1702_v17, 0 }
 0x413   : > { %1716 = vmatpush.bf16.msra.mxu3 %v1707_v18 }
 0x417   : > { %v1607_v19 = vpop.f32.mrf.mxu0 }
 0x41c   : > { %1656 = vrot.lane.b32.xlu2 %v1654_v20, %s8808_s1  ;;  %v6431_v20 = vld [vmem:[%s6862_s19 + $0x8] sm:$0xff] }
 0x426   : > { %v1661_v24 = vpop.permute.xlu1 %1660 }
 0x427   : > { %v1644_v42 = vpop.permute.xlu0 %1643 }
 0x477   : > { %v1485_v21 = vpop.xlane.xlu2 %1484 }
 0x478   : > { %v1486_v22 = vsub.f32 %v1482_v13, %v1485_v21  ;;  %v6433_v21 = vld [vmem:[%s6867_s24 + $0x8] sm:$0xff] }
 0x479   : > { %1848 = vmatpush.bf16.msrb.mxu3 %v6433_v21 }
 0x47a   : > { %v1487_v23 = vmul.f32 1.442695, %v1486_v22  ;;  %v6430_v22 = vld [vmem:[%s6862_s19] sm:$0xff] }
 0x47c   : > { %6660 = vpow2.f32 %v1487_v23  ;;  %v6432_v23 = vld [vmem:[%s6867_s24] sm:$0xff] }
 0x47d   : > { %1849 = vmatpush.bf16.msrb.mxu3 %v6432_v23 }
 0x47f   : > { %v1657_v25 = vpop.permute.xlu2 %1656 }
 0x480   : > { %v1663_v26 = vsel %vm8798_vm13, %v1657_v25, %v1661_v24 }
 0x481   : > { %v1665_v30 = vmul.f32 %v1663_v26, %v7083_v31 }
 0x482   : > { %v6661_v32 = vpop.eup %6660 }
 0x483   : > { %v1666_v33 = vadd.f32 %v1665_v30, %v1664_v29  ;;  %v1489_v34 = vsel %vm8798_vm13, %v6661_v32, 0.0 }
 0x484   : > { %1490 = vadd.xlane.f32.xlu2 %v1489_v34 }
 0x485   : > { %v1668_v35 = vpack.c.bf16 %v1666_v33, %v1666_v33 }
 0x487   : > { %v1673_v36 = vsel %vm8796_vm1, %v1668_v35, 0  ;;  %v6639_v35 = vld [vmem:[%s6857_s14] ss:$0 sm:$0xff] }
 0x488   : > { %1682 = vmatpush.bf16.xpose.msra.mxu2 %v1673_v36 }
 0x49c   : > { %1647 = vrot.lane.b32.xlu2 %v1624_v1, %s8806_s28 }
 0x4f7   : > { %v1491_v37 = vpop.xlane.xlu2 %1490 }
 0x4f8   : > { %6662 = vrcp.f32 %v1491_v37 }
 0x4fe   : > { %v6663_v38 = vpop.eup %6662 }
 0x4ff   : > { %v1493_v39 = vmul.f32 %v6663_v38, %v6661_v32  ;;  %v1648_v41 = vpop.permute.xlu2 %1647 }
 0x500   : > { %v1650_v43 = vsel %vm8798_vm13, %v1644_v42, %v1648_v41  ;;  %v6436_v41 = vld [vmem:[%s8849_s2 + $0x10] sm:$0xff]  ;;  %v6435_v42 = vld [vmem:[%s8849_s2 + $0x8] sm:$0xff] }
 0x501   : > { %v1494_v40 = vpack.c.bf16 %v1493_v39, %v1493_v39  ;;  %v1652_v44 = vmul.f32 %v1650_v43, %v7083_v31  ;;  %v6434_v43 = vld [vmem:[%s8849_s2] sm:$0xff] }
 0x503   : > { %5852 = vmatmul.msk.bf16.vlgmr.msrb.gmra.mxu2 %vm8798_vm13, %v1494_v40  ;;  %v1653_v47 = vadd.f32 %v1652_v44, %v1651_v45  ;;  %v6437_v40 = vld [vmem:[%s8849_s2 + $0x18] sm:$0xff] }
 0x504   : > { %1819 = vmatpush.bf16.msrb.mxu2 %v6431_v20  ;;  %1903 = vmatpush.bf16.msra.mxu1 %v6437_v40 }
 0x505   : > { %v1667_v48 = vpack.c.bf16 %v1653_v47, %v1653_v47 }
 0x508   : > { %1820 = vmatpush.bf16.msrb.mxu2 %v6430_v22  ;;  %1904 = vmatpush.bf16.msra.mxu1 %v6436_v41  ;;  %v6640_v22 = vld [vmem:[%s6832_s21 + $0x1] ss:$0 sm:$0xff] }
 0x50c   : > { %1905 = vmatpush.bf16.msra.mxu1 %v6435_v42 }
 0x510   : > { %1906 = vmatpush.bf16.msra.mxu1 %v6434_v43 }
 0x513   : > { %5892 = vmatmul.msk.bf16.vlgmr.msra.gmra.mxu2 %vm8796_vm1, %v1667_v48 }
 0x586   : > { %v1512_v50 = vpop.f32.mrf.mxu2 }
 0x587   : > { %v1516_v51 = vpack.c.bf16 %v1512_v50, %v1512_v50 }
 0x589   : > { %5905 = vmatmul.msk.bf16.vlgmr.msrb.gmra.mxu0 %vm8796_vm1, %v1516_v51 }
 0x58e   : > { %v1514_v52 = vpop.f32.mrf.mxu2 }
 0x596   : > { %v1684_v53 = vpop.f32.mrf.mxu2 }
 0x597   : > { %v1688_v54 = vmul.f32 0.25, %v1684_v53 }
 0x599   : > { %v1689_v55 = vsel %vm7120_vm9, %v1688_v54, -1e+30 }
 0x59a   : > { %v1690_v56 = vsel %vm8798_vm13, %v1689_v55, -inf }
 0x59b   : > { %1691 = vmax.xlane.f32.xlu2 %v1690_v56 }
 0x59e   : > { %v1686_v57 = vpop.f32.mrf.mxu2 }
 0x606   : > { %v1766_v58 = vpop.f32.mrf.mxu0 }
 0x60e   : > { %v1692_v61 = vpop.xlane.xlu2 %1691  ;;  %v1768_v62 = vpop.f32.mrf.mxu0 }
 0x60f   : > { %v1693_v63 = vsub.f32 %v1689_v55, %v1692_v61 }
 0x611   : > { %v1694_v46 = vmul.f32 1.442695, %v1693_v63 }
 0x613   : > { %6664 = vpow2.f32 %v1694_v46  ;;  %v6439_v46 = vld [vmem:[%s6837_s25 + $0x28] sm:$0xff] }
 0x614   : > { %1963 = vmatpush.bf16.msra.mxu0 %v6439_v46 }
 0x618   : > { %1964 = vmatpush.bf16.msra.mxu0 %v6438_v2 }
 0x619   : > { %v6665_v0 = vpop.eup %6664 }
 0x61a   : > { %v1696_v1 = vsel %vm8798_vm13, %v6665_v0, 0.0 }
 0x61b   : > { %1697 = vadd.xlane.f32.xlu0 %v1696_v1  ;;  %v6443_v1 = vld [vmem:[%s8840_s3 + $0x28] sm:$0xff] }
 0x68e   : > { %v1698_v3 = vpop.xlane.xlu0 %1697 }
 0x68f   : > { %6666 = vrcp.f32 %v1698_v3  ;;  %v6440_v3 = vld [vmem:[%s6842_s29 + $0x20] sm:$0xff] }
 0x695   : > { %v6667_v4 = vpop.eup %6666 }
 0x696   : > { %v1700_v5 = vmul.f32 %v6667_v4, %v6665_v0  ;;  %v6441_v0 = vld [vmem:[%s6842_s29 + $0x28] sm:$0xff]  ;;  %v6442_v4 = vld [vmem:[%s8840_s3 + $0x20] sm:$0xff] }
 0x697   : > { %1993 = vmatpush.bf16.msra.mxu2 %v6441_v0 }
 0x698   : > { %v1701_v60 = vpack.c.bf16 %v1700_v5, %v1700_v5  ;;  %v6446_v5 = vld [vmem:[%s6837_s25 + $0x38] sm:$0xff] }
 0x69a   : > { %5893 = vmatmul.msk.bf16.vlgmr.msra.gmra.mxu3 %vm8798_vm13, %v1701_v60  ;;  %v6448_v60 = vld [vmem:[%s6842_s29 + $0x38] sm:$0xff] }
 0x69b   : > { %2023 = vmatpush.bf16.msra.mxu3 %v6443_v1  ;;  %1994 = vmatpush.bf16.msra.mxu2 %v6440_v3 }
 0x69f   : > { %2024 = vmatpush.bf16.msra.mxu3 %v6442_v4 }
 0x71d   : > { %v1718_v9 = vpop.f32.mrf.mxu3 }
 0x71e   : > { %v1722_v11 = vpack.c.bf16 %v1718_v9, %v1718_v9 }
 0x720   : > { %5900 = vmatmul.msk.bf16.vlgmr.msrb.gmra.mxu1 %vm8796_vm1, %v1722_v11  ;;  %v6445_v11 = vld [vmem:[%s6837_s25 + $0x30] sm:$0xff] }
 0x725   : > { %v1720_v13 = vpop.f32.mrf.mxu3 }
 0x726   : > { %v6447_v13 = vld [vmem:[%s6842_s29 + $0x30] sm:$0xff] }
 0x79d   : > { %v1744_v14 = vpop.f32.mrf.mxu1 }
 0x79e   : > { %v1767_v15 = vadd.f32 %v1766_v58, %v1744_v14 }
 0x7a0   : > { %v1770_v16 = vadd.f32 %v1767_v15, %v7030_v12 }
 0x7a2   : > { %v1772_v17 = vmul.f32 %v1770_v16, %v1770_v16 }
 0x7a4   : > { %v1773_v18 = vsel %vm8797_vm0, %v1772_v17, 0.0 }
 0x7a5   : > { %v1746_v19 = vpop.f32.mrf.mxu1  ;;  %1774 = vadd.xlane.f32.xlu1 %v1773_v18 }
 0x818   : > { %v1775_v24 = vpop.xlane.xlu1 %1774 }
 0x819   : > { %v1776_v25 = vmul.f32 %v1775_v24, %v7041_v28 }
 0x81b   : > { %v1777_v26 = vadd.f32 1e-06, %v1776_v25 }
 0x81d   : > { %6668 = vrsqrt.f32 %v1777_v26  ;;  %vm1784_vm11 = vweird.f32 %v1777_v26 }
 0x823   : > { %v6669_v12 = vpop.eup %6668 }
 0x824   : > { %v1779_v29 = vmul.f32 %v6669_v12, %v1777_v26  ;;  %vm1785_vm10 = vweird.f32 %v6669_v12 }
 0x825   : > { %vm1786_vm12 = vmor %vm1784_vm11, %vm1785_vm10 }
 0x826   : > { %v1780_v30 = vmul.f32 %v6669_v12, %v1779_v29 }
 0x828   : > { %v1781_v32 = vmul.f32 0.5, %v1780_v30 }
 0x82a   : > { %v1782_v33 = vsub.f32 1.5, %v1781_v32 }
 0x82c   : > { %v1783_v34 = vmul.f32 %v6669_v12, %v1782_v33 }
 0x82e   : > { %v1787_v36 = vsel %vm1786_vm12, %v6669_v12, %v1783_v34 }
 0x82f   : > { %v1788_v37 = vmul.f32 %v1787_v36, %v1770_v16 }
 0x831   : > { %v1792_v38 = vmul.f32 %v6639_v35, %v1788_v37 }
 0x833   : > { %v1793_v39 = vpack.c.bf16 %v1792_v38, %v1792_v38 }
 0x835   : > { %5914 = vmatmul.msk.bf16.vlgmr.msrb.gmra.mxu2 %vm8797_vm0, %v1793_v39  ;;  %5923 = vmatmul.msk.bf16.vlgmr.msrb.gmra.mxu3 %vm8797_vm0, %v1793_v39 }
 0x836   : > { %2170 = vmatpush.bf16.msrb.mxu2 %v6446_v5  ;;  %2200 = vmatpush.bf16.msrb.mxu3 %v6448_v60 }
 0x83a   : > { %2171 = vmatpush.bf16.msrb.mxu2 %v6445_v11  ;;  %2201 = vmatpush.bf16.msrb.mxu3 %v6447_v13 }
 0x8b8   : > { %v1822_v44 = vpop.f32.mrf.mxu2  ;;  %v1851_v45 = vpop.f32.mrf.mxu3 }
 0x8b9   : > { %v1855_v47 = vsub.f32 0.0, %v1822_v44 }
 0x8bb   : > { %v1856_v48 = vmul.f32 1.442695, %v1855_v47 }
 0x8bd   : > { %6670 = vpow2.f32 %v1856_v48 }
 0x8c0   : > { %v1824_v49 = vpop.f32.mrf.mxu2  ;;  %v1853_v50 = vpop.f32.mrf.mxu3 }
 0x8c3   : > { %v6671_v51 = vpop.eup %6670 }
 0x8c4   : > { %v1858_v52 = vadd.f32 1.0, %v6671_v51 }
 0x8c6   : > { %6672 = vrcp.f32 %v1858_v52 }
 0x8cc   : > { %v6673_v53 = vpop.eup %6672 }
 0x8cd   : > { %v1860_v54 = vmul.f32 %v6673_v53, %v1822_v44 }
 0x8cf   : > { %v1861_v55 = vmul.f32 %v1860_v54, %v1851_v45 }
 0x8d1   : > { %v1862_v56 = vpack.c.bf16 %v1861_v55, %v1861_v55 }
 0x8d3   : > { %5940 = vmatmul.msk.bf16.vlgmr.msra.gmra.mxu1 %vm8803_vm14, %v1862_v56 }
 0x950   : > { %v1908_v57 = vpop.f32.mrf.mxu1 }
 0x951   : > { %v7164_v58 = vadd.f32 %v1908_v57, %v1770_v16 }
 0x953   : > { %v1915_v61 = vmul.f32 %v7164_v58, %v7164_v58 }
 0x955   : > { %v1916_v62 = vsel %vm8797_vm0, %v1915_v61, 0.0 }
 0x956   : > { %1917 = vadd.xlane.f32.xlu2 %v1916_v62 }
 0x958   : > { %v1910_v63 = vpop.f32.mrf.mxu1 }
 0x9c9   : > { %v1918_v9 = vpop.xlane.xlu2 %1917 }
 0x9ca   : > { %v1919_v14 = vmul.f32 %v1918_v9, %v7041_v28 }
 0x9cc   : > { %v1920_v15 = vadd.f32 1e-06, %v1919_v14 }
 0x9ce   : > { %6674 = vrsqrt.f32 %v1920_v15  ;;  %vm1927_vm2 = vweird.f32 %v1920_v15 }
 0x9d4   : > { %v6675_v16 = vpop.eup %6674 }
 0x9d5   : > { %v1922_v17 = vmul.f32 %v6675_v16, %v1920_v15  ;;  %vm1928_vm15 = vweird.f32 %v6675_v16 }
 0x9d6   : > { %vm1929_vm3 = vmor %vm1927_vm2, %vm1928_vm15 }
 0x9d7   : > { %v1923_v18 = vmul.f32 %v6675_v16, %v1922_v17 }
 0x9d9   : > { %v1924_v19 = vmul.f32 0.5, %v1923_v18 }
 0x9db   : > { %v1925_v20 = vsub.f32 1.5, %v1924_v19 }
 0x9dd   : > { %v1926_v21 = vmul.f32 %v6675_v16, %v1925_v20 }
 0x9df   : > { %v1930_v23 = vsel %vm1929_vm3, %v6675_v16, %v1926_v21  ;;  %v6450_v21 = vld [vmem:[%s8840_s3 + $0x38] sm:$0xff] }
 0x9e0   : > { %v1931_v24 = vmul.f32 %v1930_v23, %v7164_v58 }
 0x9e2   : > { %v1935_v25 = vmul.f32 %v6640_v22, %v1931_v24 }
 0x9e4   : > { %v7182_v26 = vpack.c.bf16 %v1935_v25, %v1935_v25 }
 0x9e6   : > { %5954 = vmatmul.msk.bf16.vlgmr.msra.gmra.mxu0 %vm8797_vm0, %v7182_v26  ;;  %5967 = vmatmul.msk.bf16.vlgmr.msra.gmra.mxu2 %vm8797_vm0, %v7182_v26 }
 0x9e7   : > { %5980 = vmatmul.msk.bf16.vlgmr.msra.gmra.mxu3 %vm8797_vm0, %v7182_v26 }
 0x9f6   : > { %5997 = vmatmul.msk.bf16.vlgmr.msrb.gmra.mxu2 %vm8797_vm0, %v7182_v26 }
 0x9f7   : > { %6010 = vmatmul.msk.bf16.vlgmr.msrb.gmra.mxu3 %vm8797_vm0, %v7182_v26 }
 0xa63   : > { %v1966_v12 = vpop.f32.mrf.mxu0 }
 0xa64   : > { %v2030_v29 = vmul.f32 %v1966_v12, %v1966_v12 }
 0xa66   : > { %v2031_v30 = vsel %vm8796_vm1, %v2030_v29, 0.0 }
 0xa67   : > { %2032 = vadd.xlane.f32.xlu1 %v2031_v30  ;;  %v6449_v30 = vld [vmem:[%s8840_s3 + $0x30] sm:$0xff]  ;;  %s9009_s3 = sld [smem:[#allocation18_spill]] }
 0xa69   : > { %v1996_v32 = vpop.f32.mrf.mxu2 }
 0xa6a   : > { %v2026_v33 = vpop.f32.mrf.mxu3  ;;  %v2046_v34 = vmul.f32 %v1996_v32, %v1996_v32 }
 0xa6b   : > { %v2123_v35 = vpack.c.bf16 %v2026_v33, %v2026_v33  ;;  %v1968_v36 = vpop.f32.mrf.mxu0 }
 0xa6c   : > { %v2047_v37 = vsel %vm8796_vm1, %v2046_v34, 0.0 }
 0xa6d   : > { %v2128_v38 = vsel %vm8799_vm6, %v2123_v35, 0  ;;  %2048 = vadd.xlane.f32.xlu0 %v2047_v37 }
 0xa6e   : > { %2137 = vmatpush.bf16.msrb.mxu0 %v2128_v38 }
 0xa71   : > { %v1998_v39 = vpop.f32.mrf.mxu2 }
 0xa72   : > { %v2028_v40 = vpop.f32.mrf.mxu3 }
 0xa79   : > { %v7197_v41 = vpop.f32.mrf.mxu2 }
 0xa7a   : > { %v7199_v42 = vpop.f32.mrf.mxu3  ;;  %v2237_v11 = vmul.f32 %v7197_v41, %v7197_v41 }
 0xa7b   : > { %v2253_v60 = vmul.f32 %v7199_v42, %v7199_v42 }
 0xa7c   : > { %v2238_v13 = vsel %vm8796_vm1, %v2237_v11, 0.0 }
 0xa7d   : > { %v2254_v9 = vsel %vm8796_vm1, %v2253_v60, 0.0 }
 0xa81   : > { %v2175_v43 = vpop.f32.mrf.mxu2 }
 0xa82   : > { %v2205_v44 = vpop.f32.mrf.mxu3 }
 0xada   : > { %v2033_v45 = vpop.xlane.xlu1 %2032 }
 0xadb   : > { %v2034_v47 = vadd.f32 1e-06, %v2033_v45 }
 0xadd   : > { %6676 = vrsqrt.f32 %v2034_v47  ;;  %vm2041_vm5 = vweird.f32 %v2034_v47 }
 0xae0   : > { %v2049_v48 = vpop.xlane.xlu0 %2048 }
 0xae1   : > { %v2050_v49 = vadd.f32 1e-06, %v2049_v48 }
 0xae3   : > { %v6677_v50 = vpop.eup %6676  ;;  %6678 = vrsqrt.f32 %v2050_v49  ;;  %vm2057_vm11 = vweird.f32 %v2050_v49 }
 0xae4   : > { %v2036_v51 = vmul.f32 %v6677_v50, %v2034_v47  ;;  %vm2042_vm4 = vweird.f32 %v6677_v50 }
 0xae5   : > { %vm2043_vm8 = vmor %vm2041_vm5, %vm2042_vm4 }
 0xae6   : > { %v2037_v52 = vmul.f32 %v6677_v50, %v2036_v51 }
 0xae8   : > { %v2038_v53 = vmul.f32 0.5, %v2037_v52 }
 0xae9   : > { %v6679_v54 = vpop.eup %6678 }
 0xaea   : > { %v2039_v55 = vsub.f32 1.5, %v2038_v53  ;;  %v2052_v56 = vmul.f32 %v6679_v54, %v2050_v49  ;;  %vm2058_vm10 = vweird.f32 %v6679_v54 }
 0xaeb   : > { %vm2059_vm12 = vmor %vm2057_vm11, %vm2058_vm10 }
 0xaec   : > { %v2040_v57 = vmul.f32 %v6677_v50, %v2039_v55  ;;  %v2053_v61 = vmul.f32 %v6679_v54, %v2052_v56 }
 0xaee   : > { %v2054_v62 = vmul.f32 0.5, %v2053_v61  ;;  %v2044_v63 = vsel %vm2043_vm8, %v6677_v50, %v2040_v57 }
 0xaef   : > { %v2045_v46 = vmul.f32 %v2044_v63, %v1966_v12 }
 0xaf0   : > { %v2055_v0 = vsub.f32 1.5, %v2054_v62 }
 0xaf1   : > { %v2062_v1 = vsub.f32 0.0, %v2045_v46  ;;  %v2072_v12 = vmul.f32 %v2045_v46, %v7080_v27 }
 0xaf2   : > { %v2056_v2 = vmul.f32 %v6679_v54, %v2055_v0 }
 0xaf3   : > { %2064 = vrot.lane.b32.xlu1 %v2062_v1, %s8808_s1 }
 0xaf4   : > { %v2060_v3 = vsel %vm2059_vm12, %v6679_v54, %v2056_v2 }
 0xaf5   : > { %v2061_v4 = vmul.f32 %v2060_v3, %v1996_v32 }
 0xaf7   : > { %2081 = vrot.lane.b32.xlu0 %v2061_v4, %s8806_s28  ;;  %v2075_v5 = vsub.f32 0.0, %v2061_v4  ;;  %v2085_v17 = vmul.f32 %v2061_v4, %v7080_v27 }
 0xaf9   : > { %2077 = vrot.lane.b32.xlu2 %v2075_v5, %s8808_s1 }
 0xaff   : > { %2068 = vrot.lane.b32.xlu0 %v2045_v46, %s8806_s28 }
 0xb1d   : > { %2255 = vadd.xlane.f32.xlu1 %v2254_v9 }
 0xb29   : > { %2239 = vadd.xlane.f32.xlu0 %v2238_v13 }
 0xb53   : > { %v2078_v14 = vpop.permute.xlu2 %2077 }
 0xb65   : > { %v2065_v22 = vpop.permute.xlu1 %2064 }
 0xb69   : > { %v2082_v15 = vpop.permute.xlu0 %2081 }
 0xb6a   : > { %v2084_v16 = vsel %vm8798_vm13, %v2078_v14, %v2082_v15 }
 0xb6b   : > { %v2086_v18 = vmul.f32 %v2084_v16, %v7083_v31 }
 0xb6d   : > { %v2087_v19 = vadd.f32 %v2086_v18, %v2085_v17 }
 0xb6f   : > { %v2089_v20 = vpack.c.bf16 %v2087_v19, %v2087_v19 }
 0xb71   : > { %v2069_v23 = vpop.permute.xlu0 %2068  ;;  %v2094_v24 = vsel %vm8796_vm1, %v2089_v20, 0 }
 0xb72   : > { %v2071_v25 = vsel %vm8798_vm13, %v2065_v22, %v2069_v23  ;;  %2103 = vmatpush.bf16.xpose.msrb.mxu1 %v2094_v24 }
 0xb73   : > { %v2073_v29 = vmul.f32 %v2071_v25, %v7083_v31 }
 0xb75   : > { %v2074_v32 = vadd.f32 %v2073_v29, %v2072_v12 }
 0xb77   : > { %v2088_v33 = vpack.c.bf16 %v2074_v32, %v2074_v32 }
 0xb79   : > { %5981 = vmatmul.msk.bf16.vlgmr.msrb.gmra.mxu1 %vm8796_vm1, %v2088_v33 }
 0xb7a   : > { %2230 = vmatpush.bf16.msra.mxu1 %v6450_v21 }
 0xb7e   : > { %2231 = vmatpush.bf16.msra.mxu1 %v6449_v30 }
 0xb89   : > { %6023 = vmatmul.msk.bf16.vlgmr.msra.gmra.mxu1 %vm8797_vm0, %v7182_v26 }
 0xb90   : > { %v2256_v34 = vpop.xlane.xlu1 %2255 }
 0xb91   : > { %v2257_v35 = vadd.f32 1e-06, %v2256_v34  ;;  %v6444_v34 = vld [vmem:[%s6852_s8 + $0x10] sm:$0xff] }
 0xb92   : > { %2392 = vmatpush.bf16.msrb.mxu1 %v6444_v34  ;;  %v7288_v34 = vadd.s32 16, %v7101_v6 }
 0xb93   : > { %6680 = vrsqrt.f32 %v2257_v35  ;;  %vm2264_vm2 = vweird.f32 %v2257_v35 }
 0xb99   : > { %v6681_v36 = vpop.eup %6680 }
 0xb9a   : > { %v2259_v37 = vmul.f32 %v6681_v36, %v2257_v35  ;;  %vm2265_vm15 = vweird.f32 %v6681_v36 }
 0xb9b   : > { %vm2266_vm3 = vmor %vm2264_vm2, %vm2265_vm15 }
 0xb9c   : > { %v2260_v38 = vmul.f32 %v6681_v36, %v2259_v37  ;;  %v2240_v39 = vpop.xlane.xlu0 %2239 }
 0xb9d   : > { %v2241_v40 = vadd.f32 1e-06, %v2240_v39 }
 0xb9e   : > { %v2261_v43 = vmul.f32 0.5, %v2260_v38 }
 0xb9f   : > { %6682 = vrsqrt.f32 %v2241_v40  ;;  %vm2248_vm5 = vweird.f32 %v2241_v40 }
 0xba0   : > { %v2262_v44 = vsub.f32 1.5, %v2261_v43 }
 0xba2   : > { %v2263_v45 = vmul.f32 %v6681_v36, %v2262_v44 }
 0xba4   : > { %v2267_v47 = vsel %vm2266_vm3, %v6681_v36, %v2263_v45  ;;  %vm3538_vm3 = vcmask 130112  }
 0xba5   : > { %v6683_v48 = vpop.eup %6682  ;;  %v2268_v49 = vmul.f32 %v2267_v47, %v7199_v42 }
 0xba6   : > { %v2243_v26 = vmul.f32 %v6683_v48, %v2241_v40  ;;  %vm2249_vm4 = vweird.f32 %v6683_v48 }
 0xba7   : > { %2288 = vrot.lane.b32.xlu0 %v2268_v49, %s8806_s28  ;;  %v2282_v50 = vsub.f32 0.0, %v2268_v49  ;;  %vm2250_vm8 = vmor %vm2248_vm5, %vm2249_vm4  ;;  %v2292_v5 = vmul.f32 %v2268_v49, %v7080_v27  ;;  %vm3542_vm4 = vcmask 195712   ;;  %vm3546_vm5 = vcmask 261312  }
 0xba8   : > { %v2244_v51 = vmul.f32 %v6683_v48, %v2243_v26 }
 0xba9   : > { %2284 = vrot.lane.b32.xlu1 %v2282_v50, %s8808_s1  ;;  %v6451_v50 = vld [vmem:[%s6852_s8 + $0x18] sm:$0xff] }
 0xbaa   : > { %v2245_v52 = vmul.f32 0.5, %v2244_v51  ;;  %2370 = vmatpush.bf16.msra.mxu3 %v6451_v50 }
 0xbac   : > { %v2246_v53 = vsub.f32 1.5, %v2245_v52 }
 0xbae   : > { %v2247_v54 = vmul.f32 %v6683_v48, %v2246_v53 }
 0xbb0   : > { %v2251_v55 = vsel %vm2250_vm8, %v6683_v48, %v2247_v54  ;;  %vm3550_vm8 = vcmask 326912  }
 0xbb1   : > { %v2252_v56 = vmul.f32 %v2251_v55, %v7197_v41 }
 0xbb3   : > { %2275 = vrot.lane.b32.xlu0 %v2252_v56, %s8806_s28  ;;  %v2269_v19 = vsub.f32 0.0, %v2252_v56  ;;  %v2279_v30 = vmul.f32 %v2252_v56, %v7080_v27  ;;  %s8968_s28 = sld [smem:[#allocation16_spill]] }
 0xbf6   : > { %v2105_v57 = vpop.f32.mrf.mxu1 }
 0xbf7   : > { %v2109_v42 = vmul.f32 0.25, %v2105_v57 }
 0xbf9   : > { %v2110_v61 = vsel %vm7120_vm9, %v2109_v42, -1e+30 }
 0xbfa   : > { %v2111_v62 = vsel %vm8798_vm13, %v2110_v61, -inf }
 0xbfb   : > { %2112 = vmax.xlane.f32.xlu2 %v2111_v62 }
 0xbfe   : > { %v2107_v63 = vpop.f32.mrf.mxu1 }
 0xc06   : > { %v2233_v46 = vpop.f32.mrf.mxu1 }
 0xc07   : > { %v2330_v0 = vpack.c.bf16 %v2233_v46, %v2233_v46 }
 0xc09   : > { %v2335_v1 = vsel %vm8799_vm6, %v2330_v0, 0  ;;  %v6453_v0 = vld [vmem:[%s6862_s19 + $0x18] sm:$0xff] }
 0xc0a   : > { %2344 = vmatpush.bf16.msra.mxu2 %v2335_v1  ;;  %v6455_v1 = vld [vmem:[%s6867_s24 + $0x18] sm:$0xff] }
 0xc0e   : > { %v2235_v2 = vpop.f32.mrf.mxu1  ;;  %2479 = vmatpush.bf16.msrb.mxu2 %v6455_v1 }
 0xc0f   : > { %v6452_v2 = vld [vmem:[%s6862_s19 + $0x10] sm:$0xff] }
 0xc19   : > { %v2289_v3 = vpop.permute.xlu0 %2288 }
 0xc1b   : > { %v2285_v4 = vpop.permute.xlu1 %2284 }
 0xc1c   : > { %v2291_v41 = vsel %vm8798_vm13, %v2285_v4, %v2289_v3  ;;  %v6454_v3 = vld [vmem:[%s6867_s24 + $0x10] sm:$0xff]  ;;  %v2610_v4 = vld [vmem:[%s8850_s7] sm:$0xf]  ;;  %s8963_s7 = sld [smem:[#allocation12_spill]] }
 0xc1d   : > { %v2293_v60 = vmul.f32 %v2291_v41, %v7083_v31  ;;  %2480 = vmatpush.bf16.msrb.mxu2 %v6454_v3 }
 0xc1f   : > { %v2294_v9 = vadd.f32 %v2293_v60, %v2292_v5 }
 0xc21   : > { %v2296_v11 = vpack.c.bf16 %v2294_v9, %v2294_v9 }
 0xc23   : > { %v2301_v13 = vsel %vm8796_vm1, %v2296_v11, 0 }
 0xc24   : > { %2310 = vmatpush.bf16.xpose.msra.mxu0 %v2301_v13 }
 0xc25   : > { %v2276_v25 = vpop.permute.xlu0 %2275 }
 0xc6e   : > { %v2113_v14 = vpop.xlane.xlu2 %2112 }
 0xc6f   : > { %v2114_v15 = vsub.f32 %v2110_v61, %v2113_v14 }
 0xc71   : > { %v2115_v16 = vmul.f32 1.442695, %v2114_v15 }
 0xc73   : > { %6684 = vpow2.f32 %v2115_v16 }
 0xc79   : > { %v6685_v17 = vpop.eup %6684 }
 0xc7a   : > { %v2117_v18 = vsel %vm8798_vm13, %v6685_v17, 0.0 }
 0xc7b   : > { %2118 = vadd.xlane.f32.xlu2 %v2117_v18 }
 0xc93   : > { %2271 = vrot.lane.b32.xlu2 %v2269_v19, %s8808_s1 }
 0xcee   : > { %v2119_v20 = vpop.xlane.xlu2 %2118 }
 0xcef   : > { %6686 = vrcp.f32 %v2119_v20 }
 0xcf5   : > { %v6687_v21 = vpop.eup %6686 }
 0xcf6   : > { %v2121_v22 = vmul.f32 %v6687_v21, %v6685_v17  ;;  %v2272_v24 = vpop.permute.xlu2 %2271  ;;  %v6641_v17 = vld [vmem:[%s6857_s14 + $0x1] ss:$0 sm:$0xff] }
 0xcf7   : > { %v2278_v12 = vsel %vm8798_vm13, %v2272_v24, %v2276_v25  ;;  %v6464_v24 = vld [vmem:[%s8851_s10 + $0x10] sm:$0xff]  ;;  %v6465_v25 = vld [vmem:[%s8851_s10 + $0x18] sm:$0xff] }
 0xcf8   : > { %v2122_v23 = vpack.c.bf16 %v2121_v22, %v2121_v22  ;;  %v2280_v29 = vmul.f32 %v2278_v12, %v7083_v31  ;;  %v6462_v22 = vld [vmem:[%s8851_s10] sm:$0xff]  ;;  %v6459_v12 = vld [vmem:[%s8849_s2 + $0x38] sm:$0xff] }
 0xcf9   : > { %2534 = vmatpush.bf16.msrb.mxu3 %v6459_v12 }
 0xcfa   : > { %5982 = vmatmul.msk.bf16.vlgmr.msrb.gmra.mxu0 %vm8798_vm13, %v2122_v23  ;;  %v2281_v32 = vadd.f32 %v2280_v29, %v2279_v30  ;;  %v6463_v23 = vld [vmem:[%s8851_s10 + $0x8] sm:$0xff]  ;;  %v6458_v29 = vld [vmem:[%s8849_s2 + $0x30] sm:$0xff]  ;;  %v7281_v30 = vadd.s32 8, %v7101_v6 }
 0xcfb   : > { %2449 = vmatpush.bf16.msrb.mxu0 %v6453_v0 }
 0xcfc   : > { %v2295_v33 = vpack.c.bf16 %v2281_v32, %v2281_v32  ;;  %6566 = vset.pattern.permute.xlu1 %v7281_v30  ;;  %v6457_v32 = vld [vmem:[%s8849_s2 + $0x28] sm:$0xff] }
 0xcfd   : > { %2535 = vmatpush.bf16.msrb.mxu3 %v6458_v29 }
 0xcff   : > { %2450 = vmatpush.bf16.msrb.mxu0 %v6452_v2 }
 0xd01   : > { %2536 = vmatpush.bf16.msrb.mxu3 %v6457_v32 }
 0xd0a   : > { %6024 = vmatmul.msk.bf16.vlgmr.msra.gmra.mxu0 %vm8796_vm1, %v2295_v33  ;;  %v6456_v33 = vld [vmem:[%s8849_s2 + $0x20] sm:$0xff]  ;;  %s9006_s2 = sld [smem:[#allocation20_spill]] }
 0xd0b   : > { %2537 = vmatpush.bf16.msrb.mxu3 %v6456_v33 }
 0xd77   : > { %v2139_v35 = vpop.f32.mrf.mxu0 }
 0xd78   : > { %v2143_v36 = vpack.c.bf16 %v2139_v35, %v2139_v35 }
 0xd7a   : > { %6037 = vmatmul.msk.bf16.vlgmr.msrb.gmra.mxu1 %vm8796_vm1, %v2143_v36 }
 0xd7f   : > { %v2141_v37 = vpop.f32.mrf.mxu0 }
 0xd80   : > { %v7291_v37 = vadd.s32 24, %v7101_v6 }
 0xd87   : > { %v2312_v38 = vpop.f32.mrf.mxu0 }
 0xd88   : > { %v2316_v39 = vmul.f32 0.25, %v2312_v38 }
 0xd8a   : > { %v2317_v40 = vsel %vm7120_vm9, %v2316_v39, -1e+30 }
 0xd8b   : > { %v2318_v31 = vsel %vm8798_vm13, %v2317_v40, -inf }
 0xd8c   : > { %2319 = vmax.xlane.f32.xlu1 %v2318_v31 }
 0xd8f   : > { %v2314_v27 = vpop.f32.mrf.mxu0 }
 0xda5   : > { %3778 = vperm.xlu1 %6566, %v7105_v7  }
 0xdad   : > { %6567 = vset.pattern.permute.xlu1 %v7288_v34 }
 0xdb5   : > { %3784 = vperm.xlu1 %6567, %v7105_v7  }
 0xdf7   : > { %v2394_v43 = vpop.f32.mrf.mxu1 }
 0xdff   : > { %v2396_v44 = vpop.f32.mrf.mxu1  ;;  %v2320_v45 = vpop.xlane.xlu1 %2319 }
 0xe00   : > { %v2321_v47 = vsub.f32 %v2317_v40, %v2320_v45  ;;  %v7298_v44 = vadd.s32 32, %v7101_v6 }
 0xe02   : > { %v2322_v48 = vmul.f32 1.442695, %v2321_v47  ;;  %v7301_v47 = vadd.s32 48, %v7101_v6  ;;  %6569 = vset.pattern.permute.xlu1 %v7298_v44 }
 0xe04   : > { %6688 = vpow2.f32 %v2322_v48 }
 0xe0a   : > { %v6689_v49 = vpop.eup %6688  ;;  %3796 = vperm.xlu1 %6569, %v7105_v7  }
 0xe0b   : > { %v2324_v26 = vsel %vm8798_vm13, %v6689_v49, 0.0 }
 0xe0c   : > { %2325 = vadd.xlane.f32.xlu2 %v2324_v26 }
 0xe17   : > { %v7337_v29 = vpop.permute.xlu1 %3778 }
 0xe27   : > { %v7339_v32 = vpop.permute.xlu1 %3784 }
 0xe7c   : > { %v7341_v33 = vpop.permute.xlu1 %3796 }
 0xe7d   : > { %8854 = vst [vmem:[#allocation30_spill] sm:$0xff] %v7341_v33 }
 0xe7f   : > { %v2326_v51 = vpop.xlane.xlu2 %2325 }
 0xe80   : > { %6690 = vrcp.f32 %v2326_v51 }
 0xe86   : > { %v6691_v10 = vpop.eup %6690 }
 0xe87   : > { %v2328_v52 = vmul.f32 %v6691_v10, %v6689_v49  ;;  %v7309_v10 = vadd.s32 40, %v7101_v6 }
 0xe89   : > { %v2329_v53 = vpack.c.bf16 %v2328_v52, %v2328_v52  ;;  %6570 = vset.pattern.permute.xlu1 %v7309_v10 }
 0xe8b   : > { %6025 = vmatmul.msk.bf16.vlgmr.msra.gmra.mxu2 %vm8798_vm13, %v2329_v53 }
 0xe91   : > { %3802 = vperm.xlu1 %6570, %v7105_v7  }
 0xf0e   : > { %v2346_v54 = vpop.f32.mrf.mxu2 }
 0xf0f   : > { %v2350_v55 = vpack.c.bf16 %v2346_v54, %v2346_v54  ;;  %v7315_v54 = vadd.s32 56, %v7101_v6 }
 0xf11   : > { %6032 = vmatmul.msk.bf16.vlgmr.msra.gmra.mxu3 %vm8796_vm1, %v2350_v55  ;;  %6572 = vset.pattern.permute.xlu1 %v7315_v54  ;;  %vm8804_vm1 = vcmask 1044484  }
 0xf16   : > { %v2348_v56 = vpop.f32.mrf.mxu2 }
 0xf19   : > { %3814 = vperm.xlu1 %6572, %v7105_v7  }
 0xf21   : > { %6575 = vset.pattern.permute.xlu1 %v7101_v6 }
 0xf94   : > { %v2372_v57 = vpop.f32.mrf.mxu3 }
 0xf95   : > { %v2395_v42 = vadd.f32 %v2394_v43, %v2372_v57  ;;  %v2611_v57 = vld [vmem:[%s8852_s11] sm:$0x1]  ;;  %s1198_s11 = scalar_lea.vmem %s6997_s27, %s7022_s0 }
 0xf97   : > { %v7253_v61 = vadd.f32 %v2395_v42, %v7164_v58  ;;  %v2647_v58 = vsel %vm8799_vm6, %v2610_v4, 0  ;;  %v2612_v42 = vunpack.c.l.bf16 %v2611_v57  ;;  %vm8802_vm6 = vcmask 1047559  }
 0xf98   : > { %2656 = vmatpush.bf16.msra.mxu0 %v2647_v58 }
 0xf99   : > { %v2401_v62 = vmul.f32 %v7253_v61, %v7253_v61 }
 0xf9b   : > { %v2402_v63 = vsel %vm8797_vm0, %v2401_v62, 0.0 }
 0xf9c   : > { %2403 = vadd.xlane.f32.xlu0 %v2402_v63  ;;  %v2374_v46 = vpop.f32.mrf.mxu3  ;;  %v2613_v63 = vperm.slane %v2612_v42, 0  ;;  %v6642_v42 = vld [vmem:[%s8857_s16] ss:$0 sm:$0xff]  ;;  %s8965_s16 = sld [smem:[#allocation14_spill]] }
 0xfb0   : > { %3772 = vperm.xlu0 %6565, %v7105_v7  }
 0xfb8   : > { %6568 = vset.pattern.permute.xlu0 %v7291_v37 }
 0xfc0   : > { %3790 = vperm.xlu0 %6568, %v7105_v7  }
 0xfc8   : > { %6571 = vset.pattern.permute.xlu0 %v7301_v47 }
 0xfd0   : > { %3808 = vperm.xlu0 %6571, %v7105_v7  }
 0xfd8   : > { %6574 = vset.pattern.permute.xlu0 %v7281_v30 }
0x100f   : > { %v2404_v41 = vpop.xlane.xlu0 %2403 }
0x1010   : > { %v2405_v5 = vmul.f32 %v2404_v41, %v7041_v28 }
0x1012   : > { %v2406_v60 = vadd.f32 1e-06, %v2405_v5 }
0x1014   : > { %6692 = vrsqrt.f32 %v2406_v60  ;;  %vm2413_vm10 = vweird.f32 %v2406_v60 }
0x101a   : > { %v6693_v9 = vpop.eup %6692 }
0x101b   : > { %v2408_v11 = vmul.f32 %v6693_v9, %v2406_v60  ;;  %vm2414_vm9 = vweird.f32 %v6693_v9 }
0x101c   : > { %vm2415_vm11 = vmor %vm2413_vm10, %vm2414_vm9  ;;  %vm3554_vm9 = vcmask 392512   ;;  %vm3558_vm10 = vcmask 458112  }
0x101d   : > { %v2409_v13 = vmul.f32 %v6693_v9, %v2408_v11 }
0x101f   : > { %v2410_v14 = vmul.f32 0.5, %v2409_v13 }
0x1021   : > { %v2411_v15 = vsub.f32 1.5, %v2410_v14 }
0x1023   : > { %v2412_v16 = vmul.f32 %v6693_v9, %v2411_v15 }
0x1025   : > { %v2416_v18 = vsel %vm2415_vm11, %v6693_v9, %v2412_v16  ;;  %vm3562_vm11 = vcmask 523712  }
0x1026   : > { %v2417_v19 = vmul.f32 %v2416_v18, %v7253_v61 }
0x1028   : > { %v2421_v20 = vmul.f32 %v6641_v17, %v2417_v19 }
0x102a   : > { %v2422_v21 = vpack.c.bf16 %v2421_v20, %v2421_v20 }
0x102c   : > { %6051 = vmatmul.msk.bf16.vlgmr.msrb.gmra.mxu0 %vm8797_vm0, %v2422_v21  ;;  %6064 = vmatmul.msk.bf16.vlgmr.msrb.gmra.mxu2 %vm8797_vm0, %v2422_v21 }
0x103c   : > { %6115 = vmatmul.msk.bf16.vlgmr.msra.gmra.mxu0 %vm8798_vm13, %v6462_v22 }
0x104c   : > { %6116 = vmatmul.msk.bf16.gmra.mxu0 %vm8798_vm13, %v6463_v23 }
0x105c   : > { %6117 = vmatmul.msk.bf16.gmra.mxu0 %vm8798_vm13, %v6464_v24 }
0x106c   : > { %6118 = vmatmul.msk.bf16.gmra.mxu0 %vm8798_vm13, %v6465_v25 }
0x10a9   : > { %v2452_v35 = vpop.f32.mrf.mxu0 }
0x10aa   : > { %v2486_v36 = vsub.f32 0.0, %v2452_v35 }
0x10ac   : > { %v2487_v38 = vmul.f32 1.442695, %v2486_v36 }
0x10ae   : > { %6694 = vpow2.f32 %v2487_v38 }
0x10af   : > { %v2482_v39 = vpop.f32.mrf.mxu2 }
0x10b1   : > { %v2454_v40 = vpop.f32.mrf.mxu0 }
0x10b2   : > { %v6460_v40 = vld [vmem:[%s8853_s15] sm:$0xff] }
0x10b4   : > { %v6695_v31 = vpop.eup %6694 }
0x10b5   : > { %v2489_v27 = vadd.f32 1.0, %v6695_v31 }
0x10b7   : > { %6696 = vrcp.f32 %v2489_v27  ;;  %v2484_v43 = vpop.f32.mrf.mxu2 }
0x10b9   : > { %v2658_v45 = vpop.f32.mrf.mxu0 }
0x10ba   : > { %v2659_v46 = vadd.f32 %v2658_v45, %v2613_v63 }
0x10bc   : > { %v2678_v2 = vmul.f32 %v2659_v46, %v2659_v46 }
0x10bd   : > { %v6697_v48 = vpop.eup %6696 }
0x10be   : > { %v2491_v49 = vmul.f32 %v6697_v48, %v2452_v35  ;;  %v2686_v5 = vsel %vm8798_vm13, %v2678_v2, 0.0  ;;  %v7343_v35 = vpop.permute.xlu1 %3802 }
0x10bf   : > { %2687 = vadd.xlane.f32.xlu2 %v2686_v5  ;;  %8855 = vst [vmem:[#allocation31_spill] sm:$0xff] %v7343_v35 }
0x10c0   : > { %v2492_v26 = vmul.f32 %v2491_v49, %v2482_v39 }
0x10c1   : > { %v2660_v50 = vpop.f32.mrf.mxu0 }
0x10c2   : > { %v2493_v51 = vpack.c.bf16 %v2492_v26, %v2492_v26  ;;  %v2661_v0 = vadd.f32 %v2660_v50, %v2613_v63 }
0x10c4   : > { %6089 = vmatmul.msk.bf16.vlgmr.msrb.gmra.mxu3 %vm8803_vm14, %v2493_v51  ;;  %v2679_v1 = vmul.f32 %v2661_v0, %v2661_v0 }
0x10c6   : > { %v2689_v41 = vsel %vm8798_vm13, %v2679_v1, 0.0  ;;  %v7345_v36 = vpop.permute.xlu1 %3814  ;;  %v2571_v1 = vld [vmem:[%s8858_s18] sm:$0x1]  ;;  %s8967_s18 = sld [smem:[#allocation15_spill]] }
0x10c7   : > { %2690 = vadd.xlane.f32.xlu0 %v2689_v41  ;;  %8856 = vst [vmem:[#allocation32_spill] sm:$0xff] %v7345_v36  ;;  %v2572_v2 = vunpack.c.l.bf16 %v2571_v1 }
0x10c9   : > { %v2663_v52 = vpop.f32.mrf.mxu0 }
0x10ca   : > { %v2664_v15 = vadd.f32 %v2663_v52, %v2613_v63 }
0x10cc   : > { %v2680_v16 = vmul.f32 %v2664_v15, %v2664_v15 }
0x10ce   : > { %v2692_v17 = vsel %vm8798_vm13, %v2680_v16, 0.0 }
0x10cf   : > { %2693 = vadd.xlane.f32.xlu1 %v2692_v17 }
0x10d1   : > { %v2665_v53 = vpop.f32.mrf.mxu0 }
0x10d2   : > { %v2666_v4 = vadd.f32 %v2665_v53, %v2613_v63 }
0x10d4   : > { %v2681_v9 = vmul.f32 %v2666_v4, %v2666_v4 }
0x10d6   : > { %v2695_v14 = vsel %vm8798_vm13, %v2681_v9, 0.0 }
0x10d7   : > { %2696 = vadd.xlane.f32.xlu2 %v2695_v14 }
0x10d9   : > { %v2668_v55 = vpop.f32.mrf.mxu0 }
0x10da   : > { %v2669_v13 = vadd.f32 %v2668_v55, %v2613_v63 }
0x10dc   : > { %v2682_v18 = vmul.f32 %v2669_v13, %v2669_v13 }
0x10de   : > { %v2698_v19 = vsel %vm8798_vm13, %v2682_v18, 0.0 }
0x10df   : > { %2699 = vadd.xlane.f32.xlu1 %v2698_v19 }
0x10e1   : > { %v2670_v56 = vpop.f32.mrf.mxu0 }
0x10e2   : > { %v2671_v11 = vadd.f32 %v2670_v56, %v2613_v63 }
0x10e4   : > { %v2683_v20 = vmul.f32 %v2671_v11, %v2671_v11 }
0x10e6   : > { %v2701_v21 = vsel %vm8798_vm13, %v2683_v20, 0.0  ;;  %v7474_v20 = vpop.permute.xlu0 %3772 }
0x10e7   : > { %2702 = vadd.xlane.f32.xlu1 %v2701_v21 }
0x10e9   : > { %v2673_v62 = vpop.f32.mrf.mxu0 }
0x10ea   : > { %v2674_v60 = vadd.f32 %v2673_v62, %v2613_v63 }
0x10ec   : > { %v2684_v27 = vmul.f32 %v2674_v60, %v2674_v60 }
0x10ee   : > { %v2704_v43 = vsel %vm8798_vm13, %v2684_v27, 0.0  ;;  %v7481_v21 = vpop.permute.xlu0 %3790 }
0x10ef   : > { %2705 = vadd.xlane.f32.xlu2 %v2704_v43 }
0x10f1   : > { %v2675_v3 = vpop.f32.mrf.mxu0 }
0x10f2   : > { %v2676_v58 = vadd.f32 %v2675_v3, %v2613_v63  ;;  %v2573_v3 = vperm.slane %v2572_v2, 0 }
0x10f4   : > { %6119 = vmatpush.xpose.msk.msra.mxu2 %vm8798_vm13, %v2676_v58  ;;  %4228 = vmatpush.msra.mxu3 %v2676_v58  ;;  %v2685_v49 = vmul.f32 %v2676_v58, %v2676_v58 }
0x10f6   : > { %4229 = vmatpush.msra.mxu3 %v2674_v60  ;;  %v2707_v50 = vsel %vm8798_vm13, %v2685_v49, 0.0 }
0x10f7   : > { %2708 = vadd.xlane.f32.xlu2 %v2707_v50 }
0x10f8   : > { %6120 = vmatpush.xpose.msk.msra.mxu2 %vm8798_vm13, %v2674_v60  ;;  %4230 = vmatpush.msra.mxu3 %v2671_v11 }
0x10fa   : > { %4231 = vmatpush.msra.mxu3 %v2669_v13 }
0x10fc   : > { %6121 = vmatpush.xpose.msk.msra.mxu2 %vm8798_vm13, %v2671_v11  ;;  %4232 = vmatpush.msra.mxu3 %v2666_v4 }
0x10fe   : > { %4233 = vmatpush.msra.mxu3 %v2664_v15 }
0x1100   : > { %6122 = vmatpush.xpose.msk.msra.mxu2 %vm8798_vm13, %v2669_v13  ;;  %4234 = vmatpush.msra.mxu3 %v2661_v0 }
0x1102   : > { %4235 = vmatpush.msra.mxu3 %v2659_v46 }
0x1104   : > { %6123 = vmatpush.xpose.msk.msra.mxu2 %vm8798_vm13, %v2666_v4 }
0x1108   : > { %6124 = vmatpush.xpose.msk.msra.mxu2 %vm8798_vm13, %v2664_v15 }
0x110c   : > { %6125 = vmatpush.xpose.msk.msra.mxu2 %vm8798_vm13, %v2661_v0 }
0x1110   : > { %6126 = vmatpush.xpose.msk.msra.mxu2 %vm8798_vm13, %v2659_v46 }
0x1132   : > { %v7471_v19 = vpop.xlane.xlu2 %2687 }
0x1142   : > { %v7347_v38 = vpop.xlane.xlu1 %2693 }
0x1147   : > { %v2539_v22 = vpop.f32.mrf.mxu3 }
0x1148   : > { %v2543_v23 = vadd.f32 %v2539_v22, %v7253_v61  ;;  %v6461_v61 = vld [vmem:[%s8853_s15 + $0x8] sm:$0xff] }
0x1149   : > { %2595 = vmatpush.bf16.msra.mxu1 %v6461_v61 }
0x114a   : > { %v2545_v24 = vmul.f32 %v2543_v23, %v2543_v23 }
0x114c   : > { %v2546_v25 = vsel %vm8797_vm0, %v2545_v24, 0.0 }
0x114d   : > { %2547 = vadd.xlane.f32.xlu1 %v2546_v25  ;;  %2596 = vmatpush.bf16.msra.mxu1 %v6460_v40 }
0x114f   : > { %v2541_v12 = vpop.f32.mrf.mxu3 }
0x1152   : > { %v7349_v39 = vpop.xlane.xlu1 %2699 }
0x115a   : > { %v7353_v31 = vpop.xlane.xlu1 %2702 }
0x11c0   : > { %v2548_v45 = vpop.xlane.xlu1 %2547 }
0x11c1   : > { %v2549_v48 = vmul.f32 %v2548_v45, %v7041_v28 }
0x11c3   : > { %v2550_v26 = vadd.f32 1e-06, %v2549_v48 }
0x11c5   : > { %6698 = vrsqrt.f32 %v2550_v26  ;;  %vm2557_vm15 = vweird.f32 %v2550_v26 }
0x11cb   : > { %v6699_v51 = vpop.eup %6698 }
0x11cc   : > { %v2552_v52 = vmul.f32 %v6699_v51, %v2550_v26  ;;  %vm2558_vm12 = vweird.f32 %v6699_v51 }
0x11cd   : > { %vm2559_vm2 = vmor %vm2557_vm15, %vm2558_vm12  ;;  %vm3669_vm12 = vcmask 1041409   ;;  %vm3671_vm15 = vcmask 1042434  }
0x11ce   : > { %v2553_v53 = vmul.f32 %v6699_v51, %v2552_v52  ;;  %v8740_v52 = vmov 0  }
0x11d0   : > { %v2554_v55 = vmul.f32 0.5, %v2553_v53 }
0x11d2   : > { %v2555_v56 = vsub.f32 1.5, %v2554_v55 }
0x11d4   : > { %v2556_v57 = vmul.f32 %v6699_v51, %v2555_v56 }
0x11d6   : > { %v2560_v62 = vsel %vm2559_vm2, %v6699_v51, %v2556_v57  ;;  %vm8805_vm2 = vcmask 1043459  }
0x11d7   : > { %v2561_v63 = vmul.f32 %v2560_v62, %v2543_v23  ;;  %v7491_v23 = vpop.permute.xlu0 %3808 }
0x11d8   : > { %8860 = vst [vmem:[#allocation34_spill] sm:$0xff] %v7491_v23 }
0x11d9   : > { %v2565_v46 = vmul.f32 %v6642_v42, %v2561_v63 }
0x11db   : > { %v2566_v0 = vpack.c.bf16 %v2565_v46, %v2565_v46 }
0x11dd   : > { %6098 = vmatmul.msk.bf16.vlgmr.msra.gmra.mxu1 %vm8797_vm0, %v2566_v0  ;;  %vm8801_vm0 = vcmask 1045509  }
0x11df   : > { %v7502_v40 = vpop.xlane.xlu0 %2690 }
0x125a   : > { %v2598_v4 = vpop.f32.mrf.mxu1 }
0x125b   : > { %v7361_v58 = vadd.f32 %v2598_v4, %v2573_v3 }
0x125d   : > { %8859 = vst [vmem:[#allocation33_spill] sm:$0xff] %v7361_v58  ;;  %6127 = vmatmul.msk.f32.vlgmr.msra.gmra.mxu2 %vm8798_vm13, %v7361_v58  ;;  %vm8800_vm13 = vcmask 1046534  }
0x1262   : > { %v2600_v41 = vpop.f32.mrf.mxu1 }
0x12e0   : > { %v2754_v5 = vpop.f32.mrf.mxu2 }
0x12e1   : > { %v7365_v60 = vmul.f32 2.0, %v2754_v5 }
0x12e3   : > { %v7368_v9 = vperm.slane %v7365_v60, 1  ;;  %v7371_v11 = vperm.slane %v7365_v60, 0  ;;  %v7380_v13 = vperm.slane %v7365_v60, 2  ;;  %v7395_v14 = vperm.slane %v7365_v60, 3 }
0x12e4   : > { %v7416_v15 = vperm.slane %v7365_v60, 4  ;;  %v7428_v16 = vperm.slane %v7365_v60, 5  ;;  %v7434_v17 = vperm.slane %v7365_v60, 6  ;;  %v7455_v18 = vperm.slane %v7365_v60, 7 }
0x12e5   : > { %2813 = vperm.xlu1 %6575, %v7368_v9   ;;  %2770 = vperm.xlu0 %6574, %v7371_v11  }
0x12e6   : > { %2764 = vperm.xlu2 %6573, %v7371_v11  }
0x12ed   : > { %6577 = vset.pattern.permute.xlu1 %v7288_v34  ;;  %6578 = vset.pattern.permute.xlu0 %v7101_v6 }
0x12ee   : > { %6576 = vset.pattern.permute.xlu2 %v7281_v30 }
0x12f5   : > { %2776 = vperm.xlu1 %6577, %v7371_v11   ;;  %2862 = vperm.xlu0 %6578, %v7380_v13  }
0x12f6   : > { %2819 = vperm.xlu2 %6576, %v7368_v9  }
0x12fd   : > { %2825 = vperm.xlu1 %6577, %v7368_v9   ;;  %6580 = vset.pattern.permute.xlu0 %v7291_v37 }
0x12fe   : > { %6581 = vset.pattern.permute.xlu2 %v7291_v37 }
0x1305   : > { %6579 = vset.pattern.permute.xlu1 %v7281_v30  ;;  %2782 = vperm.xlu0 %6580, %v7371_v11  }
0x1306   : > { %2831 = vperm.xlu2 %6581, %v7368_v9  }
0x130d   : > { %2868 = vperm.xlu1 %6579, %v7380_v13   ;;  %6582 = vset.pattern.permute.xlu0 %v7288_v34 }
0x130e   : > { %6584 = vset.pattern.permute.xlu2 %v7281_v30 }
0x1315   : > { %6586 = vset.pattern.permute.xlu1 %v7298_v44  ;;  %2874 = vperm.xlu0 %6582, %v7380_v13  }
0x1316   : > { %2917 = vperm.xlu2 %6584, %v7395_v14  }
0x131d   : > { %2837 = vperm.xlu1 %6586, %v7368_v9   ;;  %6583 = vset.pattern.permute.xlu0 %v7101_v6 }
0x131e   : > { %6585 = vset.pattern.permute.xlu2 %v7298_v44 }
0x1325   : > { %6591 = vset.pattern.permute.xlu1 %v7309_v10  ;;  %2911 = vperm.xlu0 %6583, %v7395_v14  }
0x1326   : > { %2788 = vperm.xlu2 %6585, %v7371_v11  }
0x132d   : > { %2794 = vperm.xlu1 %6591, %v7371_v11   ;;  %6587 = vset.pattern.permute.xlu0 %v7291_v37 }
0x132e   : > { %6588 = vset.pattern.permute.xlu2 %v7288_v34 }
0x1335   : > { %6593 = vset.pattern.permute.xlu1 %v7298_v44  ;;  %2880 = vperm.xlu0 %6587, %v7380_v13  }
0x1336   : > { %2923 = vperm.xlu2 %6588, %v7395_v14  }
0x133d   : > { %2886 = vperm.xlu1 %6593, %v7380_v13   ;;  %6590 = vset.pattern.permute.xlu0 %v7281_v30 }
0x133e   : > { %6589 = vset.pattern.permute.xlu2 %v7101_v6 }
0x1345   : > { %6594 = vset.pattern.permute.xlu1 %v7291_v37  ;;  %2966 = vperm.xlu0 %6590, %v7416_v15  }
0x1346   : > { %2960 = vperm.xlu2 %6589, %v7416_v15  }
0x134d   : > { %2929 = vperm.xlu1 %6594, %v7395_v14   ;;  %6592 = vset.pattern.permute.xlu0 %v7309_v10 }
0x134e   : > { %6600 = vset.pattern.permute.xlu2 %v7309_v10 }
0x1355   : > { %6596 = vset.pattern.permute.xlu1 %v7101_v6  ;;  %2843 = vperm.xlu0 %6592, %v7368_v9  }
0x1356   : > { %2892 = vperm.xlu2 %6600, %v7380_v13  }
0x1357   : > { %v7493_v24 = vpop.permute.xlu1 %2813  ;;  %v7507_v43 = vpop.permute.xlu0 %2770 }
0x135d   : > { %3009 = vperm.xlu1 %6596, %v7428_v16   ;;  %6595 = vset.pattern.permute.xlu0 %v7288_v34 }
0x135e   : > { %6605 = vset.pattern.permute.xlu2 %v7281_v30 }
0x1365   : > { %6597 = vset.pattern.permute.xlu1 %v7281_v30  ;;  %2972 = vperm.xlu0 %6595, %v7416_v15  }
0x1366   : > { %3064 = vperm.xlu2 %6605, %v7434_v17  }
0x1367   : > { %v7500_v12 = vpop.permute.xlu1 %2776  ;;  %v7516_v48 = vpop.permute.xlu0 %2862 }
0x136d   : > { %3015 = vperm.xlu1 %6597, %v7428_v16   ;;  %6598 = vset.pattern.permute.xlu0 %v7301_v47 }
0x136e   : > { %6608 = vset.pattern.permute.xlu2 %v7301_v47 }
0x136f   : > { %v7509_v45 = vpop.permute.xlu1 %2825 }
0x1375   : > { %6599 = vset.pattern.permute.xlu1 %v7301_v47  ;;  %2800 = vperm.xlu0 %6598, %v7371_v11  }
0x1376   : > { %2898 = vperm.xlu2 %6608, %v7380_v13  }
0x1377   : > { %v2783_v50 = vpop.permute.xlu0 %2782 }
0x137d   : > { %2849 = vperm.xlu1 %6599, %v7368_v9   ;;  %6602 = vset.pattern.permute.xlu0 %v7291_v37 }
0x137e   : > { %6610 = vset.pattern.permute.xlu2 %v7298_v44 }
0x137f   : > { %v7518_v49 = vpop.permute.xlu1 %2868 }
0x1380   : > { %v7617_v8 = vsub.f32 %v7502_v40, %v7518_v49 }
0x1385   : > { %6601 = vset.pattern.permute.xlu1 %v7298_v44  ;;  %2978 = vperm.xlu0 %6602, %v7416_v15  }
0x1386   : > { %2984 = vperm.xlu2 %6610, %v7416_v15  }
0x1387   : > { %v2875_v55 = vpop.permute.xlu0 %2874 }
0x1388   : > { %v7628_v59 = vsub.f32 %v7347_v38, %v2875_v55 }
0x138a   : > { %8868 = vst [vmem:[#allocation42_spill] sm:$0xff] %v7628_v59 }
0x138d   : > { %2935 = vperm.xlu1 %6601, %v7395_v14   ;;  %6606 = vset.pattern.permute.xlu0 %v7315_v54 }
0x138e   : > { %6613 = vset.pattern.permute.xlu2 %v7101_v6 }
0x1395   : > { %6603 = vset.pattern.permute.xlu1 %v7288_v34  ;;  %2806 = vperm.xlu0 %6606, %v7371_v11  }
0x1396   : > { %3107 = vperm.xlu2 %6613, %v7455_v18  }
0x1397   : > { %v2912_v62 = vpop.permute.xlu0 %2911 }
0x1398   : > { %v7547_v46 = vsub.f32 %v7471_v19, %v2912_v62 }
0x139d   : > { %3021 = vperm.xlu1 %6603, %v7428_v16   ;;  %6611 = vset.pattern.permute.xlu0 %v7291_v37 }
0x139e   : > { %6615 = vset.pattern.permute.xlu2 %v7315_v54 }
0x13a5   : > { %6604 = vset.pattern.permute.xlu1 %v7101_v6  ;;  %3027 = vperm.xlu0 %6611, %v7428_v16   ;;  %v7478_v6 = vpop.xlane.xlu2 %2696 }
0x13a6   : > { %2904 = vperm.xlu2 %6615, %v7380_v13   ;;  %v7537_v57 = vsub.f32 %v7478_v6, %v2783_v50 }
0x13a7   : > { %v7552_v1 = vpop.permute.xlu0 %2880 }
0x13ad   : > { %3058 = vperm.xlu1 %6604, %v7434_v17   ;;  %6616 = vset.pattern.permute.xlu0 %v7301_v47  ;;  %v7485_v22 = vpop.xlane.xlu2 %2705 }
0x13ae   : > { %6618 = vset.pattern.permute.xlu2 %v7298_v44 }
0x13b5   : > { %6607 = vset.pattern.permute.xlu1 %v7315_v54  ;;  %2947 = vperm.xlu0 %6616, %v7395_v14   ;;  %v7495_v25 = vpop.xlane.xlu2 %2708 }
0x13b6   : > { %3033 = vperm.xlu2 %6618, %v7428_v16  }
0x13bd   : > { %2855 = vperm.xlu1 %6607, %v7368_v9   ;;  %6621 = vset.pattern.permute.xlu0 %v7315_v54  ;;  %v2765_v61 = vpop.permute.xlu2 %2764 }
0x13be   : > { %6620 = vset.pattern.permute.xlu2 %v7288_v34 }
0x13c5   : > { %6609 = vset.pattern.permute.xlu1 %v7309_v10  ;;  %2953 = vperm.xlu0 %6621, %v7395_v14   ;;  %v2820_v27 = vpop.permute.xlu2 %2819 }
0x13c6   : > { %3119 = vperm.xlu2 %6620, %v7455_v18   ;;  %v7526_v51 = vsub.f32 %v7502_v40, %v2820_v27 }
0x13cd   : > { %2941 = vperm.xlu1 %6609, %v7395_v14   ;;  %3002 = vperm.xlu0 %6621, %v7416_v15   ;;  %v7582_v14 = vsub.f32 %v7471_v19, %v2765_v61  ;;  %v7597_v61 = vsub.f32 %v7471_v19, %v7493_v24 }
0x13ce   : > { %6623 = vset.pattern.permute.xlu2 %v7309_v10 }
0x13d5   : > { %6612 = vset.pattern.permute.xlu1 %v7288_v34  ;;  %6628 = vset.pattern.permute.xlu0 %v7298_v44  ;;  %v7514_v34 = vpop.permute.xlu2 %2831 }
0x13d6   : > { %3039 = vperm.xlu2 %6623, %v7428_v16  }
0x13dd   : > { %3070 = vperm.xlu1 %6612, %v7434_v17   ;;  %3131 = vperm.xlu0 %6628, %v7455_v18   ;;  %v7523_v26 = vpop.permute.xlu2 %2917 }
0x13de   : > { %6625 = vset.pattern.permute.xlu2 %v7291_v37 }
0x13e5   : > { %6614 = vset.pattern.permute.xlu1 %v7281_v30  ;;  %6633 = vset.pattern.permute.xlu0 %v7301_v47  ;;  %v2838_v30 = vpop.permute.xlu1 %2837  ;;  %v7532_v53 = vpop.permute.xlu2 %2788 }
0x13e6   : > { %3125 = vperm.xlu2 %6625, %v7455_v18   ;;  %v7557_v3 = vsub.f32 %v7349_v39, %v2838_v30 }
0x13e8   : > { %8861 = vst [vmem:[#allocation35_spill] sm:$0xff] %v7557_v3 }
0x13ed   : > { %3113 = vperm.xlu1 %6614, %v7455_v18   ;;  %3143 = vperm.xlu0 %6633, %v7455_v18   ;;  %v7534_v56 = vpop.permute.xlu1 %2794  ;;  %v7542_v42 = vpop.permute.xlu2 %2923 }
0x13ee   : > { %6627 = vset.pattern.permute.xlu2 %v7309_v10 }
0x13f5   : > { %6617 = vset.pattern.permute.xlu1 %v7309_v10  ;;  %6637 = vset.pattern.permute.xlu0 %v8740_v52  ;;  %v7544_v63 = vpop.permute.xlu1 %2886  ;;  %v2961_v0 = vpop.permute.xlu2 %2960 }
0x13f6   : > { %3088 = vperm.xlu2 %6627, %v7434_v17   ;;  %3371 = vperm.xlu0 %6637, %v7526_v51   ;;  %v7569_v5 = vsub.f32 %v7471_v19, %v2961_v0 }
0x13f8   : > { %8862 = vst [vmem:[#allocation36_spill] sm:$0xff] %v7569_v5 }
0x13fd   : > { %2990 = vperm.xlu1 %6617, %v7416_v15   ;;  %v7554_v2 = vpop.permute.xlu1 %2929  ;;  %v7562_v4 = vpop.permute.xlu2 %2892 }
0x13fe   : > { %6630 = vset.pattern.permute.xlu2 %v7301_v47  ;;  %3353 = vperm.xlu0 %6637, %v7537_v57   ;;  %v7678_v23 = vsub.f32 %v7478_v6, %v7554_v2  ;;  %v7691_v2 = vsub.f32 %v7353_v31, %v7562_v4 }
0x1400   : > { %8876 = vst [vmem:[#allocation50_spill] sm:$0xff] %v7678_v23 }
0x1401   : > { %8878 = vst [vmem:[#allocation52_spill] sm:$0xff] %v7691_v2 }
0x1405   : > { %6619 = vset.pattern.permute.xlu1 %v7291_v37  ;;  %v7564_v37 = vpop.permute.xlu0 %2966  ;;  %v7566_v41 = vpop.permute.xlu1 %3009 }
0x1406   : > { %3094 = vperm.xlu2 %6630, %v7434_v17   ;;  %3416 = vperm.xlu0 %6637, %v7547_v46   ;;  %v7574_v60 = vpop.permute.xlu2 %3064 }
0x140d   : > { %3076 = vperm.xlu1 %6619, %v7434_v17   ;;  %v2844_v9 = vpop.permute.xlu0 %2843  ;;  %v7576_v11 = vpop.permute.xlu1 %3015 }
0x140e   : > { %6632 = vset.pattern.permute.xlu2 %v7315_v54  ;;  %3380 = vperm.xlu0 %6637, %v7557_v3   ;;  %v7579_v13 = vsub.f32 %v7353_v31, %v2844_v9  ;;  %v7588_v27 = vpop.permute.xlu2 %2898  ;;  %v7928_v3 = vadd.s32 4294967240, %v7105_v7 }
0x1410   : > { %8863 = vst [vmem:[#allocation37_spill] sm:$0xff] %v7579_v13 }
0x1415   : > { %6622 = vset.pattern.permute.xlu1 %v7301_v47  ;;  %v2973_v50 = vpop.permute.xlu0 %2972  ;;  %v7590_v30 = vpop.permute.xlu1 %2849 }
0x1416   : > { %3100 = vperm.xlu2 %6632, %v7434_v17   ;;  %3440 = vperm.xlu0 %6637, %v7569_v5   ;;  %v7593_v62 = vsub.f32 %v7347_v38, %v2973_v50  ;;  %v7607_v50 = vsub.f32 %v7347_v38, %v7509_v45 }
0x1418   : > { %8864 = vst [vmem:[#allocation38_spill] sm:$0xff] %v7593_v62 }
0x141d   : > { %2996 = vperm.xlu1 %6622, %v7416_v15   ;;  %v2985_v15 = vpop.permute.xlu2 %2984  ;;  %v2801_v0 = vpop.permute.xlu0 %2800 }
0x141e   : > { %6635 = vset.pattern.permute.xlu2 %v8740_v52  ;;  %3383 = vperm.xlu0 %6637, %v7579_v13   ;;  %v2936_v9 = vpop.permute.xlu1 %2935  ;;  %v7603_v52 = vsub.f32 %v7485_v22, %v2801_v0  ;;  %v7908_v13 = vadd.s32 4294967264, %v7105_v7 }
0x141f   : > { %3344 = vperm.xlu2 %6635, %v7582_v14   ;;  %v7613_v58 = vsub.f32 %v7349_v39, %v2936_v9 }
0x1420   : > { %8865 = vst [vmem:[#allocation39_spill] sm:$0xff] %v7603_v52 }
0x1421   : > { %8866 = vst [vmem:[#allocation40_spill] sm:$0xff] %v7613_v58 }
0x1425   : > { %6624 = vset.pattern.permute.xlu1 %v7298_v44  ;;  %v3108_v44 = vpop.permute.xlu2 %3107 }
0x1426   : > { %3446 = vperm.xlu0 %6637, %v7593_v62   ;;  %v3022_v24 = vpop.permute.xlu1 %3021 }
0x1427   : > { %3368 = vperm.xlu2 %6635, %v7597_v61  }
0x142d   : > { %3082 = vperm.xlu1 %6624, %v7434_v17   ;;  %v7622_v17 = vpop.permute.xlu2 %2904 }
0x142e   : > { %3362 = vperm.xlu0 %6637, %v7603_v52   ;;  %v3059_v45 = vpop.permute.xlu1 %3058 }
0x142f   : > { %3374 = vperm.xlu2 %6635, %v7607_v50   ;;  %v7625_v0 = vsub.f32 %v7471_v19, %v3059_v45  ;;  %v7642_v45 = vsub.f32 %v7349_v39, %v7532_v53 }
0x1431   : > { %8867 = vst [vmem:[#allocation41_spill] sm:$0xff] %v7625_v0 }
0x1432   : > { %8870 = vst [vmem:[#allocation44_spill] sm:$0xff] %v7642_v45 }
0x1435   : > { %6626 = vset.pattern.permute.xlu1 %v7301_v47  ;;  %v7633_v47 = vpop.permute.xlu0 %2978  ;;  %v7635_v49 = vpop.permute.xlu2 %3033 }
0x1436   : > { %3428 = vperm.xlu0 %6637, %v7613_v58   ;;  %v2856_v9 = vpop.permute.xlu1 %2855  ;;  %v7664_v58 = vsub.f32 %v7471_v19, %v3108_v44  ;;  %v7685_v44 = vsub.f32 %v7502_v40, %v7576_v11  ;;  %v7701_v11 = vsub.f32 %v7502_v40, %v7507_v43 }
0x1437   : > { %3395 = vperm.xlu2 %6635, %v7617_v8   ;;  %v7638_v28 = vsub.f32 %v7495_v25, %v2856_v9  ;;  %v7654_v9 = vsub.f32 %v7347_v38, %v7542_v42 }
0x1438   : > { %8873 = vst [vmem:[#allocation47_spill] sm:$0xff] %v7664_v58 }
0x1439   : > { %8869 = vst [vmem:[#allocation43_spill] sm:$0xff] %v7638_v28 }
0x143a   : > { %8872 = vst [vmem:[#allocation46_spill] sm:$0xff] %v7654_v9 }
0x143b   : > { %8877 = vst [vmem:[#allocation51_spill] sm:$0xff] %v7685_v44 }
0x143d   : > { %3045 = vperm.xlu1 %6626, %v7428_v16   ;;  %v2807_v55 = vpop.permute.xlu0 %2806  ;;  %v7647_v36 = vpop.permute.xlu2 %3119 }
0x143e   : > { %3488 = vperm.xlu0 %6637, %v7625_v0   ;;  %v7650_v0 = vsub.f32 %v7349_v39, %v2985_v15  ;;  %v7668_v15 = vsub.f32 %v7353_v31, %v7534_v56  ;;  %v7718_v43 = vsub.f32 %v7495_v25, %v2807_v55 }
0x143f   : > { %3398 = vperm.xlu2 %6635, %v7628_v59   ;;  %v2942_v56 = vpop.permute.xlu1 %2941 }
0x1440   : > { %8871 = vst [vmem:[#allocation45_spill] sm:$0xff] %v7650_v0 }
0x1441   : > { %8874 = vst [vmem:[#allocation48_spill] sm:$0xff] %v7668_v15 }
0x1442   : > { %8881 = vst [vmem:[#allocation54_spill] sm:$0xff] %v7718_v43 }
0x1445   : > { %6629 = vset.pattern.permute.xlu1 %v7315_v54  ;;  %v7659_v53 = vpop.permute.xlu0 %3027 }
0x1446   : > { %3389 = vperm.xlu0 %6637, %v7638_v28   ;;  %v7661_v28 = vpop.permute.xlu2 %3039 }
0x1447   : > { %3356 = vperm.xlu2 %6635, %v7642_v45   ;;  %v7921_v45 = vsub.f32 %v7347_v38, %v7647_v36 }
0x144d   : > { %3051 = vperm.xlu1 %6629, %v7428_v16   ;;  %v2948_v16 = vpop.permute.xlu0 %2947 }
0x144e   : > { %3452 = vperm.xlu0 %6637, %v7650_v0   ;;  %v3126_v42 = vpop.permute.xlu2 %3125  ;;  %v7674_v0 = vsub.f32 %v7485_v22, %v2948_v16 }
0x144f   : > { %3422 = vperm.xlu2 %6635, %v7654_v9   ;;  %v3071_v16 = vpop.permute.xlu1 %3070 }
0x1450   : > { %8875 = vst [vmem:[#allocation49_spill] sm:$0xff] %v7674_v0 }
0x1455   : > { %6631 = vset.pattern.permute.xlu1 %v7309_v10  ;;  %v2954_v55 = vpop.permute.xlu0 %2953 }
0x1456   : > { %3512 = vperm.xlu0 %6637, %v7664_v58   ;;  %v3089_v10 = vpop.permute.xlu2 %3088 }
0x1457   : > { %3359 = vperm.xlu2 %6635, %v7668_v15  }
0x145d   : > { %3137 = vperm.xlu1 %6631, %v7455_v18   ;;  %v7751_v62 = vpop.permute.xlu0 %3002 }
0x145e   : > { %3434 = vperm.xlu0 %6637, %v7674_v0  }
0x145f   : > { %3425 = vperm.xlu2 %6635, %v7678_v23   ;;  %v7694_v0 = vpop.permute.xlu1 %3113 }
0x1460   : > { %v3095_v58 = vpop.permute.xlu2 %3094 }
0x1465   : > { %6634 = vset.pattern.permute.xlu1 %v7315_v54  ;;  %v7704_v54 = vsub.f32 %v7347_v38, %v3022_v24 }
0x1467   : > { %3467 = vperm.xlu2 %6635, %v7685_v44   ;;  %8879 = vst [vmem:[#allocation53_spill] sm:$0xff] %v7704_v54  ;;  %v8880_v44 = vmov 0  }
0x146d   : > { %3149 = vperm.xlu1 %6634, %v7455_v18  }
0x146f   : > { %3407 = vperm.xlu2 %6635, %v7691_v2   ;;  %v7708_v4 = vpop.permute.xlu1 %2990  ;;  %v7715_v2 = vsub.f32 %v7347_v38, %v7500_v12  ;;  %v7731_v12 = vsub.f32 %v7353_v31, %v2942_v56 }
0x1470   : > { %v7697_v52 = vpop.permute.xlu2 %3100 }
0x1471   : > { %8883 = vst [vmem:[#allocation56_spill] sm:$0xff] %v7731_v12 }
0x1475   : > { %6636 = vset.pattern.permute.xlu1 %v8880_v44 }
0x1476   : > { %3347 = vperm.xlu1 %6636, %v7701_v11  }
0x1477   : > { %3470 = vperm.xlu2 %6635, %v7704_v54   ;;  %v7728_v54 = vsub.f32 %v7471_v19, %v7516_v48 }
0x1479   : > { %v7711_v18 = vpop.permute.xlu2 %3344 }
0x147e   : > { %3350 = vperm.xlu1 %6636, %v7715_v2  }
0x147f   : > { %3365 = vperm.xlu2 %6635, %v7718_v43   ;;  %v3077_v24 = vpop.permute.xlu1 %3076 }
0x1480   : > { %v7723_v44 = vsub.f32 %v7478_v6, %v3077_v24  ;;  %v7739_v24 = vsub.f32 %v7478_v6, %v7514_v34  ;;  %v7756_v34 = vsub.f32 %v7502_v40, %v7523_v26  ;;  %v7774_v26 = vsub.f32 %v7478_v6, %v7552_v1 }
0x1481   : > { %v7733_v23 = vpop.permute.xlu2 %3368  ;;  %v7790_v1 = vsub.f32 %v7502_v40, %v7564_v37 }
0x1482   : > { %8882 = vst [vmem:[#allocation55_spill] sm:$0xff] %v7723_v44  ;;  %3497 = vperm.xlu0 %6637, %v7723_v44   ;;  %v7742_v44 = vsub.f32 %v7347_v38, %v3071_v16  ;;  %v7760_v16 = vsub.f32 %v7495_v25, %v7622_v17  ;;  %v7778_v17 = vsub.f32 %v7349_v39, %v7635_v49 }
0x1483   : > { %8890 = vst [vmem:[#allocation63_spill] sm:$0xff] %v7790_v1  ;;  %v7798_v49 = vsub.f32 %v7485_v22, %v3095_v58 }
0x1484   : > { %8884 = vst [vmem:[#allocation57_spill] sm:$0xff] %v7742_v44 }
0x1485   : > { %8886 = vst [vmem:[#allocation59_spill] sm:$0xff] %v7760_v16 }
0x1486   : > { %3392 = vperm.xlu1 %6636, %v7728_v54   ;;  %8888 = vst [vmem:[#allocation61_spill] sm:$0xff] %v7778_v17 }
0x1487   : > { %3431 = vperm.xlu2 %6635, %v7731_v12   ;;  %v7769_v12 = vpop.permute.xlu0 %3131  ;;  %8892 = vst [vmem:[#allocation65_spill] sm:$0xff] %v7798_v49 }
0x1489   : > { %v7745_v48 = vpop.permute.xlu2 %3374 }
0x148e   : > { %3377 = vperm.xlu1 %6636, %v7739_v24  }
0x148f   : > { %3494 = vperm.xlu2 %6635, %v7742_v44   ;;  %v2997_v56 = vpop.permute.xlu1 %2996  ;;  %v7765_v44 = vsub.f32 %v7478_v6, %v3126_v42  ;;  %v7783_v42 = vsub.f32 %v7353_v31, %v3089_v10 }
0x1490   : > { %v7749_v43 = vsub.f32 %v7485_v22, %v2997_v56 }
0x1491   : > { %8887 = vst [vmem:[#allocation60_spill] sm:$0xff] %v7765_v44  ;;  %v7767_v56 = vpop.permute.xlu2 %3395 }
0x1492   : > { %8885 = vst [vmem:[#allocation58_spill] sm:$0xff] %v7749_v43  ;;  %3458 = vperm.xlu0 %6637, %v7749_v43   ;;  %v3144_v43 = vpop.permute.xlu0 %3143 }
0x1493   : > { %8889 = vst [vmem:[#allocation62_spill] sm:$0xff] %v7783_v42  ;;  %v7815_v58 = vsub.f32 %v7485_v22, %v3144_v43  ;;  %v7831_v43 = vsub.f32 %v7485_v22, %v7590_v30  ;;  %v7847_v30 = vsub.f32 %v7495_v25, %v7697_v52 }
0x1495   : > { %8895 = vst [vmem:[#allocation68_spill] sm:$0xff] %v7815_v58 }
0x1496   : > { %3419 = vperm.xlu1 %6636, %v7756_v34   ;;  %8898 = vst [vmem:[#allocation71_spill] sm:$0xff] %v7831_v43 }
0x1497   : > { %3413 = vperm.xlu2 %6635, %v7760_v16   ;;  %8901 = vst [vmem:[#allocation74_spill] sm:$0xff] %v7847_v30 }
0x1499   : > { %v7786_v16 = vpop.permute.xlu2 %3398 }
0x149a   : > { %3521 = vperm.xlu0 %6637, %v7765_v44   ;;  %v7793_v44 = vsub.f32 %v7495_v25, %v2954_v55 }
0x149c   : > { %8891 = vst [vmem:[#allocation64_spill] sm:$0xff] %v7793_v44 }
0x149e   : > { %3401 = vperm.xlu1 %6636, %v7774_v26  }
0x149f   : > { %3476 = vperm.xlu2 %6635, %v7778_v17   ;;  %v3083_v10 = vpop.permute.xlu1 %3082  ;;  %v7805_v17 = vpop.permute.xlu0 %3371 }
0x14a0   : > { %v7808_v37 = vsub.f32 %v7349_v39, %v3083_v10 }
0x14a1   : > { %v7810_v55 = vpop.permute.xlu2 %3356 }
0x14a2   : > { %3503 = vperm.xlu0 %6637, %v7783_v42   ;;  %v7803_v42 = vsub.f32 %v7349_v39, %v7544_v63  ;;  %8894 = vst [vmem:[#allocation67_spill] sm:$0xff] %v7808_v37  ;;  %v7820_v63 = vsub.f32 %v7471_v19, %v7566_v41 }
0x14a4   : > { %8893 = vst [vmem:[#allocation66_spill] sm:$0xff] %v7803_v42 }
0x14a5   : > { %8896 = vst [vmem:[#allocation69_spill] sm:$0xff] %v7820_v63 }
0x14a6   : > { %3443 = vperm.xlu1 %6636, %v7790_v1   ;;  %v3549_v1 = vperm.slane %v7810_v55, %v7908_v13 }
0x14a7   : > { %3437 = vperm.xlu2 %6635, %v7793_v44   ;;  %v3354_v10 = vpop.permute.xlu0 %3353 }
0x14a9   : > { %v7826_v15 = vpop.permute.xlu2 %3422 }
0x14aa   : > { %3506 = vperm.xlu0 %6637, %v7798_v49  }
0x14ae   : > { %3404 = vperm.xlu1 %6636, %v7803_v42   ;;  %v7916_v42 = vadd.s32 4294967256, %v7105_v7 }
0x14af   : > { %3500 = vperm.xlu2 %6635, %v7808_v37   ;;  %v3046_v44 = vpop.permute.xlu1 %3045  ;;  %v7834_v37 = vpop.permute.xlu0 %3416 }
0x14b0   : > { %v7823_v49 = vsub.f32 %v7485_v22, %v3046_v44  ;;  %v7842_v44 = vsub.f32 %v7478_v6, %v7633_v47  ;;  %v7861_v47 = vsub.f32 %v7485_v22, %v7588_v27  ;;  %v7883_v27 = vsub.f32 %v7502_v40, %v7694_v0 }
0x14b1   : > { %v3360_v41 = vpop.permute.xlu2 %3359  ;;  %v7903_v0 = vadd.s32 4294967280, %v7105_v7 }
0x14b2   : > { %3530 = vperm.xlu0 %6637, %v7815_v58   ;;  %8897 = vst [vmem:[#allocation70_spill] sm:$0xff] %v7823_v49 }
0x14b3   : > { %8900 = vst [vmem:[#allocation73_spill] sm:$0xff] %v7842_v44 }
0x14b4   : > { %8903 = vst [vmem:[#allocation76_spill] sm:$0xff] %v7861_v47 }
0x14b5   : > { %8905 = vst [vmem:[#allocation78_spill] sm:$0xff] %v7883_v27 }
0x14b6   : > { %3464 = vperm.xlu1 %6636, %v7820_v63  }
0x14b7   : > { %3482 = vperm.xlu2 %6635, %v7823_v49   ;;  %v7849_v49 = vpop.permute.xlu0 %3380 }
0x14be   : > { %3386 = vperm.xlu1 %6636, %v7831_v43   ;;  %v7852_v43 = vpop.permute.xlu2 %3425 }
0x14bf   : > { %v3052_v58 = vpop.permute.xlu1 %3051 }
0x14c0   : > { %v7837_v19 = vsub.f32 %v7495_v25, %v3052_v58  ;;  %v7856_v58 = vsub.f32 %v7502_v40, %v7574_v60 }
0x14c2   : > { %8899 = vst [vmem:[#allocation72_spill] sm:$0xff] %v7837_v19  ;;  %3485 = vperm.xlu2 %6635, %v7837_v19   ;;  %v7863_v19 = vpop.permute.xlu0 %3440 }
0x14c3   : > { %8902 = vst [vmem:[#allocation75_spill] sm:$0xff] %v7856_v58 }
0x14c6   : > { %3449 = vperm.xlu1 %6636, %v7842_v44   ;;  %v7865_v52 = vpop.permute.xlu2 %3467 }
0x14ca   : > { %3509 = vperm.xlu2 %6635, %v7847_v30   ;;  %v7872_v30 = vsub.f32 %v7478_v6, %v7659_v53  ;;  %v7874_v60 = vpop.permute.xlu0 %3383  ;;  %v7891_v6 = vadd.s32 4294967288, %v7105_v7  ;;  %v7895_v53 = vsub.f32 %v7353_v31, %v7708_v4  ;;  %v7911_v4 = vadd.s32 4294967248, %v7105_v7 }
0x14cc   : > { %8904 = vst [vmem:[#allocation77_spill] sm:$0xff] %v7872_v30 }
0x14cd   : > { %8906 = vst [vmem:[#allocation79_spill] sm:$0xff] %v7895_v53 }
0x14ce   : > { %3491 = vperm.xlu1 %6636, %v7856_v58   ;;  %v7877_v58 = vpop.permute.xlu2 %3407 }
0x14cf   : > { %v7868_v44 = vpop.permute.xlu1 %3137 }
0x14d6   : > { %3410 = vperm.xlu1 %6636, %v7861_v47   ;;  %v7886_v47 = vpop.permute.xlu0 %3446  ;;  %v7888_v35 = vpop.permute.xlu2 %3470 }
0x14de   : > { %3473 = vperm.xlu1 %6636, %v7872_v30   ;;  %v7898_v30 = vadd.s32 4294967272, %v7105_v7  ;;  %v3363_v5 = vpop.permute.xlu0 %3362  ;;  %v3366_v33 = vpop.permute.xlu2 %3365 }
0x14df   : > { %v7879_v22 = vpop.permute.xlu1 %3149  ;;  %v3561_v38 = vperm.slane %v3366_v33, %v7928_v3  ;;  %v7947_v33 = vsub.f32 %v7495_v25, %v7751_v62  ;;  %v7960_v62 = vsub.f32 %v7349_v39, %v7769_v12 }
0x14e0   : > { %v7976_v12 = vsub.f32 %v7495_v25, %v7879_v22  ;;  %v3625_v25 = vperm.slane %v7865_v52, %v7891_v6  ;;  %v3571_v52 = vperm.slane %v7849_v49, %v7908_v13 }
0x14e6   : > { %3515 = vperm.xlu1 %6636, %v7883_v27   ;;  %v3535_v27 = vperm.slane %v7711_v18, %v7105_v7 }
0x14e8   : > { %v3348_v63 = vpop.permute.xlu1 %3347 }
0x14e9   : > { %v3537_v40 = vperm.slane %v3348_v63, %v7891_v6 }
0x14eb   : > { %v3539_v18 = vsel %vm3538_vm3, %v3537_v40, %v3535_v27  ;;  %v3557_v27 = vperm.slane %v3363_v5, %v7911_v4 }
0x14ee   : > { %3455 = vperm.xlu1 %6636, %v7895_v53   ;;  %v3545_v53 = vperm.slane %v3354_v10, %v7898_v30  ;;  %v3553_v10 = vperm.slane %v3360_v41, %v7916_v42 }
0x14f0   : > { %v3351_v9 = vpop.permute.xlu1 %3350 }
0x14f1   : > { %v3541_v63 = vperm.slane %v3351_v9, %v7903_v0 }
0x14f3   : > { %v3543_v9 = vsel %vm3542_vm4, %v3541_v63, %v3539_v18  ;;  %v3429_v18 = vpop.permute.xlu0 %3428 }
0x14f4   : > { %v3547_v59 = vsel %vm3546_vm5, %v3545_v53, %v3543_v9  ;;  %v7942_v53 = vsub.f32 %v7353_v31, %v7661_v28  ;;  %v3597_v28 = vperm.slane %v7826_v15, %v7903_v0 }
0x14f5   : > { %v3551_v36 = vsel %vm3550_vm8, %v3549_v1, %v3547_v59  ;;  %v3594_v1 = vperm.slane %v7834_v37, %v7105_v7 }
0x14f6   : > { %v3555_v55 = vsel %vm3554_vm9, %v3553_v10, %v3551_v36  ;;  %3518 = vperm.xlu1 %6636, %v7921_v45   ;;  %v3599_v10 = vperm.slane %v7852_v43, %v7898_v30  ;;  %v3601_v36 = vperm.slane %v3429_v18, %v7908_v13  ;;  %v7971_v43 = vsub.f32 %v7353_v31, %v7868_v44 }
0x14f7   : > { %v3559_v40 = vsel %vm3558_vm10, %v3557_v27, %v3555_v55  ;;  %v3564_v18 = vperm.slane %v7733_v23, %v7105_v7  ;;  %v3565_v44 = vperm.slane %v7805_v17, %v7891_v6  ;;  %v3627_v23 = vperm.slane %v7888_v35, %v7903_v0 }
0x14f8   : > { %v7937_v41 = vpop.permute.xlu1 %3392  ;;  %v3563_v63 = vsel %vm3562_vm11, %v3561_v38, %v3559_v40 }
0x14fb   : > { %v3489_v40 = vpop.permute.xlu0 %3488 }
0x14fe   : > { %3479 = vperm.xlu1 %6636, %v7942_v53  }
0x1500   : > { %v3378_v59 = vpop.permute.xlu1 %3377 }
0x1503   : > { %v3390_v31 = vpop.permute.xlu0 %3389 }
0x1506   : > { %3461 = vperm.xlu1 %6636, %v7947_v33  }
0x1508   : > { %v3420_v5 = vpop.permute.xlu1 %3419 }
0x1509   : > { %v3595_v9 = vperm.slane %v3420_v5, %v7891_v6  ;;  %v3432_v5 = vpop.permute.xlu2 %3431 }
0x150b   : > { %v3596_v27 = vsel %vm3538_vm3, %v3595_v9, %v3594_v1  ;;  %v3567_v9 = vperm.slane %v7745_v48, %v7903_v0 }
0x150c   : > { %v3598_v38 = vsel %vm3542_vm4, %v3597_v28, %v3596_v27  ;;  %v3569_v28 = vperm.slane %v3378_v59, %v7898_v30  ;;  %v3566_v27 = vsel %vm3538_vm3, %v3565_v44, %v3564_v18  ;;  %v3573_v18 = vperm.slane %v7874_v60, %v7916_v42  ;;  %v8005_v44 = vpop.permute.xlu0 %3452 }
0x150d   : > { %v3600_v37 = vsel %vm3546_vm5, %v3599_v10, %v3598_v38  ;;  %v3568_v48 = vsel %vm3542_vm4, %v3567_v9, %v3566_v27  ;;  %v3609_v60 = vperm.slane %v7863_v19, %v7105_v7 }
0x150e   : > { %v7966_v55 = vsel %vm3550_vm8, %v3601_v36, %v3600_v37  ;;  %3524 = vperm.xlu1 %6636, %v7960_v62   ;;  %v3570_v17 = vsel %vm3546_vm5, %v3569_v28, %v3568_v48 }
0x150f   : > { %v3572_v37 = vsel %vm3550_vm8, %v3571_v52, %v3570_v17 }
0x1510   : > { %v3402_v15 = vpop.permute.xlu1 %3401  ;;  %v3574_v28 = vsel %vm3554_vm9, %v3573_v18, %v3572_v37  ;;  %v3579_v18 = vperm.slane %v7937_v41, %v7105_v7 }
0x1511   : > { %v7992_v36 = vpop.permute.xlu2 %3494 }
0x1514   : > { %v8021_v52 = vpop.permute.xlu0 %3512 }
0x1516   : > { %3527 = vperm.xlu1 %6636, %v7971_v43  }
0x1518   : > { %v3444_v39 = vpop.permute.xlu1 %3443 }
0x1519   : > { %v3414_v49 = vpop.permute.xlu2 %3413 }
0x151e   : > { %3533 = vperm.xlu1 %6636, %v7976_v12  }
0x1520   : > { %v3405_v1 = vpop.permute.xlu1 %3404 }
0x1521   : > { %v3477_v19 = vpop.permute.xlu2 %3476 }
0x1528   : > { %v3465_v10 = vpop.permute.xlu1 %3464 }
0x1529   : > { %v3624_v22 = vperm.slane %v3465_v10, %v7105_v7  ;;  %v3577_v10 = vperm.slane %v3390_v31, %v7928_v3  ;;  %v3612_v31 = vperm.slane %v7886_v47, %v7903_v0 }
0x152b   : > { %v3626_v38 = vsel %vm3538_vm3, %v3625_v25, %v3624_v22  ;;  %v3610_v25 = vperm.slane %v3444_v39, %v7891_v6 }
0x152c   : > { %v7998_v59 = vsel %vm3542_vm4, %v3627_v23, %v3626_v38 }
0x152d   : > { %v3611_v48 = vsel %vm3538_vm3, %v3610_v25, %v3609_v60  ;;  %v3582_v25 = vperm.slane %v7786_v16, %v7903_v0  ;;  %v3603_v60 = vperm.slane %v3432_v5, %v7916_v42  ;;  %v3592_v5 = vperm.slane %v3414_v49, %v7928_v3 }
0x152e   : > { %v3613_v39 = vsel %vm3542_vm4, %v3612_v31, %v3611_v48 }
0x152f   : > { %v3604_v48 = vsel %vm3554_vm9, %v3603_v60, %v7966_v55 }
0x1530   : > { %v3387_v35 = vpop.permute.xlu1 %3386 }
0x1531   : > { %v3575_v9 = vperm.slane %v3387_v35, %v7911_v4 }
0x1533   : > { %v3576_v22 = vsel %vm3558_vm10, %v3575_v9, %v3574_v28  ;;  %v3639_v9 = vperm.slane %v3489_v40, %v7105_v7  ;;  %v3584_v28 = vperm.slane %v3402_v15, %v7898_v30  ;;  %v3588_v15 = vperm.slane %v7877_v58, %v7916_v42 }
0x1534   : > { %v3578_v27 = vsel %vm3562_vm11, %v3577_v10, %v3576_v22  ;;  %v3586_v22 = vperm.slane %v3405_v1, %v7908_v13  ;;  %v3438_v1 = vpop.permute.xlu2 %3437 }
0x1535   : > { %v3670_v23 = vsel %vm3669_vm12, %v3578_v27, %v3563_v63  ;;  %v3580_v63 = vperm.slane %v7767_v56, %v7891_v6  ;;  %v3435_v27 = vpop.permute.xlu0 %3434  ;;  %v3607_v55 = vperm.slane %v3438_v1, %v7928_v3 }
0x1536   : > { %v3605_v16 = vperm.slane %v3435_v27, %v7911_v4 }
0x1537   : > { %v3581_v10 = vsel %vm3538_vm3, %v3580_v63, %v3579_v18 }
0x1538   : > { %v3450_v38 = vpop.permute.xlu1 %3449  ;;  %v3583_v56 = vsel %vm3542_vm4, %v3582_v25, %v3581_v10  ;;  %v3606_v18 = vsel %vm3558_vm10, %v3605_v16, %v3604_v48 }
0x1539   : > { %v3614_v17 = vperm.slane %v3450_v38, %v7898_v30  ;;  %v3585_v40 = vsel %vm3546_vm5, %v3584_v28, %v3583_v56 }
0x153a   : > { %v3587_v31 = vsel %vm3550_vm8, %v3586_v22, %v3585_v40 }
0x153b   : > { %v3615_v37 = vsel %vm3546_vm5, %v3614_v17, %v3613_v39  ;;  %v3589_v39 = vsel %vm3554_vm9, %v3588_v15, %v3587_v31  ;;  %v3642_v31 = vperm.slane %v7992_v36, %v7903_v0 }
0x153c   : > { %v3501_v22 = vpop.permute.xlu2 %3500 }
0x153d   : > { %v3498_v10 = vpop.permute.xlu0 %3497 }
0x153e   : > { %v3644_v1 = vperm.slane %v3498_v10, %v7898_v30 }
0x1540   : > { %v3492_v35 = vpop.permute.xlu1 %3491 }
0x1541   : > { %v3640_v47 = vperm.slane %v3492_v35, %v7891_v6 }
0x1543   : > { %v3641_v41 = vsel %vm3538_vm3, %v3640_v47, %v3639_v9  ;;  %v3608_v9 = vsel %vm3562_vm11, %v3607_v55, %v3606_v18  ;;  %v3631_v55 = vperm.slane %v3477_v19, %v7908_v13 }
0x1544   : > { %v3483_v56 = vpop.permute.xlu2 %3482 }
0x1545   : > { %v3459_v28 = vpop.permute.xlu0 %3458 }
0x1548   : > { %v3411_v38 = vpop.permute.xlu1 %3410 }
0x1549   : > { %v3590_v17 = vperm.slane %v3411_v38, %v7911_v4 }
0x154b   : > { %v3591_v63 = vsel %vm3558_vm10, %v3590_v17, %v3589_v39 }
0x154c   : > { %v3593_v58 = vsel %vm3562_vm11, %v3592_v5, %v3591_v63  ;;  %v3486_v15 = vpop.permute.xlu2 %3485  ;;  %v3646_v5 = vperm.slane %v3501_v22, %v7908_v13 }
0x154d   : > { %v3672_v35 = vsel %vm3671_vm15, %v3593_v58, %v3670_v23  ;;  %v3522_v60 = vpop.permute.xlu0 %3521  ;;  %v3643_v23 = vsel %vm3542_vm4, %v3642_v31, %v3641_v41  ;;  %v3616_v41 = vperm.slane %v8005_v44, %v7908_v13 }
0x154e   : > { %v3674_v47 = vsel %vm8805_vm2, %v3608_v9, %v3672_v35  ;;  %v3645_v17 = vsel %vm3546_vm5, %v3644_v1, %v3643_v23 }
0x154f   : > { %v3647_v63 = vsel %vm3550_vm8, %v3646_v5, %v3645_v17  ;;  %v3617_v10 = vsel %vm3550_vm8, %v3616_v41, %v3615_v37  ;;  %v3637_v37 = vperm.slane %v3486_v15, %v7928_v3 }
0x1550   : > { %v3474_v49 = vpop.permute.xlu1 %3473 }
0x1551   : > { %v3629_v16 = vperm.slane %v3474_v49, %v7898_v30  ;;  %v3635_v49 = vperm.slane %v3483_v56, %v7911_v4 }
0x1553   : > { %v3630_v39 = vsel %vm3546_vm5, %v3629_v16, %v7998_v59 }
0x1554   : > { %v3632_v9 = vsel %vm3550_vm8, %v3631_v55, %v3630_v39  ;;  %v3510_v31 = vpop.permute.xlu2 %3509 }
0x1555   : > { %v3504_v48 = vpop.permute.xlu0 %3503 }
0x1556   : > { %v3648_v58 = vperm.slane %v3504_v48, %v7916_v42 }
0x1558   : > { %v3516_v25 = vpop.permute.xlu1 %3515  ;;  %v3649_v22 = vsel %vm3554_vm9, %v3648_v58, %v3647_v63  ;;  %v3654_v63 = vperm.slane %v8021_v52, %v7105_v7 }
0x155d   : > { %v3507_v35 = vpop.permute.xlu0 %3506 }
0x155e   : > { %v3650_v44 = vperm.slane %v3507_v35, %v7911_v4 }
0x1560   : > { %v3456_v27 = vpop.permute.xlu1 %3455  ;;  %v3651_v56 = vsel %vm3558_vm10, %v3650_v44, %v3649_v22 }
0x1561   : > { %v3618_v36 = vperm.slane %v3456_v27, %v7916_v42  ;;  %v3620_v27 = vperm.slane %v3459_v28, %v7911_v4 }
0x1563   : > { %v3619_v19 = vsel %vm3554_vm9, %v3618_v36, %v3617_v10  ;;  %v3655_v36 = vperm.slane %v3516_v25, %v7891_v6  ;;  %v3659_v10 = vperm.slane %v3522_v60, %v7898_v30 }
0x1564   : > { %v3621_v1 = vsel %vm3558_vm10, %v3620_v27, %v3619_v19 }
0x1565   : > { %v3656_v35 = vsel %vm3538_vm3, %v3655_v36, %v3654_v63  ;;  %v8912_v36 = vld [vmem:[#allocation36_spill] sm:$0xff] }
0x1568   : > { %v3519_v40 = vpop.permute.xlu1 %3518 }
0x1569   : > { %v3657_v41 = vperm.slane %v3519_v40, %v7903_v0 }
0x1570   : > { %v3480_v38 = vpop.permute.xlu1 %3479 }
0x1571   : > { %v3633_v18 = vperm.slane %v3480_v38, %v7916_v42  ;;  %v3652_v38 = vperm.slane %v3510_v31, %v7928_v3 }
0x1573   : > { %v3634_v59 = vsel %vm3554_vm9, %v3633_v18, %v3632_v9  ;;  %v3653_v39 = vsel %vm3562_vm11, %v3652_v38, %v3651_v56 }
0x1574   : > { %v3636_v48 = vsel %vm3558_vm10, %v3635_v49, %v3634_v59  ;;  %v3531_v49 = vpop.permute.xlu0 %3530 }
0x1575   : > { %v3638_v5 = vsel %vm3562_vm11, %v3637_v37, %v3636_v48  ;;  %v3665_v52 = vperm.slane %v3531_v49, %v7911_v4 }
0x1578   : > { %v3462_v23 = vpop.permute.xlu1 %3461 }
0x1579   : > { %v3622_v16 = vperm.slane %v3462_v23, %v7928_v3 }
0x157b   : > { %v3623_v28 = vsel %vm3562_vm11, %v3622_v16, %v3621_v1 }
0x157c   : > { %v3676_v17 = vsel %vm8804_vm1, %v3623_v28, %v3674_v47  ;;  %v3658_v47 = vsel %vm3542_vm4, %v3657_v41, %v3656_v35  ;;  %v8913_v35 = vld [vmem:[#allocation66_spill] sm:$0xff] }
0x157d   : > { %v3678_v18 = vsel %vm8801_vm0, %v3638_v5, %v3676_v17  ;;  %v3660_v19 = vsel %vm3546_vm5, %v3659_v10, %v3658_v47  ;;  %v8914_v47 = vld [vmem:[#allocation46_spill] sm:$0xff] }
0x157e   : > { %v3680_v15 = vsel %vm8800_vm13, %v3653_v39, %v3678_v18  ;;  %v8909_v18 = vld [vmem:[#allocation30_spill] sm:$0xff] }
0x1580   : > { %v3525_v55 = vpop.permute.xlu1 %3524 }
0x1581   : > { %v3661_v9 = vperm.slane %v3525_v55, %v7908_v13  ;;  %v8911_v55 = vld [vmem:[#allocation44_spill] sm:$0xff] }
0x1583   : > { %v3662_v25 = vsel %vm3550_vm8, %v3661_v9, %v3660_v19  ;;  %v8915_v9 = vld [vmem:[#allocation37_spill] sm:$0xff]  ;;  %v8916_v19 = vld [vmem:[#allocation31_spill] sm:$0xff] }
0x1588   : > { %v3528_v58 = vpop.permute.xlu1 %3527 }
0x1589   : > { %v3663_v59 = vperm.slane %v3528_v58, %v7916_v42 }
0x158b   : > { %v3664_v40 = vsel %vm3554_vm9, %v3663_v59, %v3662_v25 }
0x158c   : > { %v3666_v44 = vsel %vm3558_vm10, %v3665_v52, %v3664_v40  ;;  %v8917_v40 = vld [vmem:[#allocation69_spill] sm:$0xff]  ;;  %v8918_v52 = vld [vmem:[#allocation48_spill] sm:$0xff] }
0x1590   : > { %v3534_v22 = vpop.permute.xlu1 %3533 }
0x1591   : > { %v3667_v27 = vperm.slane %v3534_v22, %v7928_v3  ;;  %v8919_v22 = vld [vmem:[#allocation38_spill] sm:$0xff] }
0x1593   : > { %v3668_v31 = vsel %vm3562_vm11, %v3667_v27, %v3666_v44 }
0x1594   : > { %v3682_v60 = vsel %vm8802_vm6, %v3668_v31, %v3680_v15 }
0x1595   : > { %v3684_v23 = vsel %vm8803_vm14, %v3682_v60, inf  ;;  %v8920_v60 = vld [vmem:[#allocation71_spill] sm:$0xff] }
0x1596   : > { %3685 = vmin.xlane.f32.xlu2 %v3684_v23  ;;  %v8921_v23 = vld [vmem:[#allocation50_spill] sm:$0xff] }
0x1609   : > { %v8109_v48 = vpop.xlane.xlu2 %3685 }
0x160a   : > { %v8112_v16 = vperm.slane %v8109_v48, 0  ;;  %v8115_v37 = vperm.slane %v8109_v48, 1  ;;  %v8127_v28 = vperm.slane %v8109_v48, 2  ;;  %v8168_v39 = vperm.slane %v8109_v48, 4 }
0x160b   : > { %v8189_v49 = vperm.slane %v8109_v48, 5 }
0x160c   : > { %vm3712_vm13 = vcmp.eq.f32.partialorder %v7597_v61, %v8115_v37  ;;  %vm3705_vm0 = vcmp.eq.f32.partialorder %v7701_v11, %v8112_v16  ;;  %vm3704_vm6 = vcmp.eq.f32.partialorder %v7582_v14, %v8112_v16  ;;  %vm3720_vm14 = vcmp.eq.f32.partialorder %v7728_v54, %v8127_v28 }
0x160d   : > { %v3824_v1 = vsel %vm3712_vm13, %v7474_v20, 64  ;;  %v3817_v56 = vsel %vm3705_vm0, %v7337_v29, 64  ;;  %v3816_v38 = vsel %vm3704_vm6, %v7474_v20, 64  ;;  %vm3713_vm1 = vcmp.eq.f32.partialorder %v7526_v51, %v8115_v37 }
0x160e   : > { %3905 = vperm.xlu0 %6637, %v3824_v1   ;;  %3884 = vperm.xlu1 %6636, %v3817_v56   ;;  %vm3714_vm2 = vcmp.eq.f32.partialorder %v7607_v50, %v8115_v37  ;;  %v3832_v14 = vsel %vm3720_vm14, %v7474_v20, 64  ;;  %v3825_v61 = vsel %vm3713_vm1, %v7337_v29, 64  ;;  %vm3715_vm0 = vcmp.eq.f32.partialorder %v7739_v24, %v8115_v37  ;;  %v8922_v1 = vld [vmem:[#allocation39_spill] sm:$0xff]  ;;  %v8923_v56 = vld [vmem:[#allocation34_spill] sm:$0xff] }
0x160f   : > { %3881 = vperm.xlu2 %6635, %v3816_v38   ;;  %v3826_v11 = vsel %vm3714_vm2, %v7339_v32, 64  ;;  %vm3706_vm6 = vcmp.eq.f32.partialorder %v7715_v2, %v8112_v16  ;;  %vm3707_vm13 = vcmp.eq.f32.partialorder %v7537_v57, %v8112_v16  ;;  %v3827_v51 = vsel %vm3715_vm0, %v7481_v21, 64 }
0x1610   : > { %v3818_v50 = vsel %vm3706_vm6, %v7339_v32, 64  ;;  %v8147_v54 = vperm.slane %v8109_v48, 3  ;;  %v3819_v17 = vsel %vm3707_vm13, %v7481_v21, 64  ;;  %vm3721_vm14 = vcmp.eq.f32.partialorder %v7617_v8, %v8127_v28  ;;  %v8908_v8 = vld [vmem:[#allocation35_spill] sm:$0xff] }
0x1611   : > { %v3833_v2 = vsel %vm3721_vm14, %v7337_v29, 64  ;;  %vm3723_vm0 = vcmp.eq.f32.partialorder %v7774_v26, %v8127_v28  ;;  %vm3716_vm13 = vcmp.eq.f32.partialorder %v8908_v8, %v8115_v37  ;;  %v8910_v26 = vld [vmem:[#allocation63_spill] sm:$0xff]  ;;  %vm3708_vm14 = vcmp.eq.f32.partialorder %v8911_v55, %v8112_v16  ;;  %v8928_v8 = vld [vmem:[#allocation52_spill] sm:$0xff] }
0x1612   : > { %vm3729_vm1 = vcmp.eq.f32.partialorder %v7756_v34, %v8147_v54  ;;  %vm3728_vm2 = vcmp.eq.f32.partialorder %v7547_v46, %v8147_v54  ;;  %v8907_v34 = vld [vmem:[#allocation42_spill] sm:$0xff]  ;;  %v3835_v46 = vsel %vm3723_vm0, %v7481_v21, 64  ;;  %v3828_v15 = vsel %vm3716_vm13, %v8909_v18, 64  ;;  %v8930_v55 = vld [vmem:[#allocation76_spill] sm:$0xff] }
0x1613   : > { %v3841_v57 = vsel %vm3729_vm1, %v7337_v29, 64  ;;  %v3840_v24 = vsel %vm3728_vm2, %v7474_v20, 64  ;;  %vm3722_vm6 = vcmp.eq.f32.partialorder %v8907_v34, %v8127_v28  ;;  %vm3737_vm1 = vcmp.eq.f32.partialorder %v8910_v26, %v8168_v39  ;;  %v8927_v34 = vld [vmem:[#allocation75_spill] sm:$0xff] }
0x1614   : > { %v3834_v5 = vsel %vm3722_vm6, %v7339_v32, 64  ;;  %vm3736_vm2 = vcmp.eq.f32.partialorder %v8912_v36, %v8168_v39  ;;  %v3849_v41 = vsel %vm3737_vm1, %v7337_v29, 64  ;;  %v3820_v63 = vsel %vm3708_vm14, %v8909_v18, 64  ;;  %v8931_v36 = vld [vmem:[#allocation53_spill] sm:$0xff] }
0x1615   : > { %v3848_v58 = vsel %vm3736_vm2, %v7474_v20, 64  ;;  %vm3724_vm0 = vcmp.eq.f32.partialorder %v8913_v35, %v8127_v28  ;;  %vm3730_vm6 = vcmp.eq.f32.partialorder %v8914_v47, %v8147_v54  ;;  %vm3717_vm13 = vcmp.eq.f32.partialorder %v8915_v9, %v8115_v37  ;;  %v8933_v35 = vld [vmem:[#allocation32_spill] sm:$0xff] }
0x1616   : > { %3929 = vperm.xlu0 %6637, %v3832_v14   ;;  %3908 = vperm.xlu1 %6636, %v3825_v61   ;;  %v3836_v10 = vsel %vm3724_vm0, %v8909_v18, 64  ;;  %v3842_v59 = vsel %vm3730_vm6, %v7339_v32, 64  ;;  %v3829_v25 = vsel %vm3717_vm13, %v8916_v19, 64  ;;  %vm3744_vm1 = vcmp.eq.f32.partialorder %v8917_v40, %v8189_v49 }
0x1617   : > { %3911 = vperm.xlu2 %6635, %v3826_v11   ;;  %vm3709_vm14 = vcmp.eq.f32.partialorder %v8918_v52, %v8112_v16  ;;  %vm3738_vm2 = vcmp.eq.f32.partialorder %v8919_v22, %v8168_v39  ;;  %v3856_v27 = vsel %vm3744_vm1, %v7474_v20, 64  ;;  %vm3718_vm0 = vcmp.eq.f32.partialorder %v8920_v60, %v8115_v37  ;;  %v8924_v11 = vld [vmem:[#allocation73_spill] sm:$0xff] }
0x1618   : > { %v3821_v44 = vsel %vm3709_vm14, %v8916_v19, 64  ;;  %v3850_v31 = vsel %vm3738_vm2, %v7339_v32, 64  ;;  %vm3731_vm6 = vcmp.eq.f32.partialorder %v8921_v23, %v8147_v54  ;;  %vm3710_vm13 = vcmp.eq.f32.partialorder %v8922_v1, %v8112_v16 }
0x1619   : > { %v3830_v38 = vsel %vm3718_vm0, %v8923_v56, 64  ;;  %v3843_v14 = vsel %vm3731_vm6, %v7481_v21, 64  ;;  %v3822_v61 = vsel %vm3710_vm13, %v8923_v56, 64  ;;  %vm3739_vm1 = vcmp.eq.f32.partialorder %v8924_v11, %v8168_v39 }
0x161a   : > { %vm3725_vm6 = vcmp.eq.f32.partialorder %v8928_v8, %v8127_v28  ;;  %v8249_v52 = vperm.slane %v8109_v48, 7 }
0x161e   : > { %3914 = vperm.xlu0 %6637, %v3827_v51   ;;  %3887 = vperm.xlu1 %6636, %v3818_v50   ;;  %v8925_v51 = vld [vmem:[#allocation51_spill] sm:$0xff]  ;;  %v8926_v50 = vld [vmem:[#allocation40_spill] sm:$0xff] }
0x161f   : > { %3890 = vperm.xlu2 %6635, %v3819_v17   ;;  %vm3745_vm14 = vcmp.eq.f32.partialorder %v8925_v51, %v8189_v49  ;;  %vm3732_vm2 = vcmp.eq.f32.partialorder %v8926_v50, %v8147_v54  ;;  %v3851_v17 = vsel %vm3739_vm1, %v7481_v21, 64  ;;  %vm3726_vm1 = vcmp.eq.f32.partialorder %v8930_v55, %v8127_v28 }
0x1626   : > { %3956 = vperm.xlu0 %6637, %v3841_v57   ;;  %3932 = vperm.xlu1 %6636, %v3833_v2   ;;  %v3857_v57 = vsel %vm3745_vm14, %v7337_v29, 64  ;;  %v8219_v2 = vperm.slane %v8109_v48, 6  ;;  %vm3746_vm14 = vcmp.eq.f32.partialorder %v8931_v36, %v8189_v49 }
0x1627   : > { %3953 = vperm.xlu2 %6635, %v3840_v24   ;;  %v3844_v24 = vsel %vm3732_vm2, %v8909_v18, 64 }
0x1628   : > { %vm3753_vm0 = vcmp.eq.f32.partialorder %v8927_v34, %v8219_v2  ;;  %v8943_v34 = vld [vmem:[#allocation59_spill] sm:$0xff] }
0x162e   : > { %3938 = vperm.xlu0 %6637, %v3835_v46   ;;  %3935 = vperm.xlu1 %6636, %v3834_v5   ;;  %v8929_v46 = vld [vmem:[#allocation41_spill] sm:$0xff]  ;;  %v3865_v5 = vsel %vm3753_vm0, %v7337_v29, 64 }
0x162f   : > { %3917 = vperm.xlu2 %6635, %v3828_v15   ;;  %vm3752_vm13 = vcmp.eq.f32.partialorder %v8929_v46, %v8219_v2  ;;  %v3837_v15 = vsel %vm3725_vm6, %v8916_v19, 64  ;;  %v8944_v46 = vld [vmem:[#allocation55_spill] sm:$0xff] }
0x1630   : > { %v3864_v26 = vsel %vm3752_vm13, %v7474_v20, 64 }
0x1636   : > { %3980 = vperm.xlu0 %6637, %v3849_v41   ;;  %3893 = vperm.xlu1 %6636, %v3820_v63   ;;  %v8932_v41 = vld [vmem:[#allocation43_spill] sm:$0xff]  ;;  %v3838_v63 = vsel %vm3726_vm1, %v8923_v56, 64 }
0x1637   : > { %3977 = vperm.xlu2 %6635, %v3848_v58   ;;  %vm3719_vm2 = vcmp.eq.f32.partialorder %v8932_v41, %v8115_v37  ;;  %v3858_v58 = vsel %vm3746_vm14, %v7339_v32, 64 }
0x1638   : > { %v3831_v47 = vsel %vm3719_vm2, %v8933_v35, 64 }
0x163e   : > { %3941 = vperm.xlu0 %6637, %v3836_v10   ;;  %3959 = vperm.xlu1 %6636, %v3842_v59   ;;  %v8934_v10 = vld [vmem:[#allocation77_spill] sm:$0xff]  ;;  %v8935_v59 = vld [vmem:[#allocation54_spill] sm:$0xff] }
0x163f   : > { %3920 = vperm.xlu2 %6635, %v3829_v25   ;;  %vm3747_vm0 = vcmp.eq.f32.partialorder %v8934_v10, %v8189_v49  ;;  %vm3711_vm6 = vcmp.eq.f32.partialorder %v8935_v59, %v8112_v16  ;;  %v8936_v25 = vld [vmem:[#allocation45_spill] sm:$0xff]  ;;  %v8938_v16 = vld [vmem:[#allocation56_spill] sm:$0xff] }
0x1640   : > { %vm3740_vm13 = vcmp.eq.f32.partialorder %v8936_v25, %v8168_v39  ;;  %v3859_v37 = vsel %vm3747_vm0, %v7481_v21, 64  ;;  %v3823_v40 = vsel %vm3711_vm6, %v8933_v35, 64  ;;  %vm3733_vm14 = vcmp.eq.f32.partialorder %v8938_v16, %v8147_v54 }
0x1641   : > { %v3852_v22 = vsel %vm3740_vm13, %v8909_v18, 64  ;;  %v3845_v48 = vsel %vm3733_vm14, %v8916_v19, 64  ;;  %vm3727_vm14 = vcmp.eq.f32.partialorder %v8943_v34, %v8127_v28 }
0x1646   : > { %4001 = vperm.xlu0 %6637, %v3856_v27   ;;  %3896 = vperm.xlu1 %6636, %v3821_v44   ;;  %v8937_v44 = vld [vmem:[#allocation78_spill] sm:$0xff] }
0x1647   : > { %3983 = vperm.xlu2 %6635, %v3850_v31   ;;  %vm3761_vm1 = vcmp.eq.f32.partialorder %v8937_v44, %v8249_v52  ;;  %v8939_v31 = vld [vmem:[#allocation47_spill] sm:$0xff] }
0x1648   : > { %vm3760_vm2 = vcmp.eq.f32.partialorder %v8939_v31, %v8249_v52  ;;  %v3873_v60 = vsel %vm3761_vm1, %v7337_v29, 64  ;;  %vm3762_vm1 = vcmp.eq.f32.partialorder %v7921_v45, %v8249_v52  ;;  %v8947_v31 = vld [vmem:[#allocation64_spill] sm:$0xff] }
0x1649   : > { %v3872_v23 = vsel %vm3760_vm2, %v7474_v20, 64  ;;  %vm3755_vm2 = vcmp.eq.f32.partialorder %v8944_v46, %v8219_v2 }
0x164e   : > { %3923 = vperm.xlu0 %6637, %v3830_v38   ;;  %3962 = vperm.xlu1 %6636, %v3843_v14   ;;  %v8940_v38 = vld [vmem:[#allocation79_spill] sm:$0xff]  ;;  %v8941_v14 = vld [vmem:[#allocation57_spill] sm:$0xff] }
0x164f   : > { %3899 = vperm.xlu2 %6635, %v3822_v61   ;;  %vm3741_vm0 = vcmp.eq.f32.partialorder %v8940_v38, %v8168_v39  ;;  %vm3754_vm6 = vcmp.eq.f32.partialorder %v8941_v14, %v8219_v2  ;;  %v8942_v61 = vld [vmem:[#allocation49_spill] sm:$0xff] }
0x1650   : > { %vm3734_vm13 = vcmp.eq.f32.partialorder %v8942_v61, %v8147_v54  ;;  %v3853_v11 = vsel %vm3741_vm0, %v8916_v19, 64  ;;  %v3866_v29 = vsel %vm3754_vm6, %v7339_v32, 64  ;;  %vm3749_vm0 = vcmp.eq.f32.partialorder %v7942_v53, %v8189_v49 }
0x1651   : > { %v3846_v51 = vsel %vm3734_vm13, %v8923_v56, 64  ;;  %v3861_v10 = vsel %vm3749_vm0, %v8916_v19, 64  ;;  %vm3764_vm0 = vcmp.eq.f32.partialorder %v7960_v62, %v8249_v52 }
0x1652   : > { %v3876_v46 = vsel %vm3764_vm0, %v8909_v18, 64  ;;  %vm3767_vm0 = vcmp.eq.f32.partialorder %v7976_v12, %v8249_v52 }
0x1656   : > { %3986 = vperm.xlu0 %6637, %v3851_v17   ;;  %4004 = vperm.xlu1 %6636, %v3857_v57  }
0x1657   : > { %3965 = vperm.xlu2 %6635, %v3844_v24  }
0x165e   : > { %4028 = vperm.xlu0 %6637, %v3865_v5   ;;  %3944 = vperm.xlu1 %6636, %v3837_v15   ;;  %v3874_v5 = vsel %vm3762_vm1, %v7339_v32, 64  ;;  %v3839_v15 = vsel %vm3727_vm14, %v8933_v35, 64  ;;  %v8945_v32 = vld [vmem:[#allocation61_spill] sm:$0xff]  ;;  %vm3743_vm1 = vcmp.eq.f32.partialorder %v7947_v33, %v8168_v39  ;;  %vm3735_vm14 = vcmp.eq.f32.partialorder %v8947_v31, %v8147_v54 }
0x165f   : > { %4025 = vperm.xlu2 %6635, %v3864_v26   ;;  %v3867_v26 = vsel %vm3755_vm2, %v7481_v21, 64  ;;  %vm3748_vm6 = vcmp.eq.f32.partialorder %v8945_v32, %v8189_v49  ;;  %v3847_v61 = vsel %vm3735_vm14, %v8933_v35, 64 }
0x1660   : > { %v3860_v59 = vsel %vm3748_vm6, %v8909_v18, 64 }
0x1666   : > { %3947 = vperm.xlu0 %6637, %v3838_v63   ;;  %4007 = vperm.xlu1 %6636, %v3858_v58  }
0x1667   : > { %3926 = vperm.xlu2 %6635, %v3831_v47   ;;  %v8946_v47 = vld [vmem:[#allocation58_spill] sm:$0xff] }
0x1668   : > { %vm3742_vm13 = vcmp.eq.f32.partialorder %v8946_v47, %v8168_v39 }
0x1669   : > { %v3882_v9 = vpop.permute.xlu2 %3881  ;;  %v3854_v25 = vsel %vm3742_vm13, %v8923_v56, 64 }
0x166a   : > { %v4072_v17 = vperm.slane %v3882_v9, %v7105_v7 }
0x166e   : > { %4010 = vperm.xlu0 %6637, %v3859_v37   ;;  %3902 = vperm.xlu1 %6636, %v3823_v40  }
0x166f   : > { %3989 = vperm.xlu2 %6635, %v3852_v22  }
0x1671   : > { %v3912_v27 = vpop.permute.xlu2 %3911 }
0x1672   : > { %v4090_v63 = vperm.slane %v3912_v27, %v7903_v0 }
0x1676   : > { %4052 = vperm.xlu0 %6637, %v3873_v60   ;;  %3968 = vperm.xlu1 %6636, %v3845_v48  }
0x1677   : > { %4049 = vperm.xlu2 %6635, %v3872_v23   ;;  %v8948_v23 = vld [vmem:[#allocation60_spill] sm:$0xff] }
0x1678   : > { %vm3763_vm2 = vcmp.eq.f32.partialorder %v8948_v23, %v8249_v52 }
0x1679   : > { %v3891_v1 = vpop.permute.xlu2 %3890  ;;  %v3875_v33 = vsel %vm3763_vm2, %v7481_v21, 64 }
0x167a   : > { %v4077_v44 = vperm.slane %v3891_v1, %v7898_v30  ;;  %v3855_v1 = vsel %vm3743_vm1, %v8933_v35, 64  ;;  %vm3765_vm1 = vcmp.eq.f32.partialorder %v7971_v43, %v8249_v52 }
0x167b   : > { %v3877_v32 = vsel %vm3765_vm1, %v8916_v19, 64 }
0x167e   : > { %3992 = vperm.xlu0 %6637, %v3853_v11   ;;  %4031 = vperm.xlu1 %6636, %v3866_v29  }
0x167f   : > { %3971 = vperm.xlu2 %6635, %v3846_v51  }
0x1680   : > { %v3906_v20 = vpop.permute.xlu0 %3905  ;;  %v3885_v50 = vpop.permute.xlu1 %3884 }
0x1681   : > { %v4073_v57 = vperm.slane %v3885_v50, %v7891_v6  ;;  %v3954_v24 = vpop.permute.xlu2 %3953  ;;  %v4087_v45 = vperm.slane %v3906_v20, %v7105_v7 }
0x1682   : > { %v4117_v11 = vperm.slane %v3954_v24, %v7105_v7  ;;  %v8950_v24 = vld [vmem:[#allocation62_spill] sm:$0xff] }
0x1683   : > { %v4074_v8 = vsel %vm3538_vm3, %v4073_v57, %v4072_v17  ;;  %v8949_v57 = vld [vmem:[#allocation67_spill] sm:$0xff]  ;;  %vm3757_vm13 = vcmp.eq.f32.partialorder %v8950_v24, %v8219_v2 }
0x1684   : > { %vm3756_vm6 = vcmp.eq.f32.partialorder %v8949_v57, %v8219_v2  ;;  %v3869_v62 = vsel %vm3757_vm13, %v8916_v19, 64  ;;  %v8953_v19 = vld [vmem:[#allocation72_spill] sm:$0xff] }
0x1686   : > { %4055 = vperm.xlu0 %6637, %v3874_v5   ;;  %3950 = vperm.xlu1 %6636, %v3839_v15   ;;  %v3868_v5 = vsel %vm3756_vm6, %v8909_v18, 64  ;;  %vm3751_vm6 = vcmp.eq.f32.partialorder %v8953_v19, %v8189_v49 }
0x1687   : > { %4034 = vperm.xlu2 %6635, %v3867_v26   ;;  %v3863_v31 = vsel %vm3751_vm6, %v8933_v35, 64  ;;  %vm8970_vm6 = vcmask 261120  }
0x1688   : > { %v3930_v55 = vpop.permute.xlu0 %3929  ;;  %v3909_v36 = vpop.permute.xlu1 %3908 }
0x1689   : > { %v4088_v28 = vperm.slane %v3909_v36, %v7891_v6  ;;  %v3918_v41 = vpop.permute.xlu2 %3917  ;;  %v4102_v29 = vperm.slane %v3930_v55, %v7105_v7 }
0x168a   : > { %v4094_v16 = vperm.slane %v3918_v41, %v7908_v13  ;;  %v8952_v41 = vld [vmem:[#allocation65_spill] sm:$0xff] }
0x168b   : > { %v4089_v58 = vsel %vm3538_vm3, %v4088_v28, %v4087_v45  ;;  %v8951_v28 = vld [vmem:[#allocation70_spill] sm:$0xff]  ;;  %vm3758_vm2 = vcmp.eq.f32.partialorder %v8952_v41, %v8219_v2 }
0x168c   : > { %v4091_v9 = vsel %vm3542_vm4, %v4090_v63, %v4089_v58  ;;  %vm3750_vm14 = vcmp.eq.f32.partialorder %v8951_v28, %v8189_v49  ;;  %v3870_v47 = vsel %vm3758_vm2, %v8923_v56, 64  ;;  %vm8966_vm2 = vcmask 1043456  }
0x168d   : > { %v3862_v58 = vsel %vm3750_vm14, %v8923_v56, 64  ;;  %vm8958_vm14 = vcmask 1045509  }
0x168e   : > { %4016 = vperm.xlu0 %6637, %v3861_v10   ;;  %4013 = vperm.xlu1 %6636, %v3860_v59  }
0x168f   : > { %3995 = vperm.xlu2 %6635, %v3854_v25  }
0x1690   : > { %v3915_v53 = vpop.permute.xlu0 %3914  ;;  %v3888_v37 = vpop.permute.xlu1 %3887 }
0x1691   : > { %v4092_v40 = vperm.slane %v3915_v53, %v7898_v30  ;;  %v4075_v22 = vperm.slane %v3888_v37, %v7903_v0  ;;  %v8298_v27 = vpop.permute.xlu2 %3977 }
0x1692   : > { %v4132_v10 = vperm.slane %v8298_v27, %v7105_v7 }
0x1693   : > { %v4093_v60 = vsel %vm3546_vm5, %v4092_v40, %v4091_v9  ;;  %v4076_v48 = vsel %vm3542_vm4, %v4075_v22, %v4074_v8 }
0x1694   : > { %v4095_v38 = vsel %vm3550_vm8, %v4094_v16, %v4093_v60  ;;  %v4078_v14 = vsel %vm3546_vm5, %v4077_v44, %v4076_v48  ;;  %v8954_v44 = vld [vmem:[#allocation68_spill] sm:$0xff]  ;;  %v3879_v16 = vsel %vm3767_vm0, %v8933_v35, 64  ;;  %vm8969_vm0 = vcmask 64512  }
0x1695   : > { %vm3766_vm13 = vcmp.eq.f32.partialorder %v8954_v44, %v8249_v52  ;;  %v8955_v52 = vld [vmem:[#allocation74_spill] sm:$0xff] }
0x1696   : > { %3998 = vperm.xlu0 %6637, %v3855_v1   ;;  %3974 = vperm.xlu1 %6636, %v3847_v61   ;;  %v3878_v12 = vsel %vm3766_vm13, %v8923_v56, 64  ;;  %vm3759_vm1 = vcmp.eq.f32.partialorder %v8955_v52, %v8219_v2 }
0x1697   : > { %4058 = vperm.xlu2 %6635, %v3875_v33   ;;  %v3871_v61 = vsel %vm3759_vm1, %v8933_v35, 64 }
0x1698   : > { %v3957_v54 = vpop.permute.xlu0 %3956  ;;  %v3933_v39 = vpop.permute.xlu1 %3932 }
0x1699   : > { %v4118_v51 = vperm.slane %v3957_v54, %v7891_v6  ;;  %v4103_v20 = vperm.slane %v3933_v39, %v7891_v6  ;;  %v3921_v50 = vpop.permute.xlu2 %3920 }
0x169a   : > { %v4096_v17 = vperm.slane %v3921_v50, %v7916_v42 }
0x169b   : > { %v4119_v21 = vsel %vm3538_vm3, %v4118_v51, %v4117_v11  ;;  %v4104_v34 = vsel %vm3538_vm3, %v4103_v20, %v4102_v29 }
0x169c   : > { %v8329_v8 = vsel %vm3554_vm9, %v4096_v17, %v4095_v38 }
0x169e   : > { %4061 = vperm.xlu0 %6637, %v3876_v46   ;;  %4037 = vperm.xlu1 %6636, %v3868_v5  }
0x169f   : > { %4040 = vperm.xlu2 %6635, %v3869_v62  }
0x16a0   : > { %v3939_v15 = vpop.permute.xlu0 %3938  ;;  %v3936_v26 = vpop.permute.xlu1 %3935 }
0x16a1   : > { %v4107_v55 = vperm.slane %v3939_v15, %v7898_v30  ;;  %v4105_v36 = vperm.slane %v3936_v26, %v7903_v0  ;;  %v3984_v45 = vpop.permute.xlu2 %3983 }
0x16a2   : > { %v4135_v37 = vperm.slane %v3984_v45, %v7903_v0 }
0x16a3   : > { %v4106_v18 = vsel %vm3542_vm4, %v4105_v36, %v4104_v34 }
0x16a4   : > { %v4108_v63 = vsel %vm3546_vm5, %v4107_v55, %v4106_v18 }
0x16a6   : > { %4064 = vperm.xlu0 %6637, %v3877_v32   ;;  %4019 = vperm.xlu1 %6636, %v3862_v58  }
0x16a7   : > { %4043 = vperm.xlu2 %6635, %v3870_v47  }
0x16a8   : > { %v3981_v43 = vpop.permute.xlu0 %3980  ;;  %v3894_v9 = vpop.permute.xlu1 %3893 }
0x16a9   : > { %v4133_v59 = vperm.slane %v3981_v43, %v7891_v6  ;;  %v4079_v25 = vperm.slane %v3894_v9, %v7908_v13  ;;  %v3900_v53 = vpop.permute.xlu2 %3899 }
0x16aa   : > { %v4083_v11 = vperm.slane %v3900_v53, %v7911_v4 }
0x16ab   : > { %v4134_v40 = vsel %vm3538_vm3, %v4133_v59, %v4132_v10  ;;  %v4080_v22 = vsel %vm3550_vm8, %v4079_v25, %v4078_v14 }
0x16ac   : > { %v4136_v27 = vsel %vm3542_vm4, %v4135_v37, %v4134_v40 }
0x16ae   : > { %4070 = vperm.xlu0 %6637, %v3879_v16   ;;  %4022 = vperm.xlu1 %6636, %v3863_v31  }
0x16af   : > { %4067 = vperm.xlu2 %6635, %v3878_v12  }
0x16b0   : > { %v3942_v60 = vpop.permute.xlu0 %3941  ;;  %v3960_v49 = vpop.permute.xlu1 %3959 }
0x16b1   : > { %v4109_v48 = vperm.slane %v3942_v60, %v7908_v13  ;;  %v4120_v23 = vperm.slane %v3960_v49, %v7903_v0  ;;  %v3966_v38 = vpop.permute.xlu2 %3965 }
0x16b2   : > { %v4124_v35 = vperm.slane %v3966_v38, %v7908_v13 }
0x16b3   : > { %v4110_v14 = vsel %vm3550_vm8, %v4109_v48, %v4108_v63  ;;  %v4121_v1 = vsel %vm3542_vm4, %v4120_v23, %v4119_v21 }
0x16b6   : > { %4046 = vperm.xlu1 %6636, %v3871_v61  }
0x16b8   : > { %v4002_v33 = vpop.permute.xlu0 %4001  ;;  %v3897_v56 = vpop.permute.xlu1 %3896 }
0x16b9   : > { %v4081_v54 = vperm.slane %v3897_v56, %v7916_v42  ;;  %v4026_v39 = vpop.permute.xlu2 %4025  ;;  %v4147_v26 = vperm.slane %v4002_v33, %v7105_v7 }
0x16ba   : > { %v4162_v41 = vperm.slane %v4026_v39, %v7105_v7 }
0x16bb   : > { %v4082_v29 = vsel %vm3554_vm9, %v4081_v54, %v4080_v22 }
0x16bc   : > { %v4084_v51 = vsel %vm3558_vm10, %v4083_v11, %v4082_v29 }
0x16c0   : > { %v3924_v20 = vpop.permute.xlu0 %3923  ;;  %v3963_v2 = vpop.permute.xlu1 %3962 }
0x16c1   : > { %v4098_v50 = vperm.slane %v3924_v20, %v7911_v4  ;;  %v4122_v17 = vperm.slane %v3963_v2, %v7898_v30  ;;  %v3927_v57 = vpop.permute.xlu2 %3926 }
0x16c2   : > { %v4100_v21 = vperm.slane %v3927_v57, %v7928_v3 }
0x16c3   : > { %v4099_v34 = vsel %vm3558_vm10, %v4098_v50, %v8329_v8  ;;  %v4123_v24 = vsel %vm3546_vm5, %v4122_v17, %v4121_v1 }
0x16c4   : > { %v4101_v46 = vsel %vm3562_vm11, %v4100_v21, %v4099_v34  ;;  %v4125_v5 = vsel %vm3550_vm8, %v4124_v35, %v4123_v24 }
0x16c8   : > { %v3987_v62 = vpop.permute.xlu0 %3986  ;;  %v4005_v15 = vpop.permute.xlu1 %4004 }
0x16c9   : > { %v4137_v55 = vperm.slane %v3987_v62, %v7898_v30  ;;  %v4148_v36 = vperm.slane %v4005_v15, %v7891_v6  ;;  %v3990_v43 = vpop.permute.xlu2 %3989 }
0x16ca   : > { %v4139_v39 = vperm.slane %v3990_v43, %v7908_v13 }
0x16cb   : > { %v4138_v45 = vsel %vm3546_vm5, %v4137_v55, %v4136_v27  ;;  %v4149_v28 = vsel %vm3538_vm3, %v4148_v36, %v4147_v26 }
0x16d0   : > { %v4029_v18 = vpop.permute.xlu0 %4028  ;;  %v3945_v8 = vpop.permute.xlu1 %3944 }
0x16d1   : > { %v4163_v63 = vperm.slane %v4029_v18, %v7891_v6  ;;  %v4111_v32 = vperm.slane %v3945_v8, %v7916_v42  ;;  %v8400_v19 = vpop.permute.xlu2 %4049 }
0x16d3   : > { %v8393_v58 = vsel %vm3538_vm3, %v4163_v63, %v4162_v41  ;;  %v4112_v47 = vsel %vm3554_vm9, %v4111_v32, %v4110_v14 }
0x16d8   : > { %v3948_v9 = vpop.permute.xlu0 %3947  ;;  %v4008_v10 = vpop.permute.xlu1 %4007 }
0x16d9   : > { %v4113_v59 = vperm.slane %v3948_v9, %v7911_v4  ;;  %v4150_v25 = vperm.slane %v4008_v10, %v7903_v0  ;;  %v3972_v60 = vpop.permute.xlu2 %3971 }
0x16da   : > { %v4128_v17 = vperm.slane %v3972_v60, %v7911_v4 }
0x16db   : > { %v4114_v53 = vsel %vm3558_vm10, %v4113_v59, %v4112_v47  ;;  %v4151_v37 = vsel %vm3542_vm4, %v4150_v25, %v4149_v28 }
0x16e0   : > { %v4011_v40 = vpop.permute.xlu0 %4010  ;;  %v3903_v22 = vpop.permute.xlu1 %3902 }
0x16e1   : > { %v4085_v44 = vperm.slane %v3903_v22, %v7928_v3  ;;  %v4035_v23 = vpop.permute.xlu2 %4034  ;;  %v4152_v8 = vperm.slane %v4011_v40, %v7898_v30  ;;  %v4177_v40 = vperm.slane %v8400_v19, %v7105_v7 }
0x16e3   : > { %v4086_v27 = vsel %vm3562_vm11, %v4085_v44, %v4084_v51  ;;  %v4140_v51 = vsel %vm3550_vm8, %v4139_v39, %v4138_v45  ;;  %v4153_v43 = vsel %vm3546_vm5, %v4152_v8, %v4151_v37  ;;  %v4167_v37 = vperm.slane %v4035_v23, %v7898_v30 }
0x16e4   : > { %v4192_v16 = vsel %vm3669_vm12, %v4101_v46, %v4086_v27  ;;  %vm8956_vm12 = vcmask 1043459  }
0x16e8   : > { %v4053_v31 = vpop.permute.xlu0 %4052  ;;  %v3969_v12 = vpop.permute.xlu1 %3968 }
0x16e9   : > { %v3996_v33 = vpop.permute.xlu2 %3995  ;;  %v4126_v11 = vperm.slane %v3969_v12, %v7916_v42  ;;  %v4178_v10 = vperm.slane %v4053_v31, %v7891_v6 }
0x16ea   : > { %v4143_v57 = vperm.slane %v3996_v33, %v7911_v4 }
0x16eb   : > { %v4127_v20 = vsel %vm3554_vm9, %v4126_v11, %v4125_v5  ;;  %v4179_v31 = vsel %vm3538_vm3, %v4178_v10, %v4177_v40  ;;  %vm8959_vm3 = vcmask 1046534   ;;  %v6466_v40 = vld [vmem:[%s8965_s16] sm:$0xff] }
0x16ec   : > { %v4129_v62 = vsel %vm3558_vm10, %v4128_v17, %v4127_v20 }
0x16f0   : > { %v3993_v49 = vpop.permute.xlu0 %3992  ;;  %v4032_v48 = vpop.permute.xlu1 %4031 }
0x16f1   : > { %v4141_v29 = vperm.slane %v3993_v49, %v7916_v42  ;;  %v4059_v50 = vpop.permute.xlu2 %4058  ;;  %v4165_v32 = vperm.slane %v4032_v48, %v7903_v0 }
0x16f2   : > { %v4182_v49 = vperm.slane %v4059_v50, %v7898_v30 }
0x16f3   : > { %v4142_v2 = vsel %vm3554_vm9, %v4141_v29, %v4140_v51  ;;  %v4166_v22 = vsel %vm3542_vm4, %v4165_v32, %v8393_v58 }
0x16f4   : > { %v4144_v46 = vsel %vm3558_vm10, %v4143_v57, %v4142_v2  ;;  %v4168_v60 = vsel %vm3546_vm5, %v4167_v37, %v4166_v22  ;;  %v6468_v22 = vld [vmem:[%s8967_s18] sm:$0xff] }
0x16f8   : > { %v4056_v38 = vpop.permute.xlu0 %4055  ;;  %v3951_v52 = vpop.permute.xlu1 %3950 }
0x16f9   : > { %v4115_v14 = vperm.slane %v3951_v52, %v7928_v3  ;;  %v4041_v28 = vpop.permute.xlu2 %4040 }
0x16fa   : > { %v4171_v52 = vperm.slane %v4041_v28, %v7916_v42 }
0x16fb   : > { %v4116_v1 = vsel %vm3562_vm11, %v4115_v14, %v4114_v53  ;;  %v4180_v53 = vperm.slane %v4056_v38, %v7903_v0 }
0x16fc   : > { %v4193_v61 = vsel %vm3671_vm15, %v4116_v1, %v4192_v16  ;;  %vm8957_vm15 = vcmask 1044484  }
0x16fd   : > { %v4181_v0 = vsel %vm3542_vm4, %v4180_v53, %v4179_v31  ;;  %vm8960_vm4 = vcmask 1047559   ;;  %v6471_v53 = vld [vmem:[%s8968_s28 + $0x8] sm:$0xff] }
0x1700   : > { %v4017_v56 = vpop.permute.xlu0 %4016  ;;  %v4014_v54 = vpop.permute.xlu1 %4013 }
0x1701   : > { %v4154_v41 = vperm.slane %v4014_v54, %v7908_v13  ;;  %v4044_v47 = vpop.permute.xlu2 %4043  ;;  %v4156_v9 = vperm.slane %v4017_v56, %v7916_v42 }
0x1702   : > { %v4173_v56 = vperm.slane %v4044_v47, %v7911_v4 }
0x1703   : > { %v4155_v59 = vsel %vm3550_vm8, %v4154_v41, %v4153_v43 }
0x1704   : > { %v4157_v16 = vsel %vm3554_vm9, %v4156_v9, %v4155_v59  ;;  %v6467_v59 = vld [vmem:[%s8965_s16 + $0x8] sm:$0xff] }
0x1705   : > { %4340 = vmatpush.bf16.msrb.mxu1 %v6467_v59 }
0x1708   : > { %v3999_v35 = vpop.permute.xlu0 %3998  ;;  %v3975_v21 = vpop.permute.xlu1 %3974 }
0x1709   : > { %v4145_v34 = vperm.slane %v3999_v35, %v7928_v3  ;;  %v4130_v24 = vperm.slane %v3975_v21, %v7928_v3  ;;  %v4068_v1 = vpop.permute.xlu2 %4067  ;;  %4341 = vmatpush.bf16.msrb.mxu1 %v6466_v40 }
0x170a   : > { %v4188_v11 = vperm.slane %v4068_v1, %v7911_v4 }
0x170b   : > { %v4146_v15 = vsel %vm3562_vm11, %v4145_v34, %v4144_v46  ;;  %v4131_v5 = vsel %vm3562_vm11, %v4130_v24, %v4129_v62 }
0x170c   : > { %v4194_v26 = vsel %vm8956_vm12, %v4131_v5, %v4193_v61  ;;  %v4183_v61 = vsel %vm3546_vm5, %v4182_v49, %v4181_v0  ;;  %vm8961_vm5 = vcmask 523264  }
0x170d   : > { %v4195_v55 = vsel %vm8957_vm15, %v4146_v15, %v4194_v26  ;;  %vm8973_vm15 = vmmov %vm8970_vm6 }
0x1710   : > { %v4038_v36 = vpop.permute.xlu1 %4037  ;;  %v4062_v45 = vpop.permute.xlu0 %4061 }
0x1711   : > { %v4169_v44 = vperm.slane %v4038_v36, %v7908_v13  ;;  %v4184_v19 = vperm.slane %v4062_v45, %v7908_v13  ;;  %v4267_v45 = vld [vmem:[%s8962_s26] sm:$0xf]  ;;  %s8972_s26 = sld [smem:[#allocation13_spill]] }
0x1712   : > { %v4275_v28 = vsel %vm8966_vm2, %v4267_v45, 0 }
0x1713   : > { %v4170_v48 = vsel %vm3550_vm8, %v4169_v44, %v4168_v60  ;;  %v4185_v13 = vsel %vm3550_vm8, %v4184_v19, %v4183_v61  ;;  %4284 = vmatpush.bf16.msrb.mxu3 %v4275_v28  ;;  %v6470_v44 = vld [vmem:[%s8968_s28] sm:$0xff] }
0x1714   : > { %v4172_v33 = vsel %vm3554_vm9, %v4171_v52, %v4170_v48 }
0x1718   : > { %v4020_v18 = vpop.permute.xlu1 %4019  ;;  %v4065_v63 = vpop.permute.xlu0 %4064 }
0x1719   : > { %v4158_v25 = vperm.slane %v4020_v18, %v7911_v4  ;;  %v4186_v23 = vperm.slane %v4065_v63, %v7916_v42  ;;  %v4174_v42 = vsel %vm3558_vm10, %v4173_v56, %v4172_v33 }
0x171b   : > { %v4159_v12 = vsel %vm3558_vm10, %v4158_v25, %v4157_v16  ;;  %v4187_v30 = vsel %vm3554_vm9, %v4186_v23, %v4185_v13  ;;  %vm4240_vm9 = vcmask 7168   ;;  %v6469_v25 = vld [vmem:[%s8967_s18 + $0x8] sm:$0xff]  ;;  %v8971_v16 = vld [vmem:[#allocation27_spill] sm:$0xff] }
0x171c   : > { %v4189_v51 = vsel %vm3558_vm10, %v4188_v11, %v4187_v30  ;;  %4369 = vmatpush.bf16.msrb.mxu2 %v6469_v25  ;;  %v6643_v23 = vld [vmem:[%s8972_s26] ss:$0 sm:$0xff] }
0x1720   : > { %v4023_v27 = vpop.permute.xlu1 %4022  ;;  %v4071_v14 = vpop.permute.xlu0 %4070  ;;  %4370 = vmatpush.bf16.msrb.mxu2 %v6468_v22  ;;  %v8523_v22 = vld [vmem:[%s6987_s20] sm:$0xff] }
0x1721   : > { %v4160_v6 = vperm.slane %v4023_v27, %v7928_v3  ;;  %v4190_v54 = vperm.slane %v4071_v14, %v7928_v3  ;;  %v6474_v27 = vld [vmem:[%s8965_s16 + $0x18] sm:$0xff] }
0x1723   : > { %v4161_v58 = vsel %vm3562_vm11, %v4160_v6, %v4159_v12  ;;  %v4191_v2 = vsel %vm3562_vm11, %v4190_v54, %v4189_v51  ;;  %v6473_v12 = vld [vmem:[%s8965_s16 + $0x10] sm:$0xff] }
0x1724   : > { %v4196_v38 = vsel %vm8958_vm14, %v4161_v58, %v4195_v55  ;;  %v6803_v55 = vmov 0.0   ;;  %vm8974_vm14 = vmmov %vm8970_vm6 }
0x1728   : > { %v4047_v39 = vpop.permute.xlu1 %4046 }
0x1729   : > { %v4175_v29 = vperm.slane %v4047_v39, %v7928_v3 }
0x172b   : > { %v4176_v20 = vsel %vm3562_vm11, %v4175_v29, %v4174_v42  ;;  %vm8964_vm11 = vmmov %vm8961_vm5 }
0x172c   : > { %v4197_v50 = vsel %vm8959_vm3, %v4176_v20, %v4196_v38  ;;  %vm8975_vm3 = vmmov %vm8970_vm6 }
0x172d   : > { %v4198_v17 = vsel %vm8960_vm4, %v4191_v2, %v4197_v50  ;;  %vm8976_vm4 = vmmov %vm8975_vm3 }
0x172e   : > { %v4199_v57 = vsel %vm8961_vm5, %v4198_v17, 2147483647  ;;  %vm8977_vm5 = vcmask 130048  }
0x172f   : > { %v4201_v35 = vshra.s32 %v4199_v57, 16  ;;  %v4200_v3 = vand.u32 65535, %v4199_v57 }
0x1731   : > { %v4203_v4 = vcvt.s32.f32 %v4201_v35  ;;  %v4202_v34 = vcvt.s32.f32 %v4200_v3 }
0x1733   : > { %4204 = vmin.xlane.f32.xlu1 %v4203_v4 }
0x17a6   : > { %v4205_v21 = vpop.xlane.xlu1 %4204 }
0x17a7   : > { %vm4206_vm8 = vcmp.eq.f32.partialorder %v4203_v4, %v4205_v21  ;;  %v4211_v46 = vcvt.f32.s32 %v4205_v21 }
0x17a8   : > { %v4207_v24 = vsel %vm4206_vm8, %v4202_v34, inf  ;;  %vm8978_vm8 = vmmov %vm8977_vm5 }
0x17a9   : > { %4208 = vmin.xlane.f32.xlu2 %v4207_v24  ;;  %v4212_v15 = vshll.u32 %v4211_v46, 16 }
0x181c   : > { %v4209_v62 = vpop.xlane.xlu2 %4208 }
0x181d   : > { %v4210_v5 = vcvt.f32.s32 %v4209_v62 }
0x181f   : > { %v4213_v26 = vadd.s32 %v4212_v15, %v4210_v5 }
0x1821   : > { %vm4214_vm10 = vcmp.eq.s32.totalorder %v7105_v7, %v4213_v26  ;;  %4241 = vst.msk [vmem:[%s1198_s11] sm:$0xff] %vm4240_vm9, %v4213_v26  ;;  %v4268_v7 = vld [vmem:[%s8963_s7] sm:$0x1]  ;;  %vm8979_vm9 = vmmov %vm8966_vm2  ;;  %s8980_s7 = smov 8   ;;  %s8998_s11 = sld [smem:[#allocation17_spill]] }
0x1822   : > { %v6128_v36 = vsel %vm4214_vm10, 1.0, %v6803_v55  ;;  %v4269_v41 = vunpack.c.l.bf16 %v4268_v7 }
0x1823   : > { %6129 = vmatmul.msk.f32.vlgmr.msra.gmra.mxu3 %vm8964_vm11, %v6128_v36 }
0x1824   : > { %v4270_v63 = vperm.slane %v4269_v41, 0  ;;  %4398 = vmatpush.bf16.msra.mxu3 %v6471_v53  ;;  %v8519_v53 = vld [vmem:[%s8839_s6] sm:$0xff]  ;;  %s9023_s6 = smov 120  }
0x1828   : > { %4399 = vmatpush.bf16.msra.mxu3 %v6470_v44 }
0x18a6   : > { %v8473_v18 = vpop.f32.mrf.mxu3 }
0x18a7   : > { %v4266_v8 = vpack.c.bf16 %v8473_v18, %v8473_v18 }
0x18a9   : > { %6130 = vmatmul.msk.bf16.vlgmr.msrb.gmra.mxu3 %vm8969_vm0, %v4266_v8 }
0x18aa   : > { %4544 = vmatpush.bf16.msrb.mxu3 %v6474_v27 }
0x18ae   : > { %4545 = vmatpush.bf16.msrb.mxu3 %v6473_v12 }
0x192c   : > { %v4286_v32 = vpop.f32.mrf.mxu3 }
0x192d   : > { %v8479_v47 = vadd.f32 %v4286_v32, %v4270_v63 }
0x192f   : > { %v4293_v43 = vmul.f32 %v8479_v47, %v8479_v47 }
0x1931   : > { %v4294_v9 = vsel %vm8970_vm6, %v4293_v43, 0.0 }
0x1932   : > { %4295 = vadd.xlane.f32.xlu0 %v4294_v9 }
0x1934   : > { %v4288_v10 = vpop.f32.mrf.mxu3 }
0x19a5   : > { %v4296_v37 = vpop.xlane.xlu0 %4295 }
0x19a6   : > { %v4297_v6 = vmul.f32 %v4296_v37, %v8971_v16 }
0x19a8   : > { %v4298_v31 = vadd.f32 1e-06, %v4297_v6  ;;  %v6476_v6 = vld [vmem:[%s8967_s18 + $0x18] sm:$0xff] }
0x19aa   : > { %6700 = vrsqrt.f32 %v4298_v31  ;;  %vm4305_vm1 = vweird.f32 %v4298_v31 }
0x19b0   : > { %v6701_v0 = vpop.eup %6700 }
0x19b1   : > { %v4300_v19 = vmul.f32 %v6701_v0, %v4298_v31  ;;  %vm4306_vm13 = vweird.f32 %v6701_v0 }
0x19b2   : > { %vm4307_vm12 = vmor %vm4305_vm1, %vm4306_vm13 }
0x19b3   : > { %v4301_v60 = vmul.f32 %v6701_v0, %v4300_v19  ;;  %vm8981_vm1 = vmmov %vm8977_vm5 }
0x19b5   : > { %v4302_v58 = vmul.f32 0.5, %v4301_v60 }
0x19b7   : > { %v4303_v49 = vsub.f32 1.5, %v4302_v58 }
0x19b9   : > { %v4304_v48 = vmul.f32 %v6701_v0, %v4303_v49  ;;  %v6475_v49 = vld [vmem:[%s8967_s18 + $0x10] sm:$0xff] }
0x19bb   : > { %v4308_v38 = vsel %vm4307_vm12, %v6701_v0, %v4304_v48  ;;  %vm8982_vm12 = vcmask 64512  }
0x19bc   : > { %v4309_v52 = vmul.f32 %v4308_v38, %v8479_v47 }
0x19be   : > { %v4313_v14 = vmul.f32 %v6643_v23, %v4309_v52 }
0x19c0   : > { %v8495_v1 = vpack.c.bf16 %v4313_v14, %v4313_v14 }
0x19c2   : > { %6139 = vmatmul.msk.bf16.vlgmr.msrb.gmra.mxu1 %vm8973_vm15, %v8495_v1  ;;  %6148 = vmatmul.msk.bf16.vlgmr.msrb.gmra.mxu2 %vm8974_vm14, %v8495_v1  ;;  %vm8983_vm15 = vmmov %vm8981_vm1 }
0x19c3   : > { %6157 = vmatmul.msk.bf16.vlgmr.msra.gmra.mxu3 %vm8975_vm3, %v8495_v1  ;;  %vm8984_vm14 = vmmov %vm8982_vm12 }
0x19c4   : > { %vm8985_vm3 = vmmov %vm8981_vm1 }
0x19d3   : > { %6172 = vmatmul.msk.bf16.vlgmr.msrb.gmra.mxu3 %vm8976_vm4, %v8495_v1 }
0x1a3f   : > { %v4343_v61 = vpop.f32.mrf.mxu1 }
0x1a40   : > { %v4405_v13 = vmul.f32 %v4343_v61, %v4343_v61 }
0x1a42   : > { %v4406_v33 = vsel %vm8977_vm5, %v4405_v13, 0.0 }
0x1a43   : > { %4407 = vadd.xlane.f32.xlu2 %v4406_v33 }
0x1a45   : > { %v4372_v56 = vpop.f32.mrf.mxu2 }
0x1a46   : > { %v4421_v30 = vmul.f32 %v4372_v56, %v4372_v56  ;;  %v4401_v54 = vpop.f32.mrf.mxu3 }
0x1a47   : > { %v4498_v39 = vpack.c.bf16 %v4401_v54, %v4401_v54  ;;  %v4345_v11 = vpop.f32.mrf.mxu1 }
0x1a48   : > { %v4422_v29 = vsel %vm8978_vm8, %v4421_v30, 0.0 }
0x1a49   : > { %v4503_v42 = vsel %vm8979_vm9, %v4498_v39, 0  ;;  %4423 = vadd.xlane.f32.xlu1 %v4422_v29 }
0x1a4a   : > { %4512 = vmatpush.bf16.msra.mxu2 %v4503_v42 }
0x1a4d   : > { %v4374_v51 = vpop.f32.mrf.mxu2 }
0x1a4e   : > { %v4403_v20 = vpop.f32.mrf.mxu3 }
0x1a56   : > { %v8508_v2 = vpop.f32.mrf.mxu3 }
0x1a57   : > { %v4611_v43 = vmul.f32 %v8508_v2, %v8508_v2 }
0x1a59   : > { %v4612_v9 = vsel %vm8981_vm1, %v4611_v43, 0.0 }
0x1a5e   : > { %v4549_v50 = vpop.f32.mrf.mxu3 }
0x1ab6   : > { %v4408_v17 = vpop.xlane.xlu2 %4407 }
0x1ab7   : > { %v4409_v57 = vadd.f32 1e-06, %v4408_v17 }
0x1ab9   : > { %6702 = vrsqrt.f32 %v4409_v57  ;;  %vm4416_vm11 = vweird.f32 %v4409_v57 }
0x1abc   : > { %v4424_v35 = vpop.xlane.xlu1 %4423 }
0x1abd   : > { %v4425_v4 = vadd.f32 1e-06, %v4424_v35 }
0x1abf   : > { %v6703_v3 = vpop.eup %6702  ;;  %6704 = vrsqrt.f32 %v4425_v4  ;;  %vm4432_vm6 = vweird.f32 %v4425_v4 }
0x1ac0   : > { %v4411_v21 = vmul.f32 %v6703_v3, %v4409_v57  ;;  %vm4417_vm10 = vweird.f32 %v6703_v3 }
0x1ac1   : > { %vm4418_vm2 = vmor %vm4416_vm11, %vm4417_vm10 }
0x1ac2   : > { %v4412_v34 = vmul.f32 %v6703_v3, %v4411_v21  ;;  %vm8986_vm10 = vmmov %vm8981_vm1 }
0x1ac3   : > { %vm8991_vm1 = vmmov %vm8982_vm12 }
0x1ac4   : > { %v4413_v24 = vmul.f32 0.5, %v4412_v34 }
0x1ac5   : > { %v6705_v46 = vpop.eup %6704 }
0x1ac6   : > { %v4414_v62 = vsub.f32 1.5, %v4413_v24  ;;  %v4427_v15 = vmul.f32 %v6705_v46, %v4425_v4  ;;  %vm4433_vm0 = vweird.f32 %v6705_v46 }
0x1ac7   : > { %vm4434_vm13 = vmor %vm4432_vm6, %vm4433_vm0 }
0x1ac8   : > { %v4415_v5 = vmul.f32 %v6703_v3, %v4414_v62  ;;  %v4428_v26 = vmul.f32 %v6705_v46, %v4427_v15 }
0x1aca   : > { %v4419_v55 = vsel %vm4418_vm2, %v6703_v3, %v4415_v5  ;;  %v4429_v36 = vmul.f32 0.5, %v4428_v26  ;;  %v8987_v5 = vld [vmem:[#allocation28_spill] sm:$0xff] }
0x1acb   : > { %v4420_v45 = vmul.f32 %v4419_v55, %v4343_v61  ;;  %vm4290_vm6 = vcmp.le.s32.totalorder %v8987_v5, 1 }
0x1acc   : > { %v4430_v28 = vsub.f32 1.5, %v4429_v36 }
0x1acd   : > { %v4437_v8 = vsub.f32 0.0, %v4420_v45  ;;  %v4447_v60 = vmul.f32 %v8519_v53, %v4420_v45 }
0x1ace   : > { %v4431_v7 = vmul.f32 %v6705_v46, %v4430_v28 }
0x1acf   : > { %4439 = vrot.lane.b32.xlu2 %v4437_v8, %s8808_s1 }
0x1ad0   : > { %v4435_v41 = vsel %vm4434_vm13, %v6705_v46, %v4431_v7  ;;  %vm8544_vm13 = vmand %vm7113_vm7, %vm4290_vm6 }
0x1ad1   : > { %v4436_v63 = vmul.f32 %v4435_v41, %v4372_v56  ;;  %vm8993_vm7 = vmmov %vm8985_vm3 }
0x1ad3   : > { %4456 = vrot.lane.b32.xlu1 %v4436_v63, %s8980_s7  ;;  %v4450_v32 = vsub.f32 0.0, %v4436_v63  ;;  %v4460_v40 = vmul.f32 %v8519_v53, %v4436_v63 }
0x1ad5   : > { %4452 = vrot.lane.b32.xlu0 %v4450_v32, %s8808_s1 }
0x1add   : > { %4443 = vrot.lane.b32.xlu0 %v4420_v45, %s8980_s7 }
0x1b07   : > { %4613 = vadd.xlane.f32.xlu0 %v4612_v9 }
0x1b29   : > { %v4440_v31 = vpop.permute.xlu2 %4439 }
0x1b45   : > { %v4457_v10 = vpop.permute.xlu1 %4456 }
0x1b47   : > { %v4453_v59 = vpop.permute.xlu0 %4452 }
0x1b48   : > { %v4459_v25 = vsel %vm8982_vm12, %v4453_v59, %v4457_v10  ;;  %vm8992_vm12 = vmmov %vm8991_vm1 }
0x1b49   : > { %v4461_v44 = vmul.f32 %v8523_v22, %v4459_v25 }
0x1b4b   : > { %v4462_v27 = vadd.f32 %v4461_v44, %v4460_v40 }
0x1b4d   : > { %v4464_v37 = vpack.c.bf16 %v4462_v27, %v4462_v27 }
0x1b4f   : > { %v4444_v12 = vpop.permute.xlu0 %4443  ;;  %v4469_v0 = vsel %vm8983_vm15, %v4464_v37, 0  ;;  %vm8994_vm15 = vmmov %vm8991_vm1 }
0x1b50   : > { %v4446_v19 = vsel %vm8984_vm14, %v4440_v31, %v4444_v12  ;;  %4478 = vmatpush.bf16.xpose.msra.mxu1 %v4469_v0  ;;  %vm8995_vm14 = vmmov %vm8985_vm3 }
0x1b51   : > { %v4448_v58 = vmul.f32 %v8523_v22, %v4446_v19 }
0x1b53   : > { %v4449_v48 = vadd.f32 %v4448_v58, %v4447_v60 }
0x1b55   : > { %v4463_v23 = vpack.c.bf16 %v4449_v48, %v4449_v48 }
0x1b57   : > { %6158 = vmatmul.msk.bf16.vlgmr.msra.gmra.mxu1 %vm8985_vm3, %v4463_v23  ;;  %vm8996_vm3 = vmmov %vm8991_vm1 }
0x1b58   : > { %4574 = vmatpush.bf16.msrb.mxu1 %v6476_v6 }
0x1b5c   : > { %4575 = vmatpush.bf16.msrb.mxu1 %v6475_v49 }
0x1b67   : > { %6185 = vmatmul.msk.bf16.vlgmr.msrb.gmra.mxu1 %vm8976_vm4, %v8495_v1  ;;  %vm8997_vm4 = vmmov %vm8991_vm1 }
0x1b7a   : > { %v4614_v38 = vpop.xlane.xlu0 %4613 }
0x1b7b   : > { %v4615_v52 = vadd.f32 1e-06, %v4614_v38 }
0x1b7d   : > { %6706 = vrsqrt.f32 %v4615_v52  ;;  %vm4622_vm8 = vweird.f32 %v4615_v52 }
0x1b83   : > { %v6707_v14 = vpop.eup %6706 }
0x1b84   : > { %v4617_v61 = vmul.f32 %v6707_v14, %v4615_v52  ;;  %vm4623_vm5 = vweird.f32 %v6707_v14  ;;  %v6478_v52 = vld [vmem:[%s8968_s28 + $0x18] sm:$0xff] }
0x1b85   : > { %vm4624_vm9 = vmor %vm4622_vm8, %vm4623_vm5  ;;  %4604 = vmatpush.bf16.msrb.mxu2 %v6478_v52  ;;  %vm9000_vm8 = vcmask 261120  }
0x1b86   : > { %v4618_v13 = vmul.f32 %v6707_v14, %v4617_v61  ;;  %vm8999_vm5 = vmmov %vm8991_vm1 }
0x1b87   : > { %vm9008_vm6 = vmmov %vm9000_vm8 }
0x1b88   : > { %v4619_v33 = vmul.f32 0.5, %v4618_v13 }
0x1b8a   : > { %v4620_v56 = vsub.f32 1.5, %v4619_v33 }
0x1b8c   : > { %v4621_v30 = vmul.f32 %v6707_v14, %v4620_v56 }
0x1b8e   : > { %v4625_v54 = vsel %vm4624_vm9, %v6707_v14, %v4621_v30  ;;  %v6477_v14 = vld [vmem:[%s8968_s28 + $0x10] sm:$0xff]  ;;  %vm9001_vm9 = vmmov %vm8991_vm1 }
0x1b8f   : > { %v4626_v39 = vmul.f32 %v4625_v54, %v8508_v2  ;;  %4605 = vmatpush.bf16.msrb.mxu2 %v6477_v14 }
0x1b91   : > { %v4643_v11 = vsub.f32 0.0, %v4626_v39  ;;  %v4653_v44 = vmul.f32 %v8519_v53, %v4626_v39 }
0x1b93   : > { %4645 = vrot.lane.b32.xlu2 %v4643_v11, %s8808_s1 }
0x1bd4   : > { %v4480_v29 = vpop.f32.mrf.mxu1 }
0x1bd5   : > { %v4484_v26 = vmul.f32 0.25, %v4480_v29 }
0x1bd7   : > { %v4485_v45 = vsel %vm8544_vm13, %v4484_v26, -1e+30 }
0x1bd8   : > { %v4486_v28 = vsel %vm8991_vm1, %v4485_v45, -inf }
0x1bdc   : > { %v4482_v42 = vpop.f32.mrf.mxu1 }
0x1bdd   : > { %v6472_v42 = vld [vmem:[%s8998_s11] sm:$0xff] }
0x1be4   : > { %v4577_v51 = vpop.f32.mrf.mxu1 }
0x1be5   : > { %v4627_v20 = vmul.f32 %v4577_v51, %v4577_v51 }
0x1be7   : > { %v4628_v50 = vsel %vm8986_vm10, %v4627_v20, 0.0  ;;  %vm9002_vm10 = vmmov %vm8993_vm7 }
0x1be8   : > { %4629 = vadd.xlane.f32.xlu1 %v4628_v50 }
0x1bec   : > { %v4579_v17 = vpop.f32.mrf.mxu1 }
0x1bed   : > { %v4646_v8 = vpop.permute.xlu2 %4645 }
0x1c5b   : > { %v4630_v57 = vpop.xlane.xlu1 %4629 }
0x1c5c   : > { %v4631_v35 = vadd.f32 1e-06, %v4630_v57 }
0x1c5e   : > { %6708 = vrsqrt.f32 %v4631_v35  ;;  %vm4638_vm2 = vweird.f32 %v4631_v35 }
0x1c64   : > { %v6709_v4 = vpop.eup %6708 }
0x1c65   : > { %v4633_v3 = vmul.f32 %v6709_v4, %v4631_v35  ;;  %vm4639_vm11 = vweird.f32 %v6709_v4 }
0x1c66   : > { %vm4640_vm0 = vmor %vm4638_vm2, %vm4639_vm11  ;;  %vm9003_vm11 = vcmask 1043456  }
0x1c67   : > { %v4634_v21 = vmul.f32 %v6709_v4, %v4633_v3  ;;  %vm9004_vm2 = vmmov %vm8991_vm1 }
0x1c69   : > { %v4635_v34 = vmul.f32 0.5, %v4634_v21 }
0x1c6b   : > { %v4636_v24 = vsub.f32 1.5, %v4635_v34 }
0x1c6d   : > { %v4637_v2 = vmul.f32 %v6709_v4, %v4636_v24  ;;  %v6479_v24 = vld [vmem:[%s8998_s11 + $0x8] sm:$0xff] }
0x1c6e   : > { %4744 = vmatpush.bf16.msrb.mxu0 %v6479_v24 }
0x1c6f   : > { %v4641_v46 = vsel %vm4640_vm0, %v6709_v4, %v4637_v2  ;;  %vm9007_vm0 = vmmov %vm8993_vm7 }
0x1c70   : > { %v4642_v62 = vmul.f32 %v4641_v46, %v4577_v51 }
0x1c72   : > { %4662 = vrot.lane.b32.xlu2 %v4642_v62, %s8980_s7  ;;  %v4656_v15 = vsub.f32 0.0, %v4642_v62  ;;  %v4666_v32 = vmul.f32 %v8519_v53, %v4642_v62 }
0x1c7a   : > { %4658 = vrot.lane.b32.xlu2 %v4656_v15, %s8808_s1  ;;  %s9005_s1 = sld [smem:[#allocation19_spill]] }
0x1c82   : > { %4649 = vrot.lane.b32.xlu2 %v4626_v39, %s8980_s7 }
0x1cab   : > { %4487 = vmax.xlane.f32.xlu2 %v4486_v28 }
0x1ccc   : > { %v4663_v7 = vpop.permute.xlu2 %4662 }
0x1cd4   : > { %v4659_v41 = vpop.permute.xlu2 %4658 }
0x1cd5   : > { %v4665_v63 = vsel %vm8992_vm12, %v4659_v41, %v4663_v7  ;;  %v6481_v41 = vld [vmem:[%s9005_s1 + $0x8] sm:$0xff] }
0x1cd6   : > { %v4667_v43 = vmul.f32 %v8523_v22, %v4665_v63  ;;  %v6483_v63 = vld [vmem:[%s9006_s2 + $0x8] sm:$0xff] }
0x1cd8   : > { %v4668_v9 = vadd.f32 %v4667_v43, %v4666_v32  ;;  %v6480_v32 = vld [vmem:[%s9005_s1] sm:$0xff] }
0x1cd9   : > { %v6482_v43 = vld [vmem:[%s9006_s2] sm:$0xff] }
0x1cda   : > { %v4670_v10 = vpack.c.bf16 %v4668_v9, %v4668_v9 }
0x1cdc   : > { %v4650_v59 = vpop.permute.xlu2 %4649  ;;  %v4675_v25 = vsel %vm8993_vm7, %v4670_v10, 0 }
0x1cdd   : > { %v4652_v40 = vsel %vm8994_vm15, %v4646_v8, %v4650_v59  ;;  %4684 = vmatpush.bf16.xpose.msra.mxu3 %v4675_v25  ;;  %vm9011_vm15 = vmmov %vm9008_vm6 }
0x1cde   : > { %v4654_v27 = vmul.f32 %v8523_v22, %v4652_v40 }
0x1ce0   : > { %v4655_v37 = vadd.f32 %v4654_v27, %v4653_v44 }
0x1ce2   : > { %v4669_v6 = vpack.c.bf16 %v4655_v37, %v4655_v37 }
0x1ce4   : > { %6199 = vmatmul.msk.bf16.vlgmr.msra.gmra.mxu3 %vm8995_vm14, %v4669_v6  ;;  %v6644_v6 = vld [vmem:[%s9009_s3] ss:$0 sm:$0xff]  ;;  %vm9012_vm14 = vmmov %vm9008_vm6 }
0x1ce5   : > { %4821 = vmatpush.bf16.msrb.mxu3 %v6481_v41 }
0x1ce9   : > { %4822 = vmatpush.bf16.msrb.mxu3 %v6480_v32 }
0x1d1e   : > { %v4488_v31 = vpop.xlane.xlu2 %4487 }
0x1d1f   : > { %v4489_v12 = vsub.f32 %v4485_v45, %v4488_v31 }
0x1d21   : > { %v4490_v0 = vmul.f32 1.442695, %v4489_v12 }
0x1d23   : > { %6710 = vpow2.f32 %v4490_v0 }
0x1d29   : > { %v6711_v19 = vpop.eup %6710 }
0x1d2a   : > { %v4492_v60 = vsel %vm8996_vm3, %v6711_v19, 0.0  ;;  %vm9013_vm3 = vcmask 523264  }
0x1d2b   : > { %4493 = vadd.xlane.f32.xlu1 %v4492_v60  ;;  %v6487_v60 = vld [vmem:[%s9010_s5 + $0x18] sm:$0xff] }
0x1d2c   : > { %4904 = vmatpush.bf16.msra.mxu0 %v6487_v60 }
0x1d67   : > { %v4686_v58 = vpop.f32.mrf.mxu3 }
0x1d68   : > { %v4690_v49 = vmul.f32 0.25, %v4686_v58 }
0x1d6a   : > { %v4691_v48 = vsel %vm8544_vm13, %v4690_v49, -1e+30  ;;  %v6486_v49 = vld [vmem:[%s9010_s5 + $0x10] sm:$0xff] }
0x1d6b   : > { %v4692_v23 = vsel %vm8997_vm4, %v4691_v48, -inf  ;;  %4905 = vmatpush.bf16.msra.mxu0 %v6486_v49  ;;  %vm9014_vm4 = vmmov %vm9008_vm6 }
0x1d6c   : > { %4693 = vmax.xlane.f32.xlu0 %v4692_v23 }
0x1d6f   : > { %v4688_v38 = vpop.f32.mrf.mxu3 }
0x1d9e   : > { %v4494_v61 = vpop.xlane.xlu1 %4493 }
0x1d9f   : > { %6712 = vrcp.f32 %v4494_v61  ;;  %v6484_v61 = vld [vmem:[%s9010_s5] sm:$0xff] }
0x1da5   : > { %v6713_v13 = vpop.eup %6712 }
0x1da6   : > { %v4496_v33 = vmul.f32 %v6713_v13, %v6711_v19 }
0x1da8   : > { %v4497_v56 = vpack.c.bf16 %v4496_v33, %v4496_v33 }
0x1daa   : > { %6159 = vmatmul.msk.bf16.vlgmr.msra.gmra.mxu2 %vm8999_vm5, %v4497_v56 }
0x1dab   : > { %4766 = vmatpush.bf16.msra.mxu2 %v6472_v42 }
0x1dba   : > { %6198 = vmatmul.msk.bf16.vlgmr.msrb.gmra.mxu2 %vm9000_vm8, %v8495_v1 }
0x1ddf   : > { %v4694_v30 = vpop.xlane.xlu0 %4693 }
0x1de0   : > { %v4695_v54 = vsub.f32 %v4691_v48, %v4694_v30  ;;  %v6485_v48 = vld [vmem:[%s9010_s5 + $0x8] sm:$0xff] }
0x1de1   : > { %4906 = vmatpush.bf16.msra.mxu0 %v6485_v48 }
0x1de2   : > { %v4696_v39 = vmul.f32 1.442695, %v4695_v54 }
0x1de4   : > { %6714 = vpow2.f32 %v4696_v39 }
0x1de5   : > { %4907 = vmatpush.bf16.msra.mxu0 %v6484_v61 }
0x1dea   : > { %v6715_v11 = vpop.eup %6714 }
0x1deb   : > { %v4698_v29 = vsel %vm9001_vm9, %v6715_v11, 0.0 }
0x1dec   : > { %4699 = vadd.xlane.f32.xlu1 %v4698_v29 }
0x1e2d   : > { %v4514_v51 = vpop.f32.mrf.mxu2 }
0x1e2e   : > { %v4518_v20 = vpack.c.bf16 %v4514_v51, %v4514_v51 }
0x1e30   : > { %6212 = vmatmul.msk.bf16.vlgmr.msra.gmra.mxu2 %vm9002_vm10, %v4518_v20  ;;  %vm9015_vm10 = vmmov %vm9014_vm4 }
0x1e35   : > { %v4516_v50 = vpop.f32.mrf.mxu2 }
0x1e3d   : > { %v4607_v17 = vpop.f32.mrf.mxu2 }
0x1e3e   : > { %v4704_v57 = vpack.c.bf16 %v4607_v17, %v4607_v17  ;;  %v6489_v17 = vld [vmem:[%s8965_s16 + $0x28] sm:$0xff] }
0x1e3f   : > { %4964 = vmatpush.bf16.msrb.mxu2 %v6489_v17 }
0x1e40   : > { %v4709_v1 = vsel %vm9003_vm11, %v4704_v57, 0  ;;  %v6491_v57 = vld [vmem:[%s8967_s18 + $0x28] sm:$0xff]  ;;  %vm9016_vm11 = vmmov %vm9014_vm4 }
0x1e41   : > { %4718 = vmatpush.bf16.msra.mxu1 %v4709_v1  ;;  %v6493_v1 = vld [vmem:[%s8968_s28 + $0x28] sm:$0xff]  ;;  %4994 = vmatpush.bf16.msra.mxu3 %v6491_v57 }
0x1e45   : > { %v4609_v35 = vpop.f32.mrf.mxu2  ;;  %4850 = vmatpush.bf16.msrb.mxu1 %v6483_v63 }
0x1e46   : > { %v6488_v35 = vld [vmem:[%s8965_s16 + $0x20] sm:$0xff] }
0x1e47   : > { %4965 = vmatpush.bf16.msrb.mxu2 %v6488_v35 }
0x1e49   : > { %4851 = vmatpush.bf16.msrb.mxu1 %v6482_v43 }
0x1e5f   : > { %v4700_v4 = vpop.xlane.xlu1 %4699 }
0x1e60   : > { %6716 = vrcp.f32 %v4700_v4  ;;  %v6490_v4 = vld [vmem:[%s8967_s18 + $0x20] sm:$0xff] }
0x1e61   : > { %4995 = vmatpush.bf16.msra.mxu3 %v6490_v4 }
0x1e66   : > { %v6717_v3 = vpop.eup %6716 }
0x1e67   : > { %v4702_v21 = vmul.f32 %v6717_v3, %v6715_v11  ;;  %v6492_v3 = vld [vmem:[%s8968_s28 + $0x20] sm:$0xff] }
0x1e69   : > { %v4703_v34 = vpack.c.bf16 %v4702_v21, %v4702_v21  ;;  %v6496_v21 = vld [vmem:[%s8965_s16 + $0x38] sm:$0xff] }
0x1e6b   : > { %6200 = vmatmul.msk.bf16.vlgmr.msra.gmra.mxu1 %vm9004_vm2, %v4703_v34  ;;  %v6498_v34 = vld [vmem:[%s8967_s18 + $0x38] sm:$0xff]  ;;  %vm9017_vm2 = vmmov %vm9014_vm4 }
0x1e6c   : > { %5024 = vmatpush.bf16.msra.mxu1 %v6493_v1 }
0x1e70   : > { %5025 = vmatpush.bf16.msra.mxu1 %v6492_v3 }
0x1eb3   : > { %v4768_v2 = vpop.f32.mrf.mxu2 }
0x1ebb   : > { %v4770_v46 = vpop.f32.mrf.mxu2 }
0x1ebc   : > { %v6495_v46 = vld [vmem:[%s8965_s16 + $0x30] sm:$0xff] }
0x1ee8   : > { %v4720_v62 = vpop.f32.mrf.mxu1 }
0x1ee9   : > { %v4724_v15 = vpack.c.bf16 %v4720_v62, %v4720_v62 }
0x1eeb   : > { %6207 = vmatmul.msk.bf16.vlgmr.msrb.gmra.mxu0 %vm9007_vm0, %v4724_v15  ;;  %v6497_v15 = vld [vmem:[%s8967_s18 + $0x30] sm:$0xff]  ;;  %vm9018_vm0 = vmmov %vm9017_vm2 }
0x1ef0   : > { %v4722_v5 = vpop.f32.mrf.mxu1 }
0x1f68   : > { %v4746_v26 = vpop.f32.mrf.mxu0 }
0x1f69   : > { %v4769_v55 = vadd.f32 %v4768_v2, %v4746_v26 }
0x1f6b   : > { %v4772_v45 = vadd.f32 %v4769_v55, %v8479_v47 }
0x1f6d   : > { %v4774_v28 = vmul.f32 %v4772_v45, %v4772_v45 }
0x1f6f   : > { %v4775_v8 = vsel %vm9008_vm6, %v4774_v28, 0.0  ;;  %vm9019_vm6 = vmmov %vm9018_vm0 }
0x1f70   : > { %4776 = vadd.xlane.f32.xlu0 %v4775_v8  ;;  %v4748_v7 = vpop.f32.mrf.mxu0 }
0x1f71   : > { %v6645_v7 = vld [vmem:[%s8972_s26 + $0x1] ss:$0 sm:$0xff] }
0x1fe3   : > { %v4777_v9 = vpop.xlane.xlu0 %4776 }
0x1fe4   : > { %v4778_v10 = vmul.f32 %v4777_v9, %v8971_v16 }
0x1fe6   : > { %v4779_v59 = vadd.f32 1e-06, %v4778_v10 }
0x1fe8   : > { %6718 = vrsqrt.f32 %v4779_v59  ;;  %vm4786_vm12 = vweird.f32 %v4779_v59 }
0x1fee   : > { %v6719_v47 = vpop.eup %6718 }
0x1fef   : > { %v4781_v25 = vmul.f32 %v6719_v47, %v4779_v59  ;;  %vm4787_vm1 = vweird.f32 %v6719_v47 }
0x1ff0   : > { %vm4788_vm7 = vmor %vm4786_vm12, %vm4787_vm1  ;;  %vm9020_vm1 = vcmask 1043456   ;;  %vm9021_vm12 = vcmask 130048  }
0x1ff1   : > { %v4782_v40 = vmul.f32 %v6719_v47, %v4781_v25 }
0x1ff3   : > { %v4783_v44 = vmul.f32 0.5, %v4782_v40 }
0x1ff5   : > { %v4784_v27 = vsub.f32 1.5, %v4783_v44 }
0x1ff7   : > { %v4785_v37 = vmul.f32 %v6719_v47, %v4784_v27 }
0x1ff9   : > { %v4789_v31 = vsel %vm4788_vm7, %v6719_v47, %v4785_v37  ;;  %vm9022_vm7 = vmmov %vm9021_vm12 }
0x1ffa   : > { %v4790_v12 = vmul.f32 %v4789_v31, %v4772_v45 }
0x1ffc   : > { %v4794_v0 = vmul.f32 %v6644_v6, %v4790_v12 }
0x1ffe   : > { %v4795_v19 = vpack.c.bf16 %v4794_v0, %v4794_v0 }
0x2000   : > { %6221 = vmatmul.msk.bf16.vlgmr.msrb.gmra.mxu3 %vm9011_vm15, %v4795_v19  ;;  %6230 = vmatmul.msk.bf16.vlgmr.msrb.gmra.mxu1 %vm9012_vm14, %v4795_v19 }
0x2001   : > { %5171 = vmatpush.bf16.msrb.mxu3 %v6496_v21  ;;  %5201 = vmatpush.bf16.msrb.mxu1 %v6498_v34 }
0x2005   : > { %5172 = vmatpush.bf16.msrb.mxu3 %v6495_v46  ;;  %5202 = vmatpush.bf16.msrb.mxu1 %v6497_v15 }
0x207d   : > { %v4853_v58 = vpop.f32.mrf.mxu1 }
0x2083   : > { %v4824_v23 = vpop.f32.mrf.mxu3 }
0x2084   : > { %v4857_v38 = vsub.f32 0.0, %v4824_v23 }
0x2085   : > { %v4855_v52 = vpop.f32.mrf.mxu1 }
0x2086   : > { %v4858_v14 = vmul.f32 1.442695, %v4857_v38 }
0x2088   : > { %6720 = vpow2.f32 %v4858_v14 }
0x208b   : > { %v4826_v13 = vpop.f32.mrf.mxu3 }
0x208e   : > { %v6721_v33 = vpop.eup %6720 }
0x208f   : > { %v4860_v56 = vadd.f32 1.0, %v6721_v33 }
0x2091   : > { %6722 = vrcp.f32 %v4860_v56 }
0x2097   : > { %v6723_v30 = vpop.eup %6722 }
0x2098   : > { %v4862_v54 = vmul.f32 %v6723_v30, %v4824_v23 }
0x209a   : > { %v4863_v39 = vmul.f32 %v4862_v54, %v4853_v58 }
0x209c   : > { %v4864_v11 = vpack.c.bf16 %v4863_v39, %v4863_v39 }
0x209e   : > { %6247 = vmatmul.msk.bf16.vlgmr.msra.gmra.mxu0 %vm9013_vm3, %v4864_v11 }
0x211b   : > { %v4909_v29 = vpop.f32.mrf.mxu0 }
0x211c   : > { %v8590_v42 = vadd.f32 %v4909_v29, %v4772_v45 }
0x211e   : > { %v4916_v51 = vmul.f32 %v8590_v42, %v8590_v42 }
0x2120   : > { %v4917_v20 = vsel %vm9014_vm4, %v4916_v51, 0.0 }
0x2121   : > { %4918 = vadd.xlane.f32.xlu1 %v4917_v20 }
0x2123   : > { %v4911_v50 = vpop.f32.mrf.mxu0 }
0x2194   : > { %v4919_v24 = vpop.xlane.xlu1 %4918 }
0x2195   : > { %v4920_v2 = vmul.f32 %v4919_v24, %v8971_v16 }
0x2197   : > { %v4921_v62 = vadd.f32 1e-06, %v4920_v2 }
0x2199   : > { %6724 = vrsqrt.f32 %v4921_v62  ;;  %vm4928_vm8 = vweird.f32 %v4921_v62 }
0x219f   : > { %v6725_v5 = vpop.eup %6724 }
0x21a0   : > { %v4923_v26 = vmul.f32 %v6725_v5, %v4921_v62  ;;  %vm4929_vm5 = vweird.f32 %v6725_v5 }
0x21a1   : > { %vm4930_vm9 = vmor %vm4928_vm8, %vm4929_vm5 }
0x21a2   : > { %v4924_v55 = vmul.f32 %v6725_v5, %v4923_v26 }
0x21a4   : > { %v4925_v45 = vmul.f32 0.5, %v4924_v55  ;;  %v6500_v55 = vld [vmem:[%s8968_s28 + $0x38] sm:$0xff] }
0x21a6   : > { %v4926_v28 = vsub.f32 1.5, %v4925_v45 }
0x21a8   : > { %v4927_v8 = vmul.f32 %v6725_v5, %v4926_v28 }
0x21aa   : > { %v4931_v41 = vsel %vm4930_vm9, %v6725_v5, %v4927_v8  ;;  %vm9024_vm9 = vmmov %vm9022_vm7 }
0x21ab   : > { %v4932_v63 = vmul.f32 %v4931_v41, %v8590_v42 }
0x21ad   : > { %v4936_v32 = vmul.f32 %v6645_v7, %v4932_v63 }
0x21af   : > { %v8608_v43 = vpack.c.bf16 %v4936_v32, %v4936_v32  ;;  %v6499_v32 = vld [vmem:[%s8968_s28 + $0x30] sm:$0xff] }
0x21b1   : > { %6261 = vmatmul.msk.bf16.vlgmr.msrb.gmra.mxu2 %vm9015_vm10, %v8608_v43  ;;  %6274 = vmatmul.msk.bf16.vlgmr.msra.gmra.mxu3 %vm9016_vm11, %v8608_v43  ;;  %vm9025_vm10 = vmmov %vm9022_vm7  ;;  %vm9026_vm11 = vcmask 64512  }
0x21b2   : > { %6287 = vmatmul.msk.bf16.vlgmr.msra.gmra.mxu1 %vm9017_vm2, %v8608_v43  ;;  %vm9027_vm2 = vmmov %vm9022_vm7 }
0x21c1   : > { %6304 = vmatmul.msk.bf16.vlgmr.msrb.gmra.mxu3 %vm9018_vm0, %v8608_v43  ;;  %vm9028_vm0 = vmmov %vm9026_vm11 }
0x21c2   : > { %6317 = vmatmul.msk.bf16.vlgmr.msrb.gmra.mxu1 %vm9019_vm6, %v8608_v43  ;;  %vm9029_vm6 = vmmov %vm9027_vm2 }
0x222f   : > { %v5027_v9 = vpop.f32.mrf.mxu1 }
0x2230   : > { %v5124_v10 = vpack.c.bf16 %v5027_v9, %v5027_v9 }
0x2232   : > { %v5129_v59 = vsel %vm9020_vm1, %v5124_v10, 0  ;;  %vm9030_vm1 = vcmask 261120  }
0x2233   : > { %5138 = vmatpush.bf16.msra.mxu2 %v5129_v59 }
0x2234   : > { %v4967_v47 = vpop.f32.mrf.mxu2  ;;  %v4997_v25 = vpop.f32.mrf.mxu3 }
0x2235   : > { %v5031_v40 = vmul.f32 %v4967_v47, %v4967_v47  ;;  %v5047_v44 = vmul.f32 %v4997_v25, %v4997_v25 }
0x2237   : > { %v5029_v27 = vpop.f32.mrf.mxu1  ;;  %v5048_v37 = vsel %vm9021_vm12, %v5047_v44, 0.0  ;;  %v5032_v6 = vsel %vm9022_vm7, %v5031_v40, 0.0 }
0x2238   : > { %5049 = vadd.xlane.f32.xlu0 %v5048_v37  ;;  %5033 = vadd.xlane.f32.xlu1 %v5032_v6 }
0x223c   : > { %v4969_v31 = vpop.f32.mrf.mxu2  ;;  %v4999_v12 = vpop.f32.mrf.mxu3 }
0x223f   : > { %v8623_v0 = vpop.f32.mrf.mxu1 }
0x2240   : > { %v5254_v4 = vmul.f32 %v8623_v0, %v8623_v0 }
0x2242   : > { %v5255_v21 = vsel %vm9024_vm9, %v5254_v4, 0.0  ;;  %vm9033_vm9 = vmmov %vm9028_vm0 }
0x2244   : > { %v8625_v19 = vpop.f32.mrf.mxu3 }
0x2245   : > { %v5238_v3 = vmul.f32 %v8625_v19, %v8625_v19 }
0x2247   : > { %v5206_v60 = vpop.f32.mrf.mxu1  ;;  %v5239_v34 = vsel %vm9025_vm10, %v5238_v3, 0.0  ;;  %vm9034_vm10 = vmmov %vm9027_vm2 }
0x224c   : > { %v5176_v58 = vpop.f32.mrf.mxu3 }
0x22ab   : > { %v5050_v49 = vpop.xlane.xlu0 %5049  ;;  %v5034_v48 = vpop.xlane.xlu1 %5033 }
0x22ac   : > { %v5051_v23 = vadd.f32 1e-06, %v5050_v49  ;;  %v5035_v38 = vadd.f32 1e-06, %v5034_v48 }
0x22ae   : > { %6726 = vrsqrt.f32 %v5051_v23  ;;  %vm5058_vm3 = vweird.f32 %v5051_v23  ;;  %vm5042_vm5 = vweird.f32 %v5035_v38 }
0x22af   : > { %6728 = vrsqrt.f32 %v5035_v38 }
0x22b4   : > { %v6727_v52 = vpop.eup %6726 }
0x22b5   : > { %v6729_v14 = vpop.eup %6728  ;;  %v5053_v61 = vmul.f32 %v6727_v52, %v5051_v23  ;;  %vm5059_vm15 = vweird.f32 %v6727_v52 }
0x22b6   : > { %v5037_v13 = vmul.f32 %v6729_v14, %v5035_v38  ;;  %vm5043_vm14 = vweird.f32 %v6729_v14  ;;  %vm5060_vm4 = vmor %vm5058_vm3, %vm5059_vm15 }
0x22b7   : > { %v5054_v33 = vmul.f32 %v6727_v52, %v5053_v61  ;;  %vm5044_vm8 = vmor %vm5042_vm5, %vm5043_vm14 }
0x22b8   : > { %v5038_v56 = vmul.f32 %v6729_v14, %v5037_v13  ;;  %vm9031_vm5 = vmmov %vm9028_vm0 }
0x22b9   : > { %v5055_v30 = vmul.f32 0.5, %v5054_v33 }
0x22ba   : > { %v5039_v54 = vmul.f32 0.5, %v5038_v56 }
0x22bb   : > { %v5056_v39 = vsub.f32 1.5, %v5055_v30 }
0x22bc   : > { %v5040_v11 = vsub.f32 1.5, %v5039_v54 }
0x22bd   : > { %v5057_v29 = vmul.f32 %v6727_v52, %v5056_v39 }
0x22be   : > { %v5041_v51 = vmul.f32 %v6729_v14, %v5040_v11 }
0x22bf   : > { %v5061_v20 = vsel %vm5060_vm4, %v6727_v52, %v5057_v29 }
0x22c0   : > { %v5045_v50 = vsel %vm5044_vm8, %v6729_v14, %v5041_v51  ;;  %v5062_v17 = vmul.f32 %v5061_v20, %v4997_v25  ;;  %vm9032_vm8 = vcmask 1043456  }
0x22c1   : > { %v5046_v57 = vmul.f32 %v5045_v50, %v4967_v47 }
0x22c2   : > { %5082 = vrot.lane.b32.xlu1 %v5062_v17, %s8980_s7  ;;  %v5076_v1 = vsub.f32 0.0, %v5062_v17  ;;  %v5086_v62 = vmul.f32 %v8519_v53, %v5062_v17 }
0x22c3   : > { %v5063_v35 = vsub.f32 0.0, %v5046_v57  ;;  %v5073_v41 = vmul.f32 %v8519_v53, %v5046_v57 }
0x22c4   : > { %5078 = vrot.lane.b32.xlu0 %v5076_v1, %s9023_s6 }
0x22c5   : > { %5065 = vrot.lane.b32.xlu2 %v5063_v35, %s9023_s6 }
0x22cc   : > { %5069 = vrot.lane.b32.xlu0 %v5046_v57, %s8980_s7 }
0x22ec   : > { %5256 = vadd.xlane.f32.xlu1 %v5255_v21 }
0x22ee   : > { %5240 = vadd.xlane.f32.xlu2 %v5239_v34 }
0x231f   : > { %v5066_v45 = vpop.permute.xlu2 %5065 }
0x2334   : > { %v5083_v24 = vpop.permute.xlu1 %5082 }
0x2336   : > { %v5079_v2 = vpop.permute.xlu0 %5078 }
0x2337   : > { %v5085_v46 = vsel %vm9026_vm11, %v5079_v2, %v5083_v24  ;;  %vm9035_vm11 = vmmov %vm9028_vm0 }
0x2338   : > { %v5087_v15 = vmul.f32 %v8523_v22, %v5085_v46 }
0x233a   : > { %v5088_v5 = vadd.f32 %v5087_v15, %v5086_v62 }
0x233c   : > { %v5090_v26 = vpack.c.bf16 %v5088_v5, %v5088_v5 }
0x233e   : > { %v5070_v28 = vpop.permute.xlu0 %5069  ;;  %v5095_v8 = vsel %vm9027_vm2, %v5090_v26, 0  ;;  %vm9036_vm2 = vmmov %vm9028_vm0 }
0x233f   : > { %v5072_v7 = vsel %vm9028_vm0, %v5066_v45, %v5070_v28  ;;  %5104 = vmatpush.bf16.xpose.msrb.mxu0 %v5095_v8 }
0x2340   : > { %v5074_v63 = vmul.f32 %v8523_v22, %v5072_v7 }
0x2342   : > { %v5075_v9 = vadd.f32 %v5074_v63, %v5073_v41 }
0x2344   : > { %v5089_v10 = vpack.c.bf16 %v5075_v9, %v5075_v9 }
0x2346   : > { %6288 = vmatmul.msk.bf16.vlgmr.msrb.gmra.mxu0 %vm9029_vm6, %v5089_v10 }
0x2347   : > { %5231 = vmatpush.bf16.msra.mxu0 %v6500_v55 }
0x234b   : > { %5232 = vmatpush.bf16.msra.mxu0 %v6499_v32  ;;  %v6494_v32 = vld [vmem:[%s8998_s11 + $0x10] sm:$0xff] }
0x234f   : > { %5393 = vmatpush.bf16.msrb.mxu0 %v6494_v32  ;;  %v6646_v32 = vld [vmem:[%s9009_s3 + $0x1] ss:$0 sm:$0xff] }
0x2356   : > { %6330 = vmatmul.msk.bf16.vlgmr.msra.gmra.mxu0 %vm9030_vm1, %v8608_v43  ;;  %vm9037_vm1 = vmmov %vm9029_vm6 }
0x235f   : > { %v5257_v59 = vpop.xlane.xlu1 %5256 }
0x2360   : > { %v5258_v47 = vadd.f32 1e-06, %v5257_v59 }
0x2361   : > { %v5241_v25 = vpop.xlane.xlu2 %5240 }
0x2362   : > { %6730 = vrsqrt.f32 %v5258_v47  ;;  %v5242_v40 = vadd.f32 1e-06, %v5241_v25  ;;  %vm5265_vm7 = vweird.f32 %v5258_v47 }
0x2364   : > { %6732 = vrsqrt.f32 %v5242_v40  ;;  %vm5249_vm3 = vweird.f32 %v5242_v40 }
0x2368   : > { %v6731_v44 = vpop.eup %6730 }
0x2369   : > { %v5260_v27 = vmul.f32 %v6731_v44, %v5258_v47  ;;  %vm5266_vm12 = vweird.f32 %v6731_v44 }
0x236a   : > { %v6733_v37 = vpop.eup %6732  ;;  %vm5267_vm15 = vmor %vm5265_vm7, %vm5266_vm12 }
0x236b   : > { %v5261_v6 = vmul.f32 %v6731_v44, %v5260_v27  ;;  %v5244_v31 = vmul.f32 %v6733_v37, %v5242_v40  ;;  %vm5250_vm14 = vweird.f32 %v6733_v37  ;;  %vm9039_vm12 = vmmov %vm9028_vm0 }
0x236c   : > { %vm5251_vm4 = vmor %vm5249_vm3, %vm5250_vm14 }
0x236d   : > { %v5262_v12 = vmul.f32 0.5, %v5261_v6  ;;  %v5245_v60 = vmul.f32 %v6733_v37, %v5244_v31  ;;  %vm9040_vm7 = vmmov %vm9028_vm0 }
0x236e   : > { %vm9042_vm14 = vmmov %vm9028_vm0 }
0x236f   : > { %v5263_v58 = vsub.f32 1.5, %v5262_v12  ;;  %v5246_v49 = vmul.f32 0.5, %v5245_v60  ;;  %vm9043_vm3 = vmmov %vm9037_vm1 }
0x2371   : > { %v5264_v48 = vmul.f32 %v6731_v44, %v5263_v58  ;;  %v5247_v23 = vsub.f32 1.5, %v5246_v49 }
0x2373   : > { %v5268_v43 = vsel %vm5267_vm15, %v6731_v44, %v5264_v48  ;;  %v5248_v14 = vmul.f32 %v6733_v37, %v5247_v23  ;;  %v9038_v44 = vld [vmem:[#allocation33_spill] sm:$0xff]  ;;  %vm4253_vm15 = vcmask 0  }
0x2374   : > { %v5269_v38 = vmul.f32 %v5268_v43, %v8623_v0 }
0x2375   : > { %v5252_v61 = vsel %vm5251_vm4, %v6733_v37, %v5248_v14  ;;  %vm9044_vm4 = vcmask 261120  }
0x2376   : > { %5289 = vrot.lane.b32.xlu2 %v5269_v38, %s8980_s7  ;;  %v5283_v52 = vsub.f32 0.0, %v5269_v38  ;;  %v5253_v13 = vmul.f32 %v5252_v61, %v8625_v19  ;;  %v5293_v17 = vmul.f32 %v8519_v53, %v5269_v38 }
0x2378   : > { %5285 = vrot.lane.b32.xlu1 %v5283_v52, %s9023_s6  ;;  %v5270_v46 = vsub.f32 0.0, %v5253_v13  ;;  %v5280_v8 = vmul.f32 %v8519_v53, %v5253_v13  ;;  %v4242_v53 = vsub.f32 %v8473_v18, %v9038_v44 }
0x237a   : > { %v4243_v27 = vand.u32 2147483647, %v4242_v53 }
0x237c   : > { %v4244_v6 = vsel %vm9040_vm7, %v4243_v27, 0.0 }
0x2380   : > { %5276 = vrot.lane.b32.xlu1 %v5253_v13, %s8980_s7  ;;  %v6501_v13 = vld [vmem:[%s8998_s11 + $0x18] sm:$0xff]  ;;  %s1204_s7 = scalar_lea.vmem %s7007_s30, %s9058_s23 }
0x2381   : > { %5371 = vmatpush.bf16.msra.mxu1 %v6501_v13 }
0x23c3   : > { %v5106_v33 = vpop.f32.mrf.mxu0 }
0x23c4   : > { %v5110_v56 = vmul.f32 0.25, %v5106_v33 }
0x23c6   : > { %v5111_v30 = vsel %vm8544_vm13, %v5110_v56, -1e+30 }
0x23c7   : > { %v5112_v0 = vsel %vm9031_vm5, %v5111_v30, -inf  ;;  %vm9045_vm5 = vmmov %vm9028_vm0 }
0x23c8   : > { %5113 = vmax.xlane.f32.xlu0 %v5112_v0 }
0x23cb   : > { %v5108_v54 = vpop.f32.mrf.mxu0 }
0x23d0   : > { %v5290_v20 = vpop.permute.xlu2 %5289 }
0x23d3   : > { %v5234_v39 = vpop.f32.mrf.mxu0 }
0x23d4   : > { %v5331_v11 = vpack.c.bf16 %v5234_v39, %v5234_v39 }
0x23d6   : > { %v5336_v29 = vsel %vm9032_vm8, %v5331_v11, 0 }
0x23d7   : > { %5345 = vmatpush.bf16.msra.mxu3 %v5336_v29 }
0x23db   : > { %v5236_v51 = vpop.f32.mrf.mxu0 }
0x23ea   : > { %v5286_v50 = vpop.permute.xlu1 %5285 }
0x23eb   : > { %v5292_v19 = vsel %vm9033_vm9, %v5286_v50, %v5290_v20 }
0x23ec   : > { %v5294_v57 = vmul.f32 %v8523_v22, %v5292_v19 }
0x23ee   : > { %v5295_v1 = vadd.f32 %v5294_v57, %v5293_v17  ;;  %v4255_v57 = vmul.f32 %v9038_v44, %v9038_v44  ;;  %v6507_v44 = vld [vmem:[%s9010_s5 + $0x28] sm:$0xff] }
0x23f0   : > { %v5297_v35 = vpack.c.bf16 %v5295_v1, %v5295_v1  ;;  %v4256_v1 = vsel %vm9045_vm5, %v4255_v57, 0.0 }
0x23f2   : > { %v5302_v4 = vsel %vm9034_vm10, %v5297_v35, 0  ;;  %v5277_v55 = vpop.permute.xlu1 %5276  ;;  %v6503_v35 = vld [vmem:[%s9005_s1 + $0x18] sm:$0xff] }
0x23f3   : > { %5311 = vmatpush.bf16.xpose.msrb.mxu2 %v5302_v4  ;;  %v6505_v4 = vld [vmem:[%s9006_s2 + $0x18] sm:$0xff] }
0x23f4   : > { %5480 = vmatpush.bf16.msrb.mxu3 %v6505_v4 }
0x243b   : > { %v5114_v3 = vpop.xlane.xlu0 %5113 }
0x243c   : > { %v5115_v21 = vsub.f32 %v5111_v30, %v5114_v3  ;;  %v6502_v3 = vld [vmem:[%s9005_s1 + $0x10] sm:$0xff]  ;;  %s9053_s1 = sld [smem:[#allocation24_spill]] }
0x243e   : > { %v5116_v34 = vmul.f32 1.442695, %v5115_v21 }
0x2440   : > { %6734 = vpow2.f32 %v5116_v34 }
0x2446   : > { %v6735_v24 = vpop.eup %6734 }
0x2447   : > { %v5118_v2 = vsel %vm9035_vm11, %v6735_v24, 0.0  ;;  %vm9046_vm11 = vmmov %vm9044_vm4 }
0x2448   : > { %5119 = vadd.xlane.f32.xlu0 %v5118_v2 }
0x245c   : > { %5272 = vrot.lane.b32.xlu0 %v5270_v46, %s9023_s6  ;;  %s1201_s6 = scalar_lea.vmem %s7002_s4, %s9058_s23  ;;  %s9048_s23 = sld [smem:[#allocation23_spill]] }
0x2462   : > { %v6510_v13 = vld [vmem:[%s9048_s23] sm:$0xff] }
0x24bb   : > { %v5120_v62 = vpop.xlane.xlu0 %5119 }
0x24bc   : > { %6736 = vrcp.f32 %v5120_v62 }
0x24c2   : > { %v6737_v15 = vpop.eup %6736 }
0x24c3   : > { %v5122_v5 = vmul.f32 %v6737_v15, %v6735_v24 }
0x24c5   : > { %v5123_v26 = vpack.c.bf16 %v5122_v5, %v5122_v5 }
0x24c7   : > { %6289 = vmatmul.msk.bf16.vlgmr.msra.gmra.mxu2 %vm9036_vm2, %v5123_v26  ;;  %vm9047_vm2 = vmmov %vm9044_vm4 }
0x24c8   : > { %5450 = vmatpush.bf16.msra.mxu2 %v6503_v35 }
0x24cc   : > { %5451 = vmatpush.bf16.msra.mxu2 %v6502_v3 }
0x24ce   : > { %v5273_v45 = vpop.permute.xlu0 %5272 }
0x24cf   : > { %v5279_v28 = vsel %vm9028_vm0, %v5273_v45, %v5277_v55 }
0x24d0   : > { %v5281_v7 = vmul.f32 %v8523_v22, %v5279_v28 }
0x24d2   : > { %v5282_v41 = vadd.f32 %v5281_v7, %v5280_v8 }
0x24d4   : > { %v5296_v63 = vpack.c.bf16 %v5282_v41, %v5282_v41 }
0x24d7   : > { %6331 = vmatmul.msk.bf16.vlgmr.msrb.gmra.mxu2 %vm9029_vm6, %v5296_v63  ;;  %vm9051_vm6 = vmmov %vm9047_vm2 }
0x254a   : > { %v5140_v9 = vpop.f32.mrf.mxu2 }
0x254b   : > { %v5144_v10 = vpack.c.bf16 %v5140_v9, %v5140_v9 }
0x254d   : > { %6344 = vmatmul.msk.bf16.vlgmr.msrb.gmra.mxu0 %vm9037_vm1, %v5144_v10 }
0x2552   : > { %v5142_v59 = vpop.f32.mrf.mxu2 }
0x255a   : > { %v5313_v47 = vpop.f32.mrf.mxu2 }
0x255b   : > { %v5317_v25 = vmul.f32 0.25, %v5313_v47 }
0x255d   : > { %v5318_v40 = vsel %vm8544_vm13, %v5317_v25, -1e+30  ;;  %vm9041_vm13 = vmmov %vm9028_vm0  ;;  %v6509_v25 = vld [vmem:[%s9010_s5 + $0x38] sm:$0xff]  ;;  %vm9050_vm0 = vcmask 523264  }
0x255e   : > { %v5319_v22 = vsel %vm9039_vm12, %v5318_v40, -inf  ;;  %5535 = vmatpush.bf16.msrb.mxu1 %v6509_v25 }
0x255f   : > { %5320 = vmax.xlane.f32.xlu0 %v5319_v22 }
0x2562   : > { %v5315_v37 = vpop.f32.mrf.mxu2 }
0x2567   : > { %4245 = vadd.xlane.f32.xlu0 %v4244_v6  ;;  %v6506_v6 = vld [vmem:[%s9010_s5 + $0x20] sm:$0xff] }
0x25ca   : > { %v5395_v31 = vpop.f32.mrf.mxu0 }
0x25d2   : > { %v5397_v12 = vpop.f32.mrf.mxu0  ;;  %v5321_v60 = vpop.xlane.xlu0 %5320 }
0x25d3   : > { %v5322_v58 = vsub.f32 %v5318_v40, %v5321_v60  ;;  %v6508_v40 = vld [vmem:[%s9010_s5 + $0x30] sm:$0xff] }
0x25d4   : > { %5536 = vmatpush.bf16.msrb.mxu1 %v6508_v40 }
0x25d5   : > { %v5323_v36 = vmul.f32 1.442695, %v5322_v58 }
0x25d7   : > { %6738 = vpow2.f32 %v5323_v36 }
0x25d8   : > { %5537 = vmatpush.bf16.msrb.mxu1 %v6507_v44 }
0x25da   : > { %v4246_v49 = vpop.xlane.xlu0 %4245 }
0x25db   : > { %v4247_v48 = vrot.slane %v4246_v49, 4 }
0x25dc   : > { %5538 = vmatpush.bf16.msrb.mxu1 %v6506_v6 }
0x25dd   : > { %v6739_v18 = vpop.eup %6738  ;;  %v4248_v43 = vadd.f32 %v4247_v48, %v4246_v49 }
0x25de   : > { %v5325_v23 = vsel %vm9041_vm13, %v6739_v18, 0.0  ;;  %vm9054_vm13 = vmmov %vm9047_vm2 }
0x25df   : > { %v4249_v38 = vrot.slane %v4248_v43, 2  ;;  %5326 = vadd.xlane.f32.xlu2 %v5325_v23 }
0x25e1   : > { %v4250_v52 = vadd.f32 %v4249_v38, %v4248_v43 }
0x25e3   : > { %v4251_v14 = vrot.slane %v4250_v52, 1 }
0x25e5   : > { %v4252_v61 = vadd.f32 %v4251_v14, %v4250_v52 }
0x25e7   : > { %4254 = vst.msk [vmem:[%s1201_s6] sm:$0x1] %vm4253_vm15, %v4252_v61  ;;  %s9049_s6 = sld [smem:[#allocation25_spill]]  ;;  %v6511_v61 = vld [vmem:[%s9048_s23 + $0x8] sm:$0xff] }
0x25e8   : > { %5596 = vmatpush.bf16.msra.mxu0 %v6511_v61 }
0x25ec   : > { %5597 = vmatpush.bf16.msra.mxu0 %v6510_v13 }
0x2652   : > { %v5327_v33 = vpop.xlane.xlu2 %5326 }
0x2653   : > { %6740 = vrcp.f32 %v5327_v33  ;;  %v6512_v33 = vld [vmem:[%s9049_s6] sm:$0xff]  ;;  %s1194_s6 = scalar_lea.vmem %s6992_s12, %s7022_s0 }
0x2654   : > { %5622 = vmatpush.bf16.msrb.mxu2 %v6512_v33 }
0x2659   : > { %v6741_v56 = vpop.eup %6740 }
0x265a   : > { %v5329_v30 = vmul.f32 %v6741_v56, %v6739_v18 }
0x265c   : > { %v5330_v0 = vpack.c.bf16 %v5329_v30, %v5329_v30 }
0x265e   : > { %6332 = vmatmul.msk.bf16.vlgmr.msra.gmra.mxu3 %vm9042_vm14, %v5330_v0  ;;  %vm9056_vm14 = vmmov %vm9047_vm2 }
0x26e1   : > { %v5347_v54 = vpop.f32.mrf.mxu3 }
0x26e2   : > { %v5351_v39 = vpack.c.bf16 %v5347_v54, %v5347_v54 }
0x26e4   : > { %6339 = vmatmul.msk.bf16.vlgmr.msra.gmra.mxu1 %vm9043_vm3, %v5351_v39 }
0x26e9   : > { %v5349_v11 = vpop.f32.mrf.mxu3 }
0x2761   : > { %v5373_v29 = vpop.f32.mrf.mxu1 }
0x2762   : > { %v5396_v51 = vadd.f32 %v5395_v31, %v5373_v29 }
0x2764   : > { %v8685_v20 = vadd.f32 %v5396_v51, %v8590_v42  ;;  %v6504_v42 = vld [vmem:[%s9006_s2 + $0x10] sm:$0xff] }
0x2765   : > { %5481 = vmatpush.bf16.msrb.mxu3 %v6504_v42 }
0x2766   : > { %v5402_v50 = vmul.f32 %v8685_v20, %v8685_v20 }
0x2768   : > { %v5403_v19 = vsel %vm9044_vm4, %v5402_v50, 0.0 }
0x2769   : > { %5404 = vadd.xlane.f32.xlu1 %v5403_v19  ;;  %v5375_v17 = vpop.f32.mrf.mxu1 }
0x2771   : > { %4257 = vadd.xlane.f32.xlu1 %v4256_v1  ;;  %v5572_v1 = vld [vmem:[%s9053_s1] sm:$0x1] }
0x2772   : > { %v5573_v35 = vunpack.c.l.bf16 %v5572_v1 }
0x2774   : > { %v5574_v4 = vperm.slane %v5573_v35, 0 }
0x27dc   : > { %v5405_v21 = vpop.xlane.xlu1 %5404 }
0x27dd   : > { %v5406_v34 = vmul.f32 %v5405_v21, %v8971_v16 }
0x27df   : > { %v5407_v24 = vadd.f32 1e-06, %v5406_v34 }
0x27e1   : > { %6742 = vrsqrt.f32 %v5407_v24  ;;  %vm5414_vm9 = vweird.f32 %v5407_v24 }
0x27e4   : > { %v4258_v2 = vpop.xlane.xlu1 %4257 }
0x27e5   : > { %v4259_v46 = vrot.slane %v4258_v2, 4 }
0x27e7   : > { %v6743_v62 = vpop.eup %6742  ;;  %v4260_v15 = vadd.f32 %v4259_v46, %v4258_v2 }
0x27e8   : > { %v5409_v5 = vmul.f32 %v6743_v62, %v5407_v24  ;;  %vm5415_vm8 = vweird.f32 %v6743_v62 }
0x27e9   : > { %v4261_v26 = vrot.slane %v4260_v15, 2  ;;  %vm5416_vm10 = vmor %vm5414_vm9, %vm5415_vm8 }
0x27ea   : > { %v5410_v55 = vmul.f32 %v6743_v62, %v5409_v5 }
0x27eb   : > { %v4262_v45 = vadd.f32 %v4261_v26, %v4260_v15 }
0x27ec   : > { %v5411_v28 = vmul.f32 0.5, %v5410_v55 }
0x27ed   : > { %v4263_v8 = vrot.slane %v4262_v45, 1 }
0x27ee   : > { %v5412_v7 = vsub.f32 1.5, %v5411_v28 }
0x27ef   : > { %v4264_v41 = vadd.f32 %v4263_v8, %v4262_v45 }
0x27f0   : > { %v5413_v63 = vmul.f32 %v6743_v62, %v5412_v7 }
0x27f1   : > { %4265 = vst.msk [vmem:[%s1204_s7] sm:$0x1] %vm4253_vm15, %v4264_v41  ;;  %s9052_s7 = sld [smem:[#allocation22_spill]]  ;;  %vm9055_vm15 = vmmov %vm9043_vm3 }
0x27f2   : > { %v5417_v9 = vsel %vm5416_vm10, %v6743_v62, %v5413_v63 }
0x27f3   : > { %v5418_v10 = vmul.f32 %v5417_v9, %v8685_v20 }
0x27f5   : > { %v5422_v59 = vmul.f32 %v6646_v32, %v5418_v10 }
0x27f7   : > { %v5423_v47 = vpack.c.bf16 %v5422_v59, %v5422_v59  ;;  %v6647_v50 = vld [vmem:[%s9052_s7] ss:$0 sm:$0xff] }
0x27f9   : > { %6358 = vmatmul.msk.bf16.vlgmr.msra.gmra.mxu2 %vm9046_vm11, %v5423_v47  ;;  %6371 = vmatmul.msk.bf16.vlgmr.msrb.gmra.mxu3 %vm9047_vm2, %v5423_v47 }
0x287c   : > { %v5453_v53 = vpop.f32.mrf.mxu2  ;;  %v5483_v22 = vpop.f32.mrf.mxu3 }
0x287d   : > { %v5487_v27 = vsub.f32 0.0, %v5453_v53 }
0x287f   : > { %v5488_v37 = vmul.f32 1.442695, %v5487_v27 }
0x2881   : > { %6744 = vpow2.f32 %v5488_v37 }
0x2884   : > { %v5455_v31 = vpop.f32.mrf.mxu2  ;;  %v5485_v12 = vpop.f32.mrf.mxu3 }
0x2887   : > { %v6745_v60 = vpop.eup %6744 }
0x2888   : > { %v5490_v58 = vadd.f32 1.0, %v6745_v60 }
0x288a   : > { %6746 = vrcp.f32 %v5490_v58 }
0x2890   : > { %v6747_v36 = vpop.eup %6746 }
0x2891   : > { %v5492_v49 = vmul.f32 %v6747_v36, %v5453_v53 }
0x2893   : > { %v5493_v48 = vmul.f32 %v5492_v49, %v5483_v22 }
0x2895   : > { %v5494_v18 = vpack.c.bf16 %v5493_v48, %v5493_v48 }
0x2897   : > { %6396 = vmatmul.msk.bf16.vlgmr.msrb.gmra.mxu1 %vm9050_vm0, %v5494_v18 }
0x2914   : > { %v5540_v43 = vpop.f32.mrf.mxu1 }
0x2915   : > { %v5544_v23 = vadd.f32 %v5540_v43, %v8685_v20 }
0x2917   : > { %v5546_v38 = vmul.f32 %v5544_v23, %v5544_v23 }
0x2919   : > { %v5547_v52 = vsel %vm9051_vm6, %v5546_v38, 0.0 }
0x291a   : > { %5548 = vadd.xlane.f32.xlu2 %v5547_v52 }
0x291c   : > { %v5542_v14 = vpop.f32.mrf.mxu1 }
0x298d   : > { %v5549_v56 = vpop.xlane.xlu2 %5548 }
0x298e   : > { %v5550_v30 = vmul.f32 %v5549_v56, %v8971_v16 }
0x2990   : > { %v5551_v0 = vadd.f32 1e-06, %v5550_v30 }
0x2992   : > { %6748 = vrsqrt.f32 %v5551_v0  ;;  %vm5558_vm12 = vweird.f32 %v5551_v0 }
0x2998   : > { %v6749_v54 = vpop.eup %6748 }
0x2999   : > { %v5553_v39 = vmul.f32 %v6749_v54, %v5551_v0  ;;  %vm5559_vm1 = vweird.f32 %v6749_v54 }
0x299a   : > { %vm5560_vm7 = vmor %vm5558_vm12, %vm5559_vm1 }
0x299b   : > { %v5554_v11 = vmul.f32 %v6749_v54, %v5553_v39 }
0x299d   : > { %v5555_v29 = vmul.f32 0.5, %v5554_v11 }
0x299f   : > { %v5556_v51 = vsub.f32 1.5, %v5555_v29 }
0x29a1   : > { %v5557_v20 = vmul.f32 %v6749_v54, %v5556_v51 }
0x29a3   : > { %v5561_v19 = vsel %vm5560_vm7, %v6749_v54, %v5557_v20 }
0x29a4   : > { %v5562_v17 = vmul.f32 %v5561_v19, %v5544_v23 }
0x29a6   : > { %v5566_v57 = vmul.f32 %v6647_v50, %v5562_v17 }
0x29a8   : > { %v5567_v16 = vpack.c.bf16 %v5566_v57, %v5566_v57 }
0x29aa   : > { %6405 = vmatmul.msk.bf16.vlgmr.msra.gmra.mxu0 %vm9054_vm13, %v5567_v16 }
0x2a27   : > { %v5599_v3 = vpop.f32.mrf.mxu0 }
0x2a28   : > { %v5600_v42 = vadd.f32 %v5599_v3, %v5574_v4 }
0x2a2a   : > { %v5603_v21 = vpack.c.bf16 %v5600_v42, %v5600_v42 }
0x2a2c   : > { %6410 = vmatmul.msk.bf16.vlgmr.msrb.gmra.mxu2 %vm9055_vm15, %v5603_v21 }
0x2a2f   : > { %v5601_v34 = vpop.f32.mrf.mxu0 }
0x2aaf   : > { %v5624_v24 = vpop.f32.mrf.mxu2 }
0x2ab0   : > { %5628 = vst.msk [vmem:[%s1194_s6] sm:$0xff] %vm9056_vm14, %v5624_v24 }
0x2ab7   : > { %v5626_v2 = vpop.f32.mrf.mxu2 }
0x2ab8 PF: > { %s90_s22 = sadd.s32 1, %s6758_s22  }
0x2ab9   : > { %p87_p4 = scmp.ge.s32.totalorder %s90_s22, 4  }
0x2abb   :  { %89 = sbr.rel (!%p87_p4) target bundleno = 69 (0x45), region = 303 }

</bundles_post_ra>
